<compile_context>
chip_gen: v7x
topology: tpu7x:2x2x1
jax: 0.10.0
libtpu: 0.0.40
codegen_flags: <defaults>
</compile_context>

<pallas_src>
import jax
import jax.numpy as jnp
from jax.experimental import pallas as pl
from jax.experimental.pallas import tpu as pltpu

BN_EPS = 1e-5


def gnn_kernel(x_ref, ea_ref, gsrc_ref, gdst_ref, wbig_ref, small_ref,
               energy_ref, force_ref):
    GB, N, Fin = x_ref.shape
    E = ea_ref.shape[1]
    H = wbig_ref.shape[1]
    f32 = jnp.float32

    # Flatten per-graph tensors for the shared dense matmuls.
    x = x_ref[...].reshape(GB * N, Fin)                  # (GB*N, Fin)
    ea = ea_ref[...].reshape(GB * E, 1)                  # (GB*E, 1)
    # One-hot gather/scatter matrices; up-cast bf16 -> f32 once.
    gsrc = gsrc_ref[...].astype(f32)                     # (GB, E, N)
    gdst = gdst_ref[...].astype(f32)                     # (GB, E, N)

    def W(k):                                            # (H, H) slab slice (static view)
        return wbig_ref[k * H:(k + 1) * H, :]

    def row(i):                                          # (1, H) bias / scale row
        return small_ref[i:i + 1, :]

    def relu(v):
        return jnp.maximum(v, 0.0)

    def edge_conv(xin, nw1, nb1, nw2, nb2, ewi, ewj, ewe, eb1, ew2, eb2):
        # node_mlp: Linear -> ReLU -> Linear
        h = relu(jnp.dot(xin, nw1, preferred_element_type=f32) + nb1)
        xn = jnp.dot(h, nw2, preferred_element_type=f32) + nb2          # (GB*N, H)
        xn_g = xn.reshape(GB, N, H)
        # gather endpoint features (batched one-hot matmuls, per graph)
        x_i = jnp.einsum('gen,gnh->geh', gdst, xn_g,
                         preferred_element_type=f32).reshape(GB * E, H)  # x[dst]
        x_j = jnp.einsum('gen,gnh->geh', gsrc, xn_g,
                         preferred_element_type=f32).reshape(GB * E, H)  # x[src]
        # edge_mlp on cat([x_i, x_j, edge_attr]); first-layer weight pre-split
        m = relu(jnp.dot(x_i, ewi, preferred_element_type=f32)
                 + jnp.dot(x_j, ewj, preferred_element_type=f32)
                 + ea * ewe + eb1)
        m = jnp.dot(m, ew2, preferred_element_type=f32) + eb2           # (GB*E, H)
        # scatter-add onto destination nodes: gdst^T . m (contract E axis)
        aggr = jnp.einsum('gen,geh->gnh', gdst, m.reshape(GB, E, H),
                          preferred_element_type=f32)
        # update(): aggr_out + node_mlp(x)
        return aggr.reshape(GB * N, H) + xn

    # conv1 -> folded BN1 -> ReLU   (dropout is identity in eval mode)
    nw1_c1 = wbig_ref[12 * H:12 * H + Fin, :]
    h1 = edge_conv(x, nw1_c1, row(0), W(0), row(1),
                   W(1), W(2), row(2), row(3), W(3), row(4))
    x1 = relu(h1 * row(5) + row(6))

    # conv2 -> folded BN2 -> ReLU -> residual
    h2 = edge_conv(x1, W(4), row(7), W(5), row(8),
                   W(6), W(7), row(9), row(10), W(8), row(11))
    x2 = relu(h2 * row(12) + row(13)) + x1

    shared = relu(jnp.dot(x2, W(9), preferred_element_type=f32) + row(14))

    # global_mean_pool per graph -> energy head (VPU reduction, out_dim=1)
    pooled = jnp.mean(shared.reshape(GB, N, H), axis=1)                  # (GB, H)
    energy_ref[...] = (jnp.sum(pooled * row(17), axis=-1, keepdims=True)
                       + small_ref[18:19, 0:1])                          # (GB, 1)

    # force head: Linear -> ReLU -> Linear (lane-dense padded output)
    fh = relu(jnp.dot(shared, W(10), preferred_element_type=f32) + row(15))
    force = jnp.dot(fh, W(11), preferred_element_type=f32) + row(16)     # (GB*N, H)
    force_ref[...] = force.reshape(GB, N, H)


def gnn_forward(x, edge_index, edge_attr, params, graph_block=16):
    """x: (G, N, Fin) f32; edge_index: (G, 2, E) int32; edge_attr: (G, E, 1) f32."""
    G, N, Fin = x.shape
    E = edge_index.shape[-1]
    H = params["wsh"].shape[0]
    assert params["wen"].shape[1] == 1, "energy head packed for output_dim == 1"

    # One-hot gather/scatter matrices; bf16 is exact for {0,1}.
    src = edge_index[:, 0, :]
    dst = edge_index[:, 1, :]
    nodes = jnp.arange(N, dtype=edge_index.dtype)
    gsrc = (src[:, :, None] == nodes[None, None, :]).astype(jnp.bfloat16)  # (G,E,N)
    gdst = (dst[:, :, None] == nodes[None, None, :]).astype(jnp.bfloat16)  # (G,E,N)

    # Fold eval-mode BatchNorm into (scale, shift).
    def fold_bn(bn):
        scale = bn["gamma"] * jax.lax.rsqrt(bn["var"] + BN_EPS)
        shift = bn["beta"] - bn["mean"] * scale
        return jnp.stack([scale, shift], axis=0)                         # (2, H)

    def row(v):
        v = v.reshape(1, -1)
        return jnp.pad(v, ((0, 0), (0, H - v.shape[1])))

    c1, c2 = params["conv1"], params["conv2"]
    wf2_pad = jnp.pad(params["wf2"], ((0, 0), (0, H - params["wf2"].shape[1])))

    # Packed weight slabs (constant index_map -> resident in VMEM).
    wbig = jnp.concatenate([
        c1["nw2"], c1["ewi"], c1["ewj"], c1["ew2"],
        c2["nw1"], c2["nw2"], c2["ewi"], c2["ewj"], c2["ew2"],
        params["wsh"], params["wf1"], wf2_pad,
        c1["nw1"],
    ], axis=0)                                                            # (12*H+Fin, H)

    wsmall = jnp.concatenate([
        row(c1["nb1"]), row(c1["nb2"]), row(c1["ewe"]), row(c1["eb1"]), row(c1["eb2"]),
        fold_bn(params["bn1"]),
        row(c2["nb1"]), row(c2["nb2"]), row(c2["ewe"]), row(c2["eb1"]), row(c2["eb2"]),
        fold_bn(params["bn2"]),
        row(params["bsh"]), row(params["bf1"]), row(params["bf2"]),
        row(params["wen"].T), row(params["ben"]),
    ], axis=0)                                                            # (19, H)

    # Graph batching: GB graphs per grid step (pad G to a multiple of GB).
    GB = min(graph_block, G)
    G_pad = pl.cdiv(G, GB) * GB
    xp, eap, gsrcp, gdstp = x, edge_attr, gsrc, gdst
    if G_pad != G:
        pad = G_pad - G
        xp = jnp.pad(xp, ((0, pad), (0, 0), (0, 0)))
        eap = jnp.pad(eap, ((0, pad), (0, 0), (0, 0)))
        gsrcp = jnp.pad(gsrcp, ((0, pad), (0, 0), (0, 0)))
        gdstp = jnp.pad(gdstp, ((0, pad), (0, 0), (0, 0)))

    energy, force = pl.pallas_call(
        gnn_kernel,
        grid=(G_pad // GB,),
        in_specs=[
            pl.BlockSpec((GB, N, Fin), lambda g: (g, 0, 0)),
            pl.BlockSpec((GB, E, 1), lambda g: (g, 0, 0)),
            pl.BlockSpec((GB, E, N), lambda g: (g, 0, 0)),
            pl.BlockSpec((GB, E, N), lambda g: (g, 0, 0)),
            pl.BlockSpec(wbig.shape, lambda g: (0, 0)),
            pl.BlockSpec(wsmall.shape, lambda g: (0, 0)),
        ],
        out_specs=(
            pl.BlockSpec((GB, 1), lambda g: (g, 0)),
            pl.BlockSpec((GB, N, H), lambda g: (g, 0, 0)),
        ),
        out_shape=(
            jax.ShapeDtypeStruct((G_pad, 1), jnp.float32),
            jax.ShapeDtypeStruct((G_pad, N, H), jnp.float32),
        ),
        compiler_params=pltpu.CompilerParams(
            dimension_semantics=("parallel",),
            vmem_limit_bytes=48 * 1024 * 1024,
        ),
    )(xp, eap, gsrcp, gdstp, wbig, wsmall)

    pos = x[:, :, 1:4]                                  # positions, as in forward()
    return energy[:G], force[:G, :, :3], pos


def init_params(key, input_dim, hidden_dim, output_dim=1):
    ks = iter(jax.random.split(key, 48))

    def lin(fan_in, fan_out, scale=0.1):
        w = jax.random.normal(next(ks), (fan_in, fan_out), jnp.float32) * scale
        b = jax.random.normal(next(ks), (1, fan_out), jnp.float32) * 0.01
        return w, b

    def edge_conv_params(in_dim, out_dim):
        nw1, nb1 = lin(in_dim, out_dim)
        nw2, nb2 = lin(out_dim, out_dim)
        ew1, eb1 = lin(2 * out_dim + 1, out_dim)   # edge_mlp first Linear (split below)
        ew2, eb2 = lin(out_dim, out_dim)
        return {
            "nw1": nw1, "nb1": nb1, "nw2": nw2, "nb2": nb2,
            "ewi": ew1[:out_dim], "ewj": ew1[out_dim:2 * out_dim],
            "ewe": ew1[2 * out_dim:], "eb1": eb1,
            "ew2": ew2, "eb2": eb2,
        }

    def bn_params(dim):
        return {
            "gamma": jax.random.uniform(next(ks), (dim,), jnp.float32, 0.5, 1.5),
            "beta": jax.random.normal(next(ks), (dim,), jnp.float32) * 0.05,
            "mean": jax.random.normal(next(ks), (dim,), jnp.float32) * 0.1,
            "var": jax.random.uniform(next(ks), (dim,), jnp.float32, 0.5, 1.5),
        }

    wsh, bsh = lin(hidden_dim, hidden_dim)
    wen, ben = lin(hidden_dim, output_dim)
    wf1, bf1 = lin(hidden_dim, hidden_dim)
    wf2, bf2 = lin(hidden_dim, 3)
    return {
        "conv1": edge_conv_params(input_dim, hidden_dim),
        "conv2": edge_conv_params(hidden_dim, hidden_dim),
        "bn1": bn_params(hidden_dim),
        "bn2": bn_params(hidden_dim),
        "wsh": wsh, "bsh": bsh,
        "wen": wen, "ben": ben,
        "wf1": wf1, "bf1": bf1, "wf2": wf2, "bf2": bf2,
    }


def gnn_forward_ref(x, edge_index, edge_attr, params):
    """Pure-JAX reference (gather/segment-sum + raw BN formula)."""
    def single(xg, eig, eag):
        src, dst = eig[0], eig[1]
        n = xg.shape[0]

        def conv(xin, p):
            h = jnp.maximum(xin @ p["nw1"] + p["nb1"], 0.0)
            xn = h @ p["nw2"] + p["nb2"]
            x_i, x_j = xn[dst], xn[src]
            m = jnp.maximum(
                x_i @ p["ewi"] + x_j @ p["ewj"] + eag @ p["ewe"] + p["eb1"], 0.0)
            m = m @ p["ew2"] + p["eb2"]
            aggr = jnp.zeros((n, xn.shape[1]), jnp.float32).at[dst].add(m)
            return aggr + xn

        def bn(h, p):
            return (h - p["mean"]) * jax.lax.rsqrt(p["var"] + BN_EPS) * p["gamma"] + p["beta"]

        x1 = jnp.maximum(bn(conv(xg, params["conv1"]), params["bn1"]), 0.0)
        x2 = jnp.maximum(bn(conv(x1, params["conv2"]), params["bn2"]), 0.0) + x1
        shared = jnp.maximum(x2 @ params["wsh"] + params["bsh"], 0.0)
        pooled = jnp.mean(shared, axis=0, keepdims=True)
        energy = pooled @ params["wen"] + params["ben"]
        fh = jnp.maximum(shared @ params["wf1"] + params["bf1"], 0.0)
        force = fh @ params["wf2"] + params["bf2"]
        return energy[0], force

    return jax.vmap(single)(x, edge_index, edge_attr)


if __name__ == "__main__":
    INPUT_DIM, HIDDEN_DIM, OUTPUT_DIM = 8, 128, 1   # hidden_dim = module default (lane-dense)
    G, N = 32, 16                                   # 32 small graphs, 16 nodes each
    E = 2 * N                                       # bidirectional ring
    GB = 16                                         # graphs per grid step -> grid=(2,)

    key = jax.random.PRNGKey(0)
    kx, ke, kp = jax.random.split(key, 3)

    # Node features: [scalar, pos_x, pos_y, pos_z, extra...]
    x = jax.random.normal(kx, (G, N, INPUT_DIM), jnp.float32)

    # Bidirectional ring graph (same topology per graph, different features).
    i = jnp.arange(N, dtype=jnp.int32)
    j = (i + 1) % N
    src = jnp.concatenate([i, j])
    dst = jnp.concatenate([j, i])
    edge_index = jnp.broadcast_to(jnp.stack([src, dst], 0)[None], (G, 2, E))
    edge_attr = jax.random.uniform(ke, (G, E, 1), jnp.float32)

    params = init_params(kp, INPUT_DIM, HIDDEN_DIM, OUTPUT_DIM)

    energy, force, pos = gnn_forward(x, edge_index, edge_attr, params, graph_block=GB)
    energy, force = jax.block_until_ready((energy, force))

    e_ref, f_ref = gnn_forward_ref(x, edge_index, edge_attr, params)
    assert energy.shape == (G, OUTPUT_DIM)
    assert force.shape == (G, N, 3)
    assert pos.shape == (G, N, 3)
    assert jnp.allclose(energy, e_ref, atol=1e-3, rtol=1e-3), (energy, e_ref)
    assert jnp.allclose(force, f_ref, atol=1e-3, rtol=1e-3)

    print("KERNEL_OK")
</pallas_src>

<mosaic_0001>
module attributes {stable_mosaic.version = 11 : i64} {
  func.func @gnn_kernel(%arg0: i32, %arg1: memref<16x16x8xf32, #tpu.memory_space<vmem>>, %arg2: memref<16x32x1xf32, #tpu.memory_space<vmem>>, %arg3: memref<16x32x16xbf16, #tpu.memory_space<vmem>>, %arg4: memref<16x32x16xbf16, #tpu.memory_space<vmem>>, %arg5: memref<1544x128xf32, #tpu.memory_space<vmem>>, %arg6: memref<19x128xf32, #tpu.memory_space<vmem>>, %arg7: memref<16x1xf32, #tpu.memory_space<vmem>>, %arg8: memref<16x16x128xf32, #tpu.memory_space<vmem>>) attributes {dimension_semantics = [#tpu.dimension_semantics<parallel>], iteration_bounds = array<i64: 2>, scalar_prefetch = 0 : i64, scratch_operands = 0 : i64, tpu.core_type = #tpu.core_type<tc>, window_params = [{transform_indices = @transform_0, window_bounds = array<i64: 16, 16, 8>}, {transform_indices = @transform_1, window_bounds = array<i64: 16, 32, 1>}, {transform_indices = @transform_2, window_bounds = array<i64: 16, 32, 16>}, {transform_indices = @transform_3, window_bounds = array<i64: 16, 32, 16>}, {pipeline_mode = #tpu.pipeline_mode<synchronous>, transform_indices = @transform_4, window_bounds = array<i64: 1544, 128>}, {pipeline_mode = #tpu.pipeline_mode<synchronous>, transform_indices = @transform_5, window_bounds = array<i64: 19, 128>}, {transform_indices = @transform_6, window_bounds = array<i64: 16, 1>}, {transform_indices = @transform_7, window_bounds = array<i64: 16, 16, 128>}]} {
    %c0 = arith.constant 0 : index
    %c0_0 = arith.constant 0 : index
    %c0_1 = arith.constant 0 : index
    %0 = vector.load %arg1[%c0, %c0_0, %c0_1] : memref<16x16x8xf32, #tpu.memory_space<vmem>>, vector<16x16x8xf32>
    %1 = vector.shape_cast %0 : vector<16x16x8xf32> to vector<256x8xf32>
    %c0_2 = arith.constant 0 : index
    %c0_3 = arith.constant 0 : index
    %c0_4 = arith.constant 0 : index
    %2 = vector.load %arg2[%c0_2, %c0_3, %c0_4] : memref<16x32x1xf32, #tpu.memory_space<vmem>>, vector<16x32x1xf32>
    %3 = vector.shape_cast %2 : vector<16x32x1xf32> to vector<512x1xf32>
    %c0_5 = arith.constant 0 : index
    %c0_6 = arith.constant 0 : index
    %c0_7 = arith.constant 0 : index
    %4 = vector.load %arg3[%c0_5, %c0_6, %c0_7] : memref<16x32x16xbf16, #tpu.memory_space<vmem>>, vector<16x32x16xbf16>
    %5 = arith.extf %4 : vector<16x32x16xbf16> to vector<16x32x16xf32>
    %c0_8 = arith.constant 0 : index
    %c0_9 = arith.constant 0 : index
    %c0_10 = arith.constant 0 : index
    %6 = vector.load %arg4[%c0_8, %c0_9, %c0_10] : memref<16x32x16xbf16, #tpu.memory_space<vmem>>, vector<16x32x16xbf16>
    %7 = arith.extf %6 : vector<16x32x16xbf16> to vector<16x32x16xf32>
    %c1536 = arith.constant 1536 : index
    %c0_11 = arith.constant 0 : index
    %8 = vector.load %arg5[%c1536, %c0_11] : memref<1544x128xf32, #tpu.memory_space<vmem>>, vector<8x128xf32>
    %c0_12 = arith.constant 0 : index
    %c0_13 = arith.constant 0 : index
    %9 = vector.load %arg6[%c0_12, %c0_13] : memref<19x128xf32, #tpu.memory_space<vmem>>, vector<1x128xf32>
    %c0_14 = arith.constant 0 : index
    %c0_15 = arith.constant 0 : index
    %10 = vector.load %arg5[%c0_14, %c0_15] : memref<1544x128xf32, #tpu.memory_space<vmem>>, vector<128x128xf32>
    %c1 = arith.constant 1 : index
    %c0_16 = arith.constant 0 : index
    %11 = vector.load %arg6[%c1, %c0_16] : memref<19x128xf32, #tpu.memory_space<vmem>>, vector<1x128xf32>
    %c128 = arith.constant 128 : index
    %c0_17 = arith.constant 0 : index
    %12 = vector.load %arg5[%c128, %c0_17] : memref<1544x128xf32, #tpu.memory_space<vmem>>, vector<128x128xf32>
    %c256 = arith.constant 256 : index
    %c0_18 = arith.constant 0 : index
    %13 = vector.load %arg5[%c256, %c0_18] : memref<1544x128xf32, #tpu.memory_space<vmem>>, vector<128x128xf32>
    %c2 = arith.constant 2 : index
    %c0_19 = arith.constant 0 : index
    %14 = vector.load %arg6[%c2, %c0_19] : memref<19x128xf32, #tpu.memory_space<vmem>>, vector<1x128xf32>
    %c3 = arith.constant 3 : index
    %c0_20 = arith.constant 0 : index
    %15 = vector.load %arg6[%c3, %c0_20] : memref<19x128xf32, #tpu.memory_space<vmem>>, vector<1x128xf32>
    %c384 = arith.constant 384 : index
    %c0_21 = arith.constant 0 : index
    %16 = vector.load %arg5[%c384, %c0_21] : memref<1544x128xf32, #tpu.memory_space<vmem>>, vector<128x128xf32>
    %c4 = arith.constant 4 : index
    %c0_22 = arith.constant 0 : index
    %17 = vector.load %arg6[%c4, %c0_22] : memref<19x128xf32, #tpu.memory_space<vmem>>, vector<1x128xf32>
    %cst = arith.constant dense<0.000000e+00> : vector<256x128xf32>
    %18 = tpu.matmul %1, %8, %cst {dimension_numbers = #tpu.dot_dimension_numbers<[1], [0], [0], [1], [0, 0, 1, 1], [], []>} : vector<256x8xf32>, vector<8x128xf32>, vector<256x128xf32> -> vector<256x128xf32>
    %19 = vector.broadcast %9 : vector<1x128xf32> to vector<256x128xf32>
    %20 = arith.addf %18, %19 : vector<256x128xf32>
    %cst_23 = arith.constant 0.000000e+00 : f32
    %21 = vector.broadcast %cst_23 : f32 to vector<256x128xf32>
    %22 = arith.maximumf %20, %21 : vector<256x128xf32>
    %cst_24 = arith.constant dense<0.000000e+00> : vector<256x128xf32>
    %23 = tpu.matmul %22, %10, %cst_24 {dimension_numbers = #tpu.dot_dimension_numbers<[1], [0], [0], [1], [0, 0, 1, 1], [], []>} : vector<256x128xf32>, vector<128x128xf32>, vector<256x128xf32> -> vector<256x128xf32>
    %24 = vector.broadcast %11 : vector<1x128xf32> to vector<256x128xf32>
    %25 = arith.addf %23, %24 : vector<256x128xf32>
    %26 = vector.shape_cast %25 : vector<256x128xf32> to vector<16x16x128xf32>
    "tpu.trace_start"() <{level = 10 : i32, message = "gen,gnh->geh"}> : () -> ()
    %cst_25 = arith.constant dense<0.000000e+00> : vector<16x32x128xf32>
    %27 = tpu.matmul %7, %26, %cst_25 {dimension_numbers = #tpu.dot_dimension_numbers<[2], [1], [1], [2], [0, 0, 0, 1, 1, 2], [0], [0]>} : vector<16x32x16xf32>, vector<16x16x128xf32>, vector<16x32x128xf32> -> vector<16x32x128xf32>
    "tpu.trace_stop"() : () -> ()
    %28 = vector.shape_cast %27 : vector<16x32x128xf32> to vector<512x128xf32>
    "tpu.trace_start"() <{level = 10 : i32, message = "gen,gnh->geh"}> : () -> ()
    %cst_26 = arith.constant dense<0.000000e+00> : vector<16x32x128xf32>
    %29 = tpu.matmul %5, %26, %cst_26 {dimension_numbers = #tpu.dot_dimension_numbers<[2], [1], [1], [2], [0, 0, 0, 1, 1, 2], [0], [0]>} : vector<16x32x16xf32>, vector<16x16x128xf32>, vector<16x32x128xf32> -> vector<16x32x128xf32>
    "tpu.trace_stop"() : () -> ()
    %30 = vector.shape_cast %29 : vector<16x32x128xf32> to vector<512x128xf32>
    %cst_27 = arith.constant dense<0.000000e+00> : vector<512x128xf32>
    %31 = tpu.matmul %28, %12, %cst_27 {dimension_numbers = #tpu.dot_dimension_numbers<[1], [0], [0], [1], [0, 0, 1, 1], [], []>} : vector<512x128xf32>, vector<128x128xf32>, vector<512x128xf32> -> vector<512x128xf32>
    %cst_28 = arith.constant dense<0.000000e+00> : vector<512x128xf32>
    %32 = tpu.matmul %30, %13, %cst_28 {dimension_numbers = #tpu.dot_dimension_numbers<[1], [0], [0], [1], [0, 0, 1, 1], [], []>} : vector<512x128xf32>, vector<128x128xf32>, vector<512x128xf32> -> vector<512x128xf32>
    %33 = arith.addf %31, %32 : vector<512x128xf32>
    %34 = vector.broadcast %3 : vector<512x1xf32> to vector<512x128xf32>
    %35 = vector.broadcast %14 : vector<1x128xf32> to vector<512x128xf32>
    %36 = arith.mulf %34, %35 : vector<512x128xf32>
    %37 = arith.addf %33, %36 : vector<512x128xf32>
    %38 = vector.broadcast %15 : vector<1x128xf32> to vector<512x128xf32>
    %39 = arith.addf %37, %38 : vector<512x128xf32>
    %cst_29 = arith.constant 0.000000e+00 : f32
    %40 = vector.broadcast %cst_29 : f32 to vector<512x128xf32>
    %41 = arith.maximumf %39, %40 : vector<512x128xf32>
    %cst_30 = arith.constant dense<0.000000e+00> : vector<512x128xf32>
    %42 = tpu.matmul %41, %16, %cst_30 {dimension_numbers = #tpu.dot_dimension_numbers<[1], [0], [0], [1], [0, 0, 1, 1], [], []>} : vector<512x128xf32>, vector<128x128xf32>, vector<512x128xf32> -> vector<512x128xf32>
    %43 = vector.broadcast %17 : vector<1x128xf32> to vector<512x128xf32>
    %44 = arith.addf %42, %43 : vector<512x128xf32>
    %45 = vector.shape_cast %44 : vector<512x128xf32> to vector<16x32x128xf32>
    "tpu.trace_start"() <{level = 10 : i32, message = "gen,geh->gnh"}> : () -> ()
    %cst_31 = arith.constant dense<0.000000e+00> : vector<16x16x128xf32>
    %46 = tpu.matmul %7, %45, %cst_31 {dimension_numbers = #tpu.dot_dimension_numbers<[1], [1], [2], [2], [0, 0, 0, 2, 1, 2], [0], [0]>} : vector<16x32x16xf32>, vector<16x32x128xf32>, vector<16x16x128xf32> -> vector<16x16x128xf32>
    "tpu.trace_stop"() : () -> ()
    %47 = vector.shape_cast %46 : vector<16x16x128xf32> to vector<256x128xf32>
    %48 = arith.addf %47, %25 : vector<256x128xf32>
    %c5 = arith.constant 5 : index
    %c0_32 = arith.constant 0 : index
    %49 = vector.load %arg6[%c5, %c0_32] : memref<19x128xf32, #tpu.memory_space<vmem>>, vector<1x128xf32>
    %50 = vector.broadcast %49 : vector<1x128xf32> to vector<256x128xf32>
    %51 = arith.mulf %48, %50 : vector<256x128xf32>
    %c6 = arith.constant 6 : index
    %c0_33 = arith.constant 0 : index
    %52 = vector.load %arg6[%c6, %c0_33] : memref<19x128xf32, #tpu.memory_space<vmem>>, vector<1x128xf32>
    %53 = vector.broadcast %52 : vector<1x128xf32> to vector<256x128xf32>
    %54 = arith.addf %51, %53 : vector<256x128xf32>
    %cst_34 = arith.constant 0.000000e+00 : f32
    %55 = vector.broadcast %cst_34 : f32 to vector<256x128xf32>
    %56 = arith.maximumf %54, %55 : vector<256x128xf32>
    %c512 = arith.constant 512 : index
    %c0_35 = arith.constant 0 : index
    %57 = vector.load %arg5[%c512, %c0_35] : memref<1544x128xf32, #tpu.memory_space<vmem>>, vector<128x128xf32>
    %c7 = arith.constant 7 : index
    %c0_36 = arith.constant 0 : index
    %58 = vector.load %arg6[%c7, %c0_36] : memref<19x128xf32, #tpu.memory_space<vmem>>, vector<1x128xf32>
    %c640 = arith.constant 640 : index
    %c0_37 = arith.constant 0 : index
    %59 = vector.load %arg5[%c640, %c0_37] : memref<1544x128xf32, #tpu.memory_space<vmem>>, vector<128x128xf32>
    %c8 = arith.constant 8 : index
    %c0_38 = arith.constant 0 : index
    %60 = vector.load %arg6[%c8, %c0_38] : memref<19x128xf32, #tpu.memory_space<vmem>>, vector<1x128xf32>
    %c768 = arith.constant 768 : index
    %c0_39 = arith.constant 0 : index
    %61 = vector.load %arg5[%c768, %c0_39] : memref<1544x128xf32, #tpu.memory_space<vmem>>, vector<128x128xf32>
    %c896 = arith.constant 896 : index
    %c0_40 = arith.constant 0 : index
    %62 = vector.load %arg5[%c896, %c0_40] : memref<1544x128xf32, #tpu.memory_space<vmem>>, vector<128x128xf32>
    %c9 = arith.constant 9 : index
    %c0_41 = arith.constant 0 : index
    %63 = vector.load %arg6[%c9, %c0_41] : memref<19x128xf32, #tpu.memory_space<vmem>>, vector<1x128xf32>
    %c10 = arith.constant 10 : index
    %c0_42 = arith.constant 0 : index
    %64 = vector.load %arg6[%c10, %c0_42] : memref<19x128xf32, #tpu.memory_space<vmem>>, vector<1x128xf32>
    %c1024 = arith.constant 1024 : index
    %c0_43 = arith.constant 0 : index
    %65 = vector.load %arg5[%c1024, %c0_43] : memref<1544x128xf32, #tpu.memory_space<vmem>>, vector<128x128xf32>
    %c11 = arith.constant 11 : index
    %c0_44 = arith.constant 0 : index
    %66 = vector.load %arg6[%c11, %c0_44] : memref<19x128xf32, #tpu.memory_space<vmem>>, vector<1x128xf32>
    %cst_45 = arith.constant dense<0.000000e+00> : vector<256x128xf32>
    %67 = tpu.matmul %56, %57, %cst_45 {dimension_numbers = #tpu.dot_dimension_numbers<[1], [0], [0], [1], [0, 0, 1, 1], [], []>} : vector<256x128xf32>, vector<128x128xf32>, vector<256x128xf32> -> vector<256x128xf32>
    %68 = vector.broadcast %58 : vector<1x128xf32> to vector<256x128xf32>
    %69 = arith.addf %67, %68 : vector<256x128xf32>
    %cst_46 = arith.constant 0.000000e+00 : f32
    %70 = vector.broadcast %cst_46 : f32 to vector<256x128xf32>
    %71 = arith.maximumf %69, %70 : vector<256x128xf32>
    %cst_47 = arith.constant dense<0.000000e+00> : vector<256x128xf32>
    %72 = tpu.matmul %71, %59, %cst_47 {dimension_numbers = #tpu.dot_dimension_numbers<[1], [0], [0], [1], [0, 0, 1, 1], [], []>} : vector<256x128xf32>, vector<128x128xf32>, vector<256x128xf32> -> vector<256x128xf32>
    %73 = vector.broadcast %60 : vector<1x128xf32> to vector<256x128xf32>
    %74 = arith.addf %72, %73 : vector<256x128xf32>
    %75 = vector.shape_cast %74 : vector<256x128xf32> to vector<16x16x128xf32>
    "tpu.trace_start"() <{level = 10 : i32, message = "gen,gnh->geh"}> : () -> ()
    %cst_48 = arith.constant dense<0.000000e+00> : vector<16x32x128xf32>
    %76 = tpu.matmul %7, %75, %cst_48 {dimension_numbers = #tpu.dot_dimension_numbers<[2], [1], [1], [2], [0, 0, 0, 1, 1, 2], [0], [0]>} : vector<16x32x16xf32>, vector<16x16x128xf32>, vector<16x32x128xf32> -> vector<16x32x128xf32>
    "tpu.trace_stop"() : () -> ()
    %77 = vector.shape_cast %76 : vector<16x32x128xf32> to vector<512x128xf32>
    "tpu.trace_start"() <{level = 10 : i32, message = "gen,gnh->geh"}> : () -> ()
    %cst_49 = arith.constant dense<0.000000e+00> : vector<16x32x128xf32>
    %78 = tpu.matmul %5, %75, %cst_49 {dimension_numbers = #tpu.dot_dimension_numbers<[2], [1], [1], [2], [0, 0, 0, 1, 1, 2], [0], [0]>} : vector<16x32x16xf32>, vector<16x16x128xf32>, vector<16x32x128xf32> -> vector<16x32x128xf32>
    "tpu.trace_stop"() : () -> ()
    %79 = vector.shape_cast %78 : vector<16x32x128xf32> to vector<512x128xf32>
    %cst_50 = arith.constant dense<0.000000e+00> : vector<512x128xf32>
    %80 = tpu.matmul %77, %61, %cst_50 {dimension_numbers = #tpu.dot_dimension_numbers<[1], [0], [0], [1], [0, 0, 1, 1], [], []>} : vector<512x128xf32>, vector<128x128xf32>, vector<512x128xf32> -> vector<512x128xf32>
    %cst_51 = arith.constant dense<0.000000e+00> : vector<512x128xf32>
    %81 = tpu.matmul %79, %62, %cst_51 {dimension_numbers = #tpu.dot_dimension_numbers<[1], [0], [0], [1], [0, 0, 1, 1], [], []>} : vector<512x128xf32>, vector<128x128xf32>, vector<512x128xf32> -> vector<512x128xf32>
    %82 = arith.addf %80, %81 : vector<512x128xf32>
    %83 = vector.broadcast %3 : vector<512x1xf32> to vector<512x128xf32>
    %84 = vector.broadcast %63 : vector<1x128xf32> to vector<512x128xf32>
    %85 = arith.mulf %83, %84 : vector<512x128xf32>
    %86 = arith.addf %82, %85 : vector<512x128xf32>
    %87 = vector.broadcast %64 : vector<1x128xf32> to vector<512x128xf32>
    %88 = arith.addf %86, %87 : vector<512x128xf32>
    %cst_52 = arith.constant 0.000000e+00 : f32
    %89 = vector.broadcast %cst_52 : f32 to vector<512x128xf32>
    %90 = arith.maximumf %88, %89 : vector<512x128xf32>
    %cst_53 = arith.constant dense<0.000000e+00> : vector<512x128xf32>
    %91 = tpu.matmul %90, %65, %cst_53 {dimension_numbers = #tpu.dot_dimension_numbers<[1], [0], [0], [1], [0, 0, 1, 1], [], []>} : vector<512x128xf32>, vector<128x128xf32>, vector<512x128xf32> -> vector<512x128xf32>
    %92 = vector.broadcast %66 : vector<1x128xf32> to vector<512x128xf32>
    %93 = arith.addf %91, %92 : vector<512x128xf32>
    %94 = vector.shape_cast %93 : vector<512x128xf32> to vector<16x32x128xf32>
    "tpu.trace_start"() <{level = 10 : i32, message = "gen,geh->gnh"}> : () -> ()
    %cst_54 = arith.constant dense<0.000000e+00> : vector<16x16x128xf32>
    %95 = tpu.matmul %7, %94, %cst_54 {dimension_numbers = #tpu.dot_dimension_numbers<[1], [1], [2], [2], [0, 0, 0, 2, 1, 2], [0], [0]>} : vector<16x32x16xf32>, vector<16x32x128xf32>, vector<16x16x128xf32> -> vector<16x16x128xf32>
    "tpu.trace_stop"() : () -> ()
    %96 = vector.shape_cast %95 : vector<16x16x128xf32> to vector<256x128xf32>
    %97 = arith.addf %96, %74 : vector<256x128xf32>
    %c12 = arith.constant 12 : index
    %c0_55 = arith.constant 0 : index
    %98 = vector.load %arg6[%c12, %c0_55] : memref<19x128xf32, #tpu.memory_space<vmem>>, vector<1x128xf32>
    %99 = vector.broadcast %98 : vector<1x128xf32> to vector<256x128xf32>
    %100 = arith.mulf %97, %99 : vector<256x128xf32>
    %c13 = arith.constant 13 : index
    %c0_56 = arith.constant 0 : index
    %101 = vector.load %arg6[%c13, %c0_56] : memref<19x128xf32, #tpu.memory_space<vmem>>, vector<1x128xf32>
    %102 = vector.broadcast %101 : vector<1x128xf32> to vector<256x128xf32>
    %103 = arith.addf %100, %102 : vector<256x128xf32>
    %cst_57 = arith.constant 0.000000e+00 : f32
    %104 = vector.broadcast %cst_57 : f32 to vector<256x128xf32>
    %105 = arith.maximumf %103, %104 : vector<256x128xf32>
    %106 = arith.addf %105, %56 : vector<256x128xf32>
    %c1152 = arith.constant 1152 : index
    %c0_58 = arith.constant 0 : index
    %107 = vector.load %arg5[%c1152, %c0_58] : memref<1544x128xf32, #tpu.memory_space<vmem>>, vector<128x128xf32>
    %cst_59 = arith.constant dense<0.000000e+00> : vector<256x128xf32>
    %108 = tpu.matmul %106, %107, %cst_59 {dimension_numbers = #tpu.dot_dimension_numbers<[1], [0], [0], [1], [0, 0, 1, 1], [], []>} : vector<256x128xf32>, vector<128x128xf32>, vector<256x128xf32> -> vector<256x128xf32>
    %c14 = arith.constant 14 : index
    %c0_60 = arith.constant 0 : index
    %109 = vector.load %arg6[%c14, %c0_60] : memref<19x128xf32, #tpu.memory_space<vmem>>, vector<1x128xf32>
    %110 = vector.broadcast %109 : vector<1x128xf32> to vector<256x128xf32>
    %111 = arith.addf %108, %110 : vector<256x128xf32>
    %cst_61 = arith.constant 0.000000e+00 : f32
    %112 = vector.broadcast %cst_61 : f32 to vector<256x128xf32>
    %113 = arith.maximumf %111, %112 : vector<256x128xf32>
    %114 = vector.shape_cast %113 : vector<256x128xf32> to vector<16x16x128xf32>
    %cst_62 = arith.constant dense<0.000000e+00> : vector<16x128xf32>
    %115 = vector.multi_reduction <add>, %114, %cst_62 [1] : vector<16x16x128xf32> to vector<16x128xf32>
    %cst_63 = arith.constant 1.600000e+01 : f32
    %116 = vector.broadcast %cst_63 : f32 to vector<16x128xf32>
    %117 = arith.divf %115, %116 : vector<16x128xf32>
    %c17 = arith.constant 17 : index
    %c0_64 = arith.constant 0 : index
    %118 = vector.load %arg6[%c17, %c0_64] : memref<19x128xf32, #tpu.memory_space<vmem>>, vector<1x128xf32>
    %119 = vector.broadcast %118 : vector<1x128xf32> to vector<16x128xf32>
    %120 = arith.mulf %117, %119 : vector<16x128xf32>
    %cst_65 = arith.constant dense<0.000000e+00> : vector<16xf32>
    %121 = vector.multi_reduction <add>, %120, %cst_65 [1] : vector<16x128xf32> to vector<16xf32>
    %122 = vector.shape_cast %121 : vector<16xf32> to vector<16x1xf32>
    %c18 = arith.constant 18 : index
    %c0_66 = arith.constant 0 : index
    %123 = vector.load %arg6[%c18, %c0_66] : memref<19x128xf32, #tpu.memory_space<vmem>>, vector<1x1xf32>
    %124 = vector.broadcast %123 : vector<1x1xf32> to vector<16x1xf32>
    %125 = arith.addf %122, %124 : vector<16x1xf32>
    %c0_67 = arith.constant 0 : index
    %c0_68 = arith.constant 0 : index
    %126 = vector.load %arg7[%c0_67, %c0_68] : memref<16x1xf32, #tpu.memory_space<vmem>>, vector<16x1xf32>
    tpu.vector_store %arg7[%c0_67, %c0_68], %125 {strides = array<i32>} : memref<16x1xf32, #tpu.memory_space<vmem>>, vector<16x1xf32>,
    %c1280 = arith.constant 1280 : index
    %c0_69 = arith.constant 0 : index
    %127 = vector.load %arg5[%c1280, %c0_69] : memref<1544x128xf32, #tpu.memory_space<vmem>>, vector<128x128xf32>
    %cst_70 = arith.constant dense<0.000000e+00> : vector<256x128xf32>
    %128 = tpu.matmul %113, %127, %cst_70 {dimension_numbers = #tpu.dot_dimension_numbers<[1], [0], [0], [1], [0, 0, 1, 1], [], []>} : vector<256x128xf32>, vector<128x128xf32>, vector<256x128xf32> -> vector<256x128xf32>
    %c15 = arith.constant 15 : index
    %c0_71 = arith.constant 0 : index
    %129 = vector.load %arg6[%c15, %c0_71] : memref<19x128xf32, #tpu.memory_space<vmem>>, vector<1x128xf32>
    %130 = vector.broadcast %129 : vector<1x128xf32> to vector<256x128xf32>
    %131 = arith.addf %128, %130 : vector<256x128xf32>
    %cst_72 = arith.constant 0.000000e+00 : f32
    %132 = vector.broadcast %cst_72 : f32 to vector<256x128xf32>
    %133 = arith.maximumf %131, %132 : vector<256x128xf32>
    %c1408 = arith.constant 1408 : index
    %c0_73 = arith.constant 0 : index
    %134 = vector.load %arg5[%c1408, %c0_73] : memref<1544x128xf32, #tpu.memory_space<vmem>>, vector<128x128xf32>
    %cst_74 = arith.constant dense<0.000000e+00> : vector<256x128xf32>
    %135 = tpu.matmul %133, %134, %cst_74 {dimension_numbers = #tpu.dot_dimension_numbers<[1], [0], [0], [1], [0, 0, 1, 1], [], []>} : vector<256x128xf32>, vector<128x128xf32>, vector<256x128xf32> -> vector<256x128xf32>
    %c16 = arith.constant 16 : index
    %c0_75 = arith.constant 0 : index
    %136 = vector.load %arg6[%c16, %c0_75] : memref<19x128xf32, #tpu.memory_space<vmem>>, vector<1x128xf32>
    %137 = vector.broadcast %136 : vector<1x128xf32> to vector<256x128xf32>
    %138 = arith.addf %135, %137 : vector<256x128xf32>
    %139 = vector.shape_cast %138 : vector<256x128xf32> to vector<16x16x128xf32>
    %c0_76 = arith.constant 0 : index
    %c0_77 = arith.constant 0 : index
    %c0_78 = arith.constant 0 : index
    %140 = vector.load %arg8[%c0_76, %c0_77, %c0_78] : memref<16x16x128xf32, #tpu.memory_space<vmem>>, vector<16x16x128xf32>
    tpu.vector_store %arg8[%c0_76, %c0_77, %c0_78], %139 {strides = array<i32>} : memref<16x16x128xf32, #tpu.memory_space<vmem>>, vector<16x16x128xf32>,
    return
  }
  func.func @transform_0(%arg0: i32) -> (i32, i32, i32) {
    %c0_i32 = arith.constant 0 : i32
    %c0_i32_0 = arith.constant 0 : i32
    %c0_i32_1 = arith.constant 0 : i32
    return %arg0, %c0_i32, %c0_i32_0 : i32, i32, i32
  }
  func.func @transform_1(%arg0: i32) -> (i32, i32, i32) {
    %c0_i32 = arith.constant 0 : i32
    %c0_i32_0 = arith.constant 0 : i32
    %c0_i32_1 = arith.constant 0 : i32
    return %arg0, %c0_i32, %c0_i32_0 : i32, i32, i32
  }
  func.func @transform_2(%arg0: i32) -> (i32, i32, i32) {
    %c0_i32 = arith.constant 0 : i32
    %c0_i32_0 = arith.constant 0 : i32
    %c0_i32_1 = arith.constant 0 : i32
    return %arg0, %c0_i32, %c0_i32_0 : i32, i32, i32
  }
  func.func @transform_3(%arg0: i32) -> (i32, i32, i32) {
    %c0_i32 = arith.constant 0 : i32
    %c0_i32_0 = arith.constant 0 : i32
    %c0_i32_1 = arith.constant 0 : i32
    return %arg0, %c0_i32, %c0_i32_0 : i32, i32, i32
  }
  func.func @transform_4(%arg0: i32) -> (i32, i32) {
    %c0_i32 = arith.constant 0 : i32
    %c0_i32_0 = arith.constant 0 : i32
    %c0_i32_1 = arith.constant 0 : i32
    return %c0_i32, %c0_i32_0 : i32, i32
  }
  func.func @transform_5(%arg0: i32) -> (i32, i32) {
    %c0_i32 = arith.constant 0 : i32
    %c0_i32_0 = arith.constant 0 : i32
    %c0_i32_1 = arith.constant 0 : i32
    return %c0_i32, %c0_i32_0 : i32, i32
  }
  func.func @transform_6(%arg0: i32) -> (i32, i32) {
    %c0_i32 = arith.constant 0 : i32
    %c0_i32_0 = arith.constant 0 : i32
    return %arg0, %c0_i32 : i32, i32
  }
  func.func @transform_7(%arg0: i32) -> (i32, i32, i32) {
    %c0_i32 = arith.constant 0 : i32
    %c0_i32_0 = arith.constant 0 : i32
    %c0_i32_1 = arith.constant 0 : i32
    return %arg0, %c0_i32, %c0_i32_0 : i32, i32, i32
  }
}

</mosaic_0001>

<bundles_post_ra>
// kernel: tpu_custom_call.1
= control target key start
LH: loop header
LB: loop body
LE: loop exit
PB: predicated region body
PF: predicated region fallthrough
CT: control target
= control target key end

     0   :  { %13 = vsyncpa [#allocation3], 0  ;;  %s25587_s0 = inlined_call_operand.vmem [shape: f32[32,16,8], index: 0, kind: input, shape index: {}]   ;;  %s25588_s1 = inlined_call_operand.vmem [shape: f32[32,32,1], index: 1, kind: input, shape index: {}]   ;;  %s25589_s2 = inlined_call_operand.vmem [shape: bf16[32,32,16], index: 2, kind: input, shape index: {}]   ;;  %s25590_s3 = inlined_call_operand.vmem [shape: bf16[32,32,16], index: 3, kind: input, shape index: {}]   ;;  %s25591_s4 = inlined_call_operand.vmem [shape: f32[1544,128], index: 4, kind: input, shape index: {}]   ;;  %s25592_s5 = inlined_call_operand.vmem [shape: f32[19,128], index: 5, kind: input, shape index: {}]   ;;  %s25593_s6 = inlined_call_operand.vmem [shape: f32[32,1], index: 6, kind: output, shape index: {0}]   ;;  %s25594_s7 = inlined_call_operand.hbm [shape: f32[32,16,128], index: 7, kind: output, shape index: {1}]  }
   0x1   :  { %15 = vsyncpa [#allocation3 + $0x1], 0  ;;  %s21154_s24 = smov 0   ;;  %s21156_s25 = smov 0  }
   0x2   :  { %s21158_s26 = smov 0   ;;  %s21160_s27 = smov 0  }
   0x3 LB: > { %s21175_s28 = sadd.s32 4294967295, %s21108_s27   ;;  %s15462_s29 = sadd.s32 4294967294, %s21108_s27   ;;  %s21108_s27 = sphi %s21160_s27, %s26965_s27   ;;  %s21104_s26 = sphi %s21158_s26, %s26964_s26   ;;  %s21100_s25 = sphi %s21156_s25, %s26963_s25   ;;  %s21096_s24 = sphi %s21154_s24, %s26962_s24  }
   0x4   : > { %s21179_s30 = sadd.s32 1, %s21108_s27   ;;  %s200_s8 = sadd.s32 1, %s21104_s26 }
   0x5   : > { %s197_s9 = ssub.s32 %s21108_s27, %s21179_s30  ;;  %p210_p0 = scmp.ne.s32.totalorder %s21104_s26, %s21100_s25 }
   0x6   : > { %p198_p1 = scmp.eq.s32.totalorder %s197_s9, 0  ;;  %p211_p2 = scmp.eq.s32.totalorder %s21175_s28, 1 }
   0x7   : > { %p216_p3 = scmp.ne.s32.totalorder %s21100_s25, %s21096_s24  ;;  %p217_p4 = scmp.eq.s32.totalorder %s15462_s29, 1 }
   0x8   : > { %s21190_s10 = scalar_select %p198_p1, %s21104_s26, %s200_s8  }
   0x9   : > { %p21192_p5 = por %p211_p2, %p210_p0  ;;  %p21196_p6 = por %p217_p4, %p216_p3 }
   0xa   : > { %p15465_p7 = scmp.ge.s32.totalorder %s21108_s27, 1  ;;  %p281_p8 = scmp.lt.s32.totalorder %s21108_s27, 3 }
   0xc   : > { %p282_p9 = pnand %p15465_p7, %p281_p8 }
   0xe   : > { %285 = sbr.rel (%p282_p9) target bundleno = 3905 (0xf41), region = 44 }
  0x15   : > { %v724_v0 = vld [vmem:[%s25591_s4 + $0x600] sm:$0xff]  ;;  %s15467_s15 = sshll.u32 %s21175_s28, 4  ;;  %v727_v2 = vld [vmem:[%s25591_s4 + $0x8] sm:$0xff]  ;;  %vm798_vm0 = vcmask 64512   ;;  %v728_v7 = vld [vmem:[%s25591_s4 + $0x10] sm:$0xff]  ;;  %vm1381_vm1 = vcmask 130048  }
  0x16   : > { %v726_v1 = vld [vmem:[%s25591_s4] sm:$0xff]  ;;  %17559 = vmatprep.subr.mxu0 %v724_v0  ;;  %p338_p10 = scmp.lt.s32.totalorder %s15467_s15, 31  ;;  %20745 = vmatprep.subr.mxu1 %v724_v0  ;;  %v729_v8 = vld [vmem:[%s25591_s4 + $0x18] sm:$0xff]  ;;  %v731_v16 = vld [vmem:[%s25591_s4 + $0x28] sm:$0xff]  ;;  %vm6261_vm2 = vcmask 261120   ;;  %vm14709_vm3 = vcmask 1041409  }
  0x17   : > { %v19849_v3 = vpack.c.bf16 %v727_v2, %v726_v1  ;;  %17560 = vmatpush3.msra.mxu0 %v724_v0  ;;  %20746 = vmatpush3.msra.mxu1 %v724_v0  ;;  %v19853_v13 = vpack.c.bf16 %v729_v8, %v728_v7  ;;  %v730_v15 = vld [vmem:[%s25591_s4 + $0x20] sm:$0xff]  ;;  %v732_v22 = vld [vmem:[%s25591_s4 + $0x30] sm:$0xff]  ;;  %v733_v23 = vld [vmem:[%s25591_s4 + $0x38] sm:$0xff]  ;;  %vm14712_vm4 = vcmask 1042434   ;;  %vm14715_vm5 = vcmask 1043459   ;;  %s334_s18 = sand.u32 1, %s21100_s25  }
  0x18   : > { %s26967_s15 = smov (!%p338_p10, %s15467_s15), 31  ;;  %v19857_v21 = vpack.c.bf16 %v731_v16, %v730_v15  ;;  %v19861_v28 = vpack.c.bf16 %v733_v23, %v732_v22  ;;  %v734_v29 = vld [vmem:[%s25591_s4 + $0x40] sm:$0xff]  ;;  %v735_v30 = vld [vmem:[%s25591_s4 + $0x48] sm:$0xff]  ;;  %v736_v36 = vld [vmem:[%s25591_s4 + $0x50] sm:$0xff]  ;;  %vm14718_vm6 = vcmask 1044484   ;;  %vm14721_vm7 = vcmask 1045509  }
  0x19   : > { %19850 = vmatprep.subr.bf16.mxu1 %v19849_v3  ;;  %s21215_s20 = sshll.u32 %s26967_s15, 4  ;;  %v19865_v35 = vpack.c.bf16 %v735_v30, %v734_v29  ;;  %v737_v37 = vld [vmem:[%s25591_s4 + $0x58] sm:$0xff]  ;;  %v738_v43 = vld [vmem:[%s25591_s4 + $0x60] sm:$0xff]  ;;  %v739_v44 = vld [vmem:[%s25591_s4 + $0x68] sm:$0xff]  ;;  %s15859_s19 = sshll.u32 %s26967_s15, 5  ;;  %vm14724_vm8 = vcmask 1046534  }
  0x1a   : > { %s21221_s23 = scalar_lea.vmem %s25587_s0, %s21215_s20  ;;  %v19869_v42 = vpack.c.bf16 %v737_v37, %v736_v36  ;;  %v19873_v49 = vpack.c.bf16 %v739_v44, %v738_v43  ;;  %v740_v54 = vld [vmem:[%s25591_s4 + $0x70] sm:$0xff]  ;;  %v741_v55 = vld [vmem:[%s25591_s4 + $0x78] sm:$0xff]  ;;  %v21332_v57 = vld [vmem:[%s25592_s5] ss:$0 sm:$0xff]  ;;  %s21376_s21 = scalar_lea.vmem %s25590_s3, %s21215_s20  ;;  %vm14727_vm9 = vcmask 1047559   ;;  %vm14756_vm10 = vcmask 7168  }
  0x1b   : > { %v372_v4 = vld [vmem:[%s21221_s23] sm:$0xff]  ;;  %v373_v5 = vld [vmem:[%s21221_s23 + $0x8] sm:$0xff]  ;;  %v374_v6 = vld [vmem:[%s21221_s23 + $0x10] sm:$0xff]  ;;  %v19877_v56 = vpack.c.bf16 %v741_v55, %v740_v54  ;;  %s21786_s13 = scalar_lea.vmem %s25589_s2, %s21215_s20  ;;  %s22339_s29 = scalar_lea.vmem %s25588_s1, %s15859_s19 }
  0x1c   : > { %17561 = vmatprep.mubr.msk.f32.mxu0 %vm798_vm0, %v372_v4  ;;  %v375_v9 = vld [vmem:[%s21221_s23 + $0x18] sm:$0xff]  ;;  %v376_v10 = vld [vmem:[%s21221_s23 + $0x20] sm:$0xff]  ;;  %v389_v12 = vld [vmem:[%s21221_s23 + $0x88] sm:$0xff]  ;;  %s15479_s15 = sshll.u32 %s21175_s28, 1 }
  0x1d   : > { %17562 = vmatmul.mubr.msk.f32.vlgmr.msra.gmra.mrb[0].mxu0 %vm798_vm0, %v373_v5  ;;  %v388_v11 = vld [vmem:[%s21221_s23 + $0x80] sm:$0xff]  ;;  %v390_v14 = vld [vmem:[%s21221_s23 + $0x90] sm:$0xff]  ;;  %v377_v17 = vld [vmem:[%s21221_s23 + $0x28] sm:$0xff]  ;;  %p366_p11 = scmp.lt.s32.totalorder %s15479_s15, 3 }
  0x1e   : > { %17564 = vmatprep.mubr.msk.f32.mxu0 %vm798_vm0, %v374_v6  ;;  %17585 = vmatprep.mubr.msk.f32.mxu1 %vm798_vm0, %v388_v11  ;;  %v378_v18 = vld [vmem:[%s21221_s23 + $0x30] sm:$0xff]  ;;  %v391_v19 = vld [vmem:[%s21221_s23 + $0x98] sm:$0xff]  ;;  %v392_v20 = vld [vmem:[%s21221_s23 + $0xa0] sm:$0xff] }
  0x1f   : > { %17586 = vmatmul.mubr.msk.f32.vlgmr.msra.gmra.mrb[0].mxu1 %vm798_vm0, %v389_v12  ;;  %v379_v24 = vld [vmem:[%s21221_s23 + $0x38] sm:$0xff]  ;;  %v380_v25 = vld [vmem:[%s21221_s23 + $0x40] sm:$0xff]  ;;  %v393_v26 = vld [vmem:[%s21221_s23 + $0xa8] sm:$0xff]  ;;  %s26969_s15 = smov (!%p366_p11, %s15479_s15), 3 }
  0x20   : > { %17588 = vmatprep.mubr.msk.f32.mxu1 %vm798_vm0, %v390_v14  ;;  %19852 = vmatpush3.bf16.msra.mxu1 %v19849_v3  ;;  %v394_v27 = vld [vmem:[%s21221_s23 + $0xb0] sm:$0xff]  ;;  %v381_v31 = vld [vmem:[%s21221_s23 + $0x48] sm:$0xff]  ;;  %v395_v33 = vld [vmem:[%s21221_s23 + $0xb8] sm:$0xff] }
  0x21   : > { %17565 = vmatmul.mubr.msk.f32.gmra.mrb[2].mxu0 %vm798_vm0, %v375_v9  ;;  %19854 = vmatprep.subr.bf16.mxu1 %v19853_v13  ;;  %v382_v32 = vld [vmem:[%s21221_s23 + $0x50] sm:$0xff]  ;;  %v396_v34 = vld [vmem:[%s21221_s23 + $0xc0] sm:$0xff]  ;;  %v383_v38 = vld [vmem:[%s21221_s23 + $0x58] sm:$0xff] }
  0x22   : > { %17567 = vmatprep.mubr.msk.f32.mxu0 %vm798_vm0, %v376_v10  ;;  %v384_v39 = vld [vmem:[%s21221_s23 + $0x60] sm:$0xff]  ;;  %v397_v40 = vld [vmem:[%s21221_s23 + $0xc8] sm:$0xff]  ;;  %v398_v41 = vld [vmem:[%s21221_s23 + $0xd0] sm:$0xff] }
  0x23   : > { %17589 = vmatmul.mubr.msk.f32.gmra.mrb[2].mxu1 %vm798_vm0, %v391_v19  ;;  %v385_v45 = vld [vmem:[%s21221_s23 + $0x68] sm:$0xff]  ;;  %v386_v46 = vld [vmem:[%s21221_s23 + $0x70] sm:$0xff]  ;;  %v399_v47 = vld [vmem:[%s21221_s23 + $0xd8] sm:$0xff] }
  0x24   : > { %17591 = vmatprep.mubr.msk.f32.mxu1 %vm798_vm0, %v392_v20  ;;  %19856 = vmatpush3.bf16.msra.mxu1 %v19853_v13  ;;  %v400_v48 = vld [vmem:[%s21221_s23 + $0xe0] sm:$0xff]  ;;  %v387_v50 = vld [vmem:[%s21221_s23 + $0x78] sm:$0xff]  ;;  %v401_v51 = vld [vmem:[%s21221_s23 + $0xe8] sm:$0xff] }
  0x25   : > { %17568 = vmatmul.mubr.msk.f32.gmra.mrb[4].mxu0 %vm798_vm0, %v377_v17  ;;  %19858 = vmatprep.subr.bf16.mxu1 %v19857_v21  ;;  %v402_v52 = vld [vmem:[%s21221_s23 + $0xf0] sm:$0xff]  ;;  %v403_v53 = vld [vmem:[%s21221_s23 + $0xf8] sm:$0xff]  ;;  %s15466_s23 = sshll.u32 %s334_s18, 8 }
  0x26   : > { %17570 = vmatprep.mubr.msk.f32.mxu0 %vm798_vm0, %v378_v18  ;;  %s25471_s22 = scalar_lea.vmem [#allocation2], %s15466_s23 }
  0x27   : > { %17592 = vmatmul.mubr.msk.f32.gmra.mrb[4].mxu1 %vm798_vm0, %v393_v26  ;;  %s15339_s8 = sshll.u32 %s25471_s22, 4  ;;  %s25539_s8 = int_to_ptr.vmem [resolvable:$true] %s15339_s8 }
  0x28   : > { %17594 = vmatprep.mubr.msk.f32.mxu1 %vm798_vm0, %v394_v27  ;;  %19860 = vmatpush3.bf16.msra.mxu1 %v19857_v21  ;;  %s21046_s14 = scalar_lea.vmem %s25539_s8, 4096 }
  0x29   : > { %17571 = vmatmul.mubr.msk.f32.gmra.mrb[6].mxu0 %vm798_vm0, %v379_v24  ;;  %19862 = vmatprep.subr.bf16.mxu1 %v19861_v28  ;;  %p21047_p12 = scmp.ne.s32.totalorder %s25539_s8, %s21046_s14 }
  0x2a   : > { %17573 = vmatprep.mubr.msk.f32.mxu0 %vm798_vm0, %v380_v25 }
  0x2b   : > { %17595 = vmatmul.mubr.msk.f32.gmra.mrb[6].mxu1 %vm798_vm0, %v395_v33  ;;  %p21048_p13 = pnand %p21047_p12, %p21192_p5 }
  0x2c   : > { %17597 = vmatprep.mubr.msk.f32.mxu1 %vm798_vm0, %v396_v34  ;;  %19864 = vmatpush3.bf16.msra.mxu1 %v19861_v28 }
  0x2d   : > { %17574 = vmatmul.mubr.msk.f32.gmra.mrb[8].mxu0 %vm798_vm0, %v381_v31  ;;  %19866 = vmatprep.subr.bf16.mxu1 %v19865_v35  ;;  %p21049_p0 = pneg %p21048_p13 }
  0x2e   : > { %17576 = vmatprep.mubr.msk.f32.mxu0 %vm798_vm0, %v382_v32 }
  0x2f   : > { %17598 = vmatmul.mubr.msk.f32.gmra.mrb[8].mxu1 %vm798_vm0, %v397_v40 }
  0x30   : > { %17600 = vmatprep.mubr.msk.f32.mxu1 %vm798_vm0, %v398_v41  ;;  %19868 = vmatpush3.bf16.msra.mxu1 %v19865_v35 }
  0x31   : > { %17577 = vmatmul.mubr.msk.f32.gmra.mrb[10].mxu0 %vm798_vm0, %v383_v38  ;;  %19870 = vmatprep.subr.bf16.mxu1 %v19869_v42 }
  0x32   : > { %17579 = vmatprep.mubr.msk.f32.mxu0 %vm798_vm0, %v384_v39 }
  0x33   : > { %17601 = vmatmul.mubr.msk.f32.gmra.mrb[10].mxu1 %vm798_vm0, %v399_v47 }
  0x34   : > { %17603 = vmatprep.mubr.msk.f32.mxu1 %vm798_vm0, %v400_v48  ;;  %19872 = vmatpush3.bf16.msra.mxu1 %v19869_v42 }
  0x35   : > { %17580 = vmatmul.mubr.msk.f32.gmra.mrb[12].mxu0 %vm798_vm0, %v385_v45  ;;  %19874 = vmatprep.subr.bf16.mxu1 %v19873_v49 }
  0x36   : > { %17582 = vmatprep.mubr.msk.f32.mxu0 %vm798_vm0, %v386_v46 }
  0x37   : > { %17604 = vmatmul.mubr.msk.f32.gmra.mrb[12].mxu1 %vm798_vm0, %v401_v51 }
  0x38   : > { %17606 = vmatprep.mubr.msk.f32.mxu1 %vm798_vm0, %v402_v52  ;;  %19876 = vmatpush3.bf16.msra.mxu1 %v19873_v49 }
  0x39   : > { %17583 = vmatmul.mubr.msk.f32.gmra.mrb[14].mxu0 %vm798_vm0, %v387_v50  ;;  %19878 = vmatprep.subr.bf16.mxu1 %v19877_v56 }
  0x3b   : > { %17607 = vmatmul.mubr.msk.f32.gmra.mrb[14].mxu1 %vm798_vm0, %v403_v53 }
  0x3c   : > { %19880 = vmatpush3.bf16.msra.mxu1 %v19877_v56 }
  0xf0   : > { %v17563_v58 = vpop.f32.mrb[0].mxu0 }
  0xf1   : > { %v967_v59 = vadd.f32 %v17563_v58, %v21332_v57  ;;  %v961_v60 = vpop.f32.mrb[1].mxu0 }
  0xf2   : > { %v962_v61 = vadd.f32 %v21332_v57, %v961_v60  ;;  %v21337_v3 = vpop.f32.mrb[0].mxu1 }
  0xf3   : > { %v1121_v0 = vmax.f32 %v967_v59, 0.0  ;;  %v1041_v5 = vpop.f32.mrb[1].mxu1  ;;  %v1047_v55 = vadd.f32 %v21337_v3, %v21332_v57 }
  0xf4   : > { %v17566_v62 = vpop.f32.mrb[2].mxu0  ;;  %v1120_v63 = vmax.f32 %v962_v61, 0.0  ;;  %v1042_v49 = vadd.f32 %v21332_v57, %v1041_v5 }
  0xf5   : > { %v977_v1 = vadd.f32 %v17566_v62, %v21332_v57  ;;  %v971_v2 = vpop.f32.mrb[3].mxu0 }
  0xf6   : > { %v972_v4 = vadd.f32 %v21332_v57, %v971_v2  ;;  %17641 = vmatprep.mubr.f32.mxu1 %v1120_v63  ;;  %v21341_v11 = vpop.f32.mrb[2].mxu1  ;;  %v1136_v60 = vmax.f32 %v1042_v49, 0.0 }
  0xf7   : > { %17642 = vmatmul.mubr.f32.vlgmr.msra.gmra.mrb[16].mxu1 %v1121_v0  ;;  %v1123_v6 = vmax.f32 %v977_v1, 0.0  ;;  %v1051_v13 = vpop.f32.mrb[3].mxu1  ;;  %v1057_v63 = vadd.f32 %v21341_v11, %v21332_v57  ;;  %v1137_v0 = vmax.f32 %v1047_v55, 0.0 }
  0xf8   : > { %v17569_v7 = vpop.f32.mrb[4].mxu0  ;;  %v1122_v8 = vmax.f32 %v972_v4, 0.0  ;;  %v1052_v59 = vadd.f32 %v21332_v57, %v1051_v13 }
  0xf9   : > { %v987_v9 = vadd.f32 %v17569_v7, %v21332_v57  ;;  %v981_v10 = vpop.f32.mrb[5].mxu0  ;;  %v1139_v4 = vmax.f32 %v1057_v63, 0.0 }
  0xfa   : > { %v982_v12 = vadd.f32 %v21332_v57, %v981_v10  ;;  %17644 = vmatprep.mubr.f32.mxu1 %v1122_v8  ;;  %v17593_v19 = vpop.f32.mrb[4].mxu1  ;;  %v1138_v2 = vmax.f32 %v1052_v59, 0.0 }
  0xfb   : > { %17645 = vmatmul.mubr.f32.gmra.mrb[18].mxu1 %v1123_v6  ;;  %v1125_v14 = vmax.f32 %v987_v9, 0.0  ;;  %v1061_v21 = vpop.f32.mrb[5].mxu1  ;;  %v1067_v3 = vadd.f32 %v17593_v19, %v21332_v57 }
  0xfc   : > { %v17572_v15 = vpop.f32.mrb[6].mxu0  ;;  %v1124_v16 = vmax.f32 %v982_v12, 0.0  ;;  %v1062_v1 = vadd.f32 %v21332_v57, %v1061_v21 }
  0xfd   : > { %v997_v17 = vadd.f32 %v17572_v15, %v21332_v57  ;;  %v991_v18 = vpop.f32.mrb[7].mxu0  ;;  %v1141_v8 = vmax.f32 %v1067_v3, 0.0 }
  0xfe   : > { %v992_v20 = vadd.f32 %v21332_v57, %v991_v18  ;;  %17647 = vmatprep.mubr.f32.mxu1 %v1124_v16  ;;  %v17596_v27 = vpop.f32.mrb[6].mxu1  ;;  %v1140_v6 = vmax.f32 %v1062_v1, 0.0 }
  0xff   : > { %17648 = vmatmul.mubr.f32.gmra.mrb[20].mxu1 %v1125_v14  ;;  %v1127_v22 = vmax.f32 %v997_v17, 0.0  ;;  %v1071_v29 = vpop.f32.mrb[7].mxu1  ;;  %v1077_v7 = vadd.f32 %v17596_v27, %v21332_v57  ;;  %v15993_v27 = vld [vmem:[%s21376_s21] sm:$0xff]  }
 0x100   : > { %v17575_v23 = vpop.f32.mrb[8].mxu0  ;;  %v1126_v24 = vmax.f32 %v992_v20, 0.0  ;;  %v1072_v5 = vadd.f32 %v21332_v57, %v1071_v29 }
 0x101   : > { %v1007_v25 = vadd.f32 %v17575_v23, %v21332_v57  ;;  %v1001_v26 = vpop.f32.mrb[9].mxu0  ;;  %v1143_v12 = vmax.f32 %v1077_v7, 0.0 }
 0x102   : > { %v1002_v28 = vadd.f32 %v21332_v57, %v1001_v26  ;;  %17650 = vmatprep.mubr.f32.mxu1 %v1126_v24  ;;  %v17599_v35 = vpop.f32.mrb[8].mxu1  ;;  %v1142_v10 = vmax.f32 %v1072_v5, 0.0 }
 0x103   : > { %17651 = vmatmul.mubr.f32.gmra.mrb[22].mxu1 %v1127_v22  ;;  %v1129_v30 = vmax.f32 %v1007_v25, 0.0  ;;  %v1081_v37 = vpop.f32.mrb[9].mxu1  ;;  %v1087_v11 = vadd.f32 %v17599_v35, %v21332_v57 }
 0x104   : > { %v17578_v31 = vpop.f32.mrb[10].mxu0  ;;  %v1128_v32 = vmax.f32 %v1002_v28, 0.0  ;;  %v1082_v9 = vadd.f32 %v21332_v57, %v1081_v37  ;;  %v21379_v28 = vunpack.c.l.bf16 %v15993_v27  ;;  %v16151_v37 = vld [vmem:[%s21376_s21 + $0x8] sm:$0xff]  }
 0x105   : > { %v1017_v33 = vadd.f32 %v17578_v31, %v21332_v57  ;;  %v1011_v34 = vpop.f32.mrb[11].mxu0  ;;  %v1145_v16 = vmax.f32 %v1087_v11, 0.0  ;;  %v21430_v49 = vunpack.c.h.bf16 %v16151_v37 }
 0x106   : > { %v1012_v36 = vadd.f32 %v21332_v57, %v1011_v34  ;;  %17653 = vmatprep.mubr.f32.mxu1 %v1128_v32  ;;  %v17602_v43 = vpop.f32.mrb[10].mxu1  ;;  %v1144_v14 = vmax.f32 %v1082_v9, 0.0  ;;  %26078 = vst [vmem:[#allocation5_spill] sm:$0xff] %v21379_v28  ;;  %17693 = vmatprep.mubr.msk.f32.mxu0 %vm1381_vm1, %v21379_v28  ;;  %v16159_v9 = vld [vmem:[%s21376_s21 + $0x48] sm:$0xff]   ;;  %v422_v28 = vld [vmem:[%s22339_s29 + $0x90] sm:$0xff] }
 0x107   : > { %17654 = vmatmul.mubr.f32.gmra.mrb[24].mxu1 %v1129_v30  ;;  %v1131_v38 = vmax.f32 %v1017_v33, 0.0  ;;  %v1091_v45 = vpop.f32.mrb[11].mxu1  ;;  %v1097_v15 = vadd.f32 %v17602_v43, %v21332_v57  ;;  %v21391_v30 = vld [vmem:[%s25592_s5 + $0x1] ss:$0 sm:$0xff]  ;;  %26088 = vst [vmem:[#allocation15_spill] sm:$0xff] %v21430_v49 }
 0x108   : > { %v17581_v39 = vpop.f32.mrb[12].mxu0  ;;  %v1130_v40 = vmax.f32 %v1012_v36, 0.0  ;;  %v1092_v13 = vadd.f32 %v21332_v57, %v1091_v45  ;;  %v16152_v45 = vld [vmem:[%s21376_s21 + $0x10] sm:$0xff]  }
 0x109   : > { %v1027_v41 = vadd.f32 %v17581_v39, %v21332_v57  ;;  %v1021_v42 = vpop.f32.mrb[13].mxu0  ;;  %v1147_v20 = vmax.f32 %v1097_v15, 0.0 }
 0x10a   : > { %v1022_v44 = vadd.f32 %v21332_v57, %v1021_v42  ;;  %17656 = vmatprep.mubr.f32.mxu1 %v1130_v40  ;;  %v17605_v52 = vpop.f32.mrb[12].mxu1  ;;  %v1146_v18 = vmax.f32 %v1092_v13, 0.0  ;;  %v21414_v42 = vunpack.c.l.bf16 %v16151_v37 }
 0x10b   : > { %17657 = vmatmul.mubr.f32.gmra.mrb[26].mxu1 %v1131_v38  ;;  %v1133_v46 = vmax.f32 %v1027_v41, 0.0  ;;  %v1101_v54 = vpop.f32.mrb[13].mxu1  ;;  %v1107_v19 = vadd.f32 %v17605_v52, %v21332_v57  ;;  %v21411_v41 = vunpack.c.h.bf16 %v15993_v27 }
 0x10c   : > { %v17584_v47 = vpop.f32.mrb[14].mxu0  ;;  %v1132_v48 = vmax.f32 %v1022_v44, 0.0  ;;  %v1102_v17 = vadd.f32 %v21332_v57, %v1101_v54  ;;  %26085 = vst [vmem:[#allocation12_spill] sm:$0xff] %v21414_v42 }
 0x10d   : > { %v1037_v50 = vadd.f32 %v17584_v47, %v21332_v57  ;;  %v1031_v51 = vpop.f32.mrb[15].mxu0  ;;  %v1149_v23 = vmax.f32 %v1107_v19, 0.0  ;;  %26084 = vst [vmem:[#allocation11_spill] sm:$0xff] %v21411_v41 }
 0x10e   : > { %v1032_v53 = vadd.f32 %v21332_v57, %v1031_v51  ;;  %17659 = vmatprep.mubr.f32.mxu1 %v1132_v48  ;;  %v17608_v61 = vpop.f32.mrb[14].mxu1  ;;  %v1148_v21 = vmax.f32 %v1102_v17, 0.0  ;;  %v16156_v17 = vld [vmem:[%s21376_s21 + $0x30] sm:$0xff]  }
 0x10f   : > { %17660 = vmatmul.mubr.f32.gmra.mrb[28].mxu1 %v1133_v46  ;;  %v1135_v56 = vmax.f32 %v1037_v50, 0.0  ;;  %v1111_v62 = vpop.f32.mrb[15].mxu1  ;;  %v1117_v24 = vadd.f32 %v17608_v61, %v21332_v57  ;;  %v21435_v50 = vunpack.c.l.bf16 %v16152_v45 }
 0x110   : > { %v1134_v58 = vmax.f32 %v1032_v53, 0.0  ;;  %v1112_v22 = vadd.f32 %v21332_v57, %v1111_v62  ;;  %v16158_v57 = vld [vmem:[%s21376_s21 + $0x40] sm:$0xff]   ;;  %v16153_v53 = vld [vmem:[%s21376_s21 + $0x18] sm:$0xff]  }
 0x111   : > { %v1151_v26 = vmax.f32 %v1117_v24, 0.0  ;;  %v21384_v29 = vunpack.c.l.bf16 %v16158_v57  ;;  %26089 = vst [vmem:[#allocation16_spill] sm:$0xff] %v21435_v50  ;;  %v21455_v59 = vunpack.c.l.bf16 %v16153_v53  ;;  %v16154_v62 = vld [vmem:[%s21376_s21 + $0x20] sm:$0xff]   ;;  %v21527_v24 = vunpack.c.l.bf16 %v16156_v17 }
 0x112   : > { %17662 = vmatprep.mubr.f32.mxu1 %v1134_v58  ;;  %v1150_v25 = vmax.f32 %v1112_v22, 0.0  ;;  %v21450_v58 = vunpack.c.h.bf16 %v16152_v45  ;;  %v21475_v3 = vunpack.c.l.bf16 %v16154_v62  ;;  %v21493_v11 = vunpack.c.h.bf16 %v16154_v62 }
 0x113   : > { %17663 = vmatmul.mubr.f32.gmra.mrb[30].mxu1 %v1135_v56  ;;  %26079 = vst [vmem:[#allocation6_spill] sm:$0xff] %v21384_v29  ;;  %26093 = vst [vmem:[#allocation20_spill] sm:$0xff] %v21455_v59 }
 0x114   : > { %17665 = vmatprep.mubr.f32.mxu1 %v1136_v60  ;;  %26092 = vst [vmem:[#allocation19_spill] sm:$0xff] %v21450_v58  ;;  %26097 = vst [vmem:[#allocation24_spill] sm:$0xff] %v21475_v3 }
 0x115   : > { %26100 = vst [vmem:[#allocation27_spill] sm:$0xff] %v21493_v11  ;;  %26108 = vst [vmem:[#allocation35_spill] sm:$0xff] %v21527_v24 }
 0x117   : > { %17666 = vmatmul.mubr.f32.gmra.mrb[32].mxu1 %v1137_v0 }
 0x118   : > { %17668 = vmatprep.mubr.f32.mxu1 %v1138_v2  ;;  %v21470_v2 = vunpack.c.h.bf16 %v16153_v53  ;;  %v16160_v53 = vld [vmem:[%s21376_s21 + $0x50] sm:$0xff]  }
 0x11a   : > { %26096 = vst [vmem:[#allocation23_spill] sm:$0xff] %v21470_v2 }
 0x11b   : > { %17669 = vmatmul.mubr.f32.gmra.mrb[34].mxu1 %v1139_v4 }
 0x11c   : > { %17671 = vmatprep.mubr.f32.mxu1 %v1140_v6  ;;  %v16155_v6 = vld [vmem:[%s21376_s21 + $0x28] sm:$0xff]  }
 0x11d   : > { %v21500_v13 = vunpack.c.l.bf16 %v16155_v6  ;;  %v21520_v22 = vunpack.c.h.bf16 %v16155_v6 }
 0x11f   : > { %17672 = vmatmul.mubr.f32.gmra.mrb[36].mxu1 %v1141_v8  ;;  %26102 = vst [vmem:[#allocation29_spill] sm:$0xff] %v21500_v13  ;;  %26106 = vst [vmem:[#allocation33_spill] sm:$0xff] %v21520_v22 }
 0x120   : > { %17674 = vmatprep.mubr.f32.mxu1 %v1142_v10 }
 0x123   : > { %17675 = vmatmul.mubr.f32.gmra.mrb[38].mxu1 %v1143_v12  ;;  %v21495_v12 = vunpack.c.h.bf16 %v16158_v57 }
 0x124   : > { %17677 = vmatprep.mubr.f32.mxu1 %v1144_v14 }
 0x125   : > { %26101 = vst [vmem:[#allocation28_spill] sm:$0xff] %v21495_v12 }
 0x127   : > { %17678 = vmatmul.mubr.f32.gmra.mrb[40].mxu1 %v1145_v16  ;;  %v21506_v16 = vunpack.c.l.bf16 %v16159_v9 }
 0x128   : > { %17680 = vmatprep.mubr.f32.mxu1 %v1146_v18 }
 0x129   : > { %26103 = vst [vmem:[#allocation30_spill] sm:$0xff] %v21506_v16 }
 0x12b   : > { %17681 = vmatmul.mubr.f32.gmra.mrb[42].mxu1 %v1147_v20  ;;  %v16162_v20 = vld [vmem:[%s21376_s21 + $0x60] sm:$0xff]  }
 0x12c   : > { %17683 = vmatprep.mubr.f32.mxu1 %v1148_v21  ;;  %v21536_v27 = vunpack.c.l.bf16 %v16162_v20 }
 0x12e   : > { %26109 = vst [vmem:[#allocation36_spill] sm:$0xff] %v21536_v27 }
 0x12f   : > { %17684 = vmatmul.mubr.f32.gmra.mrb[44].mxu1 %v1149_v23  ;;  %v21522_v23 = vunpack.c.h.bf16 %v16159_v9  ;;  %v21585_v9 = vunpack.c.l.bf16 %v16160_v53 }
 0x130   : > { %17686 = vmatprep.mubr.f32.mxu1 %v1150_v25 }
 0x131   : > { %26107 = vst [vmem:[#allocation34_spill] sm:$0xff] %v21522_v23  ;;  %26120 = vst [vmem:[#allocation47_spill] sm:$0xff] %v21585_v9 }
 0x133   : > { %17687 = vmatmul.mubr.f32.gmra.mrb[46].mxu1 %v1151_v26 }
 0x134   : > { %17733 = vmatprep.mubr.msk.f32.mxu1 %vm1381_vm1, %v21384_v29 }
 0x1ca   : > { %v17643_v31 = vpop.f32.mrb[16].mxu1 }
 0x1cb   : > { %v21394_v32 = vadd.f32 %v17643_v31, %v21391_v30  ;;  %v1222_v33 = vpop.f32.mrb[17].mxu1 }
 0x1cc   : > { %v21397_v34 = vadd.f32 %v21391_v30, %v1222_v33  ;;  %v16157_v33 = vld [vmem:[%s21376_s21 + $0x38] sm:$0xff]  }
 0x1cd   : > { %26080 = vst [vmem:[#allocation7_spill] sm:$0xff] %v21394_v32  ;;  %v21578_v6 = vunpack.c.h.bf16 %v16157_v33 }
 0x1ce   : > { %26081 = vst [vmem:[#allocation8_spill] sm:$0xff] %v21397_v34  ;;  %v21401_v35 = vpack.c.bf16 %v21394_v32, %v21397_v34  ;;  %v17646_v36 = vpop.f32.mrb[18].mxu1  ;;  %v16169_v32 = vld [vmem:[%s21376_s21 + $0x98] sm:$0xff]  }
 0x1cf   : > { %v21405_v38 = vadd.f32 %v17646_v36, %v21391_v30  ;;  %v1232_v39 = vpop.f32.mrb[19].mxu1  ;;  %v16163_v36 = vld [vmem:[%s21376_s21 + $0x68] sm:$0xff]   ;;  %26118 = vst [vmem:[#allocation45_spill] sm:$0xff] %v21578_v6 }
 0x1d0   : > { %v21408_v40 = vadd.f32 %v21391_v30, %v1232_v39  ;;  %19882 = vmatprep.subr.bf16.mxu0 %v21401_v35  ;;  %v21550_v39 = vunpack.c.h.bf16 %v16156_v17 }
 0x1d1   : > { %26082 = vst [vmem:[#allocation9_spill] sm:$0xff] %v21405_v38  ;;  %19884 = vmatpush3.bf16.msra.mxu0 %v21401_v35 }
 0x1d2   : > { %26083 = vst [vmem:[#allocation10_spill] sm:$0xff] %v21408_v40  ;;  %v21418_v43 = vpack.c.bf16 %v21405_v38, %v21408_v40  ;;  %v17649_v44 = vpop.f32.mrb[20].mxu1  ;;  %26112 = vst [vmem:[#allocation39_spill] sm:$0xff] %v21550_v39 }
 0x1d3   : > { %v21422_v46 = vadd.f32 %v17649_v44, %v21391_v30  ;;  %v1242_v47 = vpop.f32.mrb[21].mxu1  ;;  %v21555_v44 = vunpack.c.h.bf16 %v16162_v20 }
 0x1d4   : > { %17694 = vmatmul.mubr.msk.f32.vlgmr.msra.gmra.mrb[16].mxu0 %vm1381_vm1, %v21411_v41  ;;  %19886 = vmatprep.subr.bf16.mxu0 %v21418_v43  ;;  %v21428_v48 = vadd.f32 %v21391_v30, %v1242_v47  ;;  %v21560_v47 = vunpack.c.l.bf16 %v16157_v33  ;;  %v16167_v33 = vld [vmem:[%s21376_s21 + $0x88] sm:$0xff]   ;;  %v745_v41 = vld [vmem:[%s25591_s4 + $0x90] sm:$0xff] }
 0x1d5   : > { %26086 = vst [vmem:[#allocation13_spill] sm:$0xff] %v21422_v46  ;;  %19888 = vmatpush3.bf16.msra.mxu0 %v21418_v43  ;;  %17696 = vmatprep.mubr.msk.f32.mxu0 %vm1381_vm1, %v21414_v42  ;;  %26113 = vst [vmem:[#allocation40_spill] sm:$0xff] %v21555_v44 }
 0x1d6   : > { %26087 = vst [vmem:[#allocation14_spill] sm:$0xff] %v21428_v48  ;;  %v21439_v51 = vpack.c.bf16 %v21422_v46, %v21428_v48  ;;  %v17652_v52 = vpop.f32.mrb[22].mxu1  ;;  %26114 = vst [vmem:[#allocation41_spill] sm:$0xff] %v21560_v47  ;;  %v16174_v46 = vld [vmem:[%s21376_s21 + $0xc0] sm:$0xff]  }
 0x1d7   : > { %v21443_v54 = vadd.f32 %v17652_v52, %v21391_v30  ;;  %v1252_v55 = vpop.f32.mrb[23].mxu1  ;;  %v21562_v52 = vunpack.c.l.bf16 %v16163_v36 }
 0x1d8   : > { %17697 = vmatmul.mubr.msk.f32.gmra.mrb[18].mxu0 %vm1381_vm1, %v21430_v49  ;;  %v21448_v56 = vadd.f32 %v21391_v30, %v1252_v55  ;;  %19890 = vmatprep.subr.bf16.mxu0 %v21439_v51 }
 0x1d9   : > { %26090 = vst [vmem:[#allocation17_spill] sm:$0xff] %v21443_v54  ;;  %17703 = vmatprep.mubr.msk.f32.mxu0 %vm1381_vm1, %v21435_v50  ;;  %26115 = vst [vmem:[#allocation42_spill] sm:$0xff] %v21562_v52  ;;  %v421_v50 = vld [vmem:[%s22339_s29 + $0x88] sm:$0xff] }
 0x1da   : > { %26091 = vst [vmem:[#allocation18_spill] sm:$0xff] %v21448_v56  ;;  %v21459_v60 = vpack.c.bf16 %v21443_v54, %v21448_v56  ;;  %v17655_v61 = vpop.f32.mrb[24].mxu1 }
 0x1db   : > { %v21463_v63 = vadd.f32 %v17655_v61, %v21391_v30  ;;  %v1262_v0 = vpop.f32.mrb[25].mxu1 }
 0x1dc   : > { %v21466_v1 = vadd.f32 %v21391_v30, %v1262_v0  ;;  %17704 = vmatmul.mubr.msk.f32.vlgmr.msra.gmra.mrb[20].mxu0 %vm1381_vm1, %v21450_v58  ;;  %v16166_v0 = vld [vmem:[%s21376_s21 + $0x80] sm:$0xff]  }
 0x1dd   : > { %26094 = vst [vmem:[#allocation21_spill] sm:$0xff] %v21463_v63  ;;  %19892 = vmatpush3.bf16.msra.mxu0 %v21439_v51  ;;  %17706 = vmatprep.mubr.msk.f32.mxu0 %vm1381_vm1, %v21455_v59  ;;  %v420_v59 = vld [vmem:[%s22339_s29 + $0x80] sm:$0xff] }
 0x1de   : > { %26095 = vst [vmem:[#allocation22_spill] sm:$0xff] %v21466_v1  ;;  %v21479_v4 = vpack.c.bf16 %v21463_v63, %v21466_v1  ;;  %v17658_v5 = vpop.f32.mrb[26].mxu1  ;;  %19894 = vmatprep.subr.bf16.mxu0 %v21459_v60  ;;  %v16171_v1 = vld [vmem:[%s21376_s21 + $0xa8] sm:$0xff]  }
 0x1df   : > { %v21484_v7 = vadd.f32 %v17658_v5, %v21391_v30  ;;  %v1272_v8 = vpop.f32.mrb[27].mxu1 }
 0x1e0   : > { %17707 = vmatmul.mubr.msk.f32.gmra.mrb[22].mxu0 %vm1381_vm1, %v21470_v2  ;;  %19898 = vmatprep.subr.bf16.mxu1 %v21479_v4  ;;  %v21491_v10 = vadd.f32 %v21391_v30, %v1272_v8  ;;  %v21583_v8 = vunpack.c.h.bf16 %v16163_v36 }
 0x1e1   : > { %26098 = vst [vmem:[#allocation25_spill] sm:$0xff] %v21484_v7  ;;  %19900 = vmatpush3.bf16.msra.mxu1 %v21479_v4  ;;  %17713 = vmatprep.mubr.msk.f32.mxu0 %vm1381_vm1, %v21475_v3 }
 0x1e2   : > { %26099 = vst [vmem:[#allocation26_spill] sm:$0xff] %v21491_v10  ;;  %v21504_v14 = vpack.c.bf16 %v21484_v7, %v21491_v10  ;;  %v17661_v15 = vpop.f32.mrb[28].mxu1  ;;  %26119 = vst [vmem:[#allocation46_spill] sm:$0xff] %v21583_v8  ;;  %v16165_v7 = vld [vmem:[%s21376_s21 + $0x78] sm:$0xff]  }
 0x1e3   : > { %v21510_v18 = vadd.f32 %v17661_v15, %v21391_v30  ;;  %v1282_v19 = vpop.f32.mrb[29].mxu1  ;;  %v21680_v56 = vunpack.c.l.bf16 %v16165_v7  ;;  %v21698_v38 = vunpack.c.h.bf16 %v16165_v7 }
 0x1e4   : > { %v21514_v21 = vadd.f32 %v21391_v30, %v1282_v19  ;;  %17714 = vmatmul.mubr.msk.f32.vlgmr.msra.gmra.mrb[24].mxu0 %vm1381_vm1, %v21493_v11  ;;  %17734 = vmatmul.mubr.msk.f32.vlgmr.msra.gmra.mrb[48].mxu1 %vm1381_vm1, %v21495_v12  ;;  %v21595_v19 = vunpack.c.l.bf16 %v16166_v0 }
 0x1e5   : > { %26104 = vst [vmem:[#allocation31_spill] sm:$0xff] %v21510_v18  ;;  %19896 = vmatpush3.bf16.msra.mxu0 %v21459_v60  ;;  %17716 = vmatprep.mubr.msk.f32.mxu0 %vm1381_vm1, %v21500_v13  ;;  %26138 = vst [vmem:[#allocation65_spill] sm:$0xff] %v21680_v56 }
 0x1e6   : > { %26105 = vst [vmem:[#allocation32_spill] sm:$0xff] %v21514_v21  ;;  %v21531_v25 = vpack.c.bf16 %v21510_v18, %v21514_v21  ;;  %17736 = vmatprep.mubr.msk.f32.mxu1 %vm1381_vm1, %v21506_v16  ;;  %v17664_v26 = vpop.f32.mrb[30].mxu1  ;;  %19902 = vmatprep.subr.bf16.mxu0 %v21504_v14  ;;  %26121 = vst [vmem:[#allocation48_spill] sm:$0xff] %v21595_v19 }
 0x1e7   : > { %v21539_v57 = vadd.f32 %v17664_v26, %v21391_v30  ;;  %v1292_v31 = vpop.f32.mrb[31].mxu1  ;;  %26142 = vst [vmem:[#allocation69_spill] sm:$0xff] %v21698_v38 }
 0x1e8   : > { %17717 = vmatmul.mubr.msk.f32.gmra.mrb[26].mxu0 %vm1381_vm1, %v21520_v22  ;;  %17737 = vmatmul.mubr.msk.f32.gmra.mrb[50].mxu1 %vm1381_vm1, %v21522_v23  ;;  %v21548_v37 = vadd.f32 %v21391_v30, %v1292_v31  ;;  %v16161_v31 = vld [vmem:[%s21376_s21 + $0x58] sm:$0xff]   ;;  %v410_v23 = vld [vmem:[%s22339_s29 + $0x30] sm:$0xff] }
 0x1e9   : > { %26110 = vst [vmem:[#allocation37_spill] sm:$0xff] %v21539_v57  ;;  %19906 = vmatprep.subr.bf16.mxu1 %v21531_v25  ;;  %17723 = vmatprep.mubr.msk.f32.mxu0 %vm1381_vm1, %v21527_v24  ;;  %v21638_v18 = vunpack.c.h.bf16 %v16161_v31  ;;  %v418_v24 = vld [vmem:[%s22339_s29 + $0x70] sm:$0xff] }
 0x1ea   : > { %26111 = vst [vmem:[#allocation38_spill] sm:$0xff] %v21548_v37  ;;  %19908 = vmatpush3.bf16.msra.mxu1 %v21531_v25  ;;  %v17667_v45 = vpop.f32.mrb[32].mxu1  ;;  %17753 = vmatprep.mubr.msk.f32.mxu1 %vm1381_vm1, %v21536_v27  ;;  %v21567_v55 = vpack.c.bf16 %v21539_v57, %v21548_v37  ;;  %v16170_v57 = vld [vmem:[%s21376_s21 + $0xa0] sm:$0xff]  }
 0x1eb   : > { %v21570_v61 = vadd.f32 %v17667_v45, %v21391_v30  ;;  %v1302_v62 = vpop.f32.mrb[33].mxu1  ;;  %v21609_v45 = vunpack.c.h.bf16 %v16160_v53  ;;  %v16164_v53 = vld [vmem:[%s21376_s21 + $0x70] sm:$0xff]   ;;  %26130 = vst [vmem:[#allocation57_spill] sm:$0xff] %v21638_v18  ;;  %v412_v27 = vld [vmem:[%s22339_s29 + $0x40] sm:$0xff] }
 0x1ec   : > { %v21574_v5 = vadd.f32 %v21391_v30, %v1302_v62  ;;  %17724 = vmatmul.mubr.msk.f32.vlgmr.msra.gmra.mrb[28].mxu0 %vm1381_vm1, %v21550_v39  ;;  %v21615_v62 = vunpack.c.h.bf16 %v16166_v0 }
 0x1ed   : > { %26116 = vst [vmem:[#allocation43_spill] sm:$0xff] %v21570_v61  ;;  %19904 = vmatpush3.bf16.msra.mxu0 %v21504_v14  ;;  %17754 = vmatmul.mubr.msk.f32.vlgmr.msra.gmra.mrb[52].mxu1 %vm1381_vm1, %v21555_v44  ;;  %26124 = vst [vmem:[#allocation51_spill] sm:$0xff] %v21609_v45 }
 0x1ee   : > { %26117 = vst [vmem:[#allocation44_spill] sm:$0xff] %v21574_v5  ;;  %v21589_v15 = vpack.c.bf16 %v21570_v61, %v21574_v5  ;;  %17726 = vmatprep.mubr.msk.f32.mxu0 %vm1381_vm1, %v21560_v47  ;;  %17756 = vmatprep.mubr.msk.f32.mxu1 %vm1381_vm1, %v21562_v52  ;;  %v17670_v17 = vpop.f32.mrb[34].mxu1  ;;  %26125 = vst [vmem:[#allocation52_spill] sm:$0xff] %v21615_v62  ;;  %v21620_v5 = vunpack.c.l.bf16 %v16161_v31  ;;  %v416_v47 = vld [vmem:[%s22339_s29 + $0x60] sm:$0xff] }
 0x1ef   : > { %v21598_v20 = vadd.f32 %v17670_v17, %v21391_v30  ;;  %v1312_v26 = vpop.f32.mrb[35].mxu1  ;;  %19910 = vmatprep.subr.bf16.mxu0 %v21567_v55 }
 0x1f0   : > { %17727 = vmatmul.mubr.msk.f32.gmra.mrb[30].mxu0 %vm1381_vm1, %v21578_v6  ;;  %19914 = vmatprep.subr.bf16.mxu1 %v21589_v15  ;;  %v21607_v36 = vadd.f32 %v21391_v30, %v1312_v26  ;;  %26126 = vst [vmem:[#allocation53_spill] sm:$0xff] %v21620_v5  ;;  %v21622_v26 = vunpack.c.l.bf16 %v16167_v33 }
 0x1f1   : > { %26122 = vst [vmem:[#allocation49_spill] sm:$0xff] %v21598_v20  ;;  %17757 = vmatmul.mubr.msk.f32.gmra.mrb[54].mxu1 %vm1381_vm1, %v21583_v8  ;;  %17743 = vmatprep.mubr.msk.f32.mxu0 %vm1381_vm1, %v21585_v9  ;;  %v413_v9 = vld [vmem:[%s22339_s29 + $0x48] sm:$0xff] }
 0x1f2   : > { %26123 = vst [vmem:[#allocation50_spill] sm:$0xff] %v21607_v36  ;;  %19916 = vmatpush3.bf16.msra.mxu1 %v21589_v15  ;;  %v17673_v17 = vpop.f32.mrb[36].mxu1  ;;  %17773 = vmatprep.mubr.msk.f32.mxu1 %vm1381_vm1, %v21595_v19  ;;  %26127 = vst [vmem:[#allocation54_spill] sm:$0xff] %v21622_v26  ;;  %v21627_v61 = vpack.c.bf16 %v21598_v20, %v21607_v36  ;;  %v21643_v36 = vunpack.c.h.bf16 %v16167_v33  ;;  %v408_v19 = vld [vmem:[%s22339_s29 + $0x20] sm:$0xff] }
 0x1f3   : > { %v21630_v37 = vadd.f32 %v17673_v17, %v21391_v30  ;;  %v1322_v0 = vpop.f32.mrb[37].mxu1  ;;  %v21645_v17 = vunpack.c.l.bf16 %v16164_v53 }
 0x1f4   : > { %v21634_v21 = vadd.f32 %v21391_v30, %v1322_v0  ;;  %17744 = vmatmul.mubr.msk.f32.vlgmr.msra.gmra.mrb[32].mxu0 %vm1381_vm1, %v21609_v45  ;;  %26131 = vst [vmem:[#allocation58_spill] sm:$0xff] %v21643_v36  ;;  %v21655_v0 = vunpack.c.l.bf16 %v16170_v57 }
 0x1f5   : > { %26128 = vst [vmem:[#allocation55_spill] sm:$0xff] %v21630_v37  ;;  %19912 = vmatpush3.bf16.msra.mxu0 %v21567_v55  ;;  %17774 = vmatmul.mubr.msk.f32.vlgmr.msra.gmra.mrb[56].mxu1 %vm1381_vm1, %v21615_v62  ;;  %26132 = vst [vmem:[#allocation59_spill] sm:$0xff] %v21645_v17 }
 0x1f6   : > { %26129 = vst [vmem:[#allocation56_spill] sm:$0xff] %v21634_v21  ;;  %v21649_v20 = vpack.c.bf16 %v21630_v37, %v21634_v21  ;;  %17746 = vmatprep.mubr.msk.f32.mxu0 %vm1381_vm1, %v21620_v5  ;;  %17776 = vmatprep.mubr.msk.f32.mxu1 %vm1381_vm1, %v21622_v26  ;;  %v17676_v31 = vpop.f32.mrb[38].mxu1  ;;  %26133 = vst [vmem:[#allocation60_spill] sm:$0xff] %v21655_v0  ;;  %v21669_v37 = vunpack.c.h.bf16 %v16164_v53  ;;  %v16168_v53 = vld [vmem:[%s21376_s21 + $0x90] sm:$0xff]  }
 0x1f7   : > { %v21658_v10 = vadd.f32 %v17676_v31, %v21391_v30  ;;  %v1332_v33 = vpop.f32.mrb[39].mxu1  ;;  %19918 = vmatprep.subr.bf16.mxu0 %v21627_v61  ;;  %v21675_v31 = vunpack.c.h.bf16 %v16170_v57 }
 0x1f8   : > { %17747 = vmatmul.mubr.msk.f32.gmra.mrb[34].mxu0 %vm1381_vm1, %v21638_v18  ;;  %19922 = vmatprep.subr.bf16.mxu1 %v21649_v20  ;;  %v21667_v21 = vadd.f32 %v21391_v30, %v1332_v33  ;;  %26136 = vst [vmem:[#allocation63_spill] sm:$0xff] %v21669_v37  ;;  %v21682_v33 = vunpack.c.l.bf16 %v16171_v1 }
 0x1f9   : > { %26134 = vst [vmem:[#allocation61_spill] sm:$0xff] %v21658_v10  ;;  %17777 = vmatmul.mubr.msk.f32.gmra.mrb[58].mxu1 %vm1381_vm1, %v21643_v36  ;;  %17763 = vmatprep.mubr.msk.f32.mxu0 %vm1381_vm1, %v21645_v17  ;;  %26137 = vst [vmem:[#allocation64_spill] sm:$0xff] %v21675_v31  ;;  %v16175_v36 = vld [vmem:[%s21376_s21 + $0xc8] sm:$0xff]   ;;  %v411_v17 = vld [vmem:[%s22339_s29 + $0x38] sm:$0xff] }
 0x1fa   : > { %26135 = vst [vmem:[#allocation62_spill] sm:$0xff] %v21667_v21  ;;  %19924 = vmatpush3.bf16.msra.mxu1 %v21649_v20  ;;  %v17679_v63 = vpop.f32.mrb[40].mxu1  ;;  %17793 = vmatprep.mubr.msk.f32.mxu1 %vm1381_vm1, %v21655_v0  ;;  %26139 = vst [vmem:[#allocation66_spill] sm:$0xff] %v21682_v33  ;;  %v21687_v54 = vpack.c.bf16 %v21658_v10, %v21667_v21  ;;  %v21703_v21 = vunpack.c.h.bf16 %v16171_v1  ;;  %v16178_v0 = vld [vmem:[%s21376_s21 + $0xe0] sm:$0xff]  }
 0x1fb   : > { %v21690_v48 = vadd.f32 %v17679_v63, %v21391_v30  ;;  %v1342_v57 = vpop.f32.mrb[41].mxu1  ;;  %v21705_v63 = vunpack.c.l.bf16 %v16168_v53 }
 0x1fc   : > { %v21694_v40 = vadd.f32 %v21391_v30, %v1342_v57  ;;  %17764 = vmatmul.mubr.msk.f32.vlgmr.msra.gmra.mrb[36].mxu0 %vm1381_vm1, %v21669_v37  ;;  %26143 = vst [vmem:[#allocation70_spill] sm:$0xff] %v21703_v21  ;;  %v21715_v57 = vunpack.c.l.bf16 %v16174_v46 }
 0x1fd   : > { %26140 = vst [vmem:[#allocation67_spill] sm:$0xff] %v21690_v48  ;;  %19920 = vmatpush3.bf16.msra.mxu0 %v21627_v61  ;;  %17794 = vmatmul.mubr.msk.f32.vlgmr.msra.gmra.mrb[60].mxu1 %vm1381_vm1, %v21675_v31  ;;  %26144 = vst [vmem:[#allocation71_spill] sm:$0xff] %v21705_v63  ;;  %v21740_v31 = vunpack.c.l.bf16 %v16169_v32 }
 0x1fe   : > { %26141 = vst [vmem:[#allocation68_spill] sm:$0xff] %v21694_v40  ;;  %v21709_v10 = vpack.c.bf16 %v21690_v48, %v21694_v40  ;;  %17766 = vmatprep.mubr.msk.f32.mxu0 %vm1381_vm1, %v21680_v56  ;;  %17796 = vmatprep.mubr.msk.f32.mxu1 %vm1381_vm1, %v21682_v33  ;;  %v17682_v7 = vpop.f32.mrb[42].mxu1  ;;  %26145 = vst [vmem:[#allocation72_spill] sm:$0xff] %v21715_v57  ;;  %v21729_v48 = vunpack.c.h.bf16 %v16168_v53  ;;  %v16172_v53 = vld [vmem:[%s21376_s21 + $0xb0] sm:$0xff]  }
 0x1ff   : > { %v21718_v34 = vadd.f32 %v17682_v7, %v21391_v30  ;;  %v1352_v1 = vpop.f32.mrb[43].mxu1  ;;  %19926 = vmatprep.subr.bf16.mxu0 %v21687_v54  ;;  %v21735_v7 = vunpack.c.h.bf16 %v16174_v46  ;;  %26150 = vst [vmem:[#allocation77_spill] sm:$0xff] %v21740_v31 }
 0x200   : > { %17767 = vmatmul.mubr.msk.f32.gmra.mrb[38].mxu0 %vm1381_vm1, %v21698_v38  ;;  %19930 = vmatprep.subr.bf16.mxu1 %v21709_v10  ;;  %v21727_v40 = vadd.f32 %v21391_v30, %v1352_v1  ;;  %26148 = vst [vmem:[#allocation75_spill] sm:$0xff] %v21729_v48  ;;  %v21742_v1 = vunpack.c.l.bf16 %v16175_v36 }
 0x201   : > { %26146 = vst [vmem:[#allocation73_spill] sm:$0xff] %v21718_v34  ;;  %17797 = vmatmul.mubr.msk.f32.gmra.mrb[62].mxu1 %vm1381_vm1, %v21703_v21  ;;  %17783 = vmatprep.mubr.msk.f32.mxu0 %vm1381_vm1, %v21705_v63  ;;  %26149 = vst [vmem:[#allocation76_spill] sm:$0xff] %v21735_v7 }
 0x202   : > { %26147 = vst [vmem:[#allocation74_spill] sm:$0xff] %v21727_v40  ;;  %19932 = vmatpush3.bf16.msra.mxu1 %v21709_v10  ;;  %v17685_v33 = vpop.f32.mrb[44].mxu1  ;;  %17813 = vmatprep.mubr.msk.f32.mxu1 %vm1381_vm1, %v21715_v57  ;;  %26151 = vst [vmem:[#allocation78_spill] sm:$0xff] %v21742_v1  ;;  %v21747_v26 = vpack.c.bf16 %v21718_v34, %v21727_v40  ;;  %v21758_v57 = vunpack.c.h.bf16 %v16169_v32  ;;  %v21763_v40 = vunpack.c.h.bf16 %v16175_v36  ;;  %v21775_v32 = vunpack.c.l.bf16 %v16178_v0 }
 0x203   : > { %v21750_v21 = vadd.f32 %v17685_v33, %v21391_v30  ;;  %v1362_v46 = vpop.f32.mrb[45].mxu1  ;;  %v21765_v33 = vunpack.c.l.bf16 %v16172_v53 }
 0x204   : > { %v21754_v62 = vadd.f32 %v21391_v30, %v1362_v46  ;;  %17784 = vmatmul.mubr.msk.f32.vlgmr.msra.gmra.mrb[40].mxu0 %vm1381_vm1, %v21729_v48  ;;  %26154 = vst [vmem:[#allocation81_spill] sm:$0xff] %v21758_v57  ;;  %26155 = vst [vmem:[#allocation82_spill] sm:$0xff] %v21763_v40  ;;  %v16173_v48 = vld [vmem:[%s21376_s21 + $0xb8] sm:$0xff]  }
 0x205   : > { %26152 = vst [vmem:[#allocation79_spill] sm:$0xff] %v21750_v21  ;;  %19928 = vmatpush3.bf16.msra.mxu0 %v21687_v54  ;;  %17814 = vmatmul.mubr.msk.f32.vlgmr.msra.gmra.mrb[64].mxu1 %vm1381_vm1, %v21735_v7  ;;  %26156 = vst [vmem:[#allocation83_spill] sm:$0xff] %v21765_v33 }
 0x206   : > { %26153 = vst [vmem:[#allocation80_spill] sm:$0xff] %v21754_v62  ;;  %v21769_v46 = vpack.c.bf16 %v21750_v21, %v21754_v62  ;;  %17786 = vmatprep.mubr.msk.f32.mxu0 %vm1381_vm1, %v21740_v31  ;;  %17816 = vmatprep.mubr.msk.f32.mxu1 %vm1381_vm1, %v21742_v1  ;;  %26157 = vst [vmem:[#allocation84_spill] sm:$0xff] %v21775_v32  ;;  %v17688_v34 = vpop.f32.mrb[46].mxu1  ;;  %v21791_v62 = vunpack.c.h.bf16 %v16172_v53  ;;  %v21801_v1 = vunpack.c.h.bf16 %v16178_v0  ;;  %v16176_v53 = vld [vmem:[%s21376_s21 + $0xd0] sm:$0xff]  }
 0x207   : > { %19934 = vmatprep.subr.bf16.mxu0 %v21747_v26  ;;  %v21779_v36 = vadd.f32 %v17688_v34, %v21391_v30  ;;  %v1372_v7 = vpop.f32.mrb[47].mxu1  ;;  %v16179_v34 = vld [vmem:[%s21376_s21 + $0xe8] sm:$0xff]   ;;  %v21828_v31 = vunpack.c.l.bf16 %v16176_v53 }
 0x208   : > { %17787 = vmatmul.mubr.msk.f32.gmra.mrb[42].mxu0 %vm1381_vm1, %v21758_v57  ;;  %19938 = vmatprep.subr.bf16.mxu1 %v21769_v46  ;;  %26159 = vst [vmem:[#allocation86_spill] sm:$0xff] %v21791_v62  ;;  %v21794_v21 = vadd.f32 %v21391_v30, %v1372_v7  ;;  %26161 = vst [vmem:[#allocation88_spill] sm:$0xff] %v21801_v1  ;;  %v21806_v57 = vunpack.c.l.bf16 %v16173_v48  ;;  %v21810_v30 = vunpack.c.l.bf16 %v16179_v34  ;;  %v21813_v7 = vld [vmem:[%s21786_s13] sm:$0xff]  }
 0x209   : > { %26158 = vst [vmem:[#allocation85_spill] sm:$0xff] %v21779_v36  ;;  %17817 = vmatmul.mubr.msk.f32.gmra.mrb[66].mxu1 %vm1381_vm1, %v21763_v40  ;;  %17803 = vmatprep.mubr.msk.f32.mxu0 %vm1381_vm1, %v21765_v33  ;;  %26164 = vst [vmem:[#allocation91_spill] sm:$0xff] %v21813_v7  ;;  %v21821_v40 = vunpack.c.h.bf16 %v16173_v48  ;;  %v21849_v48 = vld [vmem:[%s21786_s13 + $0x8] sm:$0xff]  }
 0x20a   : > { %26160 = vst [vmem:[#allocation87_spill] sm:$0xff] %v21794_v21  ;;  %19940 = vmatpush3.bf16.msra.mxu1 %v21769_v46  ;;  %17833 = vmatprep.mubr.msk.f32.mxu1 %vm1381_vm1, %v21775_v32  ;;  %26162 = vst [vmem:[#allocation89_spill] sm:$0xff] %v21806_v57  ;;  %v21819_v0 = vpack.c.bf16 %v21779_v36, %v21794_v21  ;;  %v21826_v32 = vunpack.c.h.bf16 %v16179_v34  ;;  %v21839_v34 = vunpack.c.h.bf16 %v16176_v53  ;;  %v16177_v21 = vld [vmem:[%s21376_s21 + $0xd8] sm:$0xff]   ;;  %v26170_v36 = vunpack.c.l.bf16 %v21813_v7 }
 0x20b   : > { %19946 = vmatprep.subr.bf16.mxu1 %v21401_v35  ;;  %26163 = vst [vmem:[#allocation90_spill] sm:$0xff] %v21810_v30  ;;  %26165 = vst [vmem:[#allocation92_spill] sm:$0xff] %v21821_v40  ;;  %v21855_v53 = vunpack.c.l.bf16 %v16177_v21 }
 0x20c   : > { %17804 = vmatmul.mubr.msk.f32.vlgmr.msra.gmra.mrb[44].mxu0 %vm1381_vm1, %v21791_v62  ;;  %26166 = vst [vmem:[#allocation93_spill] sm:$0xff] %v21826_v32  ;;  %26167 = vst [vmem:[#allocation94_spill] sm:$0xff] %v21828_v31  ;;  %v405_v62 = vld [vmem:[%s22339_s29 + $0x8] sm:$0xff] }
 0x20d   : > { %19936 = vmatpush3.bf16.msra.mxu0 %v21747_v26  ;;  %17834 = vmatmul.mubr.msk.f32.vlgmr.msra.gmra.mrb[68].mxu1 %vm1381_vm1, %v21801_v1  ;;  %26168 = vst [vmem:[#allocation95_spill] sm:$0xff] %v21839_v34  ;;  %26169 = vst [vmem:[#allocation96_spill] sm:$0xff] %v21849_v48  ;;  %v21858_v1 = vld [vmem:[%s21786_s13 + $0x20] sm:$0xff]  }
 0x20e   : > { %19948 = vmatpush3.bf16.msra.mxu1 %v21401_v35  ;;  %17806 = vmatprep.mubr.msk.f32.mxu0 %vm1381_vm1, %v21806_v57  ;;  %v25667_v35 = vunpack.c.h.bf16 %v21813_v7  ;;  %26171 = vst [vmem:[#allocation97_spill] sm:$0xff] %v21855_v53  ;;  %26172 = vst [vmem:[#allocation98_spill] sm:$0xff] %v21858_v1  ;;  %v21893_v7 = vld [vmem:[%s21786_s13 + $0x28] sm:$0xff]   ;;  %v406_v57 = vld [vmem:[%s22339_s29 + $0x10] sm:$0xff] }
 0x20f   : > { %19954 = vmatprep.subr.bf16.mxu1 %v21439_v51  ;;  %17836 = vmatprep.mubr.msk.f32.mxu1 %vm1381_vm1, %v21810_v30  ;;  %v16180_v30 = vld [vmem:[%s21376_s21 + $0xf0] sm:$0xff]   ;;  %26176 = vst [vmem:[#allocation102_spill] sm:$0xff] %v21893_v7 }
 0x210   : > { %17807 = vmatmul.mubr.msk.f32.gmra.mrb[46].mxu0 %vm1381_vm1, %v21821_v40  ;;  %19942 = vmatprep.subr.bf16.mxu0 %v21819_v0  ;;  %v21863_v40 = vunpack.c.h.bf16 %v16177_v21  ;;  %v25680_v21 = vunpack.c.h.bf16 %v21858_v1 }
 0x211   : > { %17837 = vmatmul.mubr.msk.f32.gmra.mrb[70].mxu1 %vm1381_vm1, %v21826_v32  ;;  %17823 = vmatprep.mubr.msk.f32.mxu0 %vm1381_vm1, %v21828_v31  ;;  %v25672_v32 = vunpack.c.l.bf16 %v21849_v48  ;;  %v21870_v31 = vunpack.c.l.bf16 %v16180_v30 }
 0x212   : > { %17853 = vmatprep.mubr.msk.f32.mxu1 %vm1381_vm1, %v26170_v36  ;;  %26173 = vst [vmem:[#allocation99_spill] sm:$0xff] %v21863_v40  ;;  %v25675_v36 = vunpack.c.h.bf16 %v21849_v48 }
 0x213   : > { %26174 = vst [vmem:[#allocation100_spill] sm:$0xff] %v21870_v31 }
 0x214   : > { %17824 = vmatmul.mubr.msk.f32.vlgmr.msra.gmra.mrb[48].mxu0 %vm1381_vm1, %v21839_v34 }
 0x215   : > { %19944 = vmatpush3.bf16.msra.mxu0 %v21819_v0  ;;  %17854 = vmatmul.mubr.msk.f32.vlgmr.msra.gmra.mrb[72].mxu1 %vm1381_vm1, %v25667_v35  ;;  %v21883_v35 = vunpack.c.h.bf16 %v16180_v30 }
 0x216   : > { %19956 = vmatpush3.bf16.msra.mxu1 %v21439_v51  ;;  %19950 = vmatprep.subr.bf16.mxu0 %v21418_v43  ;;  %v16181_v51 = vld [vmem:[%s21376_s21 + $0xf8] sm:$0xff]  }
 0x217   : > { %19962 = vmatprep.subr.bf16.mxu1 %v21479_v4  ;;  %17826 = vmatprep.mubr.msk.f32.mxu0 %vm1381_vm1, %v21855_v53  ;;  %26175 = vst [vmem:[#allocation101_spill] sm:$0xff] %v21883_v35  ;;  %v26177_v53 = vunpack.c.l.bf16 %v21858_v1  ;;  %v21901_v30 = vunpack.c.l.bf16 %v16181_v51  ;;  %v21909_v48 = vunpack.c.h.bf16 %v16181_v51  ;;  %v21940_v51 = vld [vmem:[%s21786_s13 + $0x48] sm:$0xff]   ;;  %v21946_v1 = vld [vmem:[%s21786_s13 + $0x30] sm:$0xff]  }
 0x218   : > { %17856 = vmatprep.mubr.msk.f32.mxu1 %vm1381_vm1, %v25672_v32  ;;  %17827 = vmatmul.mubr.msk.f32.gmra.mrb[50].mxu0 %vm1381_vm1, %v21863_v40  ;;  %v21899_v32 = vld [vmem:[%s21786_s13 + $0x10] sm:$0xff]   ;;  %v21904_v40 = vld [vmem:[%s21786_s13 + $0x40] sm:$0xff]   ;;  %26183 = vst [vmem:[#allocation108_spill] sm:$0xff] %v21940_v51  ;;  %26185 = vst [vmem:[#allocation109_spill] sm:$0xff] %v21946_v1 }
 0x219   : > { %17857 = vmatmul.mubr.msk.f32.gmra.mrb[74].mxu1 %vm1381_vm1, %v25675_v36  ;;  %17843 = vmatprep.mubr.msk.f32.mxu0 %vm1381_vm1, %v21870_v31  ;;  %26178 = vst [vmem:[#allocation103_spill] sm:$0xff] %v21899_v32  ;;  %26179 = vst [vmem:[#allocation104_spill] sm:$0xff] %v21901_v30  ;;  %v25681_v36 = vunpack.c.l.bf16 %v21893_v7  ;;  %v25687_v31 = vunpack.c.l.bf16 %v21899_v32 }
 0x21a   : > { %17873 = vmatprep.mubr.msk.f32.mxu1 %vm1381_vm1, %v26177_v53  ;;  %26180 = vst [vmem:[#allocation105_spill] sm:$0xff] %v21904_v40  ;;  %26181 = vst [vmem:[#allocation106_spill] sm:$0xff] %v21909_v48  ;;  %v25686_v53 = vunpack.c.h.bf16 %v21893_v7  ;;  %v26188_v7 = vunpack.c.h.bf16 %v21904_v40 }
 0x21c   : > { %17844 = vmatmul.mubr.msk.f32.vlgmr.msra.gmra.mrb[52].mxu0 %vm1381_vm1, %v21883_v35 }
 0x21d   : > { %19952 = vmatpush3.bf16.msra.mxu0 %v21418_v43  ;;  %17874 = vmatmul.mubr.msk.f32.vlgmr.msra.gmra.mrb[76].mxu1 %vm1381_vm1, %v25680_v21  ;;  %v25695_v43 = vunpack.c.l.bf16 %v21946_v1 }
 0x21e   : > { %19964 = vmatpush3.bf16.msra.mxu1 %v21479_v4  ;;  %19958 = vmatprep.subr.bf16.mxu0 %v21459_v60  ;;  %v21930_v4 = vld [vmem:[%s21786_s13 + $0x18] sm:$0xff]  }
 0x21f   : > { %19970 = vmatprep.subr.bf16.mxu1 %v21531_v25  ;;  %17846 = vmatprep.mubr.msk.f32.mxu0 %vm1381_vm1, %v21901_v30  ;;  %26182 = vst [vmem:[#allocation107_spill] sm:$0xff] %v21930_v4  ;;  %v25691_v21 = vunpack.c.h.bf16 %v21930_v4  ;;  %v21110_v30 = vmov 0  }
 0x220   : > { %17876 = vmatprep.mubr.msk.f32.mxu1 %vm1381_vm1, %v25681_v36  ;;  %17847 = vmatmul.mubr.msk.f32.gmra.mrb[54].mxu0 %vm1381_vm1, %v21909_v48  ;;  %v26184_v36 = vunpack.c.l.bf16 %v21904_v40  ;;  %v21950_v48 = vld [vmem:[%s21786_s13 + $0x60] sm:$0xff]  }
 0x221   : > { %17877 = vmatmul.mubr.msk.f32.gmra.mrb[78].mxu1 %vm1381_vm1, %v25686_v53  ;;  %17863 = vmatprep.mubr.msk.f32.mxu0 %vm1381_vm1, %v25687_v31  ;;  %26186 = vst [vmem:[#allocation110_spill] sm:$0xff] %v21950_v48  ;;  %v26187_v53 = vunpack.c.h.bf16 %v21899_v32  ;;  %v25690_v31 = vunpack.c.l.bf16 %v21940_v51  ;;  %v21998_v40 = vld [vmem:[%s21786_s13 + $0x80] sm:$0xff]  }
 0x222   : > { %17893 = vmatprep.mubr.msk.f32.mxu1 %vm1381_vm1, %v26184_v36  ;;  %v25694_v36 = vunpack.c.h.bf16 %v21940_v51  ;;  %26194 = vst [vmem:[#allocation114_spill] sm:$0xff] %v21998_v40  ;;  %v26196_v51 = vunpack.c.h.bf16 %v21950_v48  ;;  %20918 = vset.pattern.permute.xlu0 %v21110_v30 }
 0x223   : > { %20919 = vset.pattern.permute.xlu1 %v21110_v30  ;;  %v407_v30 = vld [vmem:[%s22339_s29 + $0x18] sm:$0xff] }
 0x224   : > { %17864 = vmatmul.mubr.msk.f32.vlgmr.msra.gmra.mrb[56].mxu0 %vm1381_vm1, %v26187_v53  ;;  %v21988_v53 = vld [vmem:[%s21786_s13 + $0x68] sm:$0xff]   ;;  %5268 = vperm.xlu1 %20919, %v406_v57  }
 0x225   : > { %19960 = vmatpush3.bf16.msra.mxu0 %v21459_v60  ;;  %17894 = vmatmul.mubr.msk.f32.vlgmr.msra.gmra.mrb[80].mxu1 %vm1381_vm1, %v26188_v7  ;;  %v26189_v60 = vunpack.c.l.bf16 %v21930_v4  ;;  %v21978_v7 = vld [vmem:[%s21786_s13 + $0x38] sm:$0xff]   ;;  %26191 = vst [vmem:[#allocation112_spill] sm:$0xff] %v21988_v53  ;;  %v409_v57 = vld [vmem:[%s22339_s29 + $0x28] sm:$0xff] }
 0x226   : > { %19972 = vmatpush3.bf16.msra.mxu1 %v21531_v25  ;;  %19966 = vmatprep.subr.bf16.mxu0 %v21504_v14  ;;  %26190 = vst [vmem:[#allocation111_spill] sm:$0xff] %v21978_v7 }
 0x227   : > { %19978 = vmatprep.subr.bf16.mxu1 %v21589_v15  ;;  %17866 = vmatprep.mubr.msk.f32.mxu0 %vm1381_vm1, %v26189_v60  ;;  %v25699_v60 = vunpack.c.h.bf16 %v21978_v7 }
 0x228   : > { %17896 = vmatprep.mubr.msk.f32.mxu1 %vm1381_vm1, %v25690_v31  ;;  %17867 = vmatmul.mubr.msk.f32.gmra.mrb[58].mxu0 %vm1381_vm1, %v25691_v21  ;;  %v26192_v31 = vunpack.c.l.bf16 %v21950_v48  ;;  %v21994_v21 = vld [vmem:[%s21786_s13 + $0x50] sm:$0xff]   ;;  %v22046_v48 = vld [vmem:[%s21786_s13 + $0xa0] sm:$0xff]  }
 0x229   : > { %17897 = vmatmul.mubr.msk.f32.gmra.mrb[82].mxu1 %vm1381_vm1, %v25694_v36  ;;  %17883 = vmatprep.mubr.msk.f32.mxu0 %vm1381_vm1, %v25695_v43  ;;  %26193 = vst [vmem:[#allocation113_spill] sm:$0xff] %v21994_v21  ;;  %v26195_v36 = vunpack.c.h.bf16 %v21946_v1  ;;  %v25698_v43 = vunpack.c.l.bf16 %v21988_v53  ;;  %v25703_v25 = vunpack.c.l.bf16 %v21994_v21  ;;  %26202 = vst [vmem:[#allocation118_spill] sm:$0xff] %v22046_v48  ;;  %v404_v1 = vld [vmem:[%s22339_s29] sm:$0xff] }
 0x22a   : > { %17913 = vmatprep.mubr.msk.f32.mxu1 %vm1381_vm1, %v26192_v31  ;;  %v25702_v31 = vunpack.c.h.bf16 %v21988_v53  ;;  %v26204_v53 = vunpack.c.h.bf16 %v21998_v40  ;;  %5258 = vperm.xlu0 %20918, %v404_v1  }
 0x22b   : > { %5273 = vperm.xlu1 %20919, %v407_v30   ;;  %v743_v30 = vld [vmem:[%s25591_s4 + $0x80] sm:$0xff] }
 0x22c   : > { %17884 = vmatmul.mubr.msk.f32.vlgmr.msra.gmra.mrb[60].mxu0 %vm1381_vm1, %v26195_v36  ;;  %v22036_v36 = vld [vmem:[%s21786_s13 + $0x88] sm:$0xff]  }
 0x22d   : > { %19968 = vmatpush3.bf16.msra.mxu0 %v21504_v14  ;;  %17914 = vmatmul.mubr.msk.f32.vlgmr.msra.gmra.mrb[84].mxu1 %vm1381_vm1, %v26196_v51  ;;  %v26197_v14 = vunpack.c.l.bf16 %v21978_v7  ;;  %v22026_v51 = vld [vmem:[%s21786_s13 + $0x58] sm:$0xff]   ;;  %26199 = vst [vmem:[#allocation116_spill] sm:$0xff] %v22036_v36 }
 0x22e   : > { %19980 = vmatpush3.bf16.msra.mxu1 %v21589_v15  ;;  %19974 = vmatprep.subr.bf16.mxu0 %v21567_v55  ;;  %26198 = vst [vmem:[#allocation115_spill] sm:$0xff] %v22026_v51 }
 0x22f   : > { %19986 = vmatprep.subr.bf16.mxu1 %v21649_v20  ;;  %17886 = vmatprep.mubr.msk.f32.mxu0 %vm1381_vm1, %v26197_v14  ;;  %v25707_v14 = vunpack.c.h.bf16 %v22026_v51 }
 0x230   : > { %17916 = vmatprep.mubr.msk.f32.mxu1 %vm1381_vm1, %v25698_v43  ;;  %17887 = vmatmul.mubr.msk.f32.gmra.mrb[62].mxu0 %vm1381_vm1, %v25699_v60  ;;  %v26200_v43 = vunpack.c.l.bf16 %v21998_v40  ;;  %v22042_v60 = vld [vmem:[%s21786_s13 + $0x70] sm:$0xff]   ;;  %v22094_v40 = vld [vmem:[%s21786_s13 + $0xc0] sm:$0xff]  }
 0x231   : > { %17917 = vmatmul.mubr.msk.f32.gmra.mrb[86].mxu1 %vm1381_vm1, %v25702_v31  ;;  %17903 = vmatprep.mubr.msk.f32.mxu0 %vm1381_vm1, %v25703_v25  ;;  %26201 = vst [vmem:[#allocation117_spill] sm:$0xff] %v22042_v60  ;;  %v26203_v31 = vunpack.c.h.bf16 %v21994_v21  ;;  %v25706_v25 = vunpack.c.l.bf16 %v22036_v36  ;;  %v25711_v15 = vunpack.c.l.bf16 %v22042_v60  ;;  %26210 = vst [vmem:[#allocation122_spill] sm:$0xff] %v22094_v40 }
 0x232   : > { %17933 = vmatprep.mubr.msk.f32.mxu1 %vm1381_vm1, %v26200_v43  ;;  %v25710_v43 = vunpack.c.h.bf16 %v22036_v36  ;;  %v22125_v36 = vld [vmem:[%s21786_s13 + $0xc8] sm:$0xff]   ;;  %5263 = vperm.xlu0 %20918, %v405_v62  }
 0x233   : > { %26215 = vst [vmem:[#allocation124_spill] sm:$0xff] %v22125_v36  ;;  %5283 = vperm.xlu1 %20919, %v409_v57  }
 0x234   : > { %17904 = vmatmul.mubr.msk.f32.vlgmr.msra.gmra.mrb[64].mxu0 %vm1381_vm1, %v26203_v31  ;;  %v22084_v31 = vld [vmem:[%s21786_s13 + $0xa8] sm:$0xff]  }
 0x235   : > { %19976 = vmatpush3.bf16.msra.mxu0 %v21567_v55  ;;  %17934 = vmatmul.mubr.msk.f32.vlgmr.msra.gmra.mrb[88].mxu1 %vm1381_vm1, %v26204_v53  ;;  %v26205_v55 = vunpack.c.l.bf16 %v22026_v51  ;;  %v22074_v53 = vld [vmem:[%s21786_s13 + $0x78] sm:$0xff]   ;;  %26207 = vst [vmem:[#allocation120_spill] sm:$0xff] %v22084_v31 }
 0x236   : > { %19988 = vmatpush3.bf16.msra.mxu1 %v21649_v20  ;;  %19982 = vmatprep.subr.bf16.mxu0 %v21627_v61  ;;  %26206 = vst [vmem:[#allocation119_spill] sm:$0xff] %v22074_v53  ;;  %v25720_v20 = vunpack.c.h.bf16 %v22084_v31 }
 0x237   : > { %19994 = vmatprep.subr.bf16.mxu1 %v21709_v10  ;;  %17906 = vmatprep.mubr.msk.f32.mxu0 %vm1381_vm1, %v26205_v55  ;;  %v25715_v55 = vunpack.c.h.bf16 %v22074_v53 }
 0x238   : > { %17936 = vmatprep.mubr.msk.f32.mxu1 %vm1381_vm1, %v25706_v25  ;;  %17907 = vmatmul.mubr.msk.f32.gmra.mrb[66].mxu0 %vm1381_vm1, %v25707_v14  ;;  %v26208_v25 = vunpack.c.l.bf16 %v22046_v48  ;;  %v22090_v14 = vld [vmem:[%s21786_s13 + $0x90] sm:$0xff]  }
 0x239   : > { %17937 = vmatmul.mubr.msk.f32.gmra.mrb[90].mxu1 %vm1381_vm1, %v25710_v43  ;;  %17923 = vmatprep.mubr.msk.f32.mxu0 %vm1381_vm1, %v25711_v15  ;;  %26209 = vst [vmem:[#allocation121_spill] sm:$0xff] %v22090_v14  ;;  %v26211_v43 = vunpack.c.h.bf16 %v22042_v60  ;;  %v25714_v15 = vunpack.c.l.bf16 %v22084_v31  ;;  %v22143_v31 = vld [vmem:[%s21786_s13 + $0xe0] sm:$0xff]  }
 0x23a   : > { %17953 = vmatprep.mubr.msk.f32.mxu1 %vm1381_vm1, %v26208_v25  ;;  %v26212_v25 = vunpack.c.h.bf16 %v22046_v48  ;;  %26218 = vst [vmem:[#allocation126_spill] sm:$0xff] %v22143_v31  ;;  %v22172_v48 = vld [vmem:[%s21786_s13 + $0xe8] sm:$0xff]   ;;  %5278 = vperm.xlu0 %20918, %v408_v19  }
 0x23b   : > { %26224 = vst [vmem:[#allocation128_spill] sm:$0xff] %v22172_v48  ;;  %v744_v19 = vld [vmem:[%s25591_s4 + $0x88] sm:$0xff]  ;;  %5293 = vperm.xlu1 %20919, %v411_v17   ;;  %v415_v17 = vld [vmem:[%s22339_s29 + $0x58] sm:$0xff] }
 0x23c   : > { %17924 = vmatmul.mubr.msk.f32.vlgmr.msra.gmra.mrb[68].mxu0 %vm1381_vm1, %v26211_v43  ;;  %v25721_v43 = vunpack.c.l.bf16 %v22094_v40  ;;  %v20041_v5 = vpack.c.bf16 %v744_v19, %v743_v30  ;;  %v414_v30 = vld [vmem:[%s22339_s29 + $0x50] sm:$0xff] }
 0x23d   : > { %19984 = vmatpush3.bf16.msra.mxu0 %v21627_v61  ;;  %17954 = vmatmul.mubr.msk.f32.vlgmr.msra.gmra.mrb[92].mxu1 %vm1381_vm1, %v26212_v25  ;;  %v26213_v61 = vunpack.c.l.bf16 %v22074_v53  ;;  %v22122_v25 = vld [vmem:[%s21786_s13 + $0x98] sm:$0xff]  }
 0x23e   : > { %19996 = vmatpush3.bf16.msra.mxu1 %v21709_v10  ;;  %19990 = vmatprep.subr.bf16.mxu0 %v21687_v54  ;;  %26214 = vst [vmem:[#allocation123_spill] sm:$0xff] %v22122_v25  ;;  %v22158_v10 = vld [vmem:[%s21786_s13 + $0xb8] sm:$0xff]  }
 0x23f   : > { %20002 = vmatprep.subr.bf16.mxu1 %v21769_v46  ;;  %17926 = vmatprep.mubr.msk.f32.mxu0 %vm1381_vm1, %v26213_v61  ;;  %v26216_v61 = vunpack.c.l.bf16 %v22090_v14  ;;  %26220 = vst [vmem:[#allocation127_spill] sm:$0xff] %v22158_v10 }
 0x240   : > { %17956 = vmatprep.mubr.msk.f32.mxu1 %vm1381_vm1, %v25714_v15  ;;  %17927 = vmatmul.mubr.msk.f32.gmra.mrb[70].mxu0 %vm1381_vm1, %v25715_v55  ;;  %v25722_v15 = vunpack.c.h.bf16 %v22094_v40  ;;  %v22138_v55 = vld [vmem:[%s21786_s13 + $0xb0] sm:$0xff]   ;;  %v25729_v40 = vunpack.c.h.bf16 %v22143_v31 }
 0x241   : > { %17957 = vmatmul.mubr.msk.f32.gmra.mrb[94].mxu1 %vm1381_vm1, %v25720_v20  ;;  %17943 = vmatprep.mubr.msk.f32.mxu0 %vm1381_vm1, %v26216_v61  ;;  %26217 = vst [vmem:[#allocation125_spill] sm:$0xff] %v22138_v55  ;;  %v26219_v20 = vunpack.c.h.bf16 %v22090_v14  ;;  %v26221_v61 = vunpack.c.l.bf16 %v22122_v25 }
 0x242   : > { %17973 = vmatprep.mubr.msk.f32.mxu1 %vm1381_vm1, %v25721_v43  ;;  %v25727_v43 = vunpack.c.l.bf16 %v22138_v55  ;;  %5288 = vperm.xlu0 %20918, %v410_v23  }
 0x243   : > { %5303 = vperm.xlu1 %20919, %v413_v9   ;;  %v417_v9 = vld [vmem:[%s22339_s29 + $0x68] sm:$0xff] }
 0x244   : > { %17944 = vmatmul.mubr.msk.f32.vlgmr.msra.gmra.mrb[72].mxu0 %vm1381_vm1, %v26219_v20  ;;  %v25728_v20 = vunpack.c.l.bf16 %v22158_v10 }
 0x245   : > { %19992 = vmatpush3.bf16.msra.mxu0 %v21687_v54  ;;  %17974 = vmatmul.mubr.msk.f32.vlgmr.msra.gmra.mrb[96].mxu1 %vm1381_vm1, %v25722_v15  ;;  %v26222_v54 = vunpack.c.l.bf16 %v22125_v36  ;;  %v26223_v15 = vunpack.c.h.bf16 %v22122_v25  ;;  %v26228_v25 = vunpack.c.h.bf16 %v22138_v55 }
 0x246   : > { %20004 = vmatpush3.bf16.msra.mxu1 %v21769_v46  ;;  %19998 = vmatprep.subr.bf16.mxu0 %v21747_v26  ;;  %v25730_v46 = vunpack.c.l.bf16 %v22172_v48 }
 0x247   : > { %17946 = vmatprep.mubr.msk.f32.mxu0 %vm1381_vm1, %v26221_v61  ;;  %17976 = vmatprep.mubr.msk.f32.mxu1 %vm1381_vm1, %v26222_v54  ;;  %v26225_v61 = vunpack.c.h.bf16 %v22125_v36  ;;  %v22182_v54 = vld [vmem:[%s21786_s13 + $0xd0] sm:$0xff]  }
 0x248   : > { %17947 = vmatmul.mubr.msk.f32.gmra.mrb[74].mxu0 %vm1381_vm1, %v26223_v15  ;;  %26226 = vst [vmem:[#allocation129_spill] sm:$0xff] %v22182_v54  ;;  %v26227_v15 = vunpack.c.l.bf16 %v22143_v31  ;;  %v26230_v31 = vunpack.c.h.bf16 %v22172_v48  ;;  %v22227_v36 = vld [vmem:[%s21786_s13 + $0xf0] sm:$0xff]   ;;  %v763_v48 = vld [vmem:[%s25591_s4 + $0x120] sm:$0xff]  ;;  %5298 = vperm.xlu0 %20918, %v412_v27  }
 0x249   : > { %17963 = vmatprep.mubr.msk.f32.mxu0 %vm1381_vm1, %v25727_v43  ;;  %17977 = vmatmul.mubr.msk.f32.gmra.mrb[98].mxu1 %vm1381_vm1, %v26225_v61  ;;  %v25735_v43 = vunpack.c.h.bf16 %v22158_v10  ;;  %v25736_v61 = vunpack.c.l.bf16 %v22182_v54  ;;  %26231 = vst [vmem:[#allocation131_spill] sm:$0xff] %v22227_v36 }
 0x24a   : > { %17993 = vmatprep.mubr.msk.f32.mxu1 %vm1381_vm1, %v26227_v15  ;;  %v22200_v15 = vld [vmem:[%s21786_s13 + $0xd8] sm:$0xff]   ;;  %5313 = vperm.xlu1 %20919, %v415_v17  }
 0x24b   : > { %26229 = vst [vmem:[#allocation130_spill] sm:$0xff] %v22200_v15  ;;  %v419_v17 = vld [vmem:[%s22339_s29 + $0x78] sm:$0xff] }
 0x24c   : > { %17964 = vmatmul.mubr.msk.f32.vlgmr.msra.gmra.mrb[76].mxu0 %vm1381_vm1, %v26228_v25  ;;  %5308 = vperm.xlu0 %20918, %v414_v30  }
 0x24d   : > { %20000 = vmatpush3.bf16.msra.mxu0 %v21747_v26  ;;  %17966 = vmatprep.mubr.msk.f32.mxu0 %vm1381_vm1, %v25728_v20  ;;  %v759_v26 = vld [vmem:[%s25591_s4 + $0x100] sm:$0xff]  ;;  %v760_v20 = vld [vmem:[%s25591_s4 + $0x108] sm:$0xff] }
 0x24e   : > { %20006 = vmatprep.subr.bf16.mxu0 %v21819_v0  ;;  %17994 = vmatmul.mubr.msk.f32.vlgmr.msra.gmra.mrb[100].mxu1 %vm1381_vm1, %v25729_v40  ;;  %v25740_v40 = vunpack.c.h.bf16 %v22182_v54  ;;  %v20009_v25 = vpack.c.bf16 %v760_v20, %v759_v26  ;;  %v762_v20 = vld [vmem:[%s25591_s4 + $0x118] sm:$0xff]  ;;  %v25745_v26 = vunpack.c.h.bf16 %v22200_v15 }
 0x24f   : > { %17996 = vmatprep.mubr.msk.f32.mxu1 %vm1381_vm1, %v25730_v46  ;;  %v25739_v46 = vunpack.c.l.bf16 %v22200_v15  ;;  %5323 = vperm.xlu1 %20919, %v417_v9  }
 0x250   : > { %17967 = vmatmul.mubr.msk.f32.gmra.mrb[78].mxu0 %vm1381_vm1, %v25735_v43  ;;  %20010 = vmatprep.subr.bf16.mxu1 %v20009_v25  ;;  %v761_v43 = vld [vmem:[%s25591_s4 + $0x110] sm:$0xff] }
 0x251   : > { %17983 = vmatprep.mubr.msk.f32.mxu0 %vm1381_vm1, %v25736_v61  ;;  %20012 = vmatpush3.bf16.msra.mxu1 %v20009_v25  ;;  %v20013_v61 = vpack.c.bf16 %v762_v20, %v761_v43  ;;  %v22245_v25 = vld [vmem:[%s21786_s13 + $0xf8] sm:$0xff]   ;;  %v764_v43 = vld [vmem:[%s25591_s4 + $0x128] sm:$0xff]  ;;  %s15480_s13 = sshll.u32 %s26969_s15, 3  ;;  %s15863_s15 = sshll.u32 %s21175_s28, 12 }
 0x252   : > { %17997 = vmatmul.mubr.msk.f32.gmra.mrb[102].mxu1 %vm1381_vm1, %v26230_v31  ;;  %v25741_v31 = vunpack.c.l.bf16 %v22227_v36  ;;  %26232 = vst [vmem:[#allocation132_spill] sm:$0xff] %v22245_v25  ;;  %v20017_v20 = vpack.c.bf16 %v764_v43, %v763_v48  ;;  %v25744_v48 = vunpack.c.h.bf16 %v22245_v25  ;;  %5318 = vperm.xlu0 %20918, %v416_v47   ;;  %s25423_s17 = scalar_lea.vmem %s25593_s6, %s15480_s13  ;;  %s25537_s20 = scalar_lea.hbm %s25594_s7, %s15863_s15 }
 0x253   : > { %20014 = vmatprep.subr.bf16.mxu1 %v20013_v61  ;;  %5333 = vperm.xlu1 %20919, %v419_v17   ;;  %s25546_s28 = scalar_lea.sflag [#allocation3], %s334_s18 }
 0x254   : > { %17984 = vmatmul.mubr.msk.f32.vlgmr.msra.gmra.mrb[80].mxu0 %vm1381_vm1, %v25740_v40  ;;  %v766_v40 = vld [vmem:[%s25591_s4 + $0x138] sm:$0xff] }
 0x255   : > { %20008 = vmatpush3.bf16.msra.mxu0 %v21819_v0  ;;  %17986 = vmatprep.mubr.msk.f32.mxu0 %vm1381_vm1, %v25739_v46  ;;  %v25742_v0 = vunpack.c.h.bf16 %v22227_v36  ;;  %v765_v46 = vld [vmem:[%s25591_s4 + $0x130] sm:$0xff] }
 0x256   : > { %20016 = vmatpush3.bf16.msra.mxu1 %v20013_v61  ;;  %v25743_v61 = vunpack.c.l.bf16 %v22245_v25  ;;  %v20021_v43 = vpack.c.bf16 %v766_v40, %v765_v46  ;;  %v769_v40 = vld [vmem:[%s25591_s4 + $0x150] sm:$0xff]  ;;  %v770_v46 = vld [vmem:[%s25591_s4 + $0x158] sm:$0xff]  ;;  %5328 = vperm.xlu0 %20918, %v418_v24  }
 0x257   : > { %20018 = vmatprep.subr.bf16.mxu1 %v20017_v20  ;;  %v746_v24 = vld [vmem:[%s25591_s4 + $0x98] sm:$0xff]  ;;  %5343 = vperm.xlu1 %20919, %v421_v50  }
 0x258   : > { %17987 = vmatmul.mubr.msk.f32.gmra.mrb[82].mxu0 %vm1381_vm1, %v25745_v26 }
 0x259   : > { %18003 = vmatprep.mubr.msk.f32.mxu0 %vm1381_vm1, %v25741_v31  ;;  %v768_v31 = vld [vmem:[%s25591_s4 + $0x148] sm:$0xff] }
 0x25a   : > { %20020 = vmatpush3.bf16.msra.mxu1 %v20017_v20  ;;  %v767_v20 = vld [vmem:[%s25591_s4 + $0x140] sm:$0xff]  ;;  %5338 = vperm.xlu0 %20918, %v420_v59   ;;  %v20045_v59 = vpack.c.bf16 %v746_v24, %v745_v41  ;;  %v749_v24 = vld [vmem:[%s25591_s4 + $0xb0] sm:$0xff] }
 0x25b   : > { %20022 = vmatprep.subr.bf16.mxu1 %v20021_v43 }
 0x25c   : > { %18004 = vmatmul.mubr.msk.f32.vlgmr.msra.gmra.mrb[84].mxu0 %vm1381_vm1, %v25742_v0  ;;  %v20025_v0 = vpack.c.bf16 %v768_v31, %v767_v20  ;;  %v772_v31 = vld [vmem:[%s25591_s4 + $0x168] sm:$0xff]  ;;  %v773_v20 = vld [vmem:[%s25591_s4 + $0x170] sm:$0xff] }
 0x25d   : > { %18006 = vmatprep.mubr.msk.f32.mxu0 %vm1381_vm1, %v25743_v61  ;;  %v771_v61 = vld [vmem:[%s25591_s4 + $0x160] sm:$0xff] }
 0x25e   : > { %20024 = vmatpush3.bf16.msra.mxu1 %v20021_v43  ;;  %v20029_v43 = vpack.c.bf16 %v770_v46, %v769_v40  ;;  %v774_v40 = vld [vmem:[%s25591_s4 + $0x178] sm:$0xff]  ;;  %5348 = vperm.xlu0 %20918, %v422_v28  }
 0x25f   : > { %20026 = vmatprep.subr.bf16.mxu1 %v20025_v0  ;;  %v20037_v46 = vpack.c.bf16 %v774_v40, %v773_v20 }
 0x260   : > { %18007 = vmatmul.mubr.msk.f32.gmra.mrb[86].mxu0 %vm1381_vm1, %v25744_v48 }
 0x262   : > { %20028 = vmatpush3.bf16.msra.mxu1 %v20025_v0  ;;  %v20033_v0 = vpack.c.bf16 %v772_v31, %v771_v61 }
 0x263   : > { %20030 = vmatprep.subr.bf16.mxu1 %v20029_v43 }
 0x266   : > { %20032 = vmatpush3.bf16.msra.mxu1 %v20029_v43 }
 0x267   : > { %20034 = vmatprep.subr.bf16.mxu1 %v20033_v0 }
 0x26a   : > { %20036 = vmatpush3.bf16.msra.mxu1 %v20033_v0 }
 0x26b   : > { %20038 = vmatprep.subr.bf16.mxu1 %v20037_v46 }
 0x26e   : > { %20040 = vmatpush3.bf16.msra.mxu1 %v20037_v46 }
 0x26f   : > { %20042 = vmatprep.subr.bf16.mxu1 %v20041_v5 }
 0x2a7   : > { %v22301_v43 = vpop.f32.mrb[16].mxu0 }
 0x2a8   : > { %v22303_v48 = vpop.f32.mrb[17].mxu0 }
 0x2ab   : > { %v22305_v26 = vpop.f32.mrb[18].mxu0 }
 0x2ac   : > { %v22307_v61 = vpop.f32.mrb[19].mxu0 }
 0x2af   : > { %v22309_v31 = vpop.f32.mrb[20].mxu0 }
 0x2b0   : > { %v22311_v0 = vpop.f32.mrb[21].mxu0 }
 0x2b3   : > { %v22313_v25 = vpop.f32.mrb[22].mxu0 }
 0x2b4   : > { %v22315_v36 = vpop.f32.mrb[23].mxu0 }
 0x2b7   : > { %v22317_v20 = vpop.f32.mrb[24].mxu0  ;;  %v22319_v40 = vpop.f32.mrb[48].mxu1 }
 0x2b8   : > { %v22321_v46 = vpop.f32.mrb[25].mxu0  ;;  %v22323_v15 = vpop.f32.mrb[49].mxu1 }
 0x2bb   : > { %v22325_v54 = vpop.f32.mrb[26].mxu0  ;;  %v22327_v10 = vpop.f32.mrb[50].mxu1 }
 0x2bc   : > { %v22329_v55 = vpop.f32.mrb[27].mxu0  ;;  %v22331_v14 = vpop.f32.mrb[51].mxu1 }
 0x2bf   : > { %v22334_v53 = vpop.f32.mrb[28].mxu0 }
 0x2c0   : > { %v22341_v60 = vpop.f32.mrb[29].mxu0  ;;  %v22343_v51 = vpop.f32.mrb[52].mxu1 }
 0x2c1   : > { %v22345_v21 = vpop.f32.mrb[53].mxu1 }
 0x2c3   : > { %v22347_v7 = vpop.f32.mrb[30].mxu0 }
 0x2c4   : > { %v22350_v4 = vpop.f32.mrb[31].mxu0  ;;  %v22352_v32 = vpop.f32.mrb[54].mxu1 }
 0x2c5   : > { %26233 = vst [vmem:[#allocation133_spill] sm:$0xff] %v22352_v32  ;;  %v22354_v35 = vpop.f32.mrb[55].mxu1  ;;  %v456_v32 = vld [vmem:[%s22339_s29 + $0x1a0] sm:$0xff] }
 0x2c6   : > { %26234 = vst [vmem:[#allocation134_spill] sm:$0xff] %v22354_v35 }
 0x2c7   : > { %v22356_v34 = vpop.f32.mrb[32].mxu0 }
 0x2c8   : > { %v22360_v33 = vpop.f32.mrb[33].mxu0  ;;  %v22362_v38 = vpop.f32.mrb[56].mxu1 }
 0x2c9   : > { %26235 = vst [vmem:[#allocation135_spill] sm:$0xff] %v22362_v38  ;;  %v22364_v8 = vpop.f32.mrb[57].mxu1 }
 0x2ca   : > { %26236 = vst [vmem:[#allocation136_spill] sm:$0xff] %v22364_v8 }
 0x2cb   : > { %v22366_v63 = vpop.f32.mrb[34].mxu0 }
 0x2cc   : > { %v22370_v56 = vpop.f32.mrb[35].mxu0  ;;  %v22372_v1 = vpop.f32.mrb[58].mxu1 }
 0x2cd   : > { %26237 = vst [vmem:[#allocation137_spill] sm:$0xff] %v22372_v1  ;;  %v22374_v52 = vpop.f32.mrb[59].mxu1 }
 0x2ce   : > { %26238 = vst [vmem:[#allocation138_spill] sm:$0xff] %v22374_v52 }
 0x2cf   : > { %v22376_v18 = vpop.f32.mrb[36].mxu0 }
 0x2d0   : > { %26239 = vst [vmem:[#allocation139_spill] sm:$0xff] %v22376_v18  ;;  %v22380_v37 = vpop.f32.mrb[37].mxu0  ;;  %v22382_v62 = vpop.f32.mrb[60].mxu1 }
 0x2d1   : > { %26240 = vst [vmem:[#allocation140_spill] sm:$0xff] %v22380_v37  ;;  %26241 = vst [vmem:[#allocation141_spill] sm:$0xff] %v22382_v62  ;;  %v22384_v44 = vpop.f32.mrb[61].mxu1  ;;  %v455_v37 = vld [vmem:[%s22339_s29 + $0x198] sm:$0xff] }
 0x2d2   : > { %26242 = vst [vmem:[#allocation142_spill] sm:$0xff] %v22384_v44 }
 0x2d3   : > { %v22392_v16 = vpop.f32.mrb[38].mxu0 }
 0x2d4   : > { %26243 = vst [vmem:[#allocation143_spill] sm:$0xff] %v22392_v16  ;;  %v22396_v57 = vpop.f32.mrb[39].mxu0  ;;  %v22398_v45 = vpop.f32.mrb[62].mxu1 }
 0x2d5   : > { %26244 = vst [vmem:[#allocation144_spill] sm:$0xff] %v22396_v57  ;;  %26245 = vst [vmem:[#allocation145_spill] sm:$0xff] %v22398_v45  ;;  %v22400_v23 = vpop.f32.mrb[63].mxu1 }
 0x2d6   : > { %26246 = vst [vmem:[#allocation146_spill] sm:$0xff] %v22400_v23 }
 0x2d7   : > { %v22402_v12 = vpop.f32.mrb[40].mxu0 }
 0x2d8   : > { %26247 = vst [vmem:[#allocation147_spill] sm:$0xff] %v22402_v12  ;;  %v22406_v19 = vpop.f32.mrb[41].mxu0  ;;  %v22408_v29 = vpop.f32.mrb[64].mxu1 }
 0x2d9   : > { %26248 = vst [vmem:[#allocation148_spill] sm:$0xff] %v22406_v19  ;;  %26249 = vst [vmem:[#allocation149_spill] sm:$0xff] %v22408_v29  ;;  %v22410_v6 = vpop.f32.mrb[65].mxu1  ;;  %v754_v29 = vld [vmem:[%s25591_s4 + $0xd8] sm:$0xff] }
 0x2da   : > { %26250 = vst [vmem:[#allocation150_spill] sm:$0xff] %v22410_v6  ;;  %v429_v6 = vld [vmem:[%s22339_s29 + $0xc8] sm:$0xff] }
 0x2db   : > { %v22412_v22 = vpop.f32.mrb[42].mxu0 }
 0x2dc   : > { %26251 = vst [vmem:[#allocation151_spill] sm:$0xff] %v22412_v22  ;;  %v22416_v27 = vpop.f32.mrb[43].mxu0  ;;  %v22418_v13 = vpop.f32.mrb[66].mxu1 }
 0x2dd   : > { %26252 = vst [vmem:[#allocation152_spill] sm:$0xff] %v22416_v27  ;;  %26253 = vst [vmem:[#allocation153_spill] sm:$0xff] %v22418_v13  ;;  %v22420_v39 = vpop.f32.mrb[67].mxu1 }
 0x2de   : > { %26254 = vst [vmem:[#allocation154_spill] sm:$0xff] %v22420_v39  ;;  %v428_v39 = vld [vmem:[%s22339_s29 + $0xc0] sm:$0xff] }
 0x2df   : > { %v22422_v11 = vpop.f32.mrb[44].mxu0 }
 0x2e0   : > { %26255 = vst [vmem:[#allocation155_spill] sm:$0xff] %v22422_v11  ;;  %v22426_v3 = vpop.f32.mrb[45].mxu0  ;;  %v22428_v30 = vpop.f32.mrb[68].mxu1  ;;  %v431_v11 = vld [vmem:[%s22339_s29 + $0xd8] sm:$0xff] }
 0x2e1   : > { %26256 = vst [vmem:[#allocation156_spill] sm:$0xff] %v22426_v3  ;;  %26257 = vst [vmem:[#allocation157_spill] sm:$0xff] %v22428_v30  ;;  %v22430_v2 = vpop.f32.mrb[69].mxu1 }
 0x2e2   : > { %26258 = vst [vmem:[#allocation158_spill] sm:$0xff] %v22430_v2  ;;  %v748_v2 = vld [vmem:[%s25591_s4 + $0xa8] sm:$0xff] }
 0x2e3   : > { %v22432_v49 = vpop.f32.mrb[46].mxu0 }
 0x2e4   : > { %26259 = vst [vmem:[#allocation159_spill] sm:$0xff] %v22432_v49  ;;  %v22436_v42 = vpop.f32.mrb[47].mxu0  ;;  %v22438_v47 = vpop.f32.mrb[70].mxu1 }
 0x2e5   : > { %26260 = vst [vmem:[#allocation160_spill] sm:$0xff] %v22436_v42  ;;  %26261 = vst [vmem:[#allocation161_spill] sm:$0xff] %v22438_v47  ;;  %v22440_v58 = vpop.f32.mrb[71].mxu1 }
 0x2e6   : > { %26262 = vst [vmem:[#allocation162_spill] sm:$0xff] %v22440_v58  ;;  %v747_v58 = vld [vmem:[%s25591_s4 + $0xa0] sm:$0xff] }
 0x2e7   : > { %v22448_v9 = vpop.f32.mrb[48].mxu0 }
 0x2e8   : > { %26263 = vst [vmem:[#allocation163_spill] sm:$0xff] %v22448_v9  ;;  %v22452_v30 = vpop.f32.mrb[49].mxu0  ;;  %v17855_v17 = vpop.f32.mrb[72].mxu1  ;;  %v423_v9 = vld [vmem:[%s22339_s29 + $0x98] sm:$0xff] }
 0x2e9   : > { %26264 = vst [vmem:[#allocation164_spill] sm:$0xff] %v22452_v30  ;;  %v3012_v47 = vpop.f32.mrb[73].mxu1  ;;  %v424_v30 = vld [vmem:[%s22339_s29 + $0xa0] sm:$0xff]  ;;  %5353 = vperm.xlu1 %20919, %v423_v9   ;;  %v426_v9 = vld [vmem:[%s22339_s29 + $0xb0] sm:$0xff] }
 0x2ea   : > { %18041 = vmatprep.mubr.f32.mxu1 %v3012_v47  ;;  %v20049_v47 = vpack.c.bf16 %v748_v2, %v747_v58  ;;  %5358 = vperm.xlu0 %20918, %v424_v30  }
 0x2eb   : > { %v22460_v13 = vpop.f32.mrb[50].mxu0  ;;  %18042 = vmatmul.mubr.f32.vlgmr.msra.gmra.mrb[104].mxu1 %v17855_v17  ;;  %v750_v17 = vld [vmem:[%s25591_s4 + $0xb8] sm:$0xff] }
 0x2ec   : > { %26265 = vst [vmem:[#allocation165_spill] sm:$0xff] %v22460_v13  ;;  %v22464_v50 = vpop.f32.mrb[51].mxu0  ;;  %v17858_v41 = vpop.f32.mrb[74].mxu1  ;;  %20044 = vmatpush3.bf16.msra.mxu1 %v20041_v5  ;;  %v425_v5 = vld [vmem:[%s22339_s29 + $0xa8] sm:$0xff]  ;;  %v20053_v30 = vpack.c.bf16 %v750_v17, %v749_v24 }
 0x2ed   : > { %26266 = vst [vmem:[#allocation166_spill] sm:$0xff] %v22464_v50  ;;  %v3022_v28 = vpop.f32.mrb[75].mxu1  ;;  %20046 = vmatprep.subr.bf16.mxu1 %v20045_v59  ;;  %5363 = vperm.xlu1 %20919, %v425_v5  }
 0x2ee   : > { %18044 = vmatprep.mubr.f32.mxu1 %v3022_v28  ;;  %5368 = vperm.xlu0 %20918, %v426_v9   ;;  %v751_v28 = vld [vmem:[%s25591_s4 + $0xc0] sm:$0xff]  ;;  %v753_v9 = vld [vmem:[%s25591_s4 + $0xd0] sm:$0xff] }
 0x2ef   : > { %v22472_v13 = vpop.f32.mrb[52].mxu0  ;;  %18045 = vmatmul.mubr.f32.gmra.mrb[106].mxu1 %v17858_v41  ;;  %v752_v41 = vld [vmem:[%s25591_s4 + $0xc8] sm:$0xff] }
 0x2f0   : > { %26267 = vst [vmem:[#allocation167_spill] sm:$0xff] %v22472_v13  ;;  %v22476_v50 = vpop.f32.mrb[53].mxu0  ;;  %v22478_v58 = vpop.f32.mrb[76].mxu1  ;;  %20048 = vmatpush3.bf16.msra.mxu1 %v20045_v59  ;;  %v20057_v17 = vpack.c.bf16 %v752_v41, %v751_v28  ;;  %v755_v28 = vld [vmem:[%s25591_s4 + $0xe0] sm:$0xff]  ;;  %v756_v41 = vld [vmem:[%s25591_s4 + $0xe8] sm:$0xff] }
 0x2f1   : > { %26268 = vst [vmem:[#allocation168_spill] sm:$0xff] %v22476_v50  ;;  %v3206_v2 = vpop.f32.mrb[77].mxu1  ;;  %20050 = vmatprep.subr.bf16.mxu1 %v20049_v47  ;;  %v427_v50 = vld [vmem:[%s22339_s29 + $0xb8] sm:$0xff] }
 0x2f2   : > { %5373 = vperm.xlu1 %20919, %v427_v50   ;;  %5378 = vperm.xlu0 %20918, %v428_v39   ;;  %v20061_v50 = vpack.c.bf16 %v754_v29, %v753_v9  ;;  %v757_v9 = vld [vmem:[%s25591_s4 + $0xf0] sm:$0xff] }
 0x2f3   : > { %v22486_v13 = vpop.f32.mrb[54].mxu0 }
 0x2f4   : > { %26269 = vst [vmem:[#allocation169_spill] sm:$0xff] %v22486_v13  ;;  %v22490_v59 = vpop.f32.mrb[55].mxu0  ;;  %v17878_v5 = vpop.f32.mrb[78].mxu1  ;;  %20052 = vmatpush3.bf16.msra.mxu1 %v20049_v47 }
 0x2f5   : > { %26270 = vst [vmem:[#allocation170_spill] sm:$0xff] %v22490_v59  ;;  %v3216_v24 = vpop.f32.mrb[79].mxu1  ;;  %20054 = vmatprep.subr.bf16.mxu1 %v20053_v30  ;;  %v430_v59 = vld [vmem:[%s22339_s29 + $0xd0] sm:$0xff] }
 0x2f6   : > { %5383 = vperm.xlu1 %20919, %v429_v6   ;;  %5388 = vperm.xlu0 %20918, %v430_v59   ;;  %v758_v59 = vld [vmem:[%s25591_s4 + $0xf8] sm:$0xff] }
 0x2f7   : > { %v17865_v13 = vpop.f32.mrb[56].mxu0 }
 0x2f8   : > { %v3109_v49 = vpop.f32.mrb[57].mxu0  ;;  %v22500_v47 = vpop.f32.mrb[80].mxu1  ;;  %20056 = vmatpush3.bf16.msra.mxu1 %v20053_v30  ;;  %v432_v30 = vld [vmem:[%s22339_s29 + $0xe0] sm:$0xff] }
 0x2f9   : > { %18047 = vmatprep.mubr.f32.mxu1 %v3109_v49  ;;  %v22502_v39 = vpop.f32.mrb[81].mxu1  ;;  %20058 = vmatprep.subr.bf16.mxu1 %v20057_v17 }
 0x2fa   : > { %18048 = vmatmul.mubr.f32.gmra.mrb[108].mxu1 %v17865_v13  ;;  %5393 = vperm.xlu1 %20919, %v431_v11   ;;  %v20065_v13 = vpack.c.bf16 %v756_v41, %v755_v28  ;;  %v434_v11 = vld [vmem:[%s22339_s29 + $0xf0] sm:$0xff]  ;;  %v20069_v28 = vpack.c.bf16 %v758_v59, %v757_v9  ;;  %v435_v41 = vld [vmem:[%s22339_s29 + $0xf8] sm:$0xff]  ;;  %v437_v9 = vld [vmem:[%s22339_s29 + $0x108] sm:$0xff] }
 0x2fb   : > { %v17868_v42 = vpop.f32.mrb[58].mxu0  ;;  %5398 = vperm.xlu0 %20918, %v432_v30   ;;  %v436_v30 = vld [vmem:[%s22339_s29 + $0x100] sm:$0xff]  ;;  %v438_v59 = vld [vmem:[%s22339_s29 + $0x110] sm:$0xff] }
 0x2fc   : > { %v3119_v49 = vpop.f32.mrb[59].mxu0  ;;  %v22512_v6 = vpop.f32.mrb[82].mxu1  ;;  %20060 = vmatpush3.bf16.msra.mxu1 %v20057_v17  ;;  %v433_v17 = vld [vmem:[%s22339_s29 + $0xe8] sm:$0xff] }
 0x2fd   : > { %18050 = vmatprep.mubr.f32.mxu1 %v3119_v49  ;;  %v3410_v29 = vpop.f32.mrb[83].mxu1  ;;  %20062 = vmatprep.subr.bf16.mxu1 %v20061_v50 }
 0x2fe   : > { %18051 = vmatmul.mubr.f32.gmra.mrb[110].mxu1 %v17868_v42  ;;  %5403 = vperm.xlu1 %20919, %v433_v17  }
 0x2ff   : > { %18053 = vmatprep.mubr.f32.mxu1 %v3206_v2  ;;  %v17885_v3 = vpop.f32.mrb[60].mxu0  ;;  %5408 = vperm.xlu0 %20918, %v434_v11  }
 0x300   : > { %v3303_v49 = vpop.f32.mrb[61].mxu0  ;;  %v22522_v45 = vpop.f32.mrb[84].mxu1  ;;  %20064 = vmatpush3.bf16.msra.mxu1 %v20061_v50 }
 0x301   : > { %v22524_v42 = vpop.f32.mrb[85].mxu1  ;;  %20066 = vmatprep.subr.bf16.mxu1 %v20065_v13 }
 0x302   : > { %18054 = vmatmul.mubr.f32.gmra.mrb[112].mxu1 %v22478_v58  ;;  %5413 = vperm.xlu1 %20919, %v435_v41   ;;  %v440_v41 = vld [vmem:[%s22339_s29 + $0x120] sm:$0xff] }
 0x303   : > { %18056 = vmatprep.mubr.f32.mxu1 %v3216_v24  ;;  %v17888_v2 = vpop.f32.mrb[62].mxu0  ;;  %5418 = vperm.xlu0 %20918, %v436_v30  }
 0x304   : > { %v3313_v23 = vpop.f32.mrb[63].mxu0  ;;  %v22529_v62 = vpop.f32.mrb[86].mxu1  ;;  %20068 = vmatpush3.bf16.msra.mxu1 %v20065_v13 }
 0x305   : > { %v22531_v50 = vpop.f32.mrb[87].mxu1  ;;  %20070 = vmatprep.subr.bf16.mxu1 %v20069_v28 }
 0x306   : > { %18057 = vmatmul.mubr.f32.gmra.mrb[114].mxu1 %v17878_v5  ;;  %5423 = vperm.xlu1 %20919, %v437_v9   ;;  %v439_v5 = vld [vmem:[%s22339_s29 + $0x118] sm:$0xff]  ;;  %v442_v9 = vld [vmem:[%s22339_s29 + $0x130] sm:$0xff] }
 0x307   : > { %18059 = vmatprep.mubr.f32.mxu1 %v3303_v49  ;;  %v17905_v58 = vpop.f32.mrb[64].mxu0  ;;  %5428 = vperm.xlu0 %20918, %v438_v59  }
 0x308   : > { %v3497_v24 = vpop.f32.mrb[65].mxu0  ;;  %v22535_v17 = vpop.f32.mrb[88].mxu1  ;;  %20072 = vmatpush3.bf16.msra.mxu1 %v20069_v28 }
 0x309   : > { %v22537_v11 = vpop.f32.mrb[89].mxu1 }
 0x30a   : > { %18060 = vmatmul.mubr.f32.gmra.mrb[116].mxu1 %v17885_v3  ;;  %5433 = vperm.xlu1 %20919, %v439_v5   ;;  %v441_v3 = vld [vmem:[%s22339_s29 + $0x128] sm:$0xff]  ;;  %v443_v5 = vld [vmem:[%s22339_s29 + $0x138] sm:$0xff] }
 0x30b   : > { %18062 = vmatprep.mubr.f32.mxu1 %v3313_v23  ;;  %v17908_v13 = vpop.f32.mrb[66].mxu0  ;;  %5438 = vperm.xlu0 %20918, %v440_v41   ;;  %v444_v41 = vld [vmem:[%s22339_s29 + $0x140] sm:$0xff] }
 0x30c   : > { %v3507_v30 = vpop.f32.mrb[67].mxu0  ;;  %v22541_v49 = vpop.f32.mrb[90].mxu1 }
 0x30d   : > { %v22543_v44 = vpop.f32.mrb[91].mxu1 }
 0x30e   : > { %18063 = vmatmul.mubr.f32.gmra.mrb[118].mxu1 %v17888_v2  ;;  %5443 = vperm.xlu1 %20919, %v441_v3  }
 0x30f   : > { %18065 = vmatprep.mubr.f32.mxu1 %v22502_v39  ;;  %v22546_v28 = vpop.f32.mrb[68].mxu0  ;;  %5448 = vperm.xlu0 %20918, %v442_v9   ;;  %v446_v9 = vld [vmem:[%s22339_s29 + $0x150] sm:$0xff] }
 0x310   : > { %v3691_v23 = vpop.f32.mrb[69].mxu0  ;;  %v22550_v59 = vpop.f32.mrb[92].mxu1 }
 0x311   : > { %v22552_v22 = vpop.f32.mrb[93].mxu1 }
 0x312   : > { %18066 = vmatmul.mubr.f32.gmra.mrb[120].mxu1 %v22500_v47  ;;  %5453 = vperm.xlu1 %20919, %v443_v5   ;;  %v445_v47 = vld [vmem:[%s22339_s29 + $0x148] sm:$0xff] }
 0x313   : > { %18068 = vmatprep.mubr.f32.mxu1 %v3410_v29  ;;  %v17928_v2 = vpop.f32.mrb[70].mxu0  ;;  %5458 = vperm.xlu0 %20918, %v444_v41  }
 0x314   : > { %v3701_v39 = vpop.f32.mrb[71].mxu0  ;;  %v22557_v27 = vpop.f32.mrb[94].mxu1 }
 0x315   : > { %v22559_v12 = vpop.f32.mrb[95].mxu1 }
 0x316   : > { %18069 = vmatmul.mubr.f32.gmra.mrb[122].mxu1 %v22512_v6  ;;  %5463 = vperm.xlu1 %20919, %v445_v47   ;;  %v447_v6 = vld [vmem:[%s22339_s29 + $0x158] sm:$0xff]  ;;  %v450_v47 = vld [vmem:[%s22339_s29 + $0x170] sm:$0xff] }
 0x317   : > { %18071 = vmatprep.mubr.f32.mxu1 %v3497_v24  ;;  %v22562_v3 = vpop.f32.mrb[72].mxu0  ;;  %5468 = vperm.xlu0 %20918, %v446_v9   ;;  %v448_v24 = vld [vmem:[%s22339_s29 + $0x160] sm:$0xff] }
 0x318   : > { %v22566_v29 = vpop.f32.mrb[73].mxu0  ;;  %v22568_v19 = vpop.f32.mrb[96].mxu1 }
 0x319   : > { %v22570_v1 = vpop.f32.mrb[97].mxu1 }
 0x31a   : > { %18072 = vmatmul.mubr.f32.gmra.mrb[124].mxu1 %v17905_v58  ;;  %5473 = vperm.xlu1 %20919, %v447_v6  }
 0x31b   : > { %18074 = vmatprep.mubr.f32.mxu1 %v3507_v30  ;;  %v22572_v5 = vpop.f32.mrb[74].mxu0  ;;  %5478 = vperm.xlu0 %20918, %v448_v24   ;;  %v449_v30 = vld [vmem:[%s22339_s29 + $0x168] sm:$0xff]  ;;  %v452_v24 = vld [vmem:[%s22339_s29 + $0x180] sm:$0xff] }
 0x31c   : > { %v22576_v41 = vpop.f32.mrb[75].mxu0  ;;  %v22578_v52 = vpop.f32.mrb[98].mxu1 }
 0x31d   : > { %v22580_v38 = vpop.f32.mrb[99].mxu1 }
 0x31e   : > { %18075 = vmatmul.mubr.f32.gmra.mrb[126].mxu1 %v17908_v13  ;;  %5483 = vperm.xlu1 %20919, %v449_v30  }
 0x31f   : > { %18077 = vmatprep.mubr.f32.mxu1 %v22524_v42  ;;  %v22583_v58 = vpop.f32.mrb[76].mxu0  ;;  %5488 = vperm.xlu0 %20918, %v450_v47   ;;  %v451_v42 = vld [vmem:[%s22339_s29 + $0x178] sm:$0xff]  ;;  %v453_v47 = vld [vmem:[%s22339_s29 + $0x188] sm:$0xff] }
 0x320   : > { %v22587_v9 = vpop.f32.mrb[77].mxu0 }
 0x321   : > { %v22589_v8 = vpop.f32.mrb[100].mxu1 }
 0x322   : > { %18078 = vmatmul.mubr.f32.gmra.mrb[128].mxu1 %v22522_v45  ;;  %v22592_v6 = vpop.f32.mrb[101].mxu1  ;;  %5493 = vperm.xlu1 %20919, %v451_v42  }
 0x323   : > { %18080 = vmatprep.mubr.f32.mxu1 %v22531_v50  ;;  %v22595_v13 = vpop.f32.mrb[78].mxu0  ;;  %5498 = vperm.xlu0 %20918, %v452_v24   ;;  %v454_v50 = vld [vmem:[%s22339_s29 + $0x190] sm:$0xff]  ;;  %v457_v24 = vld [vmem:[%s22339_s29 + $0x1a8] sm:$0xff] }
 0x324   : > { %v4089_v16 = vpop.f32.mrb[79].mxu0 }
 0x325   : > { %v22599_v30 = vpop.f32.mrb[102].mxu1 }
 0x326   : > { %18081 = vmatmul.mubr.f32.gmra.mrb[130].mxu1 %v22529_v62  ;;  %v22602_v57 = vpop.f32.mrb[103].mxu1  ;;  %5503 = vperm.xlu1 %20919, %v453_v47   ;;  %v458_v47 = vld [vmem:[%s22339_s29 + $0x1b0] sm:$0xff] }
 0x327   : > { %18083 = vmatprep.mubr.f32.mxu1 %v3691_v23  ;;  %v17985_v45 = vpop.f32.mrb[80].mxu0  ;;  %5508 = vperm.xlu0 %20918, %v454_v50   ;;  %v466_v50 = vld [vmem:[%s22339_s29 + $0x1f0] sm:$0xff] }
 0x328   : > { %v4273_v18 = vpop.f32.mrb[81].mxu0 }
 0x32a   : > { %18084 = vmatmul.mubr.f32.gmra.mrb[132].mxu1 %v22546_v28  ;;  %5513 = vperm.xlu1 %20919, %v455_v37   ;;  %v459_v37 = vld [vmem:[%s22339_s29 + $0x1b8] sm:$0xff] }
 0x32b   : > { %18086 = vmatprep.mubr.f32.mxu1 %v3701_v39  ;;  %v17988_v42 = vpop.f32.mrb[82].mxu0  ;;  %5518 = vperm.xlu0 %20918, %v456_v32   ;;  %v462_v39 = vld [vmem:[%s22339_s29 + $0x1d0] sm:$0xff] }
 0x32c   : > { %v4283_v62 = vpop.f32.mrb[83].mxu0 }
 0x32e   : > { %18087 = vmatmul.mubr.f32.gmra.mrb[134].mxu1 %v17928_v2  ;;  %5523 = vperm.xlu1 %20919, %v457_v24   ;;  %v460_v2 = vld [vmem:[%s22339_s29 + $0x1c0] sm:$0xff]  ;;  %v26298_v24 = vld [vmem:[#allocation163_spill] sm:$0xff] }
 0x32f   : > { %18089 = vmatprep.mubr.f32.mxu1 %v22537_v11  ;;  %v18005_v23 = vpop.f32.mrb[84].mxu0  ;;  %5528 = vperm.xlu0 %20918, %v458_v47   ;;  %v461_v11 = vld [vmem:[%s22339_s29 + $0x1c8] sm:$0xff] }
 0x330   : > { %v4467_v35 = vpop.f32.mrb[85].mxu0  ;;  %v26299_v47 = vld [vmem:[#allocation166_spill] sm:$0xff] }
 0x332   : > { %18090 = vmatmul.mubr.f32.gmra.mrb[136].mxu1 %v22535_v17  ;;  %5533 = vperm.xlu1 %20919, %v459_v37   ;;  %v464_v17 = vld [vmem:[%s22339_s29 + $0x1e0] sm:$0xff]  ;;  %v26301_v37 = vld [vmem:[#allocation158_spill] sm:$0xff] }
 0x333   : > { %18092 = vmatprep.mubr.f32.mxu1 %v22543_v44  ;;  %v18008_v28 = vpop.f32.mrb[86].mxu0  ;;  %5538 = vperm.xlu0 %20918, %v460_v2   ;;  %v463_v44 = vld [vmem:[%s22339_s29 + $0x1d8] sm:$0xff]  ;;  %v26302_v2 = vld [vmem:[#allocation157_spill] sm:$0xff] }
 0x334   : > { %v4477_v32 = vpop.f32.mrb[87].mxu0 }
 0x336   : > { %18093 = vmatmul.mubr.f32.gmra.mrb[138].mxu1 %v22541_v49  ;;  %5543 = vperm.xlu1 %20919, %v461_v11   ;;  %v465_v49 = vld [vmem:[%s22339_s29 + $0x1e8] sm:$0xff]  ;;  %v26304_v11 = vld [vmem:[#allocation161_spill] sm:$0xff] }
 0x337   : > { %18095 = vmatprep.mubr.f32.mxu1 %v22566_v29  ;;  %5548 = vperm.xlu0 %20918, %v462_v39   ;;  %v26289_v29 = vld [vmem:[#allocation156_spill] sm:$0xff] }
 0x338   : > { %v26305_v39 = vld [vmem:[#allocation168_spill] sm:$0xff] }
 0x33a   : > { %18096 = vmatmul.mubr.f32.gmra.mrb[140].mxu1 %v22562_v3  ;;  %5553 = vperm.xlu1 %20919, %v463_v44   ;;  %v467_v3 = vld [vmem:[%s22339_s29 + $0x1f8] sm:$0xff]  ;;  %v26306_v44 = vld [vmem:[#allocation167_spill] sm:$0xff]  ;;  %s21111_s29 = smov [#allocation2]  }
 0x33b   : > { %18098 = vmatprep.mubr.f32.mxu1 %v22576_v41  ;;  %5558 = vperm.xlu0 %20918, %v464_v17   ;;  %v792_v41 = vld [vmem:[%s25591_s4 + $0x1f8] sm:$0xff]  ;;  %v26307_v17 = vld [vmem:[#allocation170_spill] sm:$0xff]  ;;  %s21050_s16 = sshll.u32 %s21111_s29, 4  ;;  %s21051_s16 = int_to_ptr.vmem [resolvable:$false] %s21050_s16 }
 0x33c   : > { %p21053_p1 = scmp.lt.s32.totalorder %s25539_s8, %s21051_s16 }
 0x33e   : > { %18099 = vmatmul.mubr.f32.gmra.mrb[142].mxu1 %v22572_v5  ;;  %5563 = vperm.xlu1 %20919, %v465_v49   ;;  %v791_v5 = vld [vmem:[%s25591_s4 + $0x1f0] sm:$0xff]  ;;  %v22754_v49 = vpop.permute.xlu0 %5258 }
 0x33f   : > { %18101 = vmatprep.mubr.f32.mxu1 %v22552_v22  ;;  %5568 = vperm.xlu0 %20918, %v466_v50   ;;  %v780_v22 = vld [vmem:[%s25591_s4 + $0x198] sm:$0xff]  ;;  %v26309_v50 = vld [vmem:[#allocation169_spill] sm:$0xff] }
 0x342   : > { %18102 = vmatmul.mubr.f32.gmra.mrb[144].mxu1 %v22550_v59  ;;  %5573 = vperm.xlu1 %20919, %v467_v3   ;;  %v22757_v3 = vpop.permute.xlu0 %5263 }
 0x343   : > { %18104 = vmatprep.mubr.f32.mxu1 %v22559_v12  ;;  %v778_v12 = vld [vmem:[%s25591_s4 + $0x188] sm:$0xff] }
 0x346   : > { %18105 = vmatmul.mubr.f32.gmra.mrb[146].mxu1 %v22557_v27  ;;  %v788_v27 = vld [vmem:[%s25591_s4 + $0x1d8] sm:$0xff] }
 0x347   : > { %18107 = vmatprep.mubr.f32.mxu1 %v22587_v9  ;;  %v20101_v9 = vpack.c.bf16 %v792_v41, %v791_v5 }
 0x34a   : > { %18108 = vmatmul.mubr.f32.gmra.mrb[148].mxu1 %v22583_v58  ;;  %v26290_v58 = vld [vmem:[#allocation155_spill] sm:$0xff] }
 0x34b   : > { %18110 = vmatprep.mubr.f32.mxu1 %v4089_v16  ;;  %v779_v16 = vld [vmem:[%s25591_s4 + $0x190] sm:$0xff] }
 0x34e   : > { %18111 = vmatmul.mubr.f32.gmra.mrb[150].mxu1 %v22595_v13  ;;  %v26292_v13 = vld [vmem:[#allocation159_spill] sm:$0xff] }
 0x34f   : > { %18113 = vmatprep.mubr.f32.mxu1 %v22570_v1  ;;  %v783_v1 = vld [vmem:[%s25591_s4 + $0x1b0] sm:$0xff] }
 0x352   : > { %18114 = vmatmul.mubr.f32.gmra.mrb[152].mxu1 %v22568_v19  ;;  %v786_v19 = vld [vmem:[%s25591_s4 + $0x1c8] sm:$0xff] }
 0x353   : > { %18116 = vmatprep.mubr.f32.mxu1 %v22580_v38  ;;  %v777_v38 = vld [vmem:[%s25591_s4 + $0x180] sm:$0xff] }
 0x356   : > { %18117 = vmatmul.mubr.f32.gmra.mrb[154].mxu1 %v22578_v52  ;;  %v20077_v52 = vpack.c.bf16 %v780_v22, %v779_v16 }
 0x357   : > { %18119 = vmatprep.mubr.f32.mxu1 %v4273_v18  ;;  %v20073_v18 = vpack.c.bf16 %v778_v12, %v777_v38  ;;  %v22759_v38 = vpop.permute.xlu0 %5278  ;;  %v22761_v12 = vpop.permute.xlu1 %5268 }
 0x359   : > { %20074 = vmatprep.subr.bf16.mxu0 %v20073_v18 }
 0x35a   : > { %18120 = vmatmul.mubr.f32.gmra.mrb[156].mxu1 %v17985_v45  ;;  %20076 = vmatpush3.bf16.msra.mxu0 %v20073_v18  ;;  %v26294_v45 = vld [vmem:[#allocation149_spill] sm:$0xff] }
 0x35b   : > { %18122 = vmatprep.mubr.f32.mxu1 %v4283_v62  ;;  %20078 = vmatprep.subr.bf16.mxu0 %v20077_v52  ;;  %v26296_v62 = vld [vmem:[#allocation153_spill] sm:$0xff]  ;;  %v22763_v16 = vpop.permute.xlu0 %5288  ;;  %v22765_v18 = vpop.permute.xlu1 %5273 }
 0x35e   : > { %18123 = vmatmul.mubr.f32.gmra.mrb[158].mxu1 %v17988_v42  ;;  %20080 = vmatpush3.bf16.msra.mxu0 %v20077_v52  ;;  %v26295_v42 = vld [vmem:[#allocation154_spill] sm:$0xff] }
 0x35f   : > { %18125 = vmatprep.mubr.f32.mxu1 %v22592_v6  ;;  %v26291_v6 = vld [vmem:[#allocation160_spill] sm:$0xff]  ;;  %v22767_v22 = vpop.permute.xlu0 %5298  ;;  %v22769_v52 = vpop.permute.xlu1 %5283 }
 0x362   : > { %18126 = vmatmul.mubr.f32.gmra.mrb[160].mxu1 %v22589_v8  ;;  %v781_v8 = vld [vmem:[%s25591_s4 + $0x1a0] sm:$0xff] }
 0x363   : > { %18128 = vmatprep.mubr.f32.mxu1 %v22602_v57  ;;  %v784_v57 = vld [vmem:[%s25591_s4 + $0x1b8] sm:$0xff] }
 0x366   : > { %18129 = vmatmul.mubr.f32.gmra.mrb[162].mxu1 %v22599_v30  ;;  %v26293_v30 = vld [vmem:[#allocation150_spill] sm:$0xff] }
 0x367   : > { %18131 = vmatprep.mubr.f32.mxu1 %v4467_v35  ;;  %v782_v35 = vld [vmem:[%s25591_s4 + $0x1a8] sm:$0xff] }
 0x36a   : > { %18132 = vmatmul.mubr.f32.gmra.mrb[164].mxu1 %v18005_v23  ;;  %v26297_v23 = vld [vmem:[#allocation164_spill] sm:$0xff] }
 0x36b   : > { %18134 = vmatprep.mubr.f32.mxu1 %v4477_v32  ;;  %v26303_v32 = vld [vmem:[#allocation162_spill] sm:$0xff] }
 0x36e   : > { %18135 = vmatmul.mubr.f32.gmra.mrb[166].mxu1 %v18008_v28  ;;  %v26300_v28 = vld [vmem:[#allocation165_spill] sm:$0xff] }
 0x36f   : > { %18169 = vmatprep.mubr.f32.mxu1 %v22303_v48  ;;  %v20081_v48 = vpack.c.bf16 %v782_v35, %v781_v8  ;;  %v22771_v8 = vpop.permute.xlu0 %5308  ;;  %v22773_v35 = vpop.permute.xlu1 %5293 }
 0x371   : > { %20082 = vmatprep.subr.bf16.mxu0 %v20081_v48 }
 0x372   : > { %18170 = vmatmul.mubr.f32.vlgmr.msra.gmra.mrb[104].mxu1 %v22301_v43  ;;  %v20085_v43 = vpack.c.bf16 %v784_v57, %v783_v1  ;;  %20084 = vmatpush3.bf16.msra.mxu0 %v20081_v48 }
 0x373   : > { %18172 = vmatprep.mubr.f32.mxu1 %v22307_v61  ;;  %v785_v61 = vld [vmem:[%s25591_s4 + $0x1c0] sm:$0xff]  ;;  %v22775_v48 = vpop.permute.xlu0 %5318  ;;  %v22777_v1 = vpop.permute.xlu1 %5303 }
 0x374   : > { %20086 = vmatprep.subr.bf16.mxu0 %v20085_v43 }
 0x376   : > { %18173 = vmatmul.mubr.f32.gmra.mrb[106].mxu1 %v22305_v26  ;;  %v20089_v26 = vpack.c.bf16 %v786_v19, %v785_v61  ;;  %20088 = vmatpush3.bf16.msra.mxu0 %v20085_v43 }
 0x377   : > { %18175 = vmatprep.mubr.f32.mxu1 %v22311_v0  ;;  %v787_v0 = vld [vmem:[%s25591_s4 + $0x1d0] sm:$0xff]  ;;  %v22779_v57 = vpop.permute.xlu0 %5328  ;;  %v22781_v43 = vpop.permute.xlu1 %5313 }
 0x378   : > { %20090 = vmatprep.subr.bf16.mxu0 %v20089_v26 }
 0x37a   : > { %18176 = vmatmul.mubr.f32.gmra.mrb[108].mxu1 %v22309_v31  ;;  %v20093_v31 = vpack.c.bf16 %v788_v27, %v787_v0  ;;  %20092 = vmatpush3.bf16.msra.mxu0 %v20089_v26 }
 0x37b   : > { %18178 = vmatprep.mubr.f32.mxu1 %v22315_v36  ;;  %v26274_v36 = vld [vmem:[#allocation139_spill] sm:$0xff]  ;;  %v22783_v61 = vpop.permute.xlu0 %5338  ;;  %v22785_v19 = vpop.permute.xlu1 %5323 }
 0x37c   : > { %20094 = vmatprep.subr.bf16.mxu0 %v20093_v31  ;;  %26312 = vst [vmem:[#allocation139_spill] sm:$0xff] %v22761_v12 }
 0x37e   : > { %18179 = vmatmul.mubr.f32.gmra.mrb[110].mxu1 %v22313_v25  ;;  %20096 = vmatpush3.bf16.msra.mxu0 %v20093_v31  ;;  %v26287_v25 = vld [vmem:[#allocation146_spill] sm:$0xff]  ;;  %v26328_v31 = vld [vmem:[#allocation5_spill] sm:$0xff] }
 0x37f   : > { %18181 = vmatprep.mubr.f32.mxu1 %v22321_v46  ;;  %v26288_v46 = vld [vmem:[#allocation145_spill] sm:$0xff]  ;;  %v22787_v26 = vpop.permute.xlu0 %5348  ;;  %v22789_v0 = vpop.permute.xlu1 %5333 }
 0x380   : > { %26325 = vst [vmem:[#allocation146_spill] sm:$0xff] %v22787_v26  ;;  %26326 = vst [vmem:[#allocation145_spill] sm:$0xff] %v22789_v0 }
 0x382   : > { %18182 = vmatmul.mubr.f32.gmra.mrb[112].mxu1 %v22317_v20  ;;  %v789_v20 = vld [vmem:[%s25591_s4 + $0x1e0] sm:$0xff] }
 0x383   : > { %18184 = vmatprep.mubr.f32.mxu1 %v22329_v55  ;;  %v26283_v55 = vld [vmem:[#allocation152_spill] sm:$0xff]  ;;  %v22791_v27 = vpop.permute.xlu0 %5358 }
 0x384   : > { %26321 = vst [vmem:[#allocation152_spill] sm:$0xff] %v22779_v57  ;;  %26327 = vst [vmem:[#allocation156_spill] sm:$0xff] %v22791_v27 }
 0x386   : > { %18185 = vmatmul.mubr.f32.gmra.mrb[114].mxu1 %v22325_v54  ;;  %v26285_v54 = vld [vmem:[#allocation142_spill] sm:$0xff] }
 0x387   : > { %18187 = vmatprep.mubr.f32.mxu1 %v22341_v60  ;;  %v26273_v60 = vld [vmem:[#allocation140_spill] sm:$0xff]  ;;  %26323 = vst [vmem:[#allocation142_spill] sm:$0xff] %v22783_v61 }
 0x388   : > { %26311 = vst [vmem:[#allocation140_spill] sm:$0xff] %v22759_v38 }
 0x38a   : > { %18188 = vmatmul.mubr.f32.gmra.mrb[116].mxu1 %v22334_v53  ;;  %v26282_v53 = vld [vmem:[#allocation147_spill] sm:$0xff] }
 0x38b   : > { %18190 = vmatprep.mubr.f32.mxu1 %v22350_v4  ;;  %v26271_v4 = vld [vmem:[#allocation134_spill] sm:$0xff]  ;;  %26320 = vst [vmem:[#allocation147_spill] sm:$0xff] %v22777_v1 }
 0x38c   : > { %26308 = vst [vmem:[#allocation134_spill] sm:$0xff] %v22754_v49 }
 0x38e   : > { %18191 = vmatmul.mubr.f32.gmra.mrb[118].mxu1 %v22347_v7  ;;  %v26272_v7 = vld [vmem:[#allocation133_spill] sm:$0xff] }
 0x38f   : > { %18193 = vmatprep.mubr.f32.mxu1 %v22323_v15  ;;  %v26286_v15 = vld [vmem:[#allocation141_spill] sm:$0xff]  ;;  %26310 = vst [vmem:[#allocation133_spill] sm:$0xff] %v22757_v3 }
 0x390   : > { %26324 = vst [vmem:[#allocation141_spill] sm:$0xff] %v22785_v19 }
 0x392   : > { %18194 = vmatmul.mubr.f32.gmra.mrb[120].mxu1 %v22319_v40  ;;  %v790_v40 = vld [vmem:[%s25591_s4 + $0x1e8] sm:$0xff] }
 0x393   : > { %18196 = vmatprep.mubr.f32.mxu1 %v22331_v14  ;;  %v26275_v14 = vld [vmem:[#allocation144_spill] sm:$0xff]  ;;  %v20097_v59 = vpack.c.bf16 %v790_v40, %v789_v20  ;;  %v26342_v20 = vld [vmem:[#allocation35_spill] sm:$0xff] }
 0x394   : > { %26313 = vst [vmem:[#allocation144_spill] sm:$0xff] %v22763_v16 }
 0x395   : > { %20098 = vmatprep.subr.bf16.mxu0 %v20097_v59 }
 0x396   : > { %18197 = vmatmul.mubr.f32.gmra.mrb[122].mxu1 %v22327_v10  ;;  %v26284_v10 = vld [vmem:[#allocation151_spill] sm:$0xff]  ;;  %20100 = vmatpush3.bf16.msra.mxu0 %v20097_v59 }
 0x397   : > { %18199 = vmatprep.mubr.f32.mxu1 %v22360_v33  ;;  %v26276_v33 = vld [vmem:[#allocation143_spill] sm:$0xff]  ;;  %20102 = vmatprep.subr.bf16.mxu0 %v20101_v9  ;;  %26322 = vst [vmem:[#allocation151_spill] sm:$0xff] %v22781_v43 }
 0x398   : > { %26314 = vst [vmem:[#allocation143_spill] sm:$0xff] %v22765_v18  ;;  %v26344_v59 = vld [vmem:[#allocation27_spill] sm:$0xff] }
 0x39a   : > { %18200 = vmatmul.mubr.f32.gmra.mrb[124].mxu1 %v22356_v34  ;;  %v26277_v34 = vld [vmem:[#allocation136_spill] sm:$0xff]  ;;  %20104 = vmatpush3.bf16.msra.mxu0 %v20101_v9  ;;  %v26348_v9 = vld [vmem:[#allocation29_spill] sm:$0xff] }
 0x39b   : > { %18202 = vmatprep.mubr.f32.mxu1 %v22370_v56  ;;  %v26278_v56 = vld [vmem:[#allocation135_spill] sm:$0xff]  ;;  %26315 = vst [vmem:[#allocation136_spill] sm:$0xff] %v22767_v22 }
 0x39c   : > { %26316 = vst [vmem:[#allocation135_spill] sm:$0xff] %v22769_v52 }
 0x39e   : > { %18203 = vmatmul.mubr.f32.gmra.mrb[126].mxu1 %v22366_v63  ;;  %v26279_v63 = vld [vmem:[#allocation138_spill] sm:$0xff] }
 0x39f   : > { %18205 = vmatprep.mubr.f32.mxu1 %v22345_v21  ;;  %v26280_v21 = vld [vmem:[#allocation137_spill] sm:$0xff]  ;;  %26317 = vst [vmem:[#allocation138_spill] sm:$0xff] %v22771_v8 }
 0x3a0   : > { %26318 = vst [vmem:[#allocation137_spill] sm:$0xff] %v22773_v35 }
 0x3a2   : > { %18206 = vmatmul.mubr.f32.gmra.mrb[128].mxu1 %v22343_v51  ;;  %v26281_v51 = vld [vmem:[#allocation148_spill] sm:$0xff] }
 0x3a3   : > { %18208 = vmatprep.mubr.f32.mxu1 %v26271_v4  ;;  %26319 = vst [vmem:[#allocation148_spill] sm:$0xff] %v22775_v48  ;;  %v26329_v4 = vld [vmem:[#allocation16_spill] sm:$0xff] }
 0x3a6   : > { %18209 = vmatmul.mubr.f32.gmra.mrb[130].mxu1 %v26272_v7  ;;  %v20920_v7 = vpack.i.bf16 %v26329_v4, %v26328_v31 }
 0x3a7   : > { %18211 = vmatprep.mubr.f32.mxu1 %v26273_v60  ;;  %v22795_v60 = vpop.permute.xlu1 %5343 }
 0x3a8   : > { %20921 = vxpose.xlu0.b32.start [1/4] (short) (narrow) %v20920_v7, 16  ;;  %26330 = vst [vmem:[#allocation155_spill] sm:$0xff] %v22795_v60 }
 0x3aa   : > { %18212 = vmatmul.mubr.f32.gmra.mrb[132].mxu1 %v26274_v36  ;;  %v26331_v36 = vld [vmem:[#allocation11_spill] sm:$0xff] }
 0x3ab   : > { %18214 = vmatprep.mubr.f32.mxu1 %v26275_v14  ;;  %v26332_v14 = vld [vmem:[#allocation19_spill] sm:$0xff] }
 0x3ae   : > { %18215 = vmatmul.mubr.f32.gmra.mrb[134].mxu1 %v26276_v33  ;;  %v20922_v33 = vpack.i.bf16 %v26332_v14, %v26331_v36 }
 0x3af   : > { %18217 = vmatprep.mubr.f32.mxu1 %v26277_v34  ;;  %v22799_v34 = vpop.permute.xlu0 %5368 }
 0x3b0   : > { %26333 = vst [vmem:[#allocation160_spill] sm:$0xff] %v22799_v34  ;;  %20923 = vxpose.xlu0.b32.cont [2/4] (short) (narrow) %v20922_v33, 16 }
 0x3b2   : > { %18218 = vmatmul.mubr.f32.gmra.mrb[136].mxu1 %v26278_v56  ;;  %v26334_v56 = vld [vmem:[#allocation12_spill] sm:$0xff] }
 0x3b3   : > { %18220 = vmatprep.mubr.f32.mxu1 %v26279_v63  ;;  %v26335_v63 = vld [vmem:[#allocation20_spill] sm:$0xff] }
 0x3b6   : > { %18221 = vmatmul.mubr.f32.gmra.mrb[138].mxu1 %v26280_v21  ;;  %v20924_v21 = vpack.i.bf16 %v26335_v63, %v26334_v56 }
 0x3b7   : > { %18223 = vmatprep.mubr.f32.mxu1 %v26281_v51  ;;  %v22803_v51 = vpop.permute.xlu1 %5353 }
 0x3b8   : > { %26336 = vst [vmem:[#allocation159_spill] sm:$0xff] %v22803_v51  ;;  %20925 = vxpose.xlu0.b32.cont [3/4] (short) (narrow) %v20924_v21, 16 }
 0x3ba   : > { %18224 = vmatmul.mubr.f32.gmra.mrb[140].mxu1 %v26282_v53  ;;  %v22805_v53 = vpop.permute.xlu0 %5378 }
 0x3bb   : > { %18226 = vmatprep.mubr.f32.mxu1 %v26283_v55  ;;  %26337 = vst [vmem:[#allocation150_spill] sm:$0xff] %v22805_v53  ;;  %v26338_v55 = vld [vmem:[#allocation15_spill] sm:$0xff] }
 0x3be   : > { %18227 = vmatmul.mubr.f32.gmra.mrb[142].mxu1 %v26284_v10  ;;  %v26339_v10 = vld [vmem:[#allocation23_spill] sm:$0xff] }
 0x3bf   : > { %18229 = vmatprep.mubr.f32.mxu1 %v26285_v54  ;;  %v20926_v54 = vpack.i.bf16 %v26339_v10, %v26338_v55 }
 0x3c1   : > { %20927 = vxpose.xlu0.b32.end [4/4] (short) (narrow) %v20926_v54, 16 }
 0x3c2   : > { %18230 = vmatmul.mubr.f32.gmra.mrb[144].mxu1 %v26286_v15  ;;  %v22809_v15 = vpop.permute.xlu1 %5363 }
 0x3c3   : > { %18232 = vmatprep.mubr.f32.mxu1 %v26287_v25  ;;  %26340 = vst [vmem:[#allocation149_spill] sm:$0xff] %v22809_v15  ;;  %v26341_v25 = vld [vmem:[#allocation24_spill] sm:$0xff] }
 0x3c4   : > { %v20938_v40 = vpack.i.bf16 %v26342_v20, %v26341_v25 }
 0x3c6   : > { %18233 = vmatmul.mubr.f32.gmra.mrb[146].mxu1 %v26288_v46  ;;  %v22813_v46 = vpop.permute.xlu0 %5388  ;;  %20939 = vxpose.xlu1.b32.start [1/4] (short) (narrow) %v20938_v40, 16  ;;  %v22817_v41 = vpop.permute.xlu1 %5373 }
 0x3c7   : > { %18235 = vmatprep.mubr.f32.mxu1 %v26289_v29  ;;  %26343 = vst [vmem:[#allocation154_spill] sm:$0xff] %v22813_v46  ;;  %v26345_v29 = vld [vmem:[#allocation39_spill] sm:$0xff]  ;;  %26346 = vst [vmem:[#allocation153_spill] sm:$0xff] %v22817_v41 }
 0x3c8   : > { %v20940_v5 = vpack.i.bf16 %v26345_v29, %v26344_v59 }
 0x3ca   : > { %18236 = vmatmul.mubr.f32.gmra.mrb[148].mxu1 %v26290_v58  ;;  %20941 = vxpose.xlu1.b32.cont [2/4] (short) (narrow) %v20940_v5, 16  ;;  %v22819_v58 = vpop.permute.xlu0 %5398 }
 0x3cb   : > { %18238 = vmatprep.mubr.f32.mxu1 %v26291_v6  ;;  %26347 = vst [vmem:[#allocation164_spill] sm:$0xff] %v22819_v58  ;;  %v26349_v6 = vld [vmem:[#allocation41_spill] sm:$0xff] }
 0x3ce   : > { %18239 = vmatmul.mubr.f32.gmra.mrb[150].mxu1 %v26292_v13  ;;  %v20942_v13 = vpack.i.bf16 %v26349_v6, %v26348_v9 }
 0x3cf   : > { %18241 = vmatprep.mubr.f32.mxu1 %v26293_v30  ;;  %v22826_v30 = vld [vmem:[%s25592_s5 + $0x2] ss:$0 sm:$0xff] }
 0x3d0   : > { %20943 = vxpose.xlu1.b32.cont [3/4] (short) (narrow) %v20942_v13, 16  ;;  %v5583_v7 = vmul.f32 %v22826_v30, %v22765_v18  ;;  %v5582_v21 = vmul.f32 %v22826_v30, %v22761_v12  ;;  %v26360_v18 = vld [vmem:[#allocation59_spill] sm:$0xff] }
 0x3d2   : > { %18242 = vmatmul.mubr.f32.gmra.mrb[152].mxu1 %v26294_v45  ;;  %v22828_v45 = vpop.permute.xlu1 %5383 }
 0x3d3   : > { %18244 = vmatprep.mubr.f32.mxu1 %v26295_v42  ;;  %26350 = vst [vmem:[#allocation163_spill] sm:$0xff] %v22828_v45  ;;  %v5581_v42 = vmul.f32 %v22826_v30, %v22757_v3  ;;  %v26359_v3 = vld [vmem:[#allocation36_spill] sm:$0xff] }
 0x3d6   : > { %18245 = vmatmul.mubr.f32.gmra.mrb[154].mxu1 %v26296_v62  ;;  %v26351_v62 = vld [vmem:[#allocation33_spill] sm:$0xff]  ;;  %v22850_v54 = vpop.permute.xlu1 %5393 }
 0x3d7   : > { %18247 = vmatprep.mubr.f32.mxu1 %v26297_v23  ;;  %v26352_v23 = vld [vmem:[#allocation45_spill] sm:$0xff]  ;;  %26356 = vst [vmem:[#allocation165_spill] sm:$0xff] %v22850_v54 }
 0x3da   : > { %18248 = vmatmul.mubr.f32.gmra.mrb[156].mxu1 %v26298_v24  ;;  %v20944_v24 = vpack.i.bf16 %v26352_v23, %v26351_v62 }
 0x3db   : > { %18250 = vmatprep.mubr.f32.mxu1 %v26299_v47  ;;  %v5580_v47 = vmul.f32 %v22826_v30, %v22754_v49 }
 0x3dc   : > { %20945 = vxpose.xlu1.b32.end [4/4] (short) (narrow) %v20944_v24, 16  ;;  %v26357_v24 = vld [vmem:[#allocation28_spill] sm:$0xff] }
 0x3de   : > { %18251 = vmatmul.mubr.f32.gmra.mrb[158].mxu1 %v26300_v28  ;;  %v22839_v28 = vld [vmem:[%s25592_s5 + $0x3] ss:$0 sm:$0xff] }
 0x3df   : > { %18253 = vmatprep.mubr.f32.mxu1 %v26301_v37 }
 0x3e2   : > { %18254 = vmatmul.mubr.f32.gmra.mrb[160].mxu1 %v26302_v2  ;;  %v22841_v2 = vpop.permute.xlu0 %5408 }
 0x3e3   : > { %18256 = vmatprep.mubr.f32.mxu1 %v26303_v32  ;;  %26353 = vst [vmem:[#allocation166_spill] sm:$0xff] %v22841_v2 }
 0x3e6   : > { %18257 = vmatmul.mubr.f32.gmra.mrb[162].mxu1 %v26304_v11  ;;  %v22859_v12 = vpop.permute.xlu0 %5418 }
 0x3e7   : > { %18259 = vmatprep.mubr.f32.mxu1 %v26305_v39  ;;  %26361 = vst [vmem:[#allocation158_spill] sm:$0xff] %v22859_v12 }
 0x3ea   : > { %18260 = vmatmul.mubr.f32.gmra.mrb[164].mxu1 %v26306_v44  ;;  %v26354_v44 = vld [vmem:[#allocation6_spill] sm:$0xff] }
 0x3eb   : > { %18262 = vmatprep.mubr.f32.mxu1 %v26307_v17  ;;  %v26355_v17 = vld [vmem:[#allocation47_spill] sm:$0xff] }
 0x3ee   : > { %18263 = vmatmul.mubr.f32.gmra.mrb[166].mxu1 %v26309_v50  ;;  %v20956_v50 = vpack.i.bf16 %v26355_v17, %v26354_v44  ;;  %v20974_v17 = vpack.i.bf16 %v26360_v18, %v26359_v3  ;;  %v22869_v3 = vpop.permute.xlu1 %5403 }
 0x3ef   : > { %26366 = vst [vmem:[#allocation157_spill] sm:$0xff] %v22869_v3 }
 0x3f0   : > { %20957 = vxpose.xlu0.b32.start [1/4] (short) (narrow) %v20956_v50, 16  ;;  %20975 = vxpose.xlu1.b32.start [1/4] (short) (narrow) %v20974_v17, 16  ;;  %v26367_v17 = vld [vmem:[#allocation34_spill] sm:$0xff] }
 0x445   : > { %v18171_v37 = vpop.f32.mrb[104].mxu1 }
 0x446   : > { %v5645_v32 = vadd.f32 %v18171_v37, %v5581_v42  ;;  %v4937_v11 = vpop.f32.mrb[105].mxu1 }
 0x447   : > { %v5644_v39 = vadd.f32 %v5580_v47, %v4937_v11  ;;  %v26358_v47 = vld [vmem:[#allocation51_spill] sm:$0xff] }
 0x448   : > { %v5713_v33 = vadd.f32 %v22839_v28, %v5645_v32  ;;  %v20958_v37 = vpack.i.bf16 %v26358_v47, %v26357_v24  ;;  %v5585_v32 = vmul.f32 %v22826_v30, %v22769_v52  ;;  %v26364_v52 = vld [vmem:[#allocation40_spill] sm:$0xff]  ;;  %v26365_v47 = vld [vmem:[#allocation63_spill] sm:$0xff] }
 0x449   : > { %v18174_v40 = vpop.f32.mrb[106].mxu1  ;;  %v5712_v5 = vadd.f32 %v22839_v28, %v5644_v39  ;;  %v5584_v39 = vmul.f32 %v22826_v30, %v22759_v38 }
 0x44a   : > { %v5647_v13 = vadd.f32 %v18174_v40, %v5583_v7  ;;  %v4947_v42 = vpop.f32.mrb[107].mxu1  ;;  %v5777_v23 = vmax.f32 %v5713_v33, 0.0  ;;  %20959 = vxpose.xlu0.b32.cont [2/4] (short) (narrow) %v20958_v37, 16  ;;  %v26363_v40 = vld [vmem:[#allocation53_spill] sm:$0xff]  ;;  %v20976_v33 = vpack.i.bf16 %v26365_v47, %v26364_v52  ;;  %v22879_v52 = vpop.permute.xlu0 %5428 }
 0x44b   : > { %v5646_v11 = vadd.f32 %v5582_v21, %v4947_v42  ;;  %v5776_v49 = vmax.f32 %v5712_v5, 0.0  ;;  %v26362_v21 = vld [vmem:[#allocation30_spill] sm:$0xff]  ;;  %26369 = vst [vmem:[#allocation162_spill] sm:$0xff] %v22879_v52 }
 0x44c   : > { %v5715_v6 = vadd.f32 %v22839_v28, %v5647_v13  ;;  %v20960_v5 = vpack.i.bf16 %v26363_v40, %v26362_v21  ;;  %20977 = vxpose.xlu1.b32.cont [2/4] (short) (narrow) %v20976_v33, 16  ;;  %v26373_v33 = vld [vmem:[#allocation48_spill] sm:$0xff] }
 0x44d   : > { %v18177_v50 = vpop.f32.mrb[108].mxu1  ;;  %18297 = vmatprep.mubr.f32.mxu0 %v5776_v49  ;;  %v5714_v7 = vadd.f32 %v22839_v28, %v5646_v11  ;;  %v5587_v49 = vmul.f32 %v22826_v30, %v22773_v35  ;;  %v5586_v11 = vmul.f32 %v22826_v30, %v22763_v16 }
 0x44e   : > { %v5649_v42 = vadd.f32 %v18177_v50, %v5585_v32  ;;  %v4957_v18 = vpop.f32.mrb[109].mxu1  ;;  %18298 = vmatmul.mubr.f32.vlgmr.msra.gmra.mrb[88].mxu0 %v5777_v23  ;;  %v5779_v38 = vmax.f32 %v5715_v6, 0.0  ;;  %20961 = vxpose.xlu0.b32.cont [3/4] (short) (narrow) %v20960_v5, 16  ;;  %v26368_v50 = vld [vmem:[#allocation57_spill] sm:$0xff]  ;;  %v26370_v6 = vld [vmem:[#allocation42_spill] sm:$0xff] }
 0x44f   : > { %v5648_v13 = vadd.f32 %v5584_v39, %v4957_v18  ;;  %v5778_v24 = vmax.f32 %v5714_v7, 0.0  ;;  %v20962_v47 = vpack.i.bf16 %v26368_v50, %v26367_v17  ;;  %v26371_v7 = vld [vmem:[#allocation65_spill] sm:$0xff]  ;;  %v22888_v50 = vpop.permute.xlu1 %5413  ;;  %v22897_v17 = vpop.permute.xlu0 %5438 }
 0x450   : > { %v5717_v37 = vadd.f32 %v22839_v28, %v5649_v42  ;;  %v20978_v42 = vpack.i.bf16 %v26371_v7, %v26370_v6  ;;  %26372 = vst [vmem:[#allocation161_spill] sm:$0xff] %v22888_v50  ;;  %26377 = vst [vmem:[#allocation168_spill] sm:$0xff] %v22897_v17 }
 0x451   : > { %v18180_v32 = vpop.f32.mrb[110].mxu1  ;;  %18300 = vmatprep.mubr.f32.mxu0 %v5778_v24  ;;  %v5716_v23 = vadd.f32 %v22839_v28, %v5648_v13  ;;  %v5589_v24 = vmul.f32 %v22826_v30, %v22777_v1  ;;  %v5588_v13 = vmul.f32 %v22826_v30, %v22767_v22  ;;  %v26376_v1 = vld [vmem:[#allocation69_spill] sm:$0xff]  ;;  %v5591_v22 = vmul.f32 %v22826_v30, %v22781_v43  ;;  %v26380_v43 = vld [vmem:[#allocation60_spill] sm:$0xff] }
 0x452   : > { %v5651_v18 = vadd.f32 %v18180_v32, %v5587_v49  ;;  %v4967_v39 = vpop.f32.mrb[111].mxu1  ;;  %18301 = vmatmul.mubr.f32.gmra.mrb[90].mxu0 %v5779_v38  ;;  %v5781_v16 = vmax.f32 %v5717_v37, 0.0  ;;  %20963 = vxpose.xlu0.b32.end [4/4] (short) (narrow) %v20962_v47, 16  ;;  %v26374_v32 = vld [vmem:[#allocation71_spill] sm:$0xff]  ;;  %v26375_v37 = vld [vmem:[#allocation46_spill] sm:$0xff]  ;;  %v5590_v47 = vmul.f32 %v22826_v30, %v22771_v8 }
 0x453   : > { %v5650_v35 = vadd.f32 %v5586_v11, %v4967_v39  ;;  %v5780_v40 = vmax.f32 %v5716_v23, 0.0  ;;  %v20992_v11 = vpack.i.bf16 %v26374_v32, %v26373_v33  ;;  %20979 = vxpose.xlu1.b32.cont [3/4] (short) (narrow) %v20978_v42, 16  ;;  %v26378_v42 = vld [vmem:[#allocation52_spill] sm:$0xff]  ;;  %v26381_v32 = vld [vmem:[#allocation83_spill] sm:$0xff] }
 0x454   : > { %v5719_v5 = vadd.f32 %v22839_v28, %v5651_v18  ;;  %v20980_v18 = vpack.i.bf16 %v26376_v1, %v26375_v37  ;;  %v22907_v1 = vpop.permute.xlu1 %5423 }
 0x455   : > { %v18183_v49 = vpop.f32.mrb[112].mxu1  ;;  %18303 = vmatprep.mubr.f32.mxu0 %v5780_v40  ;;  %v5718_v38 = vadd.f32 %v22839_v28, %v5650_v35  ;;  %26382 = vst [vmem:[#allocation167_spill] sm:$0xff] %v22907_v1 }
 0x456   : > { %v5653_v23 = vadd.f32 %v18183_v49, %v5589_v24  ;;  %v4977_v39 = vpop.f32.mrb[113].mxu1  ;;  %18304 = vmatmul.mubr.f32.gmra.mrb[92].mxu0 %v5781_v16  ;;  %v5783_v40 = vmax.f32 %v5719_v5, 0.0  ;;  %20993 = vxpose.xlu0.b32.start [1/4] (short) (narrow) %v20992_v11, 16  ;;  %v26379_v49 = vld [vmem:[#allocation75_spill] sm:$0xff]  ;;  %v21010_v5 = vpack.i.bf16 %v26381_v32, %v26380_v43  ;;  %v5592_v11 = vmul.f32 %v22826_v30, %v22775_v48 }
 0x457   : > { %v5652_v7 = vadd.f32 %v5588_v13, %v4977_v39  ;;  %v5782_v6 = vmax.f32 %v5718_v38, 0.0  ;;  %v20994_v13 = vpack.i.bf16 %v26379_v49, %v26378_v42  ;;  %20981 = vxpose.xlu1.b32.end [4/4] (short) (narrow) %v20980_v18, 16  ;;  %v22917_v49 = vpop.permute.xlu0 %5448 }
 0x458   : > { %v5721_v35 = vadd.f32 %v22839_v28, %v5653_v23  ;;  %26385 = vst [vmem:[#allocation170_spill] sm:$0xff] %v22917_v49 }
 0x459   : > { %v18186_v24 = vpop.f32.mrb[114].mxu1  ;;  %18306 = vmatprep.mubr.f32.mxu0 %v5782_v6  ;;  %v5720_v16 = vadd.f32 %v22839_v28, %v5652_v7  ;;  %v5593_v6 = vmul.f32 %v22826_v30, %v22785_v19 }
 0x45a   : > { %v5655_v38 = vadd.f32 %v18186_v24, %v5591_v22  ;;  %v4987_v39 = vpop.f32.mrb[115].mxu1  ;;  %18307 = vmatmul.mubr.f32.gmra.mrb[94].mxu0 %v5783_v40  ;;  %v5785_v8 = vmax.f32 %v5721_v35, 0.0  ;;  %20995 = vxpose.xlu0.b32.cont [2/4] (short) (narrow) %v20994_v13, 16  ;;  %v26383_v40 = vld [vmem:[#allocation54_spill] sm:$0xff]  ;;  %v26384_v24 = vld [vmem:[#allocation77_spill] sm:$0xff]  ;;  %v26386_v35 = vld [vmem:[#allocation64_spill] sm:$0xff] }
 0x45b   : > { %v5654_v23 = vadd.f32 %v5590_v47, %v4987_v39  ;;  %v5784_v33 = vmax.f32 %v5720_v16, 0.0  ;;  %v20996_v32 = vpack.i.bf16 %v26384_v24, %v26383_v40  ;;  %21011 = vxpose.xlu1.b32.start [1/4] (short) (narrow) %v21010_v5, 16  ;;  %v26387_v39 = vld [vmem:[#allocation86_spill] sm:$0xff]  ;;  %v22926_v24 = vpop.permute.xlu1 %5433  ;;  %v22935_v40 = vpop.permute.xlu0 %5458 }
 0x45c   : > { %v5723_v7 = vadd.f32 %v22839_v28, %v5655_v38  ;;  %v21012_v38 = vpack.i.bf16 %v26387_v39, %v26386_v35  ;;  %26388 = vst [vmem:[#allocation169_spill] sm:$0xff] %v22926_v24  ;;  %v26389_v5 = vld [vmem:[#allocation58_spill] sm:$0xff]  ;;  %26393 = vst [vmem:[#allocation5_spill] sm:$0xff] %v22935_v40 }
 0x45d   : > { %v18189_v22 = vpop.f32.mrb[116].mxu1  ;;  %18309 = vmatprep.mubr.f32.mxu0 %v5784_v33  ;;  %v5722_v18 = vadd.f32 %v22839_v28, %v5654_v23  ;;  %v5595_v33 = vmul.f32 %v22826_v30, %v22789_v0  ;;  %v5594_v23 = vmul.f32 %v22826_v30, %v22779_v57  ;;  %v26392_v0 = vld [vmem:[#allocation89_spill] sm:$0xff]  ;;  %v5597_v57 = vmul.f32 %v22826_v30, %v22795_v60  ;;  %v26396_v60 = vld [vmem:[#allocation70_spill] sm:$0xff] }
 0x45e   : > { %v5657_v47 = vadd.f32 %v18189_v22, %v5593_v6  ;;  %v4997_v16 = vpop.f32.mrb[117].mxu1  ;;  %18310 = vmatmul.mubr.f32.gmra.mrb[96].mxu0 %v5785_v8  ;;  %v5787_v48 = vmax.f32 %v5723_v7, 0.0  ;;  %20997 = vxpose.xlu0.b32.cont [3/4] (short) (narrow) %v20996_v32, 16  ;;  %v26390_v22 = vld [vmem:[#allocation81_spill] sm:$0xff]  ;;  %v26391_v7 = vld [vmem:[#allocation66_spill] sm:$0xff]  ;;  %v5596_v32 = vmul.f32 %v22826_v30, %v22783_v61 }
 0x45f   : > { %v5656_v19 = vadd.f32 %v5592_v11, %v4997_v16  ;;  %v5786_v43 = vmax.f32 %v5722_v18, 0.0  ;;  %v20998_v11 = vpack.i.bf16 %v26390_v22, %v26389_v5  ;;  %21013 = vxpose.xlu1.b32.cont [2/4] (short) (narrow) %v21012_v38, 16  ;;  %v26394_v38 = vld [vmem:[#allocation72_spill] sm:$0xff] }
 0x460   : > { %v5725_v13 = vadd.f32 %v22839_v28, %v5657_v47  ;;  %v21014_v47 = vpack.i.bf16 %v26392_v0, %v26391_v7  ;;  %v26397_v0 = vld [vmem:[#allocation92_spill] sm:$0xff]  ;;  %v22945_v7 = vpop.permute.xlu1 %5443 }
 0x461   : > { %v18192_v6 = vpop.f32.mrb[118].mxu1  ;;  %18312 = vmatprep.mubr.f32.mxu0 %v5786_v43  ;;  %v5724_v8 = vadd.f32 %v22839_v28, %v5656_v19  ;;  %26398 = vst [vmem:[#allocation16_spill] sm:$0xff] %v22945_v7 }
 0x462   : > { %v5659_v18 = vadd.f32 %v18192_v6, %v5595_v33  ;;  %v5007_v16 = vpop.f32.mrb[119].mxu1  ;;  %18313 = vmatmul.mubr.f32.gmra.mrb[98].mxu0 %v5787_v48  ;;  %v5789_v43 = vmax.f32 %v5725_v13, 0.0  ;;  %20999 = vxpose.xlu0.b32.end [4/4] (short) (narrow) %v20998_v11, 16  ;;  %v26395_v6 = vld [vmem:[#allocation94_spill] sm:$0xff]  ;;  %v21016_v13 = vpack.i.bf16 %v26397_v0, %v26396_v60  ;;  %v5598_v11 = vmul.f32 %v22826_v30, %v22787_v26  ;;  %v22955_v0 = vpop.permute.xlu0 %5468 }
 0x463   : > { %v5658_v39 = vadd.f32 %v5594_v23, %v5007_v16  ;;  %v5788_v35 = vmax.f32 %v5724_v8, 0.0  ;;  %v21028_v23 = vpack.i.bf16 %v26395_v6, %v26394_v38  ;;  %21015 = vxpose.xlu1.b32.cont [3/4] (short) (narrow) %v21014_v47, 16  ;;  %26401 = vst [vmem:[#allocation11_spill] sm:$0xff] %v22955_v0 }
 0x464   : > { %v5727_v19 = vadd.f32 %v22839_v28, %v5659_v18 }
 0x465   : > { %v18195_v33 = vpop.f32.mrb[120].mxu1  ;;  %18315 = vmatprep.mubr.f32.mxu0 %v5788_v35  ;;  %v5726_v48 = vadd.f32 %v22839_v28, %v5658_v39  ;;  %v5599_v35 = vmul.f32 %v22826_v30, %v22803_v51 }
 0x466   : > { %v5661_v8 = vadd.f32 %v18195_v33, %v5597_v57  ;;  %v5017_v16 = vpop.f32.mrb[121].mxu1  ;;  %18316 = vmatmul.mubr.f32.gmra.mrb[100].mxu0 %v5789_v43  ;;  %v5791_v61 = vmax.f32 %v5727_v19, 0.0  ;;  %21029 = vxpose.xlu0.b32.start [1/4] (short) (narrow) %v21028_v23, 16  ;;  %v26399_v43 = vld [vmem:[#allocation76_spill] sm:$0xff]  ;;  %v26400_v33 = vld [vmem:[#allocation95_spill] sm:$0xff]  ;;  %v5600_v23 = vmul.f32 %v22826_v30, %v22791_v27  ;;  %v5603_v27 = vmul.f32 %v22826_v30, %v22817_v41 }
 0x467   : > { %v5660_v18 = vadd.f32 %v5596_v32, %v5017_v16  ;;  %v5790_v22 = vmax.f32 %v5726_v48, 0.0  ;;  %v21030_v6 = vpack.i.bf16 %v26400_v33, %v26399_v43  ;;  %21017 = vxpose.xlu1.b32.end [4/4] (short) (narrow) %v21016_v13, 16  ;;  %v26404_v13 = vld [vmem:[#allocation97_spill] sm:$0xff]  ;;  %v26409_v41 = vld [vmem:[#allocation88_spill] sm:$0xff] }
 0x468   : > { %v5729_v39 = vadd.f32 %v22839_v28, %v5661_v8  ;;  %v5601_v8 = vmul.f32 %v22826_v30, %v22809_v15  ;;  %v22970_v15 = vpop.permute.xlu0 %5478 }
 0x469   : > { %v18198_v57 = vpop.f32.mrb[122].mxu1  ;;  %18318 = vmatprep.mubr.f32.mxu0 %v5790_v22  ;;  %v5728_v47 = vadd.f32 %v22839_v28, %v5660_v18  ;;  %v22962_v18 = vpop.permute.xlu1 %5453  ;;  %26406 = vst [vmem:[#allocation12_spill] sm:$0xff] %v22970_v15 }
 0x46a   : > { %v5663_v32 = vadd.f32 %v18198_v57, %v5599_v35  ;;  %v5027_v48 = vpop.f32.mrb[123].mxu1  ;;  %18319 = vmatmul.mubr.f32.gmra.mrb[102].mxu0 %v5791_v61  ;;  %v5793_v26 = vmax.f32 %v5729_v39, 0.0  ;;  %26402 = vst [vmem:[#allocation19_spill] sm:$0xff] %v22962_v18  ;;  %21031 = vxpose.xlu0.b32.cont [2/4] (short) (narrow) %v21030_v6, 16  ;;  %v26403_v61 = vld [vmem:[#allocation78_spill] sm:$0xff]  ;;  %v5602_v6 = vmul.f32 %v22826_v30, %v22799_v34 }
 0x46b   : > { %v5662_v19 = vadd.f32 %v5598_v11, %v5027_v48  ;;  %v5792_v16 = vmax.f32 %v5728_v47, 0.0  ;;  %v21032_v11 = vpack.i.bf16 %v26404_v13, %v26403_v61  ;;  %v26405_v48 = vld [vmem:[#allocation84_spill] sm:$0xff]  ;;  %v5605_v34 = vmul.f32 %v22826_v30, %v22828_v45 }
 0x46c   : > { %v5731_v22 = vadd.f32 %v22839_v28, %v5663_v32  ;;  %7812 = vxpose.xlu1.b32.start [1/4] (short) (narrow) %v26405_v48, 16 }
 0x46d   : > { %v18201_v51 = vpop.f32.mrb[124].mxu1  ;;  %18321 = vmatprep.mubr.f32.mxu0 %v5792_v16  ;;  %v5730_v35 = vadd.f32 %v22839_v28, %v5662_v19  ;;  %v22979_v13 = vpop.permute.xlu1 %5463 }
 0x46e   : > { %v5665_v57 = vadd.f32 %v18201_v51, %v5601_v8  ;;  %v5037_v47 = vpop.f32.mrb[125].mxu1  ;;  %18322 = vmatmul.mubr.f32.gmra.mrb[104].mxu0 %v5793_v26  ;;  %v5795_v33 = vmax.f32 %v5731_v22, 0.0  ;;  %21033 = vxpose.xlu0.b32.cont [3/4] (short) (narrow) %v21032_v11, 16  ;;  %v26407_v26 = vld [vmem:[#allocation82_spill] sm:$0xff]  ;;  %v26408_v8 = vld [vmem:[#allocation99_spill] sm:$0xff]  ;;  %26410 = vst [vmem:[#allocation20_spill] sm:$0xff] %v22979_v13  ;;  %v5604_v11 = vmul.f32 %v22826_v30, %v22805_v53 }
 0x46f   : > { %v5664_v39 = vadd.f32 %v5600_v23, %v5037_v47  ;;  %v5794_v32 = vmax.f32 %v5730_v35, 0.0  ;;  %v21034_v23 = vpack.i.bf16 %v26408_v8, %v26407_v26 }
 0x470   : > { %v5733_v16 = vadd.f32 %v22839_v28, %v5665_v57  ;;  %7813 = vxpose.xlu1.b32.cont [2/4] (short) (narrow) %v26409_v41, 16 }
 0x471   : > { %v18204_v19 = vpop.f32.mrb[126].mxu1  ;;  %18324 = vmatprep.mubr.f32.mxu0 %v5794_v32  ;;  %v5732_v51 = vadd.f32 %v22839_v28, %v5664_v39 }
 0x472   : > { %v5667_v35 = vadd.f32 %v18204_v19, %v5603_v27  ;;  %v5047_v47 = vpop.f32.mrb[127].mxu1  ;;  %18325 = vmatmul.mubr.f32.gmra.mrb[106].mxu0 %v5795_v33  ;;  %v5797_v48 = vmax.f32 %v5733_v16, 0.0  ;;  %21035 = vxpose.xlu0.b32.end [4/4] (short) (narrow) %v21034_v23, 16  ;;  %v22987_v33 = vpop.permute.xlu0 %5488  ;;  %v5607_v16 = vmul.f32 %v22826_v30, %v22850_v54 }
 0x473   : > { %v5666_v22 = vadd.f32 %v5602_v6, %v5047_v47  ;;  %v5796_v57 = vmax.f32 %v5732_v51, 0.0  ;;  %26411 = vst [vmem:[#allocation15_spill] sm:$0xff] %v22987_v33  ;;  %v26412_v6 = vld [vmem:[#allocation90_spill] sm:$0xff] }
 0x474   : > { %v5735_v32 = vadd.f32 %v22839_v28, %v5667_v35  ;;  %7814 = vxpose.xlu1.b32.cont [3/4] (short) (narrow) %v26412_v6, 16 }
 0x475   : > { %v18207_v39 = vpop.f32.mrb[128].mxu1  ;;  %18327 = vmatprep.mubr.f32.mxu0 %v5796_v57  ;;  %v5734_v27 = vadd.f32 %v22839_v28, %v5666_v22  ;;  %v5606_v57 = vmul.f32 %v22826_v30, %v22813_v46  ;;  %v22995_v22 = vpop.permute.xlu1 %5473 }
 0x476   : > { %v5669_v19 = vadd.f32 %v18207_v39, %v5605_v34  ;;  %v5057_v41 = vpop.f32.mrb[129].mxu1  ;;  %18328 = vmatmul.mubr.f32.gmra.mrb[108].mxu0 %v5797_v48  ;;  %v5799_v35 = vmax.f32 %v5735_v32, 0.0  ;;  %26413 = vst [vmem:[#allocation23_spill] sm:$0xff] %v22995_v22  ;;  %v26414_v48 = vld [vmem:[#allocation100_spill] sm:$0xff]  ;;  %v23002_v54 = vpop.permute.xlu0 %5498 }
 0x477   : > { %v5668_v51 = vadd.f32 %v5604_v11, %v5057_v41  ;;  %v5798_v47 = vmax.f32 %v5734_v27, 0.0  ;;  %7925 = vxpose.xlu0.b32.start [1/4] (short) (narrow) %v26414_v48, 16  ;;  %v26415_v11 = vld [vmem:[#allocation93_spill] sm:$0xff]  ;;  %26416 = vst [vmem:[#allocation24_spill] sm:$0xff] %v23002_v54 }
 0x478   : > { %v5737_v53 = vadd.f32 %v22839_v28, %v5669_v19  ;;  %7815 = vxpose.xlu1.b32.end [4/4] (short) (narrow) %v26415_v11, 16  ;;  %v5609_v19 = vmul.f32 %v22826_v30, %v22869_v3 }
 0x479   : > { %v18210_v23 = vpop.f32.mrb[130].mxu1  ;;  %18330 = vmatprep.mubr.f32.mxu0 %v5798_v47  ;;  %v5736_v34 = vadd.f32 %v22839_v28, %v5668_v51  ;;  %v5608_v51 = vmul.f32 %v22826_v30, %v22819_v58 }
 0x47a   : > { %v5671_v39 = vadd.f32 %v18210_v23, %v5607_v16  ;;  %v5067_v41 = vpop.f32.mrb[131].mxu1  ;;  %18331 = vmatmul.mubr.f32.gmra.mrb[110].mxu0 %v5799_v35  ;;  %v5801_v46 = vmax.f32 %v5737_v53, 0.0  ;;  %v26417_v35 = vld [vmem:[#allocation101_spill] sm:$0xff]  ;;  %v5611_v53 = vmul.f32 %v22826_v30, %v22888_v50 }
 0x47b   : > { %v5670_v27 = vadd.f32 %v5606_v57, %v5067_v41  ;;  %v5800_v32 = vmax.f32 %v5736_v34, 0.0  ;;  %7926 = vxpose.xlu0.b32.cont [2/4] (short) (narrow) %v26417_v35, 16  ;;  %v23009_v34 = vpop.permute.xlu1 %5483 }
 0x47c   : > { %v5739_v45 = vadd.f32 %v22839_v28, %v5671_v39  ;;  %26418 = vst [vmem:[#allocation35_spill] sm:$0xff] %v23009_v34 }
 0x47d   : > { %v18213_v47 = vpop.f32.mrb[132].mxu1  ;;  %18333 = vmatprep.mubr.f32.mxu0 %v5800_v32  ;;  %v5738_v16 = vadd.f32 %v22839_v28, %v5670_v27  ;;  %v5610_v32 = vmul.f32 %v22826_v30, %v22841_v2 }
 0x47e   : > { %v5673_v23 = vadd.f32 %v18213_v47, %v5609_v19  ;;  %v5077_v57 = vpop.f32.mrb[133].mxu1  ;;  %18334 = vmatmul.mubr.f32.gmra.mrb[112].mxu0 %v5801_v46  ;;  %v5803_v39 = vmax.f32 %v5739_v45, 0.0  ;;  %v26419_v19 = vld [vmem:[#allocation104_spill] sm:$0xff]  ;;  %v23018_v46 = vpop.permute.xlu0 %5508  ;;  %v5613_v45 = vmul.f32 %v22826_v30, %v22907_v1 }
 0x47f   : > { %v5672_v41 = vadd.f32 %v5608_v51, %v5077_v57  ;;  %v5802_v3 = vmax.f32 %v5738_v16, 0.0  ;;  %7927 = vxpose.xlu0.b32.cont [3/4] (short) (narrow) %v26419_v19, 16  ;;  %26420 = vst [vmem:[#allocation27_spill] sm:$0xff] %v23018_v46  ;;  %v23025_v2 = vpop.permute.xlu1 %5493 }
 0x480   : > { %v5741_v11 = vadd.f32 %v22839_v28, %v5673_v23  ;;  %26421 = vst [vmem:[#allocation39_spill] sm:$0xff] %v23025_v2 }
 0x481   : > { %v18216_v58 = vpop.f32.mrb[134].mxu1  ;;  %18336 = vmatprep.mubr.f32.mxu0 %v5802_v3  ;;  %v5740_v27 = vadd.f32 %v22839_v28, %v5672_v41  ;;  %v5612_v3 = vmul.f32 %v22826_v30, %v22859_v12 }
 0x482   : > { %v5675_v47 = vadd.f32 %v18216_v58, %v5611_v53  ;;  %v5087_v51 = vpop.f32.mrb[135].mxu1  ;;  %18337 = vmatmul.mubr.f32.gmra.mrb[114].mxu0 %v5803_v39  ;;  %v5805_v23 = vmax.f32 %v5741_v11, 0.0  ;;  %v26422_v58 = vld [vmem:[#allocation106_spill] sm:$0xff]  ;;  %v5615_v11 = vmul.f32 %v22826_v30, %v22926_v24 }
 0x483   : > { %v5674_v16 = vadd.f32 %v5610_v32, %v5087_v51  ;;  %v5804_v57 = vmax.f32 %v5740_v27, 0.0  ;;  %7928 = vxpose.xlu0.b32.end [4/4] (short) (narrow) %v26422_v58, 16 }
 0x484   : > { %v5743_v50 = vadd.f32 %v22839_v28, %v5675_v47  ;;  %v23031_v47 = vpop.permute.xlu0 %5518 }
 0x485   : > { %v18219_v41 = vpop.f32.mrb[136].mxu1  ;;  %18339 = vmatprep.mubr.f32.mxu0 %v5804_v57  ;;  %v5742_v19 = vadd.f32 %v22839_v28, %v5674_v16  ;;  %26423 = vst [vmem:[#allocation29_spill] sm:$0xff] %v23031_v47  ;;  %v5614_v57 = vmul.f32 %v22826_v30, %v22879_v52  ;;  %v5616_v52 = vmul.f32 %v22826_v30, %v22897_v17 }
 0x486   : > { %v5677_v53 = vadd.f32 %v18219_v41, %v5613_v45  ;;  %v5097_v39 = vpop.f32.mrb[137].mxu1  ;;  %18340 = vmatmul.mubr.f32.gmra.mrb[116].mxu0 %v5805_v23  ;;  %v5807_v51 = vmax.f32 %v5743_v50, 0.0  ;;  %v23037_v23 = vpop.permute.xlu1 %5503 }
 0x487   : > { %v5676_v32 = vadd.f32 %v5612_v3, %v5097_v39  ;;  %v5806_v27 = vmax.f32 %v5742_v19, 0.0  ;;  %26424 = vst [vmem:[#allocation33_spill] sm:$0xff] %v23037_v23  ;;  %v5617_v39 = vmul.f32 %v22826_v30, %v22945_v7 }
 0x488   : > { %v5745_v12 = vadd.f32 %v22839_v28, %v5677_v53 }
 0x489   : > { %v18222_v1 = vpop.f32.mrb[138].mxu1  ;;  %18342 = vmatprep.mubr.f32.mxu0 %v5806_v27  ;;  %v5744_v16 = vadd.f32 %v22839_v28, %v5676_v32 }
 0x48a   : > { %v5679_v45 = vadd.f32 %v18222_v1, %v5615_v11  ;;  %v5107_v41 = vpop.f32.mrb[139].mxu1  ;;  %18343 = vmatmul.mubr.f32.gmra.mrb[118].mxu0 %v5807_v51  ;;  %v5809_v50 = vmax.f32 %v5745_v12, 0.0  ;;  %v23045_v1 = vpop.permute.xlu0 %5528 }
 0x48b   : > { %v5678_v19 = vadd.f32 %v5614_v57, %v5107_v41  ;;  %v5808_v3 = vmax.f32 %v5744_v16, 0.0  ;;  %26425 = vst [vmem:[#allocation6_spill] sm:$0xff] %v23045_v1  ;;  %v5619_v16 = vmul.f32 %v22826_v30, %v22962_v18  ;;  %v5618_v41 = vmul.f32 %v22826_v30, %v22917_v49  ;;  %v23052_v17 = vpop.permute.xlu1 %5513 }
 0x48c   : > { %v5747_v53 = vadd.f32 %v22839_v28, %v5679_v45  ;;  %26426 = vst [vmem:[#allocation30_spill] sm:$0xff] %v23052_v17  ;;  %v5620_v49 = vmul.f32 %v22826_v30, %v22935_v40 }
 0x48d   : > { %v18225_v24 = vpop.f32.mrb[140].mxu1  ;;  %18345 = vmatprep.mubr.f32.mxu0 %v5808_v3  ;;  %v5746_v32 = vadd.f32 %v22839_v28, %v5678_v19 }
 0x48e   : > { %v5681_v27 = vadd.f32 %v18225_v24, %v5617_v39  ;;  %v5117_v11 = vpop.f32.mrb[141].mxu1  ;;  %18346 = vmatmul.mubr.f32.gmra.mrb[120].mxu0 %v5809_v50  ;;  %v5811_v12 = vmax.f32 %v5747_v53, 0.0  ;;  %v23057_v53 = vpop.permute.xlu0 %5538 }
 0x48f   : > { %v5680_v51 = vadd.f32 %v5616_v52, %v5117_v11  ;;  %v5810_v57 = vmax.f32 %v5746_v32, 0.0  ;;  %v5621_v32 = vmul.f32 %v22826_v30, %v22979_v13  ;;  %26427 = vst [vmem:[#allocation46_spill] sm:$0xff] %v23057_v53  ;;  %v8213_v13 = vld [vmem:[%s25591_s4 + $0x318] sm:$0xff] }
 0x490   : > { %v5749_v45 = vadd.f32 %v22839_v28, %v5681_v27 }
 0x491   : > { %v18228_v3 = vpop.f32.mrb[142].mxu1  ;;  %18348 = vmatprep.mubr.f32.mxu0 %v5810_v57  ;;  %v5748_v19 = vadd.f32 %v22839_v28, %v5680_v51 }
 0x492   : > { %v5683_v24 = vadd.f32 %v18228_v3, %v5619_v16  ;;  %v5127_v39 = vpop.f32.mrb[143].mxu1  ;;  %18349 = vmatmul.mubr.f32.gmra.mrb[122].mxu0 %v5811_v12  ;;  %v5813_v27 = vmax.f32 %v5749_v45, 0.0  ;;  %v23063_v12 = vpop.permute.xlu1 %5523 }
 0x493   : > { %v5682_v52 = vadd.f32 %v5618_v41, %v5127_v39  ;;  %v5812_v50 = vmax.f32 %v5748_v19, 0.0  ;;  %26428 = vst [vmem:[#allocation52_spill] sm:$0xff] %v23063_v12  ;;  %v5623_v19 = vmul.f32 %v22826_v30, %v22995_v22  ;;  %v5622_v39 = vmul.f32 %v22826_v30, %v22955_v0  ;;  %v8212_v22 = vld [vmem:[%s25591_s4 + $0x310] sm:$0xff] }
 0x494   : > { %v5751_v11 = vadd.f32 %v22839_v28, %v5683_v24 }
 0x495   : > { %v18231_v18 = vpop.f32.mrb[144].mxu1  ;;  %18351 = vmatprep.mubr.f32.mxu0 %v5812_v50  ;;  %v5750_v51 = vadd.f32 %v22839_v28, %v5682_v52 }
 0x496   : > { %v5685_v57 = vadd.f32 %v18231_v18, %v5621_v32  ;;  %v5137_v16 = vpop.f32.mrb[145].mxu1  ;;  %18352 = vmatmul.mubr.f32.gmra.mrb[124].mxu0 %v5813_v27  ;;  %v5815_v24 = vmax.f32 %v5751_v11, 0.0  ;;  %v23071_v18 = vpop.permute.xlu0 %5548 }
 0x497   : > { %v5684_v41 = vadd.f32 %v5620_v49, %v5137_v16  ;;  %v5814_v3 = vmax.f32 %v5750_v51, 0.0  ;;  %26429 = vst [vmem:[#allocation58_spill] sm:$0xff] %v23071_v18  ;;  %v5625_v51 = vmul.f32 %v22826_v30, %v23009_v34  ;;  %v23078_v0 = vpop.permute.xlu1 %5533 }
 0x498   : > { %v5753_v45 = vadd.f32 %v22839_v28, %v5685_v57  ;;  %v5624_v57 = vmul.f32 %v22826_v30, %v22970_v15  ;;  %26430 = vst [vmem:[#allocation72_spill] sm:$0xff] %v23078_v0  ;;  %v5626_v15 = vmul.f32 %v22826_v30, %v22987_v33 }
 0x499   : > { %v5752_v50 = vadd.f32 %v22839_v28, %v5684_v41  ;;  %v18234_v40 = vpop.f32.mrb[146].mxu1  ;;  %18354 = vmatprep.mubr.f32.mxu0 %v5814_v3 }
 0x49a   : > { %v5687_v52 = vadd.f32 %v18234_v40, %v5623_v19  ;;  %v5147_v32 = vpop.f32.mrb[147].mxu1  ;;  %18355 = vmatmul.mubr.f32.gmra.mrb[126].mxu0 %v5815_v24  ;;  %v5817_v16 = vmax.f32 %v5753_v45, 0.0  ;;  %v23083_v45 = vpop.permute.xlu0 %5558 }
 0x49b   : > { %v5816_v49 = vmax.f32 %v5752_v50, 0.0  ;;  %v5686_v27 = vadd.f32 %v5622_v39, %v5147_v32  ;;  %v5627_v50 = vmul.f32 %v22826_v30, %v23025_v2  ;;  %26431 = vst [vmem:[#allocation70_spill] sm:$0xff] %v23083_v45 }
 0x49c   : > { %v5755_v11 = vadd.f32 %v22839_v28, %v5687_v52 }
 0x49d   : > { %v5754_v41 = vadd.f32 %v22839_v28, %v5686_v27  ;;  %v18237_v3 = vpop.f32.mrb[148].mxu1  ;;  %18357 = vmatprep.mubr.f32.mxu0 %v5816_v49 }
 0x49e   : > { %v5689_v40 = vadd.f32 %v18237_v3, %v5625_v51  ;;  %v5157_v19 = vpop.f32.mrb[149].mxu1  ;;  %18358 = vmatmul.mubr.f32.gmra.mrb[128].mxu0 %v5817_v16  ;;  %v5819_v52 = vmax.f32 %v5755_v11, 0.0  ;;  %v23089_v16 = vpop.permute.xlu1 %5543  ;;  %v5629_v3 = vmul.f32 %v22826_v30, %v23037_v23 }
 0x49f   : > { %v5818_v24 = vmax.f32 %v5754_v41, 0.0  ;;  %v5688_v39 = vadd.f32 %v5624_v57, %v5157_v19  ;;  %26432 = vst [vmem:[#allocation76_spill] sm:$0xff] %v23089_v16  ;;  %v5628_v19 = vmul.f32 %v22826_v30, %v23002_v54 }
 0x4a0   : > { %v5757_v32 = vadd.f32 %v22839_v28, %v5689_v40 }
 0x4a1   : > { %v5756_v27 = vadd.f32 %v22839_v28, %v5688_v39  ;;  %v18240_v34 = vpop.f32.mrb[150].mxu1  ;;  %18360 = vmatprep.mubr.f32.mxu0 %v5818_v24 }
 0x4a2   : > { %v5691_v49 = vadd.f32 %v18240_v34, %v5627_v50  ;;  %v5167_v51 = vpop.f32.mrb[151].mxu1  ;;  %18361 = vmatmul.mubr.f32.gmra.mrb[130].mxu0 %v5819_v52  ;;  %v5821_v11 = vmax.f32 %v5757_v32, 0.0  ;;  %v23097_v34 = vpop.permute.xlu0 %5568 }
 0x4a3   : > { %v5820_v57 = vmax.f32 %v5756_v27, 0.0  ;;  %v5690_v41 = vadd.f32 %v5626_v15, %v5167_v51  ;;  %26433 = vst [vmem:[#allocation78_spill] sm:$0xff] %v23097_v34  ;;  %v5631_v27 = vmul.f32 %v22826_v30, %v23052_v17  ;;  %v5630_v51 = vmul.f32 %v22826_v30, %v23018_v46  ;;  %v23104_v54 = vpop.permute.xlu1 %5553 }
 0x4a4   : > { %v5759_v40 = vadd.f32 %v22839_v28, %v5691_v49  ;;  %26434 = vst [vmem:[#allocation82_spill] sm:$0xff] %v23104_v54  ;;  %v5632_v46 = vmul.f32 %v22826_v30, %v23031_v47 }
 0x4a5   : > { %v5758_v39 = vadd.f32 %v22839_v28, %v5690_v41  ;;  %v18243_v33 = vpop.f32.mrb[152].mxu1  ;;  %18363 = vmatprep.mubr.f32.mxu0 %v5820_v57 }
 0x4a6   : > { %v5693_v24 = vadd.f32 %v18243_v33, %v5629_v3  ;;  %v5177_v50 = vpop.f32.mrb[153].mxu1  ;;  %18364 = vmatmul.mubr.f32.gmra.mrb[132].mxu0 %v5821_v11  ;;  %v5823_v32 = vmax.f32 %v5759_v40, 0.0  ;;  %v23107_v11 = vpop.trf.xlu0  ;;  %v5633_v40 = vmul.f32 %v22826_v30, %v23063_v12 }
 0x4a7   : > { %v5822_v52 = vmax.f32 %v5758_v39, 0.0  ;;  %v5692_v15 = vadd.f32 %v5628_v19, %v5177_v50  ;;  %26435 = vst [vmem:[#allocation99_spill] sm:$0xff] %v23107_v11 }
 0x4a8   : > { %v5761_v49 = vadd.f32 %v22839_v28, %v5693_v24 }
 0x4a9   : > { %v5760_v57 = vadd.f32 %v22839_v28, %v5692_v15  ;;  %v18246_v41 = vpop.f32.mrb[154].mxu1  ;;  %18366 = vmatprep.mubr.f32.mxu0 %v5822_v52 }
 0x4aa   : > { %v5695_v33 = vadd.f32 %v18246_v41, %v5631_v27  ;;  %v5187_v3 = vpop.f32.mrb[155].mxu1  ;;  %18367 = vmatmul.mubr.f32.gmra.mrb[134].mxu0 %v5823_v32  ;;  %v5825_v24 = vmax.f32 %v5761_v49, 0.0  ;;  %v23115_v32 = vpop.trf.xlu0  ;;  %v5635_v41 = vmul.f32 %v22826_v30, %v23078_v0 }
 0x4ab   : > { %v5824_v19 = vmax.f32 %v5760_v57, 0.0  ;;  %v5694_v39 = vadd.f32 %v5630_v51, %v5187_v3  ;;  %26436 = vst [vmem:[#allocation90_spill] sm:$0xff] %v23115_v32  ;;  %v23119_v49 = vpop.permute.xlu1 %5563  ;;  %v25916_v12 = vunpack.i.l.bf16 %v23115_v32 }
 0x4ac   : > { %v5763_v50 = vadd.f32 %v22839_v28, %v5695_v33  ;;  %26437 = vst [vmem:[#allocation100_spill] sm:$0xff] %v23119_v49 }
 0x4ad   : > { %v5762_v15 = vadd.f32 %v22839_v28, %v5694_v39  ;;  %v18249_v17 = vpop.f32.mrb[156].mxu1  ;;  %18369 = vmatprep.mubr.f32.mxu0 %v5824_v19  ;;  %v5634_v39 = vmul.f32 %v22826_v30, %v23045_v1 }
 0x4ae   : > { %v5697_v52 = vadd.f32 %v18249_v17, %v5633_v40  ;;  %v5197_v27 = vpop.f32.mrb[157].mxu1  ;;  %18370 = vmatmul.mubr.f32.gmra.mrb[136].mxu0 %v5825_v24  ;;  %v5827_v33 = vmax.f32 %v5763_v50, 0.0 }
 0x4af   : > { %v5826_v57 = vmax.f32 %v5762_v15, 0.0  ;;  %v5696_v51 = vadd.f32 %v5632_v46, %v5197_v27  ;;  %v5637_v27 = vmul.f32 %v22826_v30, %v23089_v16 }
 0x4b0   : > { %v5765_v3 = vadd.f32 %v22839_v28, %v5697_v52  ;;  %v5636_v52 = vmul.f32 %v22826_v30, %v23057_v53 }
 0x4b1   : > { %v5764_v19 = vadd.f32 %v22839_v28, %v5696_v51  ;;  %v18252_v17 = vpop.f32.mrb[158].mxu1  ;;  %18372 = vmatprep.mubr.f32.mxu0 %v5826_v57  ;;  %v23131_v51 = vpop.permute.xlu1 %5573 }
 0x4b2   : > { %v5699_v40 = vadd.f32 %v18252_v17, %v5635_v41  ;;  %v5207_v24 = vpop.f32.mrb[159].mxu1  ;;  %18373 = vmatmul.mubr.f32.gmra.mrb[138].mxu0 %v5827_v33  ;;  %v5829_v0 = vmax.f32 %v5765_v3, 0.0  ;;  %26438 = vst [vmem:[#allocation101_spill] sm:$0xff] %v23131_v51 }
 0x4b3   : > { %v5828_v15 = vmax.f32 %v5764_v19, 0.0  ;;  %v5698_v46 = vadd.f32 %v5634_v39, %v5207_v24  ;;  %v5639_v19 = vmul.f32 %v22826_v30, %v23104_v54 }
 0x4b4   : > { %v5767_v50 = vadd.f32 %v22839_v28, %v5699_v40  ;;  %v5638_v40 = vmul.f32 %v22826_v30, %v23071_v18 }
 0x4b5   : > { %v5766_v1 = vadd.f32 %v22839_v28, %v5698_v46  ;;  %v18255_v47 = vpop.f32.mrb[160].mxu1  ;;  %18375 = vmatprep.mubr.f32.mxu0 %v5828_v15 }
 0x4b6   : > { %v5701_v57 = vadd.f32 %v18255_v47, %v5637_v27  ;;  %v5217_v41 = vpop.f32.mrb[161].mxu1  ;;  %18376 = vmatmul.mubr.f32.gmra.mrb[140].mxu0 %v5829_v0  ;;  %v5831_v3 = vmax.f32 %v5767_v50, 0.0  ;;  %v23139_v47 = vpop.trf.xlu1  ;;  %v5641_v27 = vmul.f32 %v22826_v30, %v23119_v49  ;;  %v8177_v49 = vld [vmem:[%s25591_s4 + $0x208] sm:$0xff] }
 0x4b7   : > { %v5830_v33 = vmax.f32 %v5766_v1, 0.0  ;;  %v5700_v39 = vadd.f32 %v5636_v52, %v5217_v41  ;;  %26439 = vst [vmem:[#allocation106_spill] sm:$0xff] %v23139_v47 }
 0x4b8   : > { %v5769_v17 = vadd.f32 %v22839_v28, %v5701_v57  ;;  %v5640_v57 = vmul.f32 %v22826_v30, %v23083_v45 }
 0x4b9   : > { %v5768_v24 = vadd.f32 %v22839_v28, %v5700_v39  ;;  %v18258_v46 = vpop.f32.mrb[162].mxu1  ;;  %18378 = vmatprep.mubr.f32.mxu0 %v5830_v33 }
 0x4ba   : > { %v5703_v15 = vadd.f32 %v18258_v46, %v5639_v19  ;;  %v5227_v53 = vpop.f32.mrb[163].mxu1  ;;  %18379 = vmatmul.mubr.f32.gmra.mrb[142].mxu0 %v5831_v3  ;;  %v5833_v50 = vmax.f32 %v5769_v17, 0.0  ;;  %v23147_v3 = vpop.trf.xlu1 }
 0x4bb   : > { %v5832_v0 = vmax.f32 %v5768_v24, 0.0  ;;  %v5702_v1 = vadd.f32 %v5638_v40, %v5227_v53  ;;  %26440 = vst [vmem:[#allocation171_spill] sm:$0xff] %v23147_v3  ;;  %v5643_v40 = vmul.f32 %v22826_v30, %v23131_v51  ;;  %v8176_v51 = vld [vmem:[%s25591_s4 + $0x200] sm:$0xff] }
 0x4bc   : > { %v5771_v52 = vadd.f32 %v22839_v28, %v5703_v15  ;;  %v5642_v15 = vmul.f32 %v22826_v30, %v23097_v34 }
 0x4bd   : > { %v5770_v41 = vadd.f32 %v22839_v28, %v5702_v1  ;;  %v18261_v39 = vpop.f32.mrb[164].mxu1  ;;  %18381 = vmatprep.mubr.f32.mxu0 %v5832_v0 }
 0x4be   : > { %v5705_v33 = vadd.f32 %v18261_v39, %v5641_v27  ;;  %v5237_v19 = vpop.f32.mrb[165].mxu1  ;;  %18382 = vmatmul.mubr.f32.gmra.mrb[144].mxu0 %v5833_v50  ;;  %v5835_v17 = vmax.f32 %v5771_v52, 0.0 }
 0x4bf   : > { %v5834_v24 = vmax.f32 %v5770_v41, 0.0  ;;  %v5704_v53 = vadd.f32 %v5640_v57, %v5237_v19 }
 0x4c0   : > { %v5773_v46 = vadd.f32 %v22839_v28, %v5705_v33  ;;  %v25908_v33 = vunpack.i.l.bf16 %v23107_v11 }
 0x4c1   : > { %v5772_v1 = vadd.f32 %v22839_v28, %v5704_v53  ;;  %v18264_v45 = vpop.f32.mrb[166].mxu1  ;;  %18384 = vmatprep.mubr.f32.mxu0 %v5834_v24 }
 0x4c2   : > { %v5707_v0 = vadd.f32 %v18264_v45, %v5643_v40  ;;  %v5247_v27 = vpop.f32.mrb[167].mxu1  ;;  %18385 = vmatmul.mubr.f32.gmra.mrb[146].mxu0 %v5835_v17  ;;  %v5837_v41 = vmax.f32 %v5773_v46, 0.0 }
 0x4c3   : > { %v5836_v50 = vmax.f32 %v5772_v1, 0.0  ;;  %v5706_v39 = vadd.f32 %v5642_v15, %v5247_v27  ;;  %v23184_v27 = vld [vmem:[%s25592_s5 + $0x4] ss:$0 sm:$0xff] }
 0x4c4   : > { %v5775_v57 = vadd.f32 %v22839_v28, %v5707_v0 }
 0x4c5   : > { %v5774_v19 = vadd.f32 %v22839_v28, %v5706_v39  ;;  %18387 = vmatprep.mubr.f32.mxu0 %v5836_v50 }
 0x4c6   : > { %18388 = vmatmul.mubr.f32.gmra.mrb[148].mxu0 %v5837_v41  ;;  %v5839_v30 = vmax.f32 %v5775_v57, 0.0  ;;  %v23158_v53 = vpop.trf.xlu0 }
 0x4c7   : > { %v5838_v52 = vmax.f32 %v5774_v19, 0.0  ;;  %26441 = vst [vmem:[#allocation172_spill] sm:$0xff] %v23158_v53 }
 0x4c9   : > { %18390 = vmatprep.mubr.f32.mxu0 %v5838_v52 }
 0x4ca   : > { %18391 = vmatmul.mubr.f32.gmra.mrb[150].mxu0 %v5839_v30  ;;  %v23163_v45 = vpop.trf.xlu0 }
 0x4cb   : > { %18401 = vmatprep.mubr.msk.f32.mxu0 %vm6261_vm2, %v25908_v33  ;;  %26442 = vst [vmem:[#allocation173_spill] sm:$0xff] %v23163_v45  ;;  %v23165_v24 = vpop.trf.xlu1 }
 0x4cc   : > { %26443 = vst [vmem:[#allocation174_spill] sm:$0xff] %v23165_v24 }
 0x4cf   : > { %v23167_v28 = vpop.trf.xlu1 }
 0x4d0   : > { %26444 = vst [vmem:[#allocation175_spill] sm:$0xff] %v23167_v28 }
 0x4d6   : > { %v23169_v40 = vpop.trf.xlu0 }
 0x4d7   : > { %26445 = vst [vmem:[#allocation176_spill] sm:$0xff] %v23169_v40 }
 0x4da   : > { %v23171_v17 = vpop.trf.xlu0 }
 0x4db   : > { %26446 = vst [vmem:[#allocation177_spill] sm:$0xff] %v23171_v17  ;;  %v23173_v46 = vpop.trf.xlu1 }
 0x4dc   : > { %26447 = vst [vmem:[#allocation178_spill] sm:$0xff] %v23173_v46 }
 0x4df   : > { %v23175_v15 = vpop.trf.xlu1 }
 0x4e0   : > { %26448 = vst [vmem:[#allocation179_spill] sm:$0xff] %v23175_v15 }
 0x4e6   : > { %v23177_v1 = vpop.trf.xlu0 }
 0x4e7   : > { %26449 = vst [vmem:[#allocation180_spill] sm:$0xff] %v23177_v1 }
 0x4ea   : > { %v23179_v0 = vpop.trf.xlu0 }
 0x4eb   : > { %26450 = vst [vmem:[#allocation181_spill] sm:$0xff] %v23179_v0 }
 0x521   : > { %v18299_v50 = vpop.f32.mrb[88].mxu0 }
 0x522   : > { %v5916_v39 = vadd.f32 %v18299_v50, %v23184_v27  ;;  %v5910_v41 = vpop.f32.mrb[89].mxu0  ;;  %v8178_v50 = vld [vmem:[%s25591_s4 + $0x210] sm:$0xff] }
 0x523   : > { %v5911_v57 = vadd.f32 %v23184_v27, %v5910_v41  ;;  %v8179_v41 = vld [vmem:[%s25591_s4 + $0x218] sm:$0xff] }
 0x525   : > { %v18302_v19 = vpop.f32.mrb[90].mxu0  ;;  %v20105_v52 = vpack.c.bf16 %v5916_v39, %v5911_v57  ;;  %v20233_v39 = vpack.c.bf16 %v8177_v49, %v8176_v51  ;;  %v8180_v49 = vld [vmem:[%s25591_s4 + $0x220] sm:$0xff]  ;;  %v8181_v51 = vld [vmem:[%s25591_s4 + $0x228] sm:$0xff] }
 0x526   : > { %v5926_v30 = vadd.f32 %v18302_v19, %v23184_v27  ;;  %v5920_v33 = vpop.f32.mrb[91].mxu0  ;;  %v20237_v19 = vpack.c.bf16 %v8179_v41, %v8178_v50  ;;  %v20241_v41 = vpack.c.bf16 %v8181_v51, %v8180_v49 }
 0x527   : > { %v5921_v34 = vadd.f32 %v23184_v27, %v5920_v33  ;;  %20106 = vmatprep.subr.bf16.mxu0 %v20105_v52  ;;  %20234 = vmatprep.subr.bf16.mxu1 %v20233_v39 }
 0x528   : > { %20108 = vmatpush3.bf16.msra.mxu0 %v20105_v52  ;;  %20236 = vmatpush3.bf16.msra.mxu1 %v20233_v39 }
 0x529   : > { %v18305_v33 = vpop.f32.mrb[92].mxu0  ;;  %v20109_v57 = vpack.c.bf16 %v5926_v30, %v5921_v34  ;;  %20238 = vmatprep.subr.bf16.mxu1 %v20237_v19  ;;  %v25917_v30 = vunpack.i.h.bf16 %v23107_v11  ;;  %v25942_v11 = vunpack.i.h.bf16 %v23139_v47 }
 0x52a   : > { %v5936_v18 = vadd.f32 %v18305_v33, %v23184_v27  ;;  %v5930_v54 = vpop.f32.mrb[93].mxu0  ;;  %v8182_v33 = vld [vmem:[%s25591_s4 + $0x230] sm:$0xff] }
 0x52b   : > { %v5931_v16 = vadd.f32 %v23184_v27, %v5930_v54  ;;  %20110 = vmatprep.subr.bf16.mxu0 %v20109_v57 }
 0x52c   : > { %20112 = vmatpush3.bf16.msra.mxu0 %v20109_v57  ;;  %20240 = vmatpush3.bf16.msra.mxu1 %v20237_v19  ;;  %v25918_v19 = vunpack.i.h.bf16 %v23115_v32 }
 0x52d   : > { %v18308_v34 = vpop.f32.mrb[94].mxu0  ;;  %v20113_v52 = vpack.c.bf16 %v5936_v18, %v5931_v16  ;;  %v8183_v18 = vld [vmem:[%s25591_s4 + $0x238] sm:$0xff]  ;;  %20242 = vmatprep.subr.bf16.mxu1 %v20241_v41 }
 0x52e   : > { %v5946_v54 = vadd.f32 %v18308_v34, %v23184_v27  ;;  %v5940_v50 = vpop.f32.mrb[95].mxu0  ;;  %v20245_v34 = vpack.c.bf16 %v8183_v18, %v8182_v33 }
 0x52f   : > { %v5941_v39 = vadd.f32 %v23184_v27, %v5940_v50  ;;  %18402 = vmatmul.mubr.msk.f32.vlgmr.msra.gmra.mrb[152].mxu0 %vm6261_vm2, %v25916_v12  ;;  %20114 = vmatprep.subr.bf16.mxu0 %v20113_v52  ;;  %v8184_v12 = vld [vmem:[%s25591_s4 + $0x240] sm:$0xff] }
 0x530   : > { %20116 = vmatpush3.bf16.msra.mxu0 %v20113_v52  ;;  %18412 = vmatprep.mubr.msk.f32.mxu0 %vm6261_vm2, %v25917_v30  ;;  %v8185_v52 = vld [vmem:[%s25591_s4 + $0x248] sm:$0xff] }
 0x531   : > { %v18311_v16 = vpop.f32.mrb[96].mxu0  ;;  %v20117_v57 = vpack.c.bf16 %v5946_v54, %v5941_v39  ;;  %v25923_v54 = vunpack.i.l.bf16 %v23139_v47  ;;  %20244 = vmatpush3.bf16.msra.mxu1 %v20241_v41  ;;  %v8187_v41 = vld [vmem:[%s25591_s4 + $0x258] sm:$0xff] }
 0x532   : > { %v5956_v49 = vadd.f32 %v18311_v16, %v23184_v27  ;;  %v5950_v51 = vpop.f32.mrb[97].mxu0  ;;  %20246 = vmatprep.subr.bf16.mxu1 %v20245_v34 }
 0x533   : > { %v5951_v50 = vadd.f32 %v23184_v27, %v5950_v51  ;;  %20118 = vmatprep.subr.bf16.mxu0 %v20117_v57  ;;  %v20249_v51 = vpack.c.bf16 %v8185_v52, %v8184_v12 }
 0x534   : > { %20120 = vmatpush3.bf16.msra.mxu0 %v20117_v57  ;;  %v8186_v57 = vld [vmem:[%s25591_s4 + $0x250] sm:$0xff] }
 0x535   : > { %v18314_v39 = vpop.f32.mrb[98].mxu0  ;;  %v20121_v16 = vpack.c.bf16 %v5956_v49, %v5951_v50  ;;  %20248 = vmatpush3.bf16.msra.mxu1 %v20245_v34 }
 0x536   : > { %v5966_v33 = vadd.f32 %v18314_v39, %v23184_v27  ;;  %v5960_v18 = vpop.f32.mrb[99].mxu0  ;;  %20250 = vmatprep.subr.bf16.mxu1 %v20249_v51  ;;  %v20253_v39 = vpack.c.bf16 %v8187_v41, %v8186_v57 }
 0x537   : > { %v5961_v30 = vadd.f32 %v23184_v27, %v5960_v18  ;;  %18413 = vmatmul.mubr.msk.f32.vlgmr.msra.gmra.mrb[154].mxu0 %vm6261_vm2, %v25918_v19  ;;  %20122 = vmatprep.subr.bf16.mxu0 %v20121_v16  ;;  %v25946_v19 = vunpack.i.l.bf16 %v23147_v3 }
 0x538   : > { %20124 = vmatpush3.bf16.msra.mxu0 %v20121_v16  ;;  %18423 = vmatprep.mubr.msk.f32.mxu0 %vm6261_vm2, %v25923_v54 }
 0x539   : > { %v18317_v12 = vpop.f32.mrb[100].mxu0  ;;  %v20125_v49 = vpack.c.bf16 %v5966_v33, %v5961_v30  ;;  %20252 = vmatpush3.bf16.msra.mxu1 %v20249_v51 }
 0x53a   : > { %v5976_v50 = vadd.f32 %v18317_v12, %v23184_v27  ;;  %v5970_v52 = vpop.f32.mrb[101].mxu0  ;;  %20254 = vmatprep.subr.bf16.mxu1 %v20253_v39  ;;  %v25924_v12 = vunpack.i.l.bf16 %v23158_v53 }
 0x53b   : > { %v5971_v18 = vadd.f32 %v23184_v27, %v5970_v52  ;;  %20126 = vmatprep.subr.bf16.mxu0 %v20125_v49 }
 0x53c   : > { %20128 = vmatpush3.bf16.msra.mxu0 %v20125_v49  ;;  %v25941_v49 = vunpack.i.h.bf16 %v23147_v3 }
 0x53d   : > { %v18320_v32 = vpop.f32.mrb[102].mxu0  ;;  %v20129_v16 = vpack.c.bf16 %v5976_v50, %v5971_v18  ;;  %20256 = vmatpush3.bf16.msra.mxu1 %v20253_v39 }
 0x53e   : > { %v5986_v54 = vadd.f32 %v18320_v32, %v23184_v27  ;;  %v5980_v30 = vpop.f32.mrb[103].mxu0 }
 0x53f   : > { %v5981_v34 = vadd.f32 %v23184_v27, %v5980_v30  ;;  %18424 = vmatmul.mubr.msk.f32.vlgmr.msra.gmra.mrb[156].mxu0 %vm6261_vm2, %v25946_v19  ;;  %20130 = vmatprep.subr.bf16.mxu0 %v20129_v16  ;;  %v8198_v19 = vld [vmem:[%s25591_s4 + $0x2a8] sm:$0xff] }
 0x540   : > { %20132 = vmatpush3.bf16.msra.mxu0 %v20129_v16  ;;  %18434 = vmatprep.mubr.msk.f32.mxu0 %vm6261_vm2, %v25942_v11 }
 0x541   : > { %v18323_v33 = vpop.f32.mrb[104].mxu0  ;;  %v20133_v51 = vpack.c.bf16 %v5986_v54, %v5981_v34 }
 0x542   : > { %v5996_v57 = vadd.f32 %v18323_v33, %v23184_v27  ;;  %v5990_v32 = vpop.f32.mrb[105].mxu0 }
 0x543   : > { %v5991_v41 = vadd.f32 %v23184_v27, %v5990_v32  ;;  %20134 = vmatprep.subr.bf16.mxu0 %v20133_v51 }
 0x544   : > { %20136 = vmatpush3.bf16.msra.mxu0 %v20133_v51 }
 0x545   : > { %v18326_v50 = vpop.f32.mrb[106].mxu0  ;;  %v20137_v52 = vpack.c.bf16 %v5996_v57, %v5991_v41  ;;  %v25925_v57 = vunpack.i.l.bf16 %v23163_v45 }
 0x546   : > { %v6006_v18 = vadd.f32 %v18326_v50, %v23184_v27  ;;  %v6000_v16 = vpop.f32.mrb[107].mxu0  ;;  %v25926_v50 = vunpack.i.h.bf16 %v23158_v53 }
 0x547   : > { %v6001_v30 = vadd.f32 %v23184_v27, %v6000_v16  ;;  %18435 = vmatmul.mubr.msk.f32.vlgmr.msra.gmra.mrb[158].mxu0 %vm6261_vm2, %v25941_v49  ;;  %20138 = vmatprep.subr.bf16.mxu0 %v20137_v52  ;;  %v25944_v49 = vunpack.i.h.bf16 %v23177_v1 }
 0x548   : > { %20140 = vmatpush3.bf16.msra.mxu0 %v20137_v52  ;;  %18445 = vmatprep.mubr.msk.f32.mxu0 %vm6261_vm2, %v25924_v12 }
 0x549   : > { %v18329_v54 = vpop.f32.mrb[108].mxu0  ;;  %v20141_v39 = vpack.c.bf16 %v6006_v18, %v6001_v30 }
 0x54a   : > { %v6016_v34 = vadd.f32 %v18329_v54, %v23184_v27  ;;  %v6010_v33 = vpop.f32.mrb[109].mxu0 }
 0x54b   : > { %v6011_v51 = vadd.f32 %v23184_v27, %v6010_v33  ;;  %20142 = vmatprep.subr.bf16.mxu0 %v20141_v39  ;;  %v25928_v33 = vunpack.i.l.bf16 %v23165_v24 }
 0x54c   : > { %20144 = vmatpush3.bf16.msra.mxu0 %v20141_v39 }
 0x54d   : > { %v18332_v32 = vpop.f32.mrb[110].mxu0  ;;  %v20145_v41 = vpack.c.bf16 %v6016_v34, %v6011_v51  ;;  %v25927_v51 = vunpack.i.h.bf16 %v23163_v45 }
 0x54e   : > { %v6026_v52 = vadd.f32 %v18332_v32, %v23184_v27  ;;  %v6020_v16 = vpop.f32.mrb[111].mxu0 }
 0x54f   : > { %v6021_v12 = vadd.f32 %v23184_v27, %v6020_v16  ;;  %18446 = vmatmul.mubr.msk.f32.vlgmr.msra.gmra.mrb[160].mxu0 %vm6261_vm2, %v25925_v57  ;;  %20146 = vmatprep.subr.bf16.mxu0 %v20145_v41 }
 0x550   : > { %20148 = vmatpush3.bf16.msra.mxu0 %v20145_v41  ;;  %18456 = vmatprep.mubr.msk.f32.mxu0 %vm6261_vm2, %v25926_v50 }
 0x551   : > { %v18335_v18 = vpop.f32.mrb[112].mxu0  ;;  %v20149_v30 = vpack.c.bf16 %v6026_v52, %v6021_v12 }
 0x552   : > { %v6036_v54 = vadd.f32 %v18335_v18, %v23184_v27  ;;  %v6030_v39 = vpop.f32.mrb[113].mxu0 }
 0x553   : > { %v6031_v34 = vadd.f32 %v23184_v27, %v6030_v39  ;;  %20150 = vmatprep.subr.bf16.mxu0 %v20149_v30 }
 0x554   : > { %20152 = vmatpush3.bf16.msra.mxu0 %v20149_v30 }
 0x555   : > { %v18338_v32 = vpop.f32.mrb[114].mxu0  ;;  %v20153_v16 = vpack.c.bf16 %v6036_v54, %v6031_v34 }
 0x556   : > { %v6046_v41 = vadd.f32 %v18338_v32, %v23184_v27  ;;  %v6040_v57 = vpop.f32.mrb[115].mxu0  ;;  %v25930_v32 = vunpack.i.h.bf16 %v23165_v24 }
 0x557   : > { %v6041_v50 = vadd.f32 %v23184_v27, %v6040_v57  ;;  %18457 = vmatmul.mubr.msk.f32.vlgmr.msra.gmra.mrb[162].mxu0 %vm6261_vm2, %v25927_v51  ;;  %20154 = vmatprep.subr.bf16.mxu0 %v20153_v16  ;;  %v25929_v57 = vunpack.i.l.bf16 %v23167_v28 }
 0x558   : > { %20156 = vmatpush3.bf16.msra.mxu0 %v20153_v16  ;;  %18467 = vmatprep.mubr.msk.f32.mxu0 %vm6261_vm2, %v25928_v33 }
 0x559   : > { %v18341_v12 = vpop.f32.mrb[116].mxu0  ;;  %v20157_v52 = vpack.c.bf16 %v6046_v41, %v6041_v50 }
 0x55a   : > { %v6056_v18 = vadd.f32 %v18341_v12, %v23184_v27  ;;  %v6050_v30 = vpop.f32.mrb[117].mxu0 }
 0x55b   : > { %v6051_v54 = vadd.f32 %v23184_v27, %v6050_v30  ;;  %20158 = vmatprep.subr.bf16.mxu0 %v20157_v52  ;;  %v25931_v30 = vunpack.i.h.bf16 %v23167_v28 }
 0x55c   : > { %20160 = vmatpush3.bf16.msra.mxu0 %v20157_v52 }
 0x55d   : > { %v18344_v39 = vpop.f32.mrb[118].mxu0  ;;  %v20161_v34 = vpack.c.bf16 %v6056_v18, %v6051_v54 }
 0x55e   : > { %v6066_v16 = vadd.f32 %v18344_v39, %v23184_v27  ;;  %v6060_v51 = vpop.f32.mrb[119].mxu0 }
 0x55f   : > { %v6061_v33 = vadd.f32 %v23184_v27, %v6060_v51  ;;  %18468 = vmatmul.mubr.msk.f32.vlgmr.msra.gmra.mrb[164].mxu0 %vm6261_vm2, %v25929_v57  ;;  %20162 = vmatprep.subr.bf16.mxu0 %v20161_v34  ;;  %v25932_v51 = vunpack.i.l.bf16 %v23169_v40 }
 0x560   : > { %20164 = vmatpush3.bf16.msra.mxu0 %v20161_v34  ;;  %18478 = vmatprep.mubr.msk.f32.mxu0 %vm6261_vm2, %v25930_v32 }
 0x561   : > { %v18347_v50 = vpop.f32.mrb[120].mxu0  ;;  %v20165_v41 = vpack.c.bf16 %v6066_v16, %v6061_v33 }
 0x562   : > { %v6076_v12 = vadd.f32 %v18347_v50, %v23184_v27  ;;  %v6070_v52 = vpop.f32.mrb[121].mxu0 }
 0x563   : > { %v6071_v18 = vadd.f32 %v23184_v27, %v6070_v52  ;;  %20166 = vmatprep.subr.bf16.mxu0 %v20165_v41 }
 0x564   : > { %20168 = vmatpush3.bf16.msra.mxu0 %v20165_v41 }
 0x565   : > { %v18350_v54 = vpop.f32.mrb[122].mxu0  ;;  %v20169_v39 = vpack.c.bf16 %v6076_v12, %v6071_v18 }
 0x566   : > { %v6086_v34 = vadd.f32 %v18350_v54, %v23184_v27  ;;  %v6080_v57 = vpop.f32.mrb[123].mxu0  ;;  %v25934_v54 = vunpack.i.h.bf16 %v23169_v40 }
 0x567   : > { %v6081_v32 = vadd.f32 %v23184_v27, %v6080_v57  ;;  %18479 = vmatmul.mubr.msk.f32.vlgmr.msra.gmra.mrb[166].mxu0 %vm6261_vm2, %v25931_v30  ;;  %20170 = vmatprep.subr.bf16.mxu0 %v20169_v39  ;;  %v25933_v57 = vunpack.i.l.bf16 %v23171_v17 }
 0x568   : > { %20172 = vmatpush3.bf16.msra.mxu0 %v20169_v39  ;;  %18489 = vmatprep.mubr.msk.f32.mxu0 %vm6261_vm2, %v25932_v51 }
 0x569   : > { %v18353_v33 = vpop.f32.mrb[124].mxu0  ;;  %v20173_v16 = vpack.c.bf16 %v6086_v34, %v6081_v32 }
 0x56a   : > { %v6096_v50 = vadd.f32 %v18353_v33, %v23184_v27  ;;  %v6090_v41 = vpop.f32.mrb[125].mxu0 }
 0x56b   : > { %v6091_v12 = vadd.f32 %v23184_v27, %v6090_v41  ;;  %20174 = vmatprep.subr.bf16.mxu0 %v20173_v16  ;;  %v25935_v41 = vunpack.i.h.bf16 %v23171_v17 }
 0x56c   : > { %20176 = vmatpush3.bf16.msra.mxu0 %v20173_v16 }
 0x56d   : > { %v18356_v52 = vpop.f32.mrb[126].mxu0  ;;  %v20177_v18 = vpack.c.bf16 %v6096_v50, %v6091_v12 }
 0x56e   : > { %v6106_v39 = vadd.f32 %v18356_v52, %v23184_v27  ;;  %v6100_v30 = vpop.f32.mrb[127].mxu0 }
 0x56f   : > { %v6101_v51 = vadd.f32 %v23184_v27, %v6100_v30  ;;  %18490 = vmatmul.mubr.msk.f32.vlgmr.msra.gmra.mrb[168].mxu0 %vm6261_vm2, %v25933_v57  ;;  %20178 = vmatprep.subr.bf16.mxu0 %v20177_v18  ;;  %v25936_v30 = vunpack.i.l.bf16 %v23173_v46 }
 0x570   : > { %20180 = vmatpush3.bf16.msra.mxu0 %v20177_v18  ;;  %18500 = vmatprep.mubr.msk.f32.mxu0 %vm6261_vm2, %v25934_v54 }
 0x571   : > { %v18359_v32 = vpop.f32.mrb[128].mxu0  ;;  %v20181_v34 = vpack.c.bf16 %v6106_v39, %v6101_v51 }
 0x572   : > { %v6116_v33 = vadd.f32 %v18359_v32, %v23184_v27  ;;  %v6110_v16 = vpop.f32.mrb[129].mxu0 }
 0x573   : > { %v6111_v50 = vadd.f32 %v23184_v27, %v6110_v16  ;;  %20182 = vmatprep.subr.bf16.mxu0 %v20181_v34 }
 0x574   : > { %20184 = vmatpush3.bf16.msra.mxu0 %v20181_v34 }
 0x575   : > { %v18362_v12 = vpop.f32.mrb[130].mxu0  ;;  %v20185_v52 = vpack.c.bf16 %v6116_v33, %v6111_v50 }
 0x576   : > { %v6126_v18 = vadd.f32 %v18362_v12, %v23184_v27  ;;  %v6120_v57 = vpop.f32.mrb[131].mxu0  ;;  %v25939_v12 = vunpack.i.h.bf16 %v23173_v46 }
 0x577   : > { %v6121_v54 = vadd.f32 %v23184_v27, %v6120_v57  ;;  %18501 = vmatmul.mubr.msk.f32.vlgmr.msra.gmra.mrb[170].mxu0 %vm6261_vm2, %v25935_v41  ;;  %20186 = vmatprep.subr.bf16.mxu0 %v20185_v52  ;;  %v25940_v57 = vunpack.i.l.bf16 %v23175_v15 }
 0x578   : > { %20188 = vmatpush3.bf16.msra.mxu0 %v20185_v52  ;;  %18511 = vmatprep.mubr.msk.f32.mxu0 %vm6261_vm2, %v25936_v30 }
 0x579   : > { %v18365_v51 = vpop.f32.mrb[132].mxu0  ;;  %v20189_v39 = vpack.c.bf16 %v6126_v18, %v6121_v54 }
 0x57a   : > { %v6136_v32 = vadd.f32 %v18365_v51, %v23184_v27  ;;  %v6130_v34 = vpop.f32.mrb[133].mxu0 }
 0x57b   : > { %v6131_v33 = vadd.f32 %v23184_v27, %v6130_v34  ;;  %20190 = vmatprep.subr.bf16.mxu0 %v20189_v39  ;;  %v8188_v34 = vld [vmem:[%s25591_s4 + $0x260] sm:$0xff] }
 0x57c   : > { %20192 = vmatpush3.bf16.msra.mxu0 %v20189_v39 }
 0x57d   : > { %v18368_v16 = vpop.f32.mrb[134].mxu0  ;;  %v20193_v50 = vpack.c.bf16 %v6136_v32, %v6131_v33  ;;  %v8189_v33 = vld [vmem:[%s25591_s4 + $0x268] sm:$0xff] }
 0x57e   : > { %v6146_v52 = vadd.f32 %v18368_v16, %v23184_v27  ;;  %v6140_v41 = vpop.f32.mrb[135].mxu0  ;;  %v25937_v16 = vunpack.i.h.bf16 %v23175_v15 }
 0x57f   : > { %v6141_v30 = vadd.f32 %v23184_v27, %v6140_v41  ;;  %18512 = vmatmul.mubr.msk.f32.vlgmr.msra.gmra.mrb[172].mxu0 %vm6261_vm2, %v25940_v57  ;;  %20194 = vmatprep.subr.bf16.mxu0 %v20193_v50  ;;  %v25938_v41 = vunpack.i.l.bf16 %v23177_v1 }
 0x580   : > { %20196 = vmatpush3.bf16.msra.mxu0 %v20193_v50  ;;  %18522 = vmatprep.mubr.msk.f32.mxu0 %vm6261_vm2, %v25939_v12 }
 0x581   : > { %v18371_v54 = vpop.f32.mrb[136].mxu0  ;;  %v20197_v18 = vpack.c.bf16 %v6146_v52, %v6141_v30  ;;  %v20257_v52 = vpack.c.bf16 %v8189_v33, %v8188_v34 }
 0x582   : > { %v6156_v51 = vadd.f32 %v18371_v54, %v23184_v27  ;;  %v6150_v39 = vpop.f32.mrb[137].mxu0 }
 0x583   : > { %v6151_v32 = vadd.f32 %v23184_v27, %v6150_v39  ;;  %20198 = vmatprep.subr.bf16.mxu0 %v20197_v18  ;;  %20258 = vmatprep.subr.bf16.mxu1 %v20257_v52 }
 0x584   : > { %20200 = vmatpush3.bf16.msra.mxu0 %v20197_v18  ;;  %20260 = vmatpush3.bf16.msra.mxu1 %v20257_v52 }
 0x585   : > { %v18374_v30 = vpop.f32.mrb[138].mxu0  ;;  %v20201_v50 = vpack.c.bf16 %v6156_v51, %v6151_v32  ;;  %v8190_v51 = vld [vmem:[%s25591_s4 + $0x270] sm:$0xff]  ;;  %v8191_v32 = vld [vmem:[%s25591_s4 + $0x278] sm:$0xff] }
 0x586   : > { %v6166_v54 = vadd.f32 %v18374_v30, %v23184_v27  ;;  %v6160_v39 = vpop.f32.mrb[139].mxu0  ;;  %v20261_v30 = vpack.c.bf16 %v8191_v32, %v8190_v51 }
 0x587   : > { %v6161_v18 = vadd.f32 %v23184_v27, %v6160_v39  ;;  %18523 = vmatmul.mubr.msk.f32.vlgmr.msra.gmra.mrb[174].mxu0 %vm6261_vm2, %v25937_v16  ;;  %20202 = vmatprep.subr.bf16.mxu0 %v20201_v50 }
 0x588   : > { %20204 = vmatpush3.bf16.msra.mxu0 %v20201_v50  ;;  %18533 = vmatprep.mubr.msk.f32.mxu0 %vm6261_vm2, %v25938_v41  ;;  %v25945_v41 = vunpack.i.l.bf16 %v23179_v0 }
 0x589   : > { %v18377_v34 = vpop.f32.mrb[140].mxu0  ;;  %v20205_v33 = vpack.c.bf16 %v6166_v54, %v6161_v18  ;;  %20262 = vmatprep.subr.bf16.mxu1 %v20261_v30 }
 0x58a   : > { %v6176_v39 = vadd.f32 %v18377_v34, %v23184_v27  ;;  %v6170_v16 = vpop.f32.mrb[141].mxu0  ;;  %20264 = vmatpush3.bf16.msra.mxu1 %v20261_v30  ;;  %v25943_v34 = vunpack.i.h.bf16 %v23179_v0 }
 0x58b   : > { %v6171_v50 = vadd.f32 %v23184_v27, %v6170_v16  ;;  %20206 = vmatprep.subr.bf16.mxu0 %v20205_v33 }
 0x58c   : > { %20208 = vmatpush3.bf16.msra.mxu0 %v20205_v33 }
 0x58d   : > { %v18380_v12 = vpop.f32.mrb[142].mxu0  ;;  %v20209_v57 = vpack.c.bf16 %v6176_v39, %v6171_v50  ;;  %v23397_v39 = vpop.trf.xlu1 }
 0x58e   : > { %v6186_v11 = vadd.f32 %v18380_v12, %v23184_v27  ;;  %v6180_v54 = vpop.f32.mrb[143].mxu0  ;;  %26451 = vst [vmem:[#allocation182_spill] sm:$0xff] %v23397_v39 }
 0x58f   : > { %v6181_v18 = vadd.f32 %v23184_v27, %v6180_v54  ;;  %18534 = vmatmul.mubr.msk.f32.vlgmr.msra.gmra.mrb[176].mxu0 %vm6261_vm2, %v25945_v41  ;;  %20210 = vmatprep.subr.bf16.mxu0 %v20209_v57  ;;  %v8197_v41 = vld [vmem:[%s25591_s4 + $0x2a0] sm:$0xff] }
 0x590   : > { %20212 = vmatpush3.bf16.msra.mxu0 %v20209_v57  ;;  %18544 = vmatprep.mubr.msk.f32.mxu0 %vm6261_vm2, %v25944_v49 }
 0x591   : > { %v18383_v16 = vpop.f32.mrb[144].mxu0  ;;  %v20213_v52 = vpack.c.bf16 %v6186_v11, %v6181_v18 }
 0x592   : > { %v6196_v51 = vadd.f32 %v18383_v16, %v23184_v27  ;;  %v6190_v32 = vpop.f32.mrb[145].mxu0 }
 0x593   : > { %v6191_v12 = vadd.f32 %v23184_v27, %v6190_v32  ;;  %20214 = vmatprep.subr.bf16.mxu0 %v20213_v52  ;;  %v23408_v32 = vpop.trf.xlu1 }
 0x594   : > { %20216 = vmatpush3.bf16.msra.mxu0 %v20213_v52  ;;  %26452 = vst [vmem:[#allocation183_spill] sm:$0xff] %v23408_v32 }
 0x595   : > { %v20217_v33 = vpack.c.bf16 %v6196_v51, %v6191_v12  ;;  %v18386_v30 = vpop.f32.mrb[146].mxu0 }
 0x596   : > { %v6206_v57 = vadd.f32 %v18386_v30, %v23184_v27  ;;  %v6200_v50 = vpop.f32.mrb[147].mxu0 }
 0x597   : > { %v6201_v54 = vadd.f32 %v23184_v27, %v6200_v50  ;;  %18545 = vmatmul.mubr.msk.f32.vlgmr.msra.gmra.mrb[178].mxu0 %vm6261_vm2, %v25943_v34  ;;  %20218 = vmatprep.subr.bf16.mxu0 %v20217_v33  ;;  %v23410_v50 = vpop.trf.xlu0 }
 0x598   : > { %20220 = vmatpush3.bf16.msra.mxu0 %v20217_v33  ;;  %18555 = vmatprep.mubr.msk.f32.mxu0 %vm6261_vm2, %v23397_v39  ;;  %26453 = vst [vmem:[#allocation184_spill] sm:$0xff] %v23410_v50  ;;  %v26460_v39 = vld [vmem:[#allocation10_spill] sm:$0xff] }
 0x599   : > { %v20221_v11 = vpack.c.bf16 %v6206_v57, %v6201_v54  ;;  %v18389_v18 = vpop.f32.mrb[148].mxu0 }
 0x59a   : > { %v6216_v16 = vadd.f32 %v18389_v18, %v23184_v27  ;;  %v6210_v52 = vpop.f32.mrb[149].mxu0 }
 0x59b   : > { %v6211_v51 = vadd.f32 %v23184_v27, %v6210_v52  ;;  %20222 = vmatprep.subr.bf16.mxu0 %v20221_v11  ;;  %v23418_v54 = vpop.trf.xlu0  ;;  %v26456_v52 = vld [vmem:[#allocation8_spill] sm:$0xff] }
 0x59c   : > { %20224 = vmatpush3.bf16.msra.mxu0 %v20221_v11  ;;  %26454 = vst [vmem:[#allocation185_spill] sm:$0xff] %v23418_v54 }
 0x59d   : > { %v20225_v12 = vpack.c.bf16 %v6216_v16, %v6211_v51  ;;  %v18392_v30 = vpop.f32.mrb[150].mxu0 }
 0x59e   : > { %v6226_v33 = vadd.f32 %v18392_v30, %v23184_v27  ;;  %v6220_v34 = vpop.f32.mrb[151].mxu0  ;;  %v8193_v30 = vld [vmem:[%s25591_s4 + $0x280] sm:$0xff] }
 0x59f   : > { %v6221_v49 = vadd.f32 %v23184_v27, %v6220_v34  ;;  %18556 = vmatmul.mubr.msk.f32.vlgmr.msra.gmra.mrb[180].mxu0 %vm6261_vm2, %v23408_v32  ;;  %20226 = vmatprep.subr.bf16.mxu0 %v20225_v12  ;;  %v23425_v27 = vld [vmem:[%s25592_s5 + $0x5] ss:$0 sm:$0xff]  ;;  %v26455_v34 = vld [vmem:[#allocation7_spill] sm:$0xff] }
 0x5a0   : > { %20228 = vmatpush3.bf16.msra.mxu0 %v20225_v12  ;;  %18566 = vmatprep.mubr.msk.f32.mxu0 %vm6261_vm2, %v23410_v50  ;;  %v8199_v32 = vld [vmem:[%s25591_s4 + $0x2b0] sm:$0xff] }
 0x5a1   : > { %v20229_v57 = vpack.c.bf16 %v6226_v33, %v6221_v49  ;;  %v23431_v49 = vld [vmem:[%s25592_s5 + $0x6] ss:$0 sm:$0xff]  ;;  %v8194_v33 = vld [vmem:[%s25591_s4 + $0x288] sm:$0xff] }
 0x5a3   : > { %20230 = vmatprep.subr.bf16.mxu0 %v20229_v57 }
 0x5a4   : > { %20232 = vmatpush3.bf16.msra.mxu0 %v20229_v57  ;;  %v8195_v57 = vld [vmem:[%s25591_s4 + $0x290] sm:$0xff] }
 0x5a7   : > { %18567 = vmatmul.mubr.msk.f32.vlgmr.msra.gmra.mrb[182].mxu0 %vm6261_vm2, %v23418_v54 }
 0x602   : > { %v18403_v11 = vpop.f32.mrb[152].mxu0 }
 0x603   : > { %v8039_v18 = vadd.f32 %v18403_v11, %v26455_v34  ;;  %v6334_v16 = vpop.f32.mrb[153].mxu0  ;;  %v20265_v34 = vpack.c.bf16 %v8194_v33, %v8193_v30 }
 0x604   : > { %v8038_v51 = vadd.f32 %v6334_v16, %v26456_v52  ;;  %v8196_v16 = vld [vmem:[%s25591_s4 + $0x298] sm:$0xff] }
 0x605   : > { %v8076_v12 = vmul.f32 %v23425_v27, %v8039_v18  ;;  %v20269_v52 = vpack.c.bf16 %v8196_v16, %v8195_v57  ;;  %20266 = vmatprep.subr.bf16.mxu0 %v20265_v34  ;;  %v26459_v57 = vld [vmem:[#allocation9_spill] sm:$0xff] }
 0x606   : > { %v8075_v11 = vmul.f32 %v23425_v27, %v8038_v51  ;;  %20268 = vmatpush3.bf16.msra.mxu0 %v20265_v34 }
 0x607   : > { %v23449_v18 = vadd.f32 %v23431_v49, %v8076_v12  ;;  %20270 = vmatprep.subr.bf16.mxu0 %v20269_v52  ;;  %v20273_v12 = vpack.c.bf16 %v8198_v19, %v8197_v41 }
 0x608   : > { %v23458_v54 = vadd.f32 %v23431_v49, %v8075_v11  ;;  %v8200_v11 = vld [vmem:[%s25591_s4 + $0x2b8] sm:$0xff] }
 0x609   : > { %26457 = vst [vmem:[#allocation7_spill] sm:$0xff] %v23449_v18  ;;  %v25951_v33 = vmax.f32 %v23449_v18, 0.0  ;;  %v8203_v18 = vld [vmem:[%s25591_s4 + $0x2d0] sm:$0xff] }
 0x60a   : > { %26458 = vst [vmem:[#allocation8_spill] sm:$0xff] %v23458_v54  ;;  %v18414_v51 = vpop.f32.mrb[154].mxu0  ;;  %v25952_v30 = vmax.f32 %v23458_v54, 0.0  ;;  %20272 = vmatpush3.bf16.msra.mxu0 %v20269_v52  ;;  %v26464_v54 = vld [vmem:[#allocation14_spill] sm:$0xff] }
 0x60b   : > { %v8041_v16 = vadd.f32 %v18414_v51, %v26459_v57  ;;  %v6447_v50 = vpop.f32.mrb[155].mxu0  ;;  %20274 = vmatprep.subr.bf16.mxu0 %v20273_v12  ;;  %v20277_v51 = vpack.c.bf16 %v8200_v11, %v8199_v32  ;;  %v26463_v11 = vld [vmem:[#allocation13_spill] sm:$0xff] }
 0x60c   : > { %v8040_v34 = vadd.f32 %v6447_v50, %v26460_v39  ;;  %18601 = vmatprep.mubr.f32.mxu1 %v25952_v30  ;;  %v8201_v39 = vld [vmem:[%s25591_s4 + $0x2c0] sm:$0xff]  ;;  %v8202_v50 = vld [vmem:[%s25591_s4 + $0x2c8] sm:$0xff] }
 0x60d   : > { %v8078_v19 = vmul.f32 %v23425_v27, %v8041_v16  ;;  %18602 = vmatmul.mubr.f32.vlgmr.msra.gmra.mrb[168].mxu1 %v25951_v33  ;;  %v20281_v32 = vpack.c.bf16 %v8202_v50, %v8201_v39 }
 0x60e   : > { %v8077_v41 = vmul.f32 %v23425_v27, %v8040_v34  ;;  %20276 = vmatpush3.bf16.msra.mxu0 %v20273_v12 }
 0x60f   : > { %v23477_v57 = vadd.f32 %v23431_v49, %v8078_v19  ;;  %20278 = vmatprep.subr.bf16.mxu0 %v20277_v51 }
 0x610   : > { %v23486_v16 = vadd.f32 %v23431_v49, %v8077_v41  ;;  %v8204_v41 = vld [vmem:[%s25591_s4 + $0x2d8] sm:$0xff] }
 0x611   : > { %26461 = vst [vmem:[#allocation9_spill] sm:$0xff] %v23477_v57  ;;  %v25955_v30 = vmax.f32 %v23477_v57, 0.0  ;;  %v26468_v57 = vld [vmem:[#allocation18_spill] sm:$0xff] }
 0x612   : > { %26462 = vst [vmem:[#allocation10_spill] sm:$0xff] %v23486_v16  ;;  %v18425_v52 = vpop.f32.mrb[156].mxu0  ;;  %v25956_v34 = vmax.f32 %v23486_v16, 0.0  ;;  %20280 = vmatpush3.bf16.msra.mxu0 %v20277_v51 }
 0x613   : > { %v8043_v19 = vadd.f32 %v18425_v52, %v26463_v11  ;;  %v6560_v33 = vpop.f32.mrb[157].mxu0  ;;  %20282 = vmatprep.subr.bf16.mxu0 %v20281_v32  ;;  %v20285_v52 = vpack.c.bf16 %v8204_v41, %v8203_v18  ;;  %v26467_v41 = vld [vmem:[#allocation17_spill] sm:$0xff] }
 0x614   : > { %v8042_v12 = vadd.f32 %v6560_v33, %v26464_v54  ;;  %18604 = vmatprep.mubr.f32.mxu1 %v25956_v34  ;;  %v8205_v54 = vld [vmem:[%s25591_s4 + $0x2e0] sm:$0xff]  ;;  %v8206_v33 = vld [vmem:[%s25591_s4 + $0x2e8] sm:$0xff] }
 0x615   : > { %v8080_v39 = vmul.f32 %v23425_v27, %v8043_v19  ;;  %18605 = vmatmul.mubr.f32.gmra.mrb[170].mxu1 %v25955_v30  ;;  %v20289_v18 = vpack.c.bf16 %v8206_v33, %v8205_v54  ;;  %v26471_v33 = vld [vmem:[#allocation21_spill] sm:$0xff] }
 0x616   : > { %v8079_v50 = vmul.f32 %v23425_v27, %v8042_v12  ;;  %20284 = vmatpush3.bf16.msra.mxu0 %v20281_v32 }
 0x617   : > { %v23505_v11 = vadd.f32 %v23431_v49, %v8080_v39  ;;  %20286 = vmatprep.subr.bf16.mxu0 %v20285_v52 }
 0x618   : > { %v23514_v19 = vadd.f32 %v23431_v49, %v8079_v50 }
 0x619   : > { %26465 = vst [vmem:[#allocation13_spill] sm:$0xff] %v23505_v11  ;;  %v25961_v34 = vmax.f32 %v23505_v11, 0.0 }
 0x61a   : > { %26466 = vst [vmem:[#allocation14_spill] sm:$0xff] %v23514_v19  ;;  %v18436_v51 = vpop.f32.mrb[158].mxu0  ;;  %v25962_v12 = vmax.f32 %v23514_v19, 0.0  ;;  %20288 = vmatpush3.bf16.msra.mxu0 %v20285_v52 }
 0x61b   : > { %v8045_v39 = vadd.f32 %v18436_v51, %v26467_v41  ;;  %v6673_v30 = vpop.f32.mrb[159].mxu0  ;;  %20290 = vmatprep.subr.bf16.mxu0 %v20289_v18 }
 0x61c   : > { %v8044_v16 = vadd.f32 %v6673_v30, %v26468_v57  ;;  %18607 = vmatprep.mubr.f32.mxu1 %v25962_v12 }
 0x61d   : > { %v8082_v0 = vmul.f32 %v23425_v27, %v8045_v39  ;;  %18608 = vmatmul.mubr.f32.gmra.mrb[172].mxu1 %v25961_v34  ;;  %v26472_v34 = vld [vmem:[#allocation22_spill] sm:$0xff] }
 0x61e   : > { %v8081_v32 = vmul.f32 %v23425_v27, %v8044_v16  ;;  %20292 = vmatpush3.bf16.msra.mxu0 %v20289_v18 }
 0x61f   : > { %v23527_v50 = vadd.f32 %v23431_v49, %v8082_v0 }
 0x620   : > { %v23530_v54 = vadd.f32 %v23431_v49, %v8081_v32 }
 0x621   : > { %26469 = vst [vmem:[#allocation17_spill] sm:$0xff] %v23527_v50  ;;  %v25965_v39 = vmax.f32 %v23527_v50, 0.0 }
 0x622   : > { %26470 = vst [vmem:[#allocation18_spill] sm:$0xff] %v23530_v54  ;;  %v18447_v30 = vpop.f32.mrb[160].mxu0  ;;  %v25963_v57 = vmax.f32 %v23530_v54, 0.0 }
 0x623   : > { %v8047_v51 = vadd.f32 %v18447_v30, %v26471_v33  ;;  %v6786_v41 = vpop.f32.mrb[161].mxu0 }
 0x624   : > { %v8046_v52 = vadd.f32 %v6786_v41, %v26472_v34  ;;  %18610 = vmatprep.mubr.f32.mxu1 %v25963_v57  ;;  %v26475_v34 = vld [vmem:[#allocation25_spill] sm:$0xff] }
 0x625   : > { %v8084_v0 = vmul.f32 %v23425_v27, %v8047_v51  ;;  %18611 = vmatmul.mubr.f32.gmra.mrb[174].mxu1 %v25965_v39  ;;  %v26476_v51 = vld [vmem:[#allocation26_spill] sm:$0xff] }
 0x626   : > { %v8083_v16 = vmul.f32 %v23425_v27, %v8046_v52 }
 0x627   : > { %v23543_v18 = vadd.f32 %v23431_v49, %v8084_v0 }
 0x628   : > { %v23546_v32 = vadd.f32 %v23431_v49, %v8083_v16 }
 0x629   : > { %26473 = vst [vmem:[#allocation21_spill] sm:$0xff] %v23543_v18  ;;  %v25969_v57 = vmax.f32 %v23543_v18, 0.0 }
 0x62a   : > { %26474 = vst [vmem:[#allocation22_spill] sm:$0xff] %v23546_v32  ;;  %v18458_v30 = vpop.f32.mrb[162].mxu0  ;;  %v25967_v33 = vmax.f32 %v23546_v32, 0.0 }
 0x62b   : > { %v8049_v41 = vadd.f32 %v18458_v30, %v26475_v34  ;;  %v6899_v12 = vpop.f32.mrb[163].mxu0 }
 0x62c   : > { %v8048_v54 = vadd.f32 %v6899_v12, %v26476_v51  ;;  %18613 = vmatprep.mubr.f32.mxu1 %v25967_v33  ;;  %v26479_v12 = vld [vmem:[#allocation31_spill] sm:$0xff] }
 0x62d   : > { %v8086_v52 = vmul.f32 %v23425_v27, %v8049_v41  ;;  %18614 = vmatmul.mubr.f32.gmra.mrb[176].mxu1 %v25969_v57  ;;  %v26480_v41 = vld [vmem:[#allocation32_spill] sm:$0xff] }
 0x62e   : > { %v8085_v0 = vmul.f32 %v23425_v27, %v8048_v54 }
 0x62f   : > { %v23559_v16 = vadd.f32 %v23431_v49, %v8086_v52 }
 0x630   : > { %v23562_v30 = vadd.f32 %v23431_v49, %v8085_v0 }
 0x631   : > { %26477 = vst [vmem:[#allocation25_spill] sm:$0xff] %v23559_v16  ;;  %v25973_v33 = vmax.f32 %v23559_v16, 0.0 }
 0x632   : > { %26478 = vst [vmem:[#allocation26_spill] sm:$0xff] %v23562_v30  ;;  %v18469_v34 = vpop.f32.mrb[164].mxu0  ;;  %v25971_v39 = vmax.f32 %v23562_v30, 0.0 }
 0x633   : > { %v8051_v51 = vadd.f32 %v18469_v34, %v26479_v12  ;;  %v7012_v32 = vpop.f32.mrb[165].mxu0 }
 0x634   : > { %v8050_v50 = vadd.f32 %v7012_v32, %v26480_v41  ;;  %18616 = vmatprep.mubr.f32.mxu1 %v25971_v39  ;;  %v26483_v32 = vld [vmem:[#allocation37_spill] sm:$0xff] }
 0x635   : > { %v8088_v54 = vmul.f32 %v23425_v27, %v8051_v51  ;;  %18617 = vmatmul.mubr.f32.gmra.mrb[178].mxu1 %v25973_v33  ;;  %v26484_v51 = vld [vmem:[#allocation38_spill] sm:$0xff] }
 0x636   : > { %v8087_v52 = vmul.f32 %v23425_v27, %v8050_v50 }
 0x637   : > { %v23575_v0 = vadd.f32 %v23431_v49, %v8088_v54 }
 0x638   : > { %v23578_v34 = vadd.f32 %v23431_v49, %v8087_v52 }
 0x639   : > { %26481 = vst [vmem:[#allocation31_spill] sm:$0xff] %v23575_v0  ;;  %v25977_v39 = vmax.f32 %v23575_v0, 0.0 }
 0x63a   : > { %26482 = vst [vmem:[#allocation32_spill] sm:$0xff] %v23578_v34  ;;  %v18480_v12 = vpop.f32.mrb[166].mxu0  ;;  %v25975_v57 = vmax.f32 %v23578_v34, 0.0 }
 0x63b   : > { %v8053_v41 = vadd.f32 %v18480_v12, %v26483_v32  ;;  %v7125_v30 = vpop.f32.mrb[167].mxu0 }
 0x63c   : > { %v8052_v18 = vadd.f32 %v7125_v30, %v26484_v51  ;;  %18619 = vmatprep.mubr.f32.mxu1 %v25975_v57  ;;  %v26487_v30 = vld [vmem:[#allocation43_spill] sm:$0xff] }
 0x63d   : > { %v8090_v50 = vmul.f32 %v23425_v27, %v8053_v41  ;;  %18620 = vmatmul.mubr.f32.gmra.mrb[180].mxu1 %v25977_v39  ;;  %v26488_v41 = vld [vmem:[#allocation44_spill] sm:$0xff] }
 0x63e   : > { %v8089_v54 = vmul.f32 %v23425_v27, %v8052_v18 }
 0x63f   : > { %v23591_v52 = vadd.f32 %v23431_v49, %v8090_v50 }
 0x640   : > { %v23594_v12 = vadd.f32 %v23431_v49, %v8089_v54 }
 0x641   : > { %26485 = vst [vmem:[#allocation37_spill] sm:$0xff] %v23591_v52  ;;  %v25981_v57 = vmax.f32 %v23591_v52, 0.0 }
 0x642   : > { %26486 = vst [vmem:[#allocation38_spill] sm:$0xff] %v23594_v12  ;;  %v18491_v32 = vpop.f32.mrb[168].mxu0  ;;  %v25979_v33 = vmax.f32 %v23594_v12, 0.0 }
 0x643   : > { %v8055_v51 = vadd.f32 %v18491_v32, %v26487_v30  ;;  %v7238_v34 = vpop.f32.mrb[169].mxu0 }
 0x644   : > { %v8054_v16 = vadd.f32 %v7238_v34, %v26488_v41  ;;  %18622 = vmatprep.mubr.f32.mxu1 %v25979_v33  ;;  %v26491_v34 = vld [vmem:[#allocation49_spill] sm:$0xff] }
 0x645   : > { %v8092_v18 = vmul.f32 %v23425_v27, %v8055_v51  ;;  %18623 = vmatmul.mubr.f32.gmra.mrb[182].mxu1 %v25981_v57  ;;  %v26492_v51 = vld [vmem:[#allocation50_spill] sm:$0xff] }
 0x646   : > { %v8091_v50 = vmul.f32 %v23425_v27, %v8054_v16 }
 0x647   : > { %v23607_v54 = vadd.f32 %v23431_v49, %v8092_v18 }
 0x648   : > { %v23610_v32 = vadd.f32 %v23431_v49, %v8091_v50 }
 0x649   : > { %26489 = vst [vmem:[#allocation43_spill] sm:$0xff] %v23607_v54  ;;  %v25985_v33 = vmax.f32 %v23607_v54, 0.0 }
 0x64a   : > { %26490 = vst [vmem:[#allocation44_spill] sm:$0xff] %v23610_v32  ;;  %v18502_v30 = vpop.f32.mrb[170].mxu0  ;;  %v25983_v39 = vmax.f32 %v23610_v32, 0.0 }
 0x64b   : > { %v8057_v41 = vadd.f32 %v18502_v30, %v26491_v34  ;;  %v7351_v12 = vpop.f32.mrb[171].mxu0 }
 0x64c   : > { %v8056_v0 = vadd.f32 %v7351_v12, %v26492_v51  ;;  %18625 = vmatprep.mubr.f32.mxu1 %v25983_v39  ;;  %v26495_v12 = vld [vmem:[#allocation55_spill] sm:$0xff] }
 0x64d   : > { %v8094_v16 = vmul.f32 %v23425_v27, %v8057_v41  ;;  %18626 = vmatmul.mubr.f32.gmra.mrb[184].mxu1 %v25985_v33  ;;  %v26496_v41 = vld [vmem:[#allocation56_spill] sm:$0xff] }
 0x64e   : > { %v8093_v18 = vmul.f32 %v23425_v27, %v8056_v0 }
 0x64f   : > { %v23623_v50 = vadd.f32 %v23431_v49, %v8094_v16 }
 0x650   : > { %v23626_v30 = vadd.f32 %v23431_v49, %v8093_v18 }
 0x651   : > { %26493 = vst [vmem:[#allocation49_spill] sm:$0xff] %v23623_v50  ;;  %v25989_v39 = vmax.f32 %v23623_v50, 0.0 }
 0x652   : > { %26494 = vst [vmem:[#allocation50_spill] sm:$0xff] %v23626_v30  ;;  %v18513_v34 = vpop.f32.mrb[172].mxu0  ;;  %v25987_v57 = vmax.f32 %v23626_v30, 0.0 }
 0x653   : > { %v8059_v51 = vadd.f32 %v18513_v34, %v26495_v12  ;;  %v7464_v32 = vpop.f32.mrb[173].mxu0 }
 0x654   : > { %v8058_v52 = vadd.f32 %v7464_v32, %v26496_v41  ;;  %18628 = vmatprep.mubr.f32.mxu1 %v25987_v57  ;;  %v26499_v32 = vld [vmem:[#allocation61_spill] sm:$0xff] }
 0x655   : > { %v8096_v0 = vmul.f32 %v23425_v27, %v8059_v51  ;;  %18629 = vmatmul.mubr.f32.gmra.mrb[186].mxu1 %v25989_v39  ;;  %v26500_v51 = vld [vmem:[#allocation62_spill] sm:$0xff] }
 0x656   : > { %v8095_v16 = vmul.f32 %v23425_v27, %v8058_v52 }
 0x657   : > { %v23639_v18 = vadd.f32 %v23431_v49, %v8096_v0 }
 0x658   : > { %v23642_v34 = vadd.f32 %v23431_v49, %v8095_v16 }
 0x659   : > { %26497 = vst [vmem:[#allocation55_spill] sm:$0xff] %v23639_v18  ;;  %v25990_v57 = vmax.f32 %v23639_v18, 0.0  ;;  %v26504_v18 = vld [vmem:[#allocation68_spill] sm:$0xff] }
 0x65a   : > { %26498 = vst [vmem:[#allocation56_spill] sm:$0xff] %v23642_v34  ;;  %v18524_v12 = vpop.f32.mrb[174].mxu0  ;;  %v25991_v33 = vmax.f32 %v23642_v34, 0.0 }
 0x65b   : > { %v8061_v41 = vadd.f32 %v18524_v12, %v26499_v32  ;;  %v7577_v30 = vpop.f32.mrb[175].mxu0 }
 0x65c   : > { %v8060_v54 = vadd.f32 %v7577_v30, %v26500_v51  ;;  %18631 = vmatprep.mubr.f32.mxu1 %v25991_v33  ;;  %v8207_v30 = vld [vmem:[%s25591_s4 + $0x2f0] sm:$0xff] }
 0x65d   : > { %v8098_v52 = vmul.f32 %v23425_v27, %v8061_v41  ;;  %18632 = vmatmul.mubr.f32.gmra.mrb[188].mxu1 %v25990_v57  ;;  %v8208_v41 = vld [vmem:[%s25591_s4 + $0x2f8] sm:$0xff]  ;;  %v26503_v51 = vld [vmem:[#allocation67_spill] sm:$0xff] }
 0x65e   : > { %v8097_v0 = vmul.f32 %v23425_v27, %v8060_v54  ;;  %v20293_v33 = vpack.c.bf16 %v8208_v41, %v8207_v30  ;;  %v26507_v41 = vld [vmem:[#allocation73_spill] sm:$0xff] }
 0x65f   : > { %v23655_v16 = vadd.f32 %v23431_v49, %v8098_v52 }
 0x660   : > { %v23658_v12 = vadd.f32 %v23431_v49, %v8097_v0  ;;  %20294 = vmatprep.subr.bf16.mxu0 %v20293_v33 }
 0x661   : > { %26501 = vst [vmem:[#allocation61_spill] sm:$0xff] %v23655_v16  ;;  %v25997_v52 = vmax.f32 %v23655_v16, 0.0  ;;  %20296 = vmatpush3.bf16.msra.mxu0 %v20293_v33  ;;  %v26508_v16 = vld [vmem:[#allocation74_spill] sm:$0xff] }
 0x662   : > { %26502 = vst [vmem:[#allocation62_spill] sm:$0xff] %v23658_v12  ;;  %v18535_v32 = vpop.f32.mrb[176].mxu0  ;;  %v25995_v39 = vmax.f32 %v23658_v12, 0.0 }
 0x663   : > { %v8063_v57 = vadd.f32 %v18535_v32, %v26503_v51  ;;  %v7690_v54 = vpop.f32.mrb[177].mxu0 }
 0x664   : > { %v8062_v0 = vadd.f32 %v7690_v54, %v26504_v18  ;;  %18634 = vmatprep.mubr.f32.mxu1 %v25995_v39 }
 0x665   : > { %v8100_v34 = vmul.f32 %v23425_v27, %v8063_v57  ;;  %18635 = vmatmul.mubr.f32.gmra.mrb[190].mxu1 %v25997_v52 }
 0x666   : > { %v8099_v50 = vmul.f32 %v23425_v27, %v8062_v0 }
 0x667   : > { %v23677_v32 = vadd.f32 %v23431_v49, %v8100_v34 }
 0x668   : > { %v23680_v51 = vadd.f32 %v23431_v49, %v8099_v50 }
 0x669   : > { %26505 = vst [vmem:[#allocation67_spill] sm:$0xff] %v23677_v32  ;;  %v26001_v57 = vmax.f32 %v23677_v32, 0.0 }
 0x66a   : > { %26506 = vst [vmem:[#allocation68_spill] sm:$0xff] %v23680_v51  ;;  %v18546_v30 = vpop.f32.mrb[178].mxu0  ;;  %v25999_v18 = vmax.f32 %v23680_v51, 0.0 }
 0x66b   : > { %v8065_v54 = vadd.f32 %v18546_v30, %v26507_v41  ;;  %v7803_v39 = vpop.f32.mrb[179].mxu0 }
 0x66c   : > { %v8064_v52 = vadd.f32 %v7803_v39, %v26508_v16  ;;  %18637 = vmatprep.mubr.f32.mxu1 %v25999_v18  ;;  %v26511_v39 = vld [vmem:[#allocation79_spill] sm:$0xff] }
 0x66d   : > { %v8102_v33 = vmul.f32 %v23425_v27, %v8065_v54  ;;  %18638 = vmatmul.mubr.f32.gmra.mrb[192].mxu1 %v26001_v57  ;;  %v26512_v54 = vld [vmem:[#allocation80_spill] sm:$0xff] }
 0x66e   : > { %v8101_v50 = vmul.f32 %v23425_v27, %v8064_v52 }
 0x66f   : > { %v23693_v34 = vadd.f32 %v23431_v49, %v8102_v33 }
 0x670   : > { %v23696_v0 = vadd.f32 %v23431_v49, %v8101_v50 }
 0x671   : > { %26509 = vst [vmem:[#allocation73_spill] sm:$0xff] %v23693_v34  ;;  %v26009_v18 = vmax.f32 %v23693_v34, 0.0 }
 0x672   : > { %26510 = vst [vmem:[#allocation74_spill] sm:$0xff] %v23696_v0  ;;  %v18557_v30 = vpop.f32.mrb[180].mxu0  ;;  %v26003_v41 = vmax.f32 %v23696_v0, 0.0 }
 0x673   : > { %v8067_v16 = vadd.f32 %v18557_v30, %v26511_v39  ;;  %v7916_v51 = vpop.f32.mrb[181].mxu0 }
 0x674   : > { %v8066_v12 = vadd.f32 %v7916_v51, %v26512_v54  ;;  %18640 = vmatprep.mubr.f32.mxu1 %v26003_v41  ;;  %v26515_v51 = vld [vmem:[#allocation85_spill] sm:$0xff] }
 0x675   : > { %v8104_v52 = vmul.f32 %v23425_v27, %v8067_v16  ;;  %18641 = vmatmul.mubr.f32.gmra.mrb[194].mxu1 %v26009_v18  ;;  %v26516_v16 = vld [vmem:[#allocation87_spill] sm:$0xff] }
 0x676   : > { %v8103_v33 = vmul.f32 %v23425_v27, %v8066_v12 }
 0x677   : > { %v23709_v50 = vadd.f32 %v23431_v49, %v8104_v52 }
 0x678   : > { %v23712_v30 = vadd.f32 %v23431_v49, %v8103_v33 }
 0x679   : > { %26513 = vst [vmem:[#allocation79_spill] sm:$0xff] %v23709_v50  ;;  %v26007_v41 = vmax.f32 %v23709_v50, 0.0  ;;  %v26550_v50 = vld [vmem:[#allocation63_spill] sm:$0xff] }
 0x67a   : > { %26514 = vst [vmem:[#allocation80_spill] sm:$0xff] %v23712_v30  ;;  %v18568_v39 = vpop.f32.mrb[182].mxu0  ;;  %v26008_v57 = vmax.f32 %v23712_v30, 0.0  ;;  %v26551_v30 = vld [vmem:[#allocation65_spill] sm:$0xff] }
 0x67b   : > { %v8069_v54 = vadd.f32 %v18568_v39, %v26515_v51  ;;  %v8029_v0 = vpop.f32.mrb[183].mxu0 }
 0x67c   : > { %v8068_v32 = vadd.f32 %v8029_v0, %v26516_v16  ;;  %18643 = vmatprep.mubr.f32.mxu1 %v26008_v57 }
 0x67d   : > { %v8106_v12 = vmul.f32 %v23425_v27, %v8069_v54  ;;  %18644 = vmatmul.mubr.f32.gmra.mrb[196].mxu1 %v26007_v41 }
 0x67e   : > { %v8105_v52 = vmul.f32 %v23425_v27, %v8068_v32  ;;  %v23741_v27 = vld [vmem:[%s25592_s5 + $0x7] ss:$0 sm:$0xff] }
 0x67f   : > { %v23725_v33 = vadd.f32 %v23431_v49, %v8106_v12 }
 0x680   : > { %v23728_v39 = vadd.f32 %v23431_v49, %v8105_v52 }
 0x681   : > { %26517 = vst [vmem:[#allocation85_spill] sm:$0xff] %v23725_v33  ;;  %v26006_v0 = vmax.f32 %v23725_v33, 0.0 }
 0x682   : > { %26518 = vst [vmem:[#allocation87_spill] sm:$0xff] %v23728_v39  ;;  %v26005_v51 = vmax.f32 %v23728_v39, 0.0 }
 0x684   : > { %18646 = vmatprep.mubr.f32.mxu1 %v26005_v51 }
 0x685   : > { %18647 = vmatmul.mubr.f32.gmra.mrb[198].mxu1 %v26006_v0 }
 0x686   : > { %18733 = vmatprep.mubr.msk.f32.mxu1 %vm1381_vm1, %v26328_v31 }
 0x6e0   : > { %v18603_v49 = vpop.f32.mrb[168].mxu1 }
 0x6e1   : > { %v8337_v32 = vadd.f32 %v18603_v49, %v23741_v27  ;;  %v8331_v54 = vpop.f32.mrb[169].mxu1 }
 0x6e2   : > { %v8332_v16 = vadd.f32 %v23741_v27, %v8331_v54 }
 0x6e3   : > { %v8491_v52 = vmax.f32 %v8337_v32, 0.0 }
 0x6e4   : > { %v8490_v12 = vmax.f32 %v8332_v16, 0.0 }
 0x6e6   : > { %18681 = vmatprep.mubr.f32.mxu0 %v8490_v12 }
 0x6e7   : > { %18682 = vmatmul.mubr.f32.vlgmr.msra.gmra.mrb[184].mxu0 %v8491_v52 }
 0x6e8   : > { %v18606_v51 = vpop.f32.mrb[170].mxu1 }
 0x6e9   : > { %v8347_v0 = vadd.f32 %v18606_v51, %v23741_v27  ;;  %v8341_v41 = vpop.f32.mrb[171].mxu1 }
 0x6ea   : > { %v8342_v31 = vadd.f32 %v23741_v27, %v8341_v41 }
 0x6eb   : > { %v8493_v18 = vmax.f32 %v8347_v0, 0.0 }
 0x6ec   : > { %v8492_v57 = vmax.f32 %v8342_v31, 0.0 }
 0x6ee   : > { %18684 = vmatprep.mubr.f32.mxu0 %v8492_v57 }
 0x6ef   : > { %18685 = vmatmul.mubr.f32.gmra.mrb[186].mxu0 %v8493_v18 }
 0x6f0   : > { %v18609_v33 = vpop.f32.mrb[172].mxu1 }
 0x6f1   : > { %v8357_v49 = vadd.f32 %v18609_v33, %v23741_v27  ;;  %v8351_v39 = vpop.f32.mrb[173].mxu1 }
 0x6f2   : > { %v8352_v54 = vadd.f32 %v23741_v27, %v8351_v39 }
 0x6f3   : > { %v8495_v32 = vmax.f32 %v8357_v49, 0.0 }
 0x6f4   : > { %v8494_v16 = vmax.f32 %v8352_v54, 0.0 }
 0x6f6   : > { %18687 = vmatprep.mubr.f32.mxu0 %v8494_v16 }
 0x6f7   : > { %18688 = vmatmul.mubr.f32.gmra.mrb[188].mxu0 %v8495_v32 }
 0x6f8   : > { %v18612_v12 = vpop.f32.mrb[174].mxu1 }
 0x6f9   : > { %v8367_v51 = vadd.f32 %v18612_v12, %v23741_v27  ;;  %v8361_v52 = vpop.f32.mrb[175].mxu1 }
 0x6fa   : > { %v8362_v41 = vadd.f32 %v23741_v27, %v8361_v52 }
 0x6fb   : > { %v8497_v0 = vmax.f32 %v8367_v51, 0.0 }
 0x6fc   : > { %v8496_v31 = vmax.f32 %v8362_v41, 0.0 }
 0x6fe   : > { %18690 = vmatprep.mubr.f32.mxu0 %v8496_v31 }
 0x6ff   : > { %18691 = vmatmul.mubr.f32.gmra.mrb[190].mxu0 %v8497_v0 }
 0x700   : > { %v18615_v18 = vpop.f32.mrb[176].mxu1 }
 0x701   : > { %v8377_v57 = vadd.f32 %v18615_v18, %v23741_v27  ;;  %v8371_v33 = vpop.f32.mrb[177].mxu1 }
 0x702   : > { %v8372_v39 = vadd.f32 %v23741_v27, %v8371_v33 }
 0x703   : > { %v8499_v49 = vmax.f32 %v8377_v57, 0.0 }
 0x704   : > { %v8498_v54 = vmax.f32 %v8372_v39, 0.0 }
 0x706   : > { %18693 = vmatprep.mubr.f32.mxu0 %v8498_v54 }
 0x707   : > { %18694 = vmatmul.mubr.f32.gmra.mrb[192].mxu0 %v8499_v49 }
 0x708   : > { %v18618_v16 = vpop.f32.mrb[178].mxu1 }
 0x709   : > { %v8387_v32 = vadd.f32 %v18618_v16, %v23741_v27  ;;  %v8381_v12 = vpop.f32.mrb[179].mxu1 }
 0x70a   : > { %v8382_v52 = vadd.f32 %v23741_v27, %v8381_v12 }
 0x70b   : > { %v8501_v51 = vmax.f32 %v8387_v32, 0.0 }
 0x70c   : > { %v8500_v41 = vmax.f32 %v8382_v52, 0.0 }
 0x70e   : > { %18696 = vmatprep.mubr.f32.mxu0 %v8500_v41 }
 0x70f   : > { %18697 = vmatmul.mubr.f32.gmra.mrb[194].mxu0 %v8501_v51 }
 0x710   : > { %v18621_v31 = vpop.f32.mrb[180].mxu1 }
 0x711   : > { %v8397_v0 = vadd.f32 %v18621_v31, %v23741_v27  ;;  %v8391_v18 = vpop.f32.mrb[181].mxu1 }
 0x712   : > { %v8392_v33 = vadd.f32 %v23741_v27, %v8391_v18 }
 0x713   : > { %v8503_v57 = vmax.f32 %v8397_v0, 0.0 }
 0x714   : > { %v8502_v39 = vmax.f32 %v8392_v33, 0.0 }
 0x716   : > { %18699 = vmatprep.mubr.f32.mxu0 %v8502_v39 }
 0x717   : > { %18700 = vmatmul.mubr.f32.gmra.mrb[196].mxu0 %v8503_v57 }
 0x718   : > { %v18624_v54 = vpop.f32.mrb[182].mxu1 }
 0x719   : > { %v8407_v49 = vadd.f32 %v18624_v54, %v23741_v27  ;;  %v8401_v16 = vpop.f32.mrb[183].mxu1 }
 0x71a   : > { %v8402_v12 = vadd.f32 %v23741_v27, %v8401_v16 }
 0x71b   : > { %v8505_v32 = vmax.f32 %v8407_v49, 0.0 }
 0x71c   : > { %v8504_v52 = vmax.f32 %v8402_v12, 0.0 }
 0x71e   : > { %18702 = vmatprep.mubr.f32.mxu0 %v8504_v52 }
 0x71f   : > { %18703 = vmatmul.mubr.f32.gmra.mrb[198].mxu0 %v8505_v32 }
 0x720   : > { %v18627_v41 = vpop.f32.mrb[184].mxu1 }
 0x721   : > { %v8417_v51 = vadd.f32 %v18627_v41, %v23741_v27  ;;  %v8411_v31 = vpop.f32.mrb[185].mxu1 }
 0x722   : > { %v8412_v18 = vadd.f32 %v23741_v27, %v8411_v31 }
 0x723   : > { %v8507_v0 = vmax.f32 %v8417_v51, 0.0 }
 0x724   : > { %v8506_v33 = vmax.f32 %v8412_v18, 0.0 }
 0x726   : > { %18705 = vmatprep.mubr.f32.mxu0 %v8506_v33 }
 0x727   : > { %18706 = vmatmul.mubr.f32.gmra.mrb[200].mxu0 %v8507_v0 }
 0x728   : > { %v18630_v39 = vpop.f32.mrb[186].mxu1 }
 0x729   : > { %v8427_v57 = vadd.f32 %v18630_v39, %v23741_v27  ;;  %v8421_v54 = vpop.f32.mrb[187].mxu1 }
 0x72a   : > { %v8422_v16 = vadd.f32 %v23741_v27, %v8421_v54 }
 0x72b   : > { %v8509_v49 = vmax.f32 %v8427_v57, 0.0 }
 0x72c   : > { %v8508_v12 = vmax.f32 %v8422_v16, 0.0 }
 0x72e   : > { %18708 = vmatprep.mubr.f32.mxu0 %v8508_v12 }
 0x72f   : > { %18709 = vmatmul.mubr.f32.gmra.mrb[202].mxu0 %v8509_v49 }
 0x730   : > { %v18633_v52 = vpop.f32.mrb[188].mxu1 }
 0x731   : > { %v8437_v32 = vadd.f32 %v18633_v52, %v23741_v27  ;;  %v8431_v41 = vpop.f32.mrb[189].mxu1 }
 0x732   : > { %v8432_v31 = vadd.f32 %v23741_v27, %v8431_v41 }
 0x733   : > { %v8511_v51 = vmax.f32 %v8437_v32, 0.0 }
 0x734   : > { %v8510_v18 = vmax.f32 %v8432_v31, 0.0 }
 0x736   : > { %18711 = vmatprep.mubr.f32.mxu0 %v8510_v18 }
 0x737   : > { %18712 = vmatmul.mubr.f32.gmra.mrb[204].mxu0 %v8511_v51 }
 0x738   : > { %v18636_v33 = vpop.f32.mrb[190].mxu1 }
 0x739   : > { %v8447_v0 = vadd.f32 %v18636_v33, %v23741_v27  ;;  %v8441_v39 = vpop.f32.mrb[191].mxu1 }
 0x73a   : > { %v8442_v54 = vadd.f32 %v23741_v27, %v8441_v39 }
 0x73b   : > { %v8513_v57 = vmax.f32 %v8447_v0, 0.0 }
 0x73c   : > { %v8512_v16 = vmax.f32 %v8442_v54, 0.0 }
 0x73e   : > { %18714 = vmatprep.mubr.f32.mxu0 %v8512_v16 }
 0x73f   : > { %18715 = vmatmul.mubr.f32.gmra.mrb[206].mxu0 %v8513_v57 }
 0x740   : > { %v18639_v12 = vpop.f32.mrb[192].mxu1 }
 0x741   : > { %v8457_v49 = vadd.f32 %v18639_v12, %v23741_v27  ;;  %v8451_v52 = vpop.f32.mrb[193].mxu1 }
 0x742   : > { %v8452_v41 = vadd.f32 %v23741_v27, %v8451_v52 }
 0x743   : > { %v8515_v32 = vmax.f32 %v8457_v49, 0.0 }
 0x744   : > { %v8514_v31 = vmax.f32 %v8452_v41, 0.0 }
 0x746   : > { %18717 = vmatprep.mubr.f32.mxu0 %v8514_v31 }
 0x747   : > { %18718 = vmatmul.mubr.f32.gmra.mrb[208].mxu0 %v8515_v32 }
 0x748   : > { %v18642_v18 = vpop.f32.mrb[194].mxu1 }
 0x749   : > { %v8467_v51 = vadd.f32 %v18642_v18, %v23741_v27  ;;  %v8461_v33 = vpop.f32.mrb[195].mxu1 }
 0x74a   : > { %v8462_v39 = vadd.f32 %v23741_v27, %v8461_v33 }
 0x74b   : > { %v8517_v0 = vmax.f32 %v8467_v51, 0.0 }
 0x74c   : > { %v8516_v54 = vmax.f32 %v8462_v39, 0.0 }
 0x74e   : > { %18720 = vmatprep.mubr.f32.mxu0 %v8516_v54  ;;  %v23780_v54 = vld [vmem:[%s25592_s5 + $0x8] ss:$0 sm:$0xff] }
 0x74f   : > { %18721 = vmatmul.mubr.f32.gmra.mrb[210].mxu0 %v8517_v0 }
 0x750   : > { %v18645_v16 = vpop.f32.mrb[196].mxu1 }
 0x751   : > { %v8477_v57 = vadd.f32 %v18645_v16, %v23741_v27  ;;  %v8471_v12 = vpop.f32.mrb[197].mxu1 }
 0x752   : > { %v8472_v52 = vadd.f32 %v23741_v27, %v8471_v12 }
 0x753   : > { %v8519_v49 = vmax.f32 %v8477_v57, 0.0 }
 0x754   : > { %v8518_v41 = vmax.f32 %v8472_v52, 0.0 }
 0x756   : > { %18723 = vmatprep.mubr.f32.mxu0 %v8518_v41 }
 0x757   : > { %18724 = vmatmul.mubr.f32.gmra.mrb[212].mxu0 %v8519_v49 }
 0x758   : > { %v18648_v31 = vpop.f32.mrb[198].mxu1 }
 0x759   : > { %v8487_v32 = vadd.f32 %v18648_v31, %v23741_v27  ;;  %v8481_v18 = vpop.f32.mrb[199].mxu1 }
 0x75a   : > { %v8482_v33 = vadd.f32 %v23741_v27, %v8481_v18 }
 0x75b   : > { %v8521_v51 = vmax.f32 %v8487_v32, 0.0 }
 0x75c   : > { %v8520_v39 = vmax.f32 %v8482_v33, 0.0 }
 0x75e   : > { %18726 = vmatprep.mubr.f32.mxu0 %v8520_v39 }
 0x75f   : > { %18727 = vmatmul.mubr.f32.gmra.mrb[214].mxu0 %v8521_v51  ;;  %v26529_v51 = vld [vmem:[#allocation41_spill] sm:$0xff] }
 0x760   : > { %18773 = vmatprep.mubr.msk.f32.mxu0 %vm1381_vm1, %v26354_v44 }
 0x7ba   : > { %v18683_v0 = vpop.f32.mrb[184].mxu0 }
 0x7bb   : > { %v23783_v16 = vadd.f32 %v18683_v0, %v23780_v54  ;;  %v8592_v57 = vpop.f32.mrb[185].mxu0  ;;  %v26531_v0 = vld [vmem:[#allocation47_spill] sm:$0xff] }
 0x7bc   : > { %v23786_v12 = vadd.f32 %v23780_v54, %v8592_v57 }
 0x7bd   : > { %26519 = vst [vmem:[#allocation186_spill] sm:$0xff] %v23783_v16 }
 0x7be   : > { %26520 = vst [vmem:[#allocation187_spill] sm:$0xff] %v23786_v12  ;;  %v23790_v27 = vpack.c.bf16 %v23783_v16, %v23786_v12  ;;  %v8210_v12 = vld [vmem:[%s25591_s4 + $0x300] sm:$0xff]  ;;  %v8211_v16 = vld [vmem:[%s25591_s4 + $0x308] sm:$0xff] }
 0x7bf   : > { %v20457_v1 = vpack.c.bf16 %v8211_v16, %v8210_v12 }
 0x7c0   : > { %20298 = vmatprep.subr.bf16.mxu1 %v23790_v27 }
 0x7c1   : > { %20300 = vmatpush3.bf16.msra.mxu1 %v23790_v27 }
 0x7c2   : > { %v18686_v44 = vpop.f32.mrb[186].mxu0 }
 0x7c3   : > { %v23795_v52 = vadd.f32 %v18686_v44, %v23780_v54  ;;  %v8602_v41 = vpop.f32.mrb[187].mxu0 }
 0x7c4   : > { %v23798_v49 = vadd.f32 %v23780_v54, %v8602_v41  ;;  %18734 = vmatmul.mubr.msk.f32.vlgmr.msra.gmra.mrb[200].mxu1 %vm1381_vm1, %v26331_v36 }
 0x7c5   : > { %26521 = vst [vmem:[#allocation188_spill] sm:$0xff] %v23795_v52  ;;  %18736 = vmatprep.mubr.msk.f32.mxu1 %vm1381_vm1, %v26334_v56 }
 0x7c6   : > { %26522 = vst [vmem:[#allocation189_spill] sm:$0xff] %v23798_v49  ;;  %v23806_v31 = vpack.c.bf16 %v23795_v52, %v23798_v49 }
 0x7c8   : > { %20302 = vmatprep.subr.bf16.mxu1 %v23806_v31  ;;  %18737 = vmatmul.mubr.msk.f32.gmra.mrb[202].mxu1 %vm1381_vm1, %v26338_v55 }
 0x7c9   : > { %20304 = vmatpush3.bf16.msra.mxu1 %v23806_v31  ;;  %18743 = vmatprep.mubr.msk.f32.mxu1 %vm1381_vm1, %v26329_v4 }
 0x7ca   : > { %v18689_v32 = vpop.f32.mrb[188].mxu0 }
 0x7cb   : > { %v23815_v36 = vadd.f32 %v18689_v32, %v23780_v54  ;;  %v8612_v18 = vpop.f32.mrb[189].mxu0  ;;  %v26534_v32 = vld [vmem:[#allocation28_spill] sm:$0xff] }
 0x7cc   : > { %v23818_v56 = vadd.f32 %v23780_v54, %v8612_v18  ;;  %18744 = vmatmul.mubr.msk.f32.vlgmr.msra.gmra.mrb[204].mxu1 %vm1381_vm1, %v26332_v14 }
 0x7cd   : > { %26523 = vst [vmem:[#allocation190_spill] sm:$0xff] %v23815_v36  ;;  %18746 = vmatprep.mubr.msk.f32.mxu1 %vm1381_vm1, %v26335_v63 }
 0x7ce   : > { %26524 = vst [vmem:[#allocation191_spill] sm:$0xff] %v23818_v56  ;;  %v23826_v55 = vpack.c.bf16 %v23815_v36, %v23818_v56 }
 0x7d0   : > { %20306 = vmatprep.subr.bf16.mxu1 %v23826_v55  ;;  %18747 = vmatmul.mubr.msk.f32.gmra.mrb[206].mxu1 %vm1381_vm1, %v26339_v10 }
 0x7d1   : > { %20308 = vmatpush3.bf16.msra.mxu1 %v23826_v55  ;;  %18753 = vmatprep.mubr.msk.f32.mxu1 %vm1381_vm1, %v26341_v25 }
 0x7d2   : > { %v18692_v4 = vpop.f32.mrb[190].mxu0 }
 0x7d3   : > { %v23835_v14 = vadd.f32 %v18692_v4, %v23780_v54  ;;  %v8622_v33 = vpop.f32.mrb[191].mxu0  ;;  %v26535_v4 = vld [vmem:[#allocation34_spill] sm:$0xff] }
 0x7d4   : > { %v23838_v63 = vadd.f32 %v23780_v54, %v8622_v33  ;;  %18754 = vmatmul.mubr.msk.f32.vlgmr.msra.gmra.mrb[208].mxu1 %vm1381_vm1, %v26344_v59  ;;  %v26536_v33 = vld [vmem:[#allocation36_spill] sm:$0xff] }
 0x7d5   : > { %26525 = vst [vmem:[#allocation192_spill] sm:$0xff] %v23835_v14  ;;  %18756 = vmatprep.mubr.msk.f32.mxu1 %vm1381_vm1, %v26348_v9 }
 0x7d6   : > { %26526 = vst [vmem:[#allocation193_spill] sm:$0xff] %v23838_v63  ;;  %v23846_v10 = vpack.c.bf16 %v23835_v14, %v23838_v63 }
 0x7d8   : > { %20310 = vmatprep.subr.bf16.mxu1 %v23846_v10  ;;  %18757 = vmatmul.mubr.msk.f32.gmra.mrb[210].mxu1 %vm1381_vm1, %v26351_v62 }
 0x7d9   : > { %20312 = vmatpush3.bf16.msra.mxu1 %v23846_v10  ;;  %18763 = vmatprep.mubr.msk.f32.mxu1 %vm1381_vm1, %v26342_v20  ;;  %v26530_v20 = vld [vmem:[#allocation45_spill] sm:$0xff] }
 0x7da   : > { %v18695_v25 = vpop.f32.mrb[192].mxu0 }
 0x7db   : > { %v23855_v59 = vadd.f32 %v18695_v25, %v23780_v54  ;;  %v8632_v39 = vpop.f32.mrb[193].mxu0 }
 0x7dc   : > { %v23858_v9 = vadd.f32 %v23780_v54, %v8632_v39  ;;  %18764 = vmatmul.mubr.msk.f32.vlgmr.msra.gmra.mrb[212].mxu1 %vm1381_vm1, %v26345_v29 }
 0x7dd   : > { %26527 = vst [vmem:[#allocation194_spill] sm:$0xff] %v23855_v59  ;;  %18766 = vmatprep.mubr.msk.f32.mxu1 %vm1381_vm1, %v26529_v51 }
 0x7de   : > { %26528 = vst [vmem:[#allocation195_spill] sm:$0xff] %v23858_v9  ;;  %v23866_v62 = vpack.c.bf16 %v23855_v59, %v23858_v9 }
 0x7e0   : > { %20314 = vmatprep.subr.bf16.mxu0 %v23866_v62  ;;  %18767 = vmatmul.mubr.msk.f32.gmra.mrb[214].mxu1 %vm1381_vm1, %v26530_v20  ;;  %v26539_v20 = vld [vmem:[#allocation51_spill] sm:$0xff] }
 0x7e1   : > { %20316 = vmatpush3.bf16.msra.mxu0 %v23866_v62  ;;  %18783 = vmatprep.mubr.msk.f32.mxu1 %vm1381_vm1, %v26531_v0  ;;  %v26540_v0 = vld [vmem:[#allocation53_spill] sm:$0xff] }
 0x7e2   : > { %v18698_v57 = vpop.f32.mrb[194].mxu0 }
 0x7e3   : > { %v23875_v29 = vadd.f32 %v18698_v57, %v23780_v54  ;;  %v8642_v44 = vpop.f32.mrb[195].mxu0 }
 0x7e4   : > { %v23878_v41 = vadd.f32 %v23780_v54, %v8642_v44  ;;  %18774 = vmatmul.mubr.msk.f32.vlgmr.msra.gmra.mrb[216].mxu0 %vm1381_vm1, %v26534_v32  ;;  %v26541_v44 = vld [vmem:[#allocation57_spill] sm:$0xff]  ;;  %v26542_v32 = vld [vmem:[#allocation59_spill] sm:$0xff] }
 0x7e5   : > { %26532 = vst [vmem:[#allocation41_spill] sm:$0xff] %v23875_v29  ;;  %18776 = vmatprep.mubr.msk.f32.mxu0 %vm1381_vm1, %v26362_v21 }
 0x7e6   : > { %26533 = vst [vmem:[#allocation45_spill] sm:$0xff] %v23878_v41  ;;  %v23886_v18 = vpack.c.bf16 %v23875_v29, %v23878_v41 }
 0x7e8   : > { %20318 = vmatprep.subr.bf16.mxu1 %v23886_v18  ;;  %18777 = vmatmul.mubr.msk.f32.gmra.mrb[218].mxu0 %vm1381_vm1, %v26535_v4 }
 0x7e9   : > { %20320 = vmatpush3.bf16.msra.mxu1 %v23886_v18  ;;  %18793 = vmatprep.mubr.msk.f32.mxu0 %vm1381_vm1, %v26536_v33 }
 0x7ea   : > { %v18701_v25 = vpop.f32.mrb[196].mxu0 }
 0x7eb   : > { %v23895_v39 = vadd.f32 %v18701_v25, %v23780_v54  ;;  %v8652_v51 = vpop.f32.mrb[197].mxu0 }
 0x7ec   : > { %v23898_v21 = vadd.f32 %v23780_v54, %v8652_v51  ;;  %18784 = vmatmul.mubr.msk.f32.vlgmr.msra.gmra.mrb[216].mxu1 %vm1381_vm1, %v26539_v20  ;;  %v26545_v20 = vld [vmem:[#allocation40_spill] sm:$0xff] }
 0x7ed   : > { %26537 = vst [vmem:[#allocation47_spill] sm:$0xff] %v23895_v39  ;;  %18786 = vmatprep.mubr.msk.f32.mxu1 %vm1381_vm1, %v26540_v0  ;;  %v26546_v0 = vld [vmem:[#allocation42_spill] sm:$0xff] }
 0x7ee   : > { %26538 = vst [vmem:[#allocation28_spill] sm:$0xff] %v23898_v21  ;;  %v23906_v57 = vpack.c.bf16 %v23895_v39, %v23898_v21 }
 0x7f0   : > { %20322 = vmatprep.subr.bf16.mxu0 %v23906_v57  ;;  %18787 = vmatmul.mubr.msk.f32.gmra.mrb[218].mxu1 %vm1381_vm1, %v26541_v44 }
 0x7f1   : > { %20324 = vmatpush3.bf16.msra.mxu0 %v23906_v57  ;;  %18803 = vmatprep.mubr.msk.f32.mxu1 %vm1381_vm1, %v26542_v32  ;;  %v26547_v32 = vld [vmem:[#allocation48_spill] sm:$0xff] }
 0x7f2   : > { %v18704_v4 = vpop.f32.mrb[198].mxu0 }
 0x7f3   : > { %v23915_v33 = vadd.f32 %v18704_v4, %v23780_v54  ;;  %v8662_v25 = vpop.f32.mrb[199].mxu0 }
 0x7f4   : > { %v23918_v51 = vadd.f32 %v23780_v54, %v8662_v25  ;;  %18794 = vmatmul.mubr.msk.f32.vlgmr.msra.gmra.mrb[220].mxu0 %vm1381_vm1, %v26545_v20 }
 0x7f5   : > { %26543 = vst [vmem:[#allocation34_spill] sm:$0xff] %v23915_v33  ;;  %18796 = vmatprep.mubr.msk.f32.mxu0 %vm1381_vm1, %v26546_v0 }
 0x7f6   : > { %26544 = vst [vmem:[#allocation36_spill] sm:$0xff] %v23918_v51  ;;  %v23926_v44 = vpack.c.bf16 %v23915_v33, %v23918_v51 }
 0x7f8   : > { %20326 = vmatprep.subr.bf16.mxu1 %v23926_v44  ;;  %18797 = vmatmul.mubr.msk.f32.gmra.mrb[222].mxu0 %vm1381_vm1, %v26375_v37 }
 0x7f9   : > { %20328 = vmatpush3.bf16.msra.mxu1 %v23926_v44  ;;  %18813 = vmatprep.mubr.msk.f32.mxu0 %vm1381_vm1, %v26547_v32  ;;  %v26552_v32 = vld [vmem:[#allocation69_spill] sm:$0xff] }
 0x7fa   : > { %v18707_v4 = vpop.f32.mrb[200].mxu0 }
 0x7fb   : > { %v23935_v25 = vadd.f32 %v18707_v4, %v23780_v54  ;;  %v8672_v20 = vpop.f32.mrb[201].mxu0  ;;  %v26553_v4 = vld [vmem:[#allocation71_spill] sm:$0xff] }
 0x7fc   : > { %v23938_v0 = vadd.f32 %v23780_v54, %v8672_v20  ;;  %18804 = vmatmul.mubr.msk.f32.vlgmr.msra.gmra.mrb[220].mxu1 %vm1381_vm1, %v26550_v50 }
 0x7fd   : > { %26548 = vst [vmem:[#allocation51_spill] sm:$0xff] %v23935_v25  ;;  %18806 = vmatprep.mubr.msk.f32.mxu1 %vm1381_vm1, %v26551_v30 }
 0x7fe   : > { %26549 = vst [vmem:[#allocation53_spill] sm:$0xff] %v23938_v0  ;;  %v23946_v37 = vpack.c.bf16 %v23935_v25, %v23938_v0  ;;  %v26556_v0 = vld [vmem:[#allocation54_spill] sm:$0xff] }
 0x800   : > { %20330 = vmatprep.subr.bf16.mxu0 %v23946_v37  ;;  %18807 = vmatmul.mubr.msk.f32.gmra.mrb[222].mxu1 %vm1381_vm1, %v26552_v32 }
 0x801   : > { %20332 = vmatpush3.bf16.msra.mxu0 %v23946_v37  ;;  %18823 = vmatprep.mubr.msk.f32.mxu1 %vm1381_vm1, %v26553_v4  ;;  %v26557_v4 = vld [vmem:[#allocation60_spill] sm:$0xff] }
 0x802   : > { %v18710_v20 = vpop.f32.mrb[202].mxu0 }
 0x803   : > { %v23955_v50 = vadd.f32 %v18710_v20, %v23780_v54  ;;  %v8682_v34 = vpop.f32.mrb[203].mxu0 }
 0x804   : > { %v23958_v30 = vadd.f32 %v23780_v54, %v8682_v34  ;;  %18814 = vmatmul.mubr.msk.f32.vlgmr.msra.gmra.mrb[224].mxu0 %vm1381_vm1, %v26378_v42 }
 0x805   : > { %26554 = vst [vmem:[#allocation57_spill] sm:$0xff] %v23955_v50  ;;  %18816 = vmatprep.mubr.msk.f32.mxu0 %vm1381_vm1, %v26556_v0 }
 0x806   : > { %26555 = vst [vmem:[#allocation59_spill] sm:$0xff] %v23958_v30  ;;  %v23966_v32 = vpack.c.bf16 %v23955_v50, %v23958_v30  ;;  %v26560_v30 = vld [vmem:[#allocation75_spill] sm:$0xff]  ;;  %v26561_v50 = vld [vmem:[#allocation77_spill] sm:$0xff] }
 0x808   : > { %20334 = vmatprep.subr.bf16.mxu1 %v23966_v32  ;;  %18817 = vmatmul.mubr.msk.f32.gmra.mrb[226].mxu0 %vm1381_vm1, %v26389_v5 }
 0x809   : > { %20336 = vmatpush3.bf16.msra.mxu1 %v23966_v32  ;;  %18833 = vmatprep.mubr.msk.f32.mxu0 %vm1381_vm1, %v26557_v4  ;;  %v26562_v4 = vld [vmem:[#allocation81_spill] sm:$0xff] }
 0x80a   : > { %v18713_v34 = vpop.f32.mrb[204].mxu0 }
 0x80b   : > { %v23975_v42 = vadd.f32 %v18713_v34, %v23780_v54  ;;  %v8692_v20 = vpop.f32.mrb[205].mxu0  ;;  %v26563_v34 = vld [vmem:[#allocation83_spill] sm:$0xff] }
 0x80c   : > { %v23978_v0 = vadd.f32 %v23780_v54, %v8692_v20  ;;  %18824 = vmatmul.mubr.msk.f32.vlgmr.msra.gmra.mrb[224].mxu1 %vm1381_vm1, %v26560_v30 }
 0x80d   : > { %26558 = vst [vmem:[#allocation40_spill] sm:$0xff] %v23975_v42  ;;  %18826 = vmatprep.mubr.msk.f32.mxu1 %vm1381_vm1, %v26561_v50 }
 0x80e   : > { %26559 = vst [vmem:[#allocation42_spill] sm:$0xff] %v23978_v0  ;;  %v23986_v5 = vpack.c.bf16 %v23975_v42, %v23978_v0  ;;  %v26566_v0 = vld [vmem:[#allocation64_spill] sm:$0xff]  ;;  %v26567_v42 = vld [vmem:[#allocation66_spill] sm:$0xff] }
 0x810   : > { %20338 = vmatprep.subr.bf16.mxu0 %v23986_v5  ;;  %18827 = vmatmul.mubr.msk.f32.gmra.mrb[226].mxu1 %vm1381_vm1, %v26562_v4 }
 0x811   : > { %20340 = vmatpush3.bf16.msra.mxu0 %v23986_v5  ;;  %18843 = vmatprep.mubr.msk.f32.mxu1 %vm1381_vm1, %v26563_v34 }
 0x812   : > { %v18716_v20 = vpop.f32.mrb[206].mxu0 }
 0x813   : > { %v23995_v30 = vadd.f32 %v18716_v20, %v23780_v54  ;;  %v8702_v25 = vpop.f32.mrb[207].mxu0  ;;  %v26570_v20 = vld [vmem:[#allocation86_spill] sm:$0xff] }
 0x814   : > { %v23998_v50 = vadd.f32 %v23780_v54, %v8702_v25  ;;  %18834 = vmatmul.mubr.msk.f32.vlgmr.msra.gmra.mrb[228].mxu0 %vm1381_vm1, %v26566_v0 }
 0x815   : > { %26564 = vst [vmem:[#allocation48_spill] sm:$0xff] %v23995_v30  ;;  %18836 = vmatprep.mubr.msk.f32.mxu0 %vm1381_vm1, %v26567_v42 }
 0x816   : > { %26565 = vst [vmem:[#allocation63_spill] sm:$0xff] %v23998_v50  ;;  %v24006_v4 = vpack.c.bf16 %v23995_v30, %v23998_v50  ;;  %v26571_v50 = vld [vmem:[#allocation89_spill] sm:$0xff] }
 0x818   : > { %20342 = vmatprep.subr.bf16.mxu1 %v24006_v4  ;;  %18837 = vmatmul.mubr.msk.f32.gmra.mrb[230].mxu0 %vm1381_vm1, %v26396_v60 }
 0x819   : > { %20344 = vmatpush3.bf16.msra.mxu1 %v24006_v4  ;;  %18853 = vmatprep.mubr.msk.f32.mxu0 %vm1381_vm1, %v26394_v38  ;;  %v26572_v38 = vld [vmem:[#allocation92_spill] sm:$0xff] }
 0x81a   : > { %v18719_v25 = vpop.f32.mrb[208].mxu0 }
 0x81b   : > { %v24015_v0 = vadd.f32 %v18719_v25, %v23780_v54  ;;  %v8712_v34 = vpop.f32.mrb[209].mxu0  ;;  %v26573_v25 = vld [vmem:[#allocation94_spill] sm:$0xff] }
 0x81c   : > { %v24018_v42 = vadd.f32 %v23780_v54, %v8712_v34  ;;  %18844 = vmatmul.mubr.msk.f32.vlgmr.msra.gmra.mrb[228].mxu1 %vm1381_vm1, %v26570_v20 }
 0x81d   : > { %26568 = vst [vmem:[#allocation65_spill] sm:$0xff] %v24015_v0  ;;  %18846 = vmatprep.mubr.msk.f32.mxu1 %vm1381_vm1, %v26571_v50 }
 0x81e   : > { %26569 = vst [vmem:[#allocation69_spill] sm:$0xff] %v24018_v42  ;;  %v24026_v60 = vpack.c.bf16 %v24015_v0, %v24018_v42 }
 0x820   : > { %20346 = vmatprep.subr.bf16.mxu0 %v24026_v60  ;;  %18847 = vmatmul.mubr.msk.f32.gmra.mrb[230].mxu1 %vm1381_vm1, %v26572_v38 }
 0x821   : > { %20348 = vmatpush3.bf16.msra.mxu0 %v24026_v60  ;;  %18863 = vmatprep.mubr.msk.f32.mxu1 %vm1381_vm1, %v26573_v25  ;;  %v26576_v25 = vld [vmem:[#allocation84_spill] sm:$0xff] }
 0x822   : > { %v18722_v34 = vpop.f32.mrb[210].mxu0 }
 0x823   : > { %v24035_v20 = vadd.f32 %v18722_v34, %v23780_v54  ;;  %v8722_v30 = vpop.f32.mrb[211].mxu0 }
 0x824   : > { %v24038_v50 = vadd.f32 %v23780_v54, %v8722_v30  ;;  %18854 = vmatmul.mubr.msk.f32.vlgmr.msra.gmra.mrb[232].mxu0 %vm1381_vm1, %v26399_v43 }
 0x825   : > { %26574 = vst [vmem:[#allocation71_spill] sm:$0xff] %v24035_v20  ;;  %18856 = vmatprep.mubr.msk.f32.mxu0 %vm1381_vm1, %v26403_v61 }
 0x826   : > { %26575 = vst [vmem:[#allocation54_spill] sm:$0xff] %v24038_v50  ;;  %v24046_v38 = vpack.c.bf16 %v24035_v20, %v24038_v50  ;;  %v26579_v50 = vld [vmem:[#allocation95_spill] sm:$0xff]  ;;  %v26580_v20 = vld [vmem:[#allocation97_spill] sm:$0xff] }
 0x828   : > { %20350 = vmatprep.subr.bf16.mxu1 %v24046_v38  ;;  %18857 = vmatmul.mubr.msk.f32.gmra.mrb[234].mxu0 %vm1381_vm1, %v26407_v26 }
 0x829   : > { %20352 = vmatpush3.bf16.msra.mxu1 %v24046_v38  ;;  %18873 = vmatprep.mubr.msk.f32.mxu0 %vm1381_vm1, %v26576_v25 }
 0x82a   : > { %v18725_v30 = vpop.f32.mrb[212].mxu0 }
 0x82b   : > { %v24055_v43 = vadd.f32 %v18725_v30, %v23780_v54  ;;  %v8732_v34 = vpop.f32.mrb[213].mxu0 }
 0x82c   : > { %v24058_v61 = vadd.f32 %v23780_v54, %v8732_v34  ;;  %18864 = vmatmul.mubr.msk.f32.vlgmr.msra.gmra.mrb[232].mxu1 %vm1381_vm1, %v26579_v50  ;;  %v26583_v34 = vld [vmem:[#allocation88_spill] sm:$0xff] }
 0x82d   : > { %26577 = vst [vmem:[#allocation60_spill] sm:$0xff] %v24055_v43  ;;  %18866 = vmatprep.mubr.msk.f32.mxu1 %vm1381_vm1, %v26580_v20 }
 0x82e   : > { %26578 = vst [vmem:[#allocation75_spill] sm:$0xff] %v24058_v61  ;;  %v24066_v26 = vpack.c.bf16 %v24055_v43, %v24058_v61 }
 0x830   : > { %20354 = vmatprep.subr.bf16.mxu0 %v24066_v26  ;;  %18867 = vmatmul.mubr.msk.f32.gmra.mrb[234].mxu1 %vm1381_vm1, %v26408_v8 }
 0x831   : > { %20356 = vmatpush3.bf16.msra.mxu0 %v24066_v26  ;;  %18883 = vmatprep.mubr.msk.f32.mxu1 %vm1381_vm1, %v26414_v48  ;;  %v26584_v48 = vld [vmem:[#allocation93_spill] sm:$0xff] }
 0x832   : > { %v18728_v25 = vpop.f32.mrb[214].mxu0  ;;  %20362 = vmatprep.subr.bf16.mxu0 %v23790_v27 }
 0x833   : > { %v24076_v50 = vadd.f32 %v18728_v25, %v23780_v54  ;;  %v8742_v20 = vpop.f32.mrb[215].mxu0 }
 0x834   : > { %v24079_v30 = vadd.f32 %v23780_v54, %v8742_v20  ;;  %18874 = vmatmul.mubr.msk.f32.vlgmr.msra.gmra.mrb[236].mxu0 %vm1381_vm1, %v26583_v34  ;;  %v26585_v54 = vld [vmem:[#allocation91_spill] sm:$0xff]  ;;  %v26589_v20 = vld [vmem:[#allocation96_spill] sm:$0xff] }
 0x835   : > { %26581 = vst [vmem:[#allocation77_spill] sm:$0xff] %v24076_v50  ;;  %20364 = vmatpush3.bf16.msra.mxu0 %v23790_v27  ;;  %18876 = vmatprep.mubr.msk.f32.mxu0 %vm1381_vm1, %v26412_v6  ;;  %v26586_v25 = vunpack.c.l.bf16 %v26585_v54  ;;  %v26587_v6 = vunpack.c.h.bf16 %v26585_v54  ;;  %v26588_v27 = vld [vmem:[#allocation104_spill] sm:$0xff]  ;;  %v26590_v34 = vunpack.c.l.bf16 %v26589_v20 }
 0x836   : > { %26582 = vst [vmem:[#allocation81_spill] sm:$0xff] %v24079_v30  ;;  %v24088_v8 = vpack.c.bf16 %v24076_v50, %v24079_v30  ;;  %20370 = vmatprep.subr.bf16.mxu0 %v23826_v55 }
 0x838   : > { %18877 = vmatmul.mubr.msk.f32.gmra.mrb[238].mxu0 %vm1381_vm1, %v26584_v48  ;;  %20358 = vmatprep.subr.bf16.mxu1 %v24088_v8  ;;  %v26594_v48 = vld [vmem:[#allocation98_spill] sm:$0xff] }
 0x839   : > { %20360 = vmatpush3.bf16.msra.mxu1 %v24088_v8  ;;  %18893 = vmatprep.mubr.msk.f32.mxu0 %vm1381_vm1, %v26586_v25  ;;  %v26595_v54 = vunpack.c.l.bf16 %v26594_v48 }
 0x83a   : > { %20366 = vmatprep.subr.bf16.mxu1 %v23806_v31 }
 0x83c   : > { %18884 = vmatmul.mubr.msk.f32.vlgmr.msra.gmra.mrb[236].mxu1 %vm1381_vm1, %v26417_v35  ;;  %18894 = vmatmul.mubr.msk.f32.vlgmr.msra.gmra.mrb[240].mxu0 %vm1381_vm1, %v26587_v6  ;;  %v26591_v35 = vunpack.c.h.bf16 %v26589_v20  ;;  %v26597_v6 = vunpack.c.h.bf16 %v26594_v48  ;;  %v26600_v20 = vld [vmem:[#allocation102_spill] sm:$0xff] }
 0x83d   : > { %20372 = vmatpush3.bf16.msra.mxu0 %v23826_v55  ;;  %20368 = vmatpush3.bf16.msra.mxu1 %v23806_v31  ;;  %v26592_v55 = vld [vmem:[#allocation103_spill] sm:$0xff] }
 0x83e   : > { %20378 = vmatprep.subr.bf16.mxu0 %v23866_v62  ;;  %20374 = vmatprep.subr.bf16.mxu1 %v23846_v10  ;;  %v26593_v31 = vunpack.c.l.bf16 %v26592_v55  ;;  %v26596_v25 = vunpack.c.h.bf16 %v26592_v55 }
 0x83f   : > { %18886 = vmatprep.mubr.msk.f32.mxu1 %vm1381_vm1, %v26588_v27  ;;  %18896 = vmatprep.mubr.msk.f32.mxu0 %vm1381_vm1, %v26590_v34  ;;  %v26601_v34 = vunpack.c.l.bf16 %v26600_v20 }
 0x840   : > { %18887 = vmatmul.mubr.msk.f32.gmra.mrb[238].mxu1 %vm1381_vm1, %v26422_v58  ;;  %18897 = vmatmul.mubr.msk.f32.gmra.mrb[242].mxu0 %vm1381_vm1, %v26591_v35  ;;  %v26598_v58 = vld [vmem:[#allocation107_spill] sm:$0xff] }
 0x841   : > { %18903 = vmatprep.mubr.msk.f32.mxu1 %vm1381_vm1, %v26593_v31  ;;  %18913 = vmatprep.mubr.msk.f32.mxu0 %vm1381_vm1, %v26595_v54  ;;  %v26599_v27 = vunpack.c.l.bf16 %v26598_v58  ;;  %v26602_v35 = vunpack.c.h.bf16 %v26598_v58  ;;  %v26606_v31 = vld [vmem:[#allocation105_spill] sm:$0xff] }
 0x842   : > { %v26607_v48 = vunpack.c.l.bf16 %v26606_v31 }
 0x844   : > { %18904 = vmatmul.mubr.msk.f32.vlgmr.msra.gmra.mrb[240].mxu1 %vm1381_vm1, %v26596_v25  ;;  %18914 = vmatmul.mubr.msk.f32.vlgmr.msra.gmra.mrb[244].mxu0 %vm1381_vm1, %v26597_v6  ;;  %v26609_v25 = vunpack.c.h.bf16 %v26606_v31  ;;  %v26610_v6 = vld [vmem:[#allocation111_spill] sm:$0xff] }
 0x845   : > { %20376 = vmatpush3.bf16.msra.mxu1 %v23846_v10  ;;  %20380 = vmatpush3.bf16.msra.mxu0 %v23866_v62  ;;  %v26603_v10 = vunpack.c.h.bf16 %v26600_v20  ;;  %v26604_v62 = vld [vmem:[#allocation109_spill] sm:$0xff]  ;;  %v26611_v58 = vunpack.c.l.bf16 %v26610_v6 }
 0x846   : > { %20382 = vmatprep.subr.bf16.mxu1 %v23886_v18  ;;  %20386 = vmatprep.subr.bf16.mxu0 %v23906_v57  ;;  %v26605_v55 = vunpack.c.l.bf16 %v26604_v62  ;;  %v26608_v54 = vunpack.c.h.bf16 %v26604_v62 }
 0x847   : > { %18906 = vmatprep.mubr.msk.f32.mxu1 %vm1381_vm1, %v26599_v27  ;;  %18916 = vmatprep.mubr.msk.f32.mxu0 %vm1381_vm1, %v26601_v34  ;;  %v26612_v27 = vld [vmem:[#allocation108_spill] sm:$0xff]  ;;  %v26614_v34 = vunpack.c.h.bf16 %v26610_v6 }
 0x848   : > { %18907 = vmatmul.mubr.msk.f32.gmra.mrb[242].mxu1 %vm1381_vm1, %v26602_v35  ;;  %18917 = vmatmul.mubr.msk.f32.gmra.mrb[246].mxu0 %vm1381_vm1, %v26603_v10  ;;  %v26613_v20 = vunpack.c.l.bf16 %v26612_v27  ;;  %v26618_v10 = vld [vmem:[#allocation110_spill] sm:$0xff] }
 0x849   : > { %18923 = vmatprep.mubr.msk.f32.mxu1 %vm1381_vm1, %v26605_v55  ;;  %18933 = vmatprep.mubr.msk.f32.mxu0 %vm1381_vm1, %v26607_v48  ;;  %v26619_v62 = vunpack.c.l.bf16 %v26618_v10  ;;  %v26621_v31 = vunpack.c.h.bf16 %v26618_v10  ;;  %v26622_v48 = vld [vmem:[#allocation115_spill] sm:$0xff] }
 0x84c   : > { %18924 = vmatmul.mubr.msk.f32.vlgmr.msra.gmra.mrb[244].mxu1 %vm1381_vm1, %v26608_v54  ;;  %18934 = vmatmul.mubr.msk.f32.vlgmr.msra.gmra.mrb[248].mxu0 %vm1381_vm1, %v26609_v25  ;;  %v26623_v54 = vunpack.c.l.bf16 %v26622_v48  ;;  %v26624_v25 = vld [vmem:[#allocation112_spill] sm:$0xff] }
 0x84d   : > { %20384 = vmatpush3.bf16.msra.mxu1 %v23886_v18  ;;  %20388 = vmatpush3.bf16.msra.mxu0 %v23906_v57  ;;  %v26615_v18 = vunpack.c.h.bf16 %v26612_v27  ;;  %v26616_v57 = vld [vmem:[#allocation113_spill] sm:$0xff]  ;;  %v26625_v6 = vunpack.c.l.bf16 %v26624_v25 }
 0x84e   : > { %20390 = vmatprep.subr.bf16.mxu1 %v23926_v44  ;;  %20394 = vmatprep.subr.bf16.mxu0 %v23946_v37  ;;  %v26617_v35 = vunpack.c.l.bf16 %v26616_v57  ;;  %v26620_v55 = vunpack.c.h.bf16 %v26616_v57 }
 0x84f   : > { %18926 = vmatprep.mubr.msk.f32.mxu1 %vm1381_vm1, %v26611_v58  ;;  %18936 = vmatprep.mubr.msk.f32.mxu0 %vm1381_vm1, %v26613_v20  ;;  %v26626_v58 = vunpack.c.h.bf16 %v26622_v48  ;;  %v26630_v20 = vld [vmem:[#allocation114_spill] sm:$0xff] }
 0x850   : > { %18927 = vmatmul.mubr.msk.f32.gmra.mrb[246].mxu1 %vm1381_vm1, %v26614_v34  ;;  %18937 = vmatmul.mubr.msk.f32.gmra.mrb[250].mxu0 %vm1381_vm1, %v26615_v18  ;;  %v26631_v34 = vunpack.c.l.bf16 %v26630_v20  ;;  %v26633_v57 = vunpack.c.h.bf16 %v26630_v20 }
 0x851   : > { %18943 = vmatprep.mubr.msk.f32.mxu1 %vm1381_vm1, %v26617_v35  ;;  %18953 = vmatprep.mubr.msk.f32.mxu0 %vm1381_vm1, %v26619_v62  ;;  %v26634_v35 = vld [vmem:[#allocation119_spill] sm:$0xff]  ;;  %v26636_v62 = vld [vmem:[#allocation116_spill] sm:$0xff] }
 0x852   : > { %v26635_v10 = vunpack.c.l.bf16 %v26634_v35 }
 0x854   : > { %18944 = vmatmul.mubr.msk.f32.vlgmr.msra.gmra.mrb[248].mxu1 %vm1381_vm1, %v26620_v55  ;;  %18954 = vmatmul.mubr.msk.f32.vlgmr.msra.gmra.mrb[252].mxu0 %vm1381_vm1, %v26621_v31  ;;  %v26637_v55 = vunpack.c.l.bf16 %v26636_v62  ;;  %v26638_v31 = vunpack.c.h.bf16 %v26634_v35 }
 0x855   : > { %20392 = vmatpush3.bf16.msra.mxu1 %v23926_v44  ;;  %20396 = vmatpush3.bf16.msra.mxu0 %v23946_v37  ;;  %v26627_v44 = vunpack.c.h.bf16 %v26624_v25  ;;  %v26628_v37 = vld [vmem:[#allocation117_spill] sm:$0xff] }
 0x856   : > { %20398 = vmatprep.subr.bf16.mxu1 %v23966_v32  ;;  %20402 = vmatprep.subr.bf16.mxu0 %v23986_v5  ;;  %v26629_v27 = vunpack.c.l.bf16 %v26628_v37  ;;  %v26632_v18 = vunpack.c.h.bf16 %v26628_v37 }
 0x857   : > { %18946 = vmatprep.mubr.msk.f32.mxu1 %vm1381_vm1, %v26623_v54  ;;  %18956 = vmatprep.mubr.msk.f32.mxu0 %vm1381_vm1, %v26625_v6  ;;  %v26642_v54 = vld [vmem:[#allocation118_spill] sm:$0xff] }
 0x858   : > { %18947 = vmatmul.mubr.msk.f32.gmra.mrb[250].mxu1 %vm1381_vm1, %v26626_v58  ;;  %18957 = vmatmul.mubr.msk.f32.gmra.mrb[254].mxu0 %vm1381_vm1, %v26627_v44  ;;  %v26643_v25 = vunpack.c.l.bf16 %v26642_v54  ;;  %v26645_v58 = vunpack.c.h.bf16 %v26642_v54  ;;  %v26646_v44 = vld [vmem:[#allocation123_spill] sm:$0xff]  ;;  %v26660_v54 = vld [vmem:[#allocation124_spill] sm:$0xff] }
 0x859   : > { %18963 = vmatprep.mubr.msk.f32.mxu1 %vm1381_vm1, %v26629_v27  ;;  %18973 = vmatprep.mubr.msk.f32.mxu0 %vm1381_vm1, %v26631_v34  ;;  %v26647_v37 = vunpack.c.l.bf16 %v26646_v44  ;;  %v26648_v27 = vld [vmem:[#allocation120_spill] sm:$0xff]  ;;  %v26650_v34 = vunpack.c.h.bf16 %v26646_v44  ;;  %v26664_v44 = vld [vmem:[#allocation129_spill] sm:$0xff] }
 0x85a   : > { %v26649_v20 = vunpack.c.l.bf16 %v26648_v27 }
 0x85c   : > { %18964 = vmatmul.mubr.msk.f32.vlgmr.msra.gmra.mrb[252].mxu1 %vm1381_vm1, %v26632_v18  ;;  %18974 = vmatmul.mubr.msk.f32.vlgmr.msra.gmra.mrb[0].mxu0 %vm1381_vm1, %v26633_v57  ;;  %v8227_v18 = vld [vmem:[%s25591_s4 + $0x388] sm:$0xff]  ;;  %v26652_v57 = vld [vmem:[#allocation125_spill] sm:$0xff] }
 0x85d   : > { %20400 = vmatpush3.bf16.msra.mxu1 %v23966_v32  ;;  %20404 = vmatpush3.bf16.msra.mxu0 %v23986_v5  ;;  %v26639_v32 = vunpack.c.h.bf16 %v26636_v62  ;;  %v26640_v5 = vld [vmem:[#allocation121_spill] sm:$0xff]  ;;  %v26653_v35 = vunpack.c.l.bf16 %v26652_v57 }
 0x85e   : > { %20406 = vmatprep.subr.bf16.mxu1 %v24006_v4  ;;  %20410 = vmatprep.subr.bf16.mxu0 %v24026_v60  ;;  %v26641_v48 = vunpack.c.l.bf16 %v26640_v5  ;;  %v26644_v6 = vunpack.c.h.bf16 %v26640_v5  ;;  %v26658_v5 = vld [vmem:[#allocation127_spill] sm:$0xff] }
 0x85f   : > { %18966 = vmatprep.mubr.msk.f32.mxu1 %vm1381_vm1, %v26635_v10  ;;  %18976 = vmatprep.mubr.msk.f32.mxu0 %vm1381_vm1, %v26637_v55  ;;  %v26654_v10 = vld [vmem:[#allocation122_spill] sm:$0xff] }
 0x860   : > { %18967 = vmatmul.mubr.msk.f32.gmra.mrb[254].mxu1 %vm1381_vm1, %v26638_v31  ;;  %18977 = vmatmul.mubr.msk.f32.gmra.mrb[2].mxu0 %vm1381_vm1, %v26639_v32  ;;  %v26655_v62 = vunpack.c.l.bf16 %v26654_v10  ;;  %v26656_v31 = vunpack.c.h.bf16 %v26652_v57  ;;  %v26657_v32 = vunpack.c.h.bf16 %v26654_v10  ;;  %v8231_v57 = vld [vmem:[%s25591_s4 + $0x3a8] sm:$0xff] }
 0x861   : > { %18983 = vmatprep.mubr.msk.f32.mxu1 %vm1381_vm1, %v26641_v48  ;;  %18993 = vmatprep.mubr.msk.f32.mxu0 %vm1381_vm1, %v26643_v25  ;;  %v26659_v48 = vunpack.c.l.bf16 %v26658_v5  ;;  %v26661_v25 = vunpack.c.l.bf16 %v26660_v54 }
 0x864   : > { %18984 = vmatmul.mubr.msk.f32.vlgmr.msra.gmra.mrb[0].mxu1 %vm1381_vm1, %v26644_v6  ;;  %18994 = vmatmul.mubr.msk.f32.vlgmr.msra.gmra.mrb[4].mxu0 %vm1381_vm1, %v26645_v58  ;;  %v26662_v6 = vunpack.c.h.bf16 %v26658_v5  ;;  %v26663_v58 = vunpack.c.h.bf16 %v26660_v54  ;;  %v8233_v54 = vld [vmem:[%s25591_s4 + $0x3b8] sm:$0xff] }
 0x865   : > { %20408 = vmatpush3.bf16.msra.mxu1 %v24006_v4  ;;  %20412 = vmatpush3.bf16.msra.mxu0 %v24026_v60  ;;  %v26651_v4 = vunpack.c.h.bf16 %v26648_v27  ;;  %v8226_v60 = vld [vmem:[%s25591_s4 + $0x380] sm:$0xff]  ;;  %v26666_v27 = vld [vmem:[#allocation126_spill] sm:$0xff] }
 0x866   : > { %20414 = vmatprep.subr.bf16.mxu1 %v24046_v38  ;;  %20418 = vmatprep.subr.bf16.mxu0 %v24066_v26  ;;  %v20425_v55 = vpack.c.bf16 %v8227_v18, %v8226_v60  ;;  %v26669_v60 = vunpack.c.h.bf16 %v26666_v27  ;;  %v8230_v18 = vld [vmem:[%s25591_s4 + $0x3a0] sm:$0xff] }
 0x867   : > { %18986 = vmatprep.mubr.msk.f32.mxu1 %vm1381_vm1, %v26647_v37  ;;  %18996 = vmatprep.mubr.msk.f32.mxu0 %vm1381_vm1, %v26649_v20  ;;  %v26665_v37 = vunpack.c.l.bf16 %v26664_v44  ;;  %v26667_v20 = vunpack.c.l.bf16 %v26666_v27 }
 0x868   : > { %18987 = vmatmul.mubr.msk.f32.gmra.mrb[2].mxu1 %vm1381_vm1, %v26650_v34  ;;  %18997 = vmatmul.mubr.msk.f32.gmra.mrb[6].mxu0 %vm1381_vm1, %v26651_v4  ;;  %v26668_v4 = vunpack.c.h.bf16 %v26664_v44  ;;  %v26679_v44 = vld [vmem:[#allocation132_spill] sm:$0xff] }
 0x869   : > { %19003 = vmatprep.mubr.msk.f32.mxu1 %vm1381_vm1, %v26653_v35  ;;  %19013 = vmatprep.mubr.msk.f32.mxu0 %vm1381_vm1, %v26655_v62  ;;  %v26670_v35 = vld [vmem:[#allocation130_spill] sm:$0xff]  ;;  %v26672_v62 = vld [vmem:[#allocation128_spill] sm:$0xff] }
 0x86a   : > { %v26671_v10 = vunpack.c.l.bf16 %v26670_v35  ;;  %v26674_v5 = vunpack.c.h.bf16 %v26670_v35 }
 0x86c   : > { %19004 = vmatmul.mubr.msk.f32.vlgmr.msra.gmra.mrb[4].mxu1 %vm1381_vm1, %v26656_v31  ;;  %19014 = vmatmul.mubr.msk.f32.vlgmr.msra.gmra.mrb[8].mxu0 %vm1381_vm1, %v26657_v32  ;;  %v26673_v31 = vunpack.c.l.bf16 %v26672_v62  ;;  %v20433_v32 = vpack.c.bf16 %v8231_v57, %v8230_v18  ;;  %v8238_v18 = vld [vmem:[%s25591_s4 + $0x3e0] sm:$0xff]  ;;  %v8239_v57 = vld [vmem:[%s25591_s4 + $0x3e8] sm:$0xff] }
 0x86d   : > { %20416 = vmatpush3.bf16.msra.mxu1 %v24046_v38  ;;  %20420 = vmatpush3.bf16.msra.mxu0 %v24066_v26  ;;  %v8228_v38 = vld [vmem:[%s25591_s4 + $0x390] sm:$0xff]  ;;  %v8229_v26 = vld [vmem:[%s25591_s4 + $0x398] sm:$0xff]  ;;  %v20449_v35 = vpack.c.bf16 %v8239_v57, %v8238_v18 }
 0x86e   : > { %20422 = vmatprep.subr.bf16.mxu1 %v24088_v8  ;;  %19006 = vmatprep.mubr.msk.f32.mxu1 %vm1381_vm1, %v26659_v48  ;;  %v20429_v34 = vpack.c.bf16 %v8229_v26, %v8228_v38  ;;  %v26675_v48 = vunpack.c.h.bf16 %v26672_v62  ;;  %v8234_v38 = vld [vmem:[%s25591_s4 + $0x3c0] sm:$0xff]  ;;  %v8235_v26 = vld [vmem:[%s25591_s4 + $0x3c8] sm:$0xff]  ;;  %v8241_v62 = vld [vmem:[%s25591_s4 + $0x3f8] sm:$0xff] }
 0x86f   : > { %19016 = vmatprep.mubr.msk.f32.mxu0 %vm1381_vm1, %v26661_v25  ;;  %20426 = vmatprep.subr.bf16.mxu0 %v20425_v55  ;;  %v26676_v25 = vld [vmem:[#allocation131_spill] sm:$0xff]  ;;  %v20441_v27 = vpack.c.bf16 %v8235_v26, %v8234_v38 }
 0x870   : > { %19007 = vmatmul.mubr.msk.f32.gmra.mrb[6].mxu1 %vm1381_vm1, %v26662_v6  ;;  %19017 = vmatmul.mubr.msk.f32.gmra.mrb[10].mxu0 %vm1381_vm1, %v26663_v58  ;;  %v26678_v58 = vunpack.c.h.bf16 %v26676_v25 }
 0x871   : > { %19023 = vmatprep.mubr.msk.f32.mxu1 %vm1381_vm1, %v26665_v37  ;;  %19033 = vmatprep.mubr.msk.f32.mxu0 %vm1381_vm1, %v26667_v20  ;;  %v26680_v37 = vunpack.c.l.bf16 %v26679_v44  ;;  %v26681_v20 = vunpack.c.h.bf16 %v26679_v44 }
 0x874   : > { %19024 = vmatmul.mubr.msk.f32.vlgmr.msra.gmra.mrb[8].mxu1 %vm1381_vm1, %v26668_v4  ;;  %19034 = vmatmul.mubr.msk.f32.vlgmr.msra.gmra.mrb[12].mxu0 %vm1381_vm1, %v26669_v60  ;;  %v8237_v4 = vld [vmem:[%s25591_s4 + $0x3d8] sm:$0xff] }
 0x875   : > { %20424 = vmatpush3.bf16.msra.mxu1 %v24088_v8  ;;  %19026 = vmatprep.mubr.msk.f32.mxu1 %vm1381_vm1, %v26671_v10  ;;  %v8232_v8 = vld [vmem:[%s25591_s4 + $0x3b0] sm:$0xff] }
 0x876   : > { %19036 = vmatprep.mubr.msk.f32.mxu0 %vm1381_vm1, %v26673_v31  ;;  %20428 = vmatpush3.bf16.msra.mxu0 %v20425_v55  ;;  %v26677_v55 = vunpack.c.l.bf16 %v26676_v25  ;;  %v20437_v6 = vpack.c.bf16 %v8233_v54, %v8232_v8  ;;  %v8240_v10 = vld [vmem:[%s25591_s4 + $0x3f0] sm:$0xff] }
 0x877   : > { %20430 = vmatprep.subr.bf16.mxu0 %v20429_v34  ;;  %v20453_v31 = vpack.c.bf16 %v8241_v62, %v8240_v10 }
 0x878   : > { %19027 = vmatmul.mubr.msk.f32.gmra.mrb[10].mxu1 %vm1381_vm1, %v26674_v5  ;;  %19037 = vmatmul.mubr.msk.f32.gmra.mrb[14].mxu0 %vm1381_vm1, %v26675_v48 }
 0x879   : > { %19043 = vmatprep.mubr.msk.f32.mxu1 %vm1381_vm1, %v26677_v55 }
 0x87a   : > { %20432 = vmatpush3.bf16.msra.mxu0 %v20429_v34  ;;  %v8236_v34 = vld [vmem:[%s25591_s4 + $0x3d0] sm:$0xff] }
 0x87b   : > { %20434 = vmatprep.subr.bf16.mxu0 %v20433_v32  ;;  %v20445_v60 = vpack.c.bf16 %v8237_v4, %v8236_v34 }
 0x87c   : > { %19044 = vmatmul.mubr.msk.f32.vlgmr.msra.gmra.mrb[12].mxu1 %vm1381_vm1, %v26678_v58 }
 0x87d   : > { %19046 = vmatprep.mubr.msk.f32.mxu1 %vm1381_vm1, %v26680_v37 }
 0x87e   : > { %20436 = vmatpush3.bf16.msra.mxu0 %v20433_v32 }
 0x87f   : > { %20438 = vmatprep.subr.bf16.mxu0 %v20437_v6 }
 0x880   : > { %19047 = vmatmul.mubr.msk.f32.gmra.mrb[14].mxu1 %vm1381_vm1, %v26681_v20 }
 0x882   : > { %20440 = vmatpush3.bf16.msra.mxu0 %v20437_v6 }
 0x883   : > { %20442 = vmatprep.subr.bf16.mxu0 %v20441_v27 }
 0x886   : > { %20444 = vmatpush3.bf16.msra.mxu0 %v20441_v27 }
 0x887   : > { %20446 = vmatprep.subr.bf16.mxu0 %v20445_v60 }
 0x88a   : > { %20448 = vmatpush3.bf16.msra.mxu0 %v20445_v60 }
 0x88b   : > { %20450 = vmatprep.subr.bf16.mxu0 %v20449_v35 }
 0x88e   : > { %20452 = vmatpush3.bf16.msra.mxu0 %v20449_v35 }
 0x88f   : > { %20454 = vmatprep.subr.bf16.mxu0 %v20453_v31 }
 0x892   : > { %20456 = vmatpush3.bf16.msra.mxu0 %v20453_v31 }
 0x893   : > { %20458 = vmatprep.subr.bf16.mxu0 %v20457_v1 }
 0x897   : > { %v24370_v32 = vpop.f32.mrb[200].mxu1 }
 0x898   : > { %v24372_v5 = vpop.f32.mrb[201].mxu1 }
 0x89b   : > { %v24374_v48 = vpop.f32.mrb[202].mxu1 }
 0x89c   : > { %v24376_v8 = vpop.f32.mrb[203].mxu1 }
 0x89f   : > { %v24378_v54 = vpop.f32.mrb[204].mxu1 }
 0x8a0   : > { %v24380_v25 = vpop.f32.mrb[205].mxu1 }
 0x8a3   : > { %v24382_v55 = vpop.f32.mrb[206].mxu1 }
 0x8a4   : > { %v24384_v6 = vpop.f32.mrb[207].mxu1 }
 0x8a7   : > { %v24386_v58 = vpop.f32.mrb[208].mxu1 }
 0x8a8   : > { %v24388_v38 = vpop.f32.mrb[209].mxu1 }
 0x8ab   : > { %v24390_v26 = vpop.f32.mrb[210].mxu1 }
 0x8ac   : > { %v24392_v44 = vpop.f32.mrb[211].mxu1 }
 0x8af   : > { %v24394_v37 = vpop.f32.mrb[212].mxu1 }
 0x8b0   : > { %v24396_v27 = vpop.f32.mrb[213].mxu1 }
 0x8b3   : > { %v24398_v20 = vpop.f32.mrb[214].mxu1 }
 0x8b4   : > { %v24400_v34 = vpop.f32.mrb[215].mxu1 }
 0x8b7   : > { %v24402_v4 = vpop.f32.mrb[216].mxu0 }
 0x8b8   : > { %v24404_v60 = vpop.f32.mrb[217].mxu0 }
 0x8bb   : > { %v24406_v18 = vpop.f32.mrb[218].mxu0 }
 0x8bc   : > { %v24408_v57 = vpop.f32.mrb[219].mxu0 }
 0x8bf   : > { %v24410_v35 = vpop.f32.mrb[216].mxu1 }
 0x8c0   : > { %v24412_v10 = vpop.f32.mrb[217].mxu1 }
 0x8c3   : > { %v24414_v62 = vpop.f32.mrb[218].mxu1 }
 0x8c4   : > { %v24416_v31 = vpop.f32.mrb[219].mxu1 }
 0x8c7   : > { %v24418_v30 = vpop.f32.mrb[220].mxu0 }
 0x8c8   : > { %v24420_v50 = vpop.f32.mrb[221].mxu0 }
 0x8cb   : > { %v24422_v61 = vpop.f32.mrb[222].mxu0 }
 0x8cc   : > { %26682 = vst [vmem:[#allocation83_spill] sm:$0xff] %v24422_v61  ;;  %v24424_v43 = vpop.f32.mrb[223].mxu0 }
 0x8cf   : > { %v24426_v42 = vpop.f32.mrb[220].mxu1 }
 0x8d0   : > { %26683 = vst [vmem:[#allocation64_spill] sm:$0xff] %v24426_v42  ;;  %v24428_v0 = vpop.f32.mrb[221].mxu1 }
 0x8d1   : > { %26684 = vst [vmem:[#allocation66_spill] sm:$0xff] %v24428_v0 }
 0x8d3   : > { %v24430_v51 = vpop.f32.mrb[222].mxu1 }
 0x8d4   : > { %26685 = vst [vmem:[#allocation86_spill] sm:$0xff] %v24430_v51  ;;  %v24432_v33 = vpop.f32.mrb[223].mxu1 }
 0x8d5   : > { %26686 = vst [vmem:[#allocation89_spill] sm:$0xff] %v24432_v33 }
 0x8d7   : > { %v24434_v21 = vpop.f32.mrb[224].mxu0 }
 0x8d8   : > { %26687 = vst [vmem:[#allocation92_spill] sm:$0xff] %v24434_v21  ;;  %v24436_v39 = vpop.f32.mrb[225].mxu0 }
 0x8d9   : > { %26688 = vst [vmem:[#allocation94_spill] sm:$0xff] %v24436_v39 }
 0x8db   : > { %v24438_v41 = vpop.f32.mrb[226].mxu0 }
 0x8dc   : > { %26689 = vst [vmem:[#allocation84_spill] sm:$0xff] %v24438_v41  ;;  %v24440_v29 = vpop.f32.mrb[227].mxu0 }
 0x8dd   : > { %26690 = vst [vmem:[#allocation95_spill] sm:$0xff] %v24440_v29 }
 0x8df   : > { %v24442_v9 = vpop.f32.mrb[224].mxu1 }
 0x8e0   : > { %26691 = vst [vmem:[#allocation97_spill] sm:$0xff] %v24442_v9  ;;  %v24444_v59 = vpop.f32.mrb[225].mxu1 }
 0x8e1   : > { %26692 = vst [vmem:[#allocation88_spill] sm:$0xff] %v24444_v59 }
 0x8e3   : > { %v24446_v11 = vpop.f32.mrb[226].mxu1 }
 0x8e4   : > { %26693 = vst [vmem:[#allocation93_spill] sm:$0xff] %v24446_v11  ;;  %v24448_v19 = vpop.f32.mrb[227].mxu1 }
 0x8e5   : > { %26694 = vst [vmem:[#allocation91_spill] sm:$0xff] %v24448_v19 }
 0x8e7   : > { %v24450_v63 = vpop.f32.mrb[228].mxu0 }
 0x8e8   : > { %26695 = vst [vmem:[#allocation104_spill] sm:$0xff] %v24450_v63  ;;  %v24452_v14 = vpop.f32.mrb[229].mxu0 }
 0x8e9   : > { %26696 = vst [vmem:[#allocation96_spill] sm:$0xff] %v24452_v14 }
 0x8eb   : > { %v24454_v56 = vpop.f32.mrb[230].mxu0 }
 0x8ec   : > { %26697 = vst [vmem:[#allocation103_spill] sm:$0xff] %v24454_v56  ;;  %v24456_v36 = vpop.f32.mrb[231].mxu0 }
 0x8ed   : > { %26698 = vst [vmem:[#allocation98_spill] sm:$0xff] %v24456_v36 }
 0x8ef   : > { %v24458_v49 = vpop.f32.mrb[228].mxu1 }
 0x8f0   : > { %26699 = vst [vmem:[#allocation107_spill] sm:$0xff] %v24458_v49  ;;  %v24460_v52 = vpop.f32.mrb[229].mxu1 }
 0x8f1   : > { %26700 = vst [vmem:[#allocation102_spill] sm:$0xff] %v24460_v52 }
 0x8f3   : > { %v24468_v15 = vpop.f32.mrb[230].mxu1 }
 0x8f4   : > { %26701 = vst [vmem:[#allocation109_spill] sm:$0xff] %v24468_v15  ;;  %v24470_v46 = vpop.f32.mrb[231].mxu1 }
 0x8f5   : > { %26702 = vst [vmem:[#allocation105_spill] sm:$0xff] %v24470_v46 }
 0x8f7   : > { %v24472_v17 = vpop.f32.mrb[232].mxu0 }
 0x8f8   : > { %26703 = vst [vmem:[#allocation111_spill] sm:$0xff] %v24472_v17  ;;  %v24474_v40 = vpop.f32.mrb[233].mxu0 }
 0x8f9   : > { %26704 = vst [vmem:[#allocation108_spill] sm:$0xff] %v24474_v40 }
 0x8fb   : > { %v24476_v28 = vpop.f32.mrb[234].mxu0 }
 0x8fc   : > { %26705 = vst [vmem:[#allocation113_spill] sm:$0xff] %v24476_v28  ;;  %v24478_v24 = vpop.f32.mrb[235].mxu0 }
 0x8fd   : > { %26706 = vst [vmem:[#allocation110_spill] sm:$0xff] %v24478_v24 }
 0x8ff   : > { %v24480_v45 = vpop.f32.mrb[232].mxu1 }
 0x900   : > { %26707 = vst [vmem:[#allocation115_spill] sm:$0xff] %v24480_v45  ;;  %v24482_v53 = vpop.f32.mrb[233].mxu1  ;;  %v20461_v45 = vpack.c.bf16 %v8213_v13, %v8212_v22  ;;  %v8216_v13 = vld [vmem:[%s25591_s4 + $0x330] sm:$0xff]  ;;  %v8217_v22 = vld [vmem:[%s25591_s4 + $0x338] sm:$0xff] }
 0x901   : > { %26708 = vst [vmem:[#allocation112_spill] sm:$0xff] %v24482_v53 }
 0x903   : > { %v24484_v3 = vpop.f32.mrb[234].mxu1 }
 0x904   : > { %26709 = vst [vmem:[#allocation117_spill] sm:$0xff] %v24484_v3  ;;  %v24486_v16 = vpop.f32.mrb[235].mxu1 }
 0x905   : > { %26710 = vst [vmem:[#allocation114_spill] sm:$0xff] %v24486_v16 }
 0x907   : > { %v24488_v12 = vpop.f32.mrb[236].mxu0 }
 0x908   : > { %26711 = vst [vmem:[#allocation119_spill] sm:$0xff] %v24488_v12  ;;  %v24490_v47 = vpop.f32.mrb[237].mxu0 }
 0x909   : > { %26712 = vst [vmem:[#allocation116_spill] sm:$0xff] %v24490_v47 }
 0x90b   : > { %v24492_v23 = vpop.f32.mrb[238].mxu0 }
 0x90c   : > { %26713 = vst [vmem:[#allocation121_spill] sm:$0xff] %v24492_v23  ;;  %v24494_v2 = vpop.f32.mrb[239].mxu0  ;;  %v8214_v23 = vld [vmem:[%s25591_s4 + $0x320] sm:$0xff] }
 0x90d   : > { %26714 = vst [vmem:[#allocation118_spill] sm:$0xff] %v24494_v2  ;;  %v8215_v2 = vld [vmem:[%s25591_s4 + $0x328] sm:$0xff] }
 0x90f   : > { %v24502_v7 = vpop.f32.mrb[236].mxu1  ;;  %v18895_v3 = vpop.f32.mrb[240].mxu0 }
 0x910   : > { %26715 = vst [vmem:[#allocation123_spill] sm:$0xff] %v24502_v7  ;;  %v24504_v16 = vpop.f32.mrb[237].mxu1  ;;  %v10177_v12 = vpop.f32.mrb[241].mxu0 }
 0x911   : > { %26716 = vst [vmem:[#allocation120_spill] sm:$0xff] %v24504_v16  ;;  %19081 = vmatprep.mubr.f32.mxu0 %v10177_v12  ;;  %v20465_v16 = vpack.c.bf16 %v8215_v2, %v8214_v23  ;;  %v8218_v2 = vld [vmem:[%s25591_s4 + $0x340] sm:$0xff]  ;;  %v8219_v23 = vld [vmem:[%s25591_s4 + $0x348] sm:$0xff] }
 0x912   : > { %19082 = vmatmul.mubr.f32.vlgmr.msra.gmra.mrb[16].mxu0 %v18895_v3 }
 0x913   : > { %v24512_v47 = vpop.f32.mrb[238].mxu1  ;;  %v18898_v53 = vpop.f32.mrb[242].mxu0  ;;  %20460 = vmatpush3.bf16.msra.mxu0 %v20457_v1 }
 0x914   : > { %26717 = vst [vmem:[#allocation125_spill] sm:$0xff] %v24512_v47  ;;  %v24514_v7 = vpop.f32.mrb[239].mxu1  ;;  %v10187_v28 = vpop.f32.mrb[243].mxu0  ;;  %20462 = vmatprep.subr.bf16.mxu0 %v20461_v45 }
 0x915   : > { %26718 = vst [vmem:[#allocation122_spill] sm:$0xff] %v24514_v7  ;;  %19084 = vmatprep.mubr.f32.mxu0 %v10187_v28  ;;  %v20469_v7 = vpack.c.bf16 %v8217_v22, %v8216_v13  ;;  %v8221_v13 = vld [vmem:[%s25591_s4 + $0x358] sm:$0xff] }
 0x916   : > { %19085 = vmatmul.mubr.f32.gmra.mrb[18].mxu0 %v18898_v53 }
 0x917   : > { %v18905_v3 = vpop.f32.mrb[240].mxu1  ;;  %v18915_v12 = vpop.f32.mrb[244].mxu0  ;;  %20464 = vmatpush3.bf16.msra.mxu0 %v20461_v45  ;;  %v20473_v45 = vpack.c.bf16 %v8219_v23, %v8218_v2  ;;  %v8222_v2 = vld [vmem:[%s25591_s4 + $0x360] sm:$0xff]  ;;  %v8223_v23 = vld [vmem:[%s25591_s4 + $0x368] sm:$0xff] }
 0x918   : > { %v10262_v47 = vpop.f32.mrb[241].mxu1  ;;  %v10347_v1 = vpop.f32.mrb[245].mxu0  ;;  %20466 = vmatprep.subr.bf16.mxu0 %v20465_v16 }
 0x919   : > { %19087 = vmatprep.mubr.f32.mxu0 %v10262_v47  ;;  %v8220_v47 = vld [vmem:[%s25591_s4 + $0x350] sm:$0xff] }
 0x91a   : > { %19088 = vmatmul.mubr.f32.gmra.mrb[20].mxu0 %v18905_v3  ;;  %v20477_v15 = vpack.c.bf16 %v8221_v13, %v8220_v47  ;;  %v8224_v47 = vld [vmem:[%s25591_s4 + $0x370] sm:$0xff]  ;;  %v8225_v13 = vld [vmem:[%s25591_s4 + $0x378] sm:$0xff] }
 0x91b   : > { %v18908_v28 = vpop.f32.mrb[242].mxu1  ;;  %v18918_v24 = vpop.f32.mrb[246].mxu0  ;;  %20468 = vmatpush3.bf16.msra.mxu0 %v20465_v16 }
 0x91c   : > { %v10272_v53 = vpop.f32.mrb[243].mxu1  ;;  %v10357_v17 = vpop.f32.mrb[247].mxu0  ;;  %20470 = vmatprep.subr.bf16.mxu0 %v20469_v7 }
 0x91d   : > { %19090 = vmatprep.mubr.f32.mxu0 %v10272_v53 }
 0x91e   : > { %19091 = vmatmul.mubr.f32.gmra.mrb[22].mxu0 %v18908_v28 }
 0x91f   : > { %19093 = vmatprep.mubr.f32.mxu0 %v10347_v1  ;;  %v18925_v22 = vpop.f32.mrb[244].mxu1  ;;  %v18935_v3 = vpop.f32.mrb[248].mxu0  ;;  %20472 = vmatpush3.bf16.msra.mxu0 %v20469_v7  ;;  %v20481_v7 = vpack.c.bf16 %v8223_v23, %v8222_v2 }
 0x920   : > { %v10432_v40 = vpop.f32.mrb[245].mxu1  ;;  %v10517_v16 = vpop.f32.mrb[249].mxu0  ;;  %20474 = vmatprep.subr.bf16.mxu0 %v20473_v45 }
 0x922   : > { %19094 = vmatmul.mubr.f32.gmra.mrb[24].mxu0 %v18915_v12 }
 0x923   : > { %19096 = vmatprep.mubr.f32.mxu0 %v10357_v17  ;;  %v18928_v53 = vpop.f32.mrb[246].mxu1  ;;  %v18938_v28 = vpop.f32.mrb[250].mxu0  ;;  %20476 = vmatpush3.bf16.msra.mxu0 %v20473_v45  ;;  %v20485_v45 = vpack.c.bf16 %v8225_v13, %v8224_v47 }
 0x924   : > { %v10442_v1 = vpop.f32.mrb[247].mxu1  ;;  %v10527_v46 = vpop.f32.mrb[251].mxu0  ;;  %20478 = vmatprep.subr.bf16.mxu0 %v20477_v15 }
 0x926   : > { %19097 = vmatmul.mubr.f32.gmra.mrb[26].mxu0 %v18918_v24 }
 0x927   : > { %19099 = vmatprep.mubr.f32.mxu0 %v10432_v40  ;;  %v18945_v49 = vpop.f32.mrb[248].mxu1  ;;  %v18955_v12 = vpop.f32.mrb[252].mxu0  ;;  %20480 = vmatpush3.bf16.msra.mxu0 %v20477_v15 }
 0x928   : > { %v10602_v17 = vpop.f32.mrb[249].mxu1  ;;  %v10687_v52 = vpop.f32.mrb[253].mxu0  ;;  %20482 = vmatprep.subr.bf16.mxu0 %v20481_v7 }
 0x92a   : > { %19100 = vmatmul.mubr.f32.gmra.mrb[28].mxu0 %v18925_v22 }
 0x92b   : > { %19102 = vmatprep.mubr.f32.mxu0 %v10442_v1  ;;  %v18948_v2 = vpop.f32.mrb[250].mxu1  ;;  %v18958_v23 = vpop.f32.mrb[254].mxu0  ;;  %20484 = vmatpush3.bf16.msra.mxu0 %v20481_v7 }
 0x92c   : > { %v10612_v56 = vpop.f32.mrb[251].mxu1  ;;  %v10697_v36 = vpop.f32.mrb[255].mxu0  ;;  %20486 = vmatprep.subr.bf16.mxu0 %v20485_v45 }
 0x92e   : > { %19103 = vmatmul.mubr.f32.gmra.mrb[30].mxu0 %v18928_v53 }
 0x92f   : > { %19105 = vmatprep.mubr.f32.mxu0 %v10517_v16  ;;  %v18965_v63 = vpop.f32.mrb[252].mxu1  ;;  %v18975_v24 = vpop.f32.mrb[0].mxu0  ;;  %20488 = vmatpush3.bf16.msra.mxu0 %v20485_v45 }
 0x930   : > { %v10772_v40 = vpop.f32.mrb[253].mxu1  ;;  %v10857_v14 = vpop.f32.mrb[1].mxu0 }
 0x932   : > { %19106 = vmatmul.mubr.f32.gmra.mrb[32].mxu0 %v18935_v3 }
 0x933   : > { %19108 = vmatprep.mubr.f32.mxu0 %v10527_v46  ;;  %v18968_v15 = vpop.f32.mrb[254].mxu1  ;;  %v18978_v11 = vpop.f32.mrb[2].mxu0 }
 0x934   : > { %v10782_v47 = vpop.f32.mrb[255].mxu1  ;;  %v10867_v22 = vpop.f32.mrb[3].mxu0 }
 0x936   : > { %19109 = vmatmul.mubr.f32.gmra.mrb[34].mxu0 %v18938_v28 }
 0x937   : > { %19111 = vmatprep.mubr.f32.mxu0 %v10602_v17  ;;  %v18985_v1 = vpop.f32.mrb[0].mxu1  ;;  %v18995_v7 = vpop.f32.mrb[4].mxu0 }
 0x938   : > { %v10942_v13 = vpop.f32.mrb[1].mxu1  ;;  %v11027_v19 = vpop.f32.mrb[5].mxu0 }
 0x93a   : > { %19112 = vmatmul.mubr.f32.gmra.mrb[36].mxu0 %v18945_v49 }
 0x93b   : > { %19114 = vmatprep.mubr.f32.mxu0 %v10612_v56  ;;  %v18988_v16 = vpop.f32.mrb[2].mxu1  ;;  %v18998_v53 = vpop.f32.mrb[6].mxu0 }
 0x93c   : > { %v10952_v9 = vpop.f32.mrb[3].mxu1  ;;  %v11037_v45 = vpop.f32.mrb[7].mxu0 }
 0x93e   : > { %19115 = vmatmul.mubr.f32.gmra.mrb[38].mxu0 %v18948_v2 }
 0x93f   : > { %19117 = vmatprep.mubr.f32.mxu0 %v10687_v52  ;;  %v19005_v3 = vpop.f32.mrb[4].mxu1  ;;  %v19015_v46 = vpop.f32.mrb[8].mxu0 }
 0x940   : > { %v11112_v59 = vpop.f32.mrb[5].mxu1  ;;  %v11197_v41 = vpop.f32.mrb[9].mxu0 }
 0x942   : > { %19118 = vmatmul.mubr.f32.gmra.mrb[40].mxu0 %v18955_v12 }
 0x943   : > { %19120 = vmatprep.mubr.f32.mxu0 %v10697_v36  ;;  %v19008_v28 = vpop.f32.mrb[6].mxu1  ;;  %v19018_v17 = vpop.f32.mrb[10].mxu0 }
 0x944   : > { %v11122_v29 = vpop.f32.mrb[7].mxu1  ;;  %v11207_v21 = vpop.f32.mrb[11].mxu0 }
 0x946   : > { %19121 = vmatmul.mubr.f32.gmra.mrb[42].mxu0 %v18958_v23 }
 0x947   : > { %19123 = vmatprep.mubr.f32.mxu0 %v10772_v40  ;;  %v19025_v49 = vpop.f32.mrb[8].mxu1  ;;  %v19035_v56 = vpop.f32.mrb[12].mxu0  ;;  %v26739_v40 = vld [vmem:[#allocation109_spill] sm:$0xff] }
 0x948   : > { %v11282_v39 = vpop.f32.mrb[9].mxu1  ;;  %v11367_v51 = vpop.f32.mrb[13].mxu0 }
 0x94a   : > { %19124 = vmatmul.mubr.f32.gmra.mrb[44].mxu0 %v18965_v63 }
 0x94b   : > { %19126 = vmatprep.mubr.f32.mxu0 %v10782_v47  ;;  %v19028_v2 = vpop.f32.mrb[10].mxu1  ;;  %v19038_v52 = vpop.f32.mrb[14].mxu0  ;;  %v26741_v47 = vld [vmem:[#allocation111_spill] sm:$0xff] }
 0x94c   : > { %v11292_v33 = vpop.f32.mrb[11].mxu1  ;;  %v11377_v42 = vpop.f32.mrb[15].mxu0 }
 0x94e   : > { %19127 = vmatmul.mubr.f32.gmra.mrb[46].mxu0 %v18968_v15  ;;  %v26740_v15 = vld [vmem:[#allocation108_spill] sm:$0xff] }
 0x94f   : > { %19129 = vmatprep.mubr.f32.mxu0 %v10857_v14  ;;  %v19045_v12 = vpop.f32.mrb[12].mxu1  ;;  %v8246_v14 = vld [vmem:[%s25591_s4 + $0x410] sm:$0xff] }
 0x950   : > { %v11452_v36 = vpop.f32.mrb[13].mxu1 }
 0x952   : > { %19130 = vmatmul.mubr.f32.gmra.mrb[48].mxu0 %v18975_v24  ;;  %v26738_v24 = vld [vmem:[#allocation105_spill] sm:$0xff] }
 0x953   : > { %19132 = vmatprep.mubr.f32.mxu0 %v10867_v22  ;;  %v19048_v0 = vpop.f32.mrb[14].mxu1  ;;  %v26742_v22 = vld [vmem:[#allocation110_spill] sm:$0xff] }
 0x954   : > { %v11462_v61 = vpop.f32.mrb[15].mxu1 }
 0x956   : > { %19133 = vmatmul.mubr.f32.gmra.mrb[50].mxu0 %v18978_v11  ;;  %v8244_v11 = vld [vmem:[%s25591_s4 + $0x400] sm:$0xff] }
 0x957   : > { %19135 = vmatprep.mubr.f32.mxu0 %v10942_v13  ;;  %v26745_v13 = vld [vmem:[#allocation115_spill] sm:$0xff] }
 0x95a   : > { %19136 = vmatmul.mubr.f32.gmra.mrb[52].mxu0 %v18985_v1  ;;  %v26743_v1 = vld [vmem:[#allocation113_spill] sm:$0xff] }
 0x95b   : > { %19138 = vmatprep.mubr.f32.mxu0 %v10952_v9 }
 0x95e   : > { %19139 = vmatmul.mubr.f32.gmra.mrb[54].mxu0 %v18988_v16  ;;  %v26746_v16 = vld [vmem:[#allocation114_spill] sm:$0xff] }
 0x95f   : > { %19141 = vmatprep.mubr.f32.mxu0 %v11027_v19  ;;  %v8245_v19 = vld [vmem:[%s25591_s4 + $0x408] sm:$0xff] }
 0x960   : > { %v20489_v63 = vpack.c.bf16 %v8245_v19, %v8244_v11  ;;  %v26757_v11 = vld [vmem:[#allocation134_spill] sm:$0xff] }
 0x962   : > { %19142 = vmatmul.mubr.f32.gmra.mrb[56].mxu0 %v18995_v7  ;;  %20490 = vmatprep.subr.bf16.mxu1 %v20489_v63  ;;  %v26744_v7 = vld [vmem:[#allocation112_spill] sm:$0xff] }
 0x963   : > { %19144 = vmatprep.mubr.f32.mxu0 %v11037_v45  ;;  %20492 = vmatpush3.bf16.msra.mxu1 %v20489_v63  ;;  %v26748_v45 = vld [vmem:[#allocation116_spill] sm:$0xff] }
 0x966   : > { %19145 = vmatmul.mubr.f32.gmra.mrb[58].mxu0 %v18998_v53  ;;  %v26747_v53 = vld [vmem:[#allocation117_spill] sm:$0xff] }
 0x967   : > { %19147 = vmatprep.mubr.f32.mxu0 %v11112_v59  ;;  %v8247_v59 = vld [vmem:[%s25591_s4 + $0x418] sm:$0xff] }
 0x968   : > { %v20493_v9 = vpack.c.bf16 %v8247_v59, %v8246_v14  ;;  %v24670_v14 = vld [vmem:[%s25592_s5 + $0xa] ss:$0 sm:$0xff] }
 0x96a   : > { %19148 = vmatmul.mubr.f32.gmra.mrb[60].mxu0 %v19005_v3  ;;  %20494 = vmatprep.subr.bf16.mxu1 %v20493_v9  ;;  %v26749_v3 = vld [vmem:[#allocation119_spill] sm:$0xff] }
 0x96b   : > { %19150 = vmatprep.mubr.f32.mxu0 %v11122_v29  ;;  %v8248_v29 = vld [vmem:[%s25591_s4 + $0x420] sm:$0xff]  ;;  %20496 = vmatpush3.bf16.msra.mxu1 %v20493_v9 }
 0x96e   : > { %19151 = vmatmul.mubr.f32.gmra.mrb[62].mxu0 %v19008_v28  ;;  %v26751_v28 = vld [vmem:[#allocation121_spill] sm:$0xff] }
 0x96f   : > { %19153 = vmatprep.mubr.f32.mxu0 %v11197_v41  ;;  %v8249_v41 = vld [vmem:[%s25591_s4 + $0x428] sm:$0xff] }
 0x972   : > { %19154 = vmatmul.mubr.f32.gmra.mrb[64].mxu0 %v19015_v46  ;;  %v26750_v46 = vld [vmem:[#allocation118_spill] sm:$0xff] }
 0x973   : > { %19156 = vmatprep.mubr.f32.mxu0 %v11207_v21  ;;  %v8250_v21 = vld [vmem:[%s25591_s4 + $0x430] sm:$0xff] }
 0x976   : > { %19157 = vmatmul.mubr.f32.gmra.mrb[66].mxu0 %v19018_v17  ;;  %v26752_v17 = vld [vmem:[#allocation120_spill] sm:$0xff] }
 0x977   : > { %19159 = vmatprep.mubr.f32.mxu0 %v11282_v39  ;;  %v20497_v39 = vpack.c.bf16 %v8249_v41, %v8248_v29  ;;  %v26758_v41 = vld [vmem:[#allocation143_spill] sm:$0xff] }
 0x979   : > { %20498 = vmatprep.subr.bf16.mxu1 %v20497_v39 }
 0x97a   : > { %19160 = vmatmul.mubr.f32.gmra.mrb[68].mxu0 %v19025_v49  ;;  %20500 = vmatpush3.bf16.msra.mxu1 %v20497_v39  ;;  %v26753_v49 = vld [vmem:[#allocation123_spill] sm:$0xff] }
 0x97b   : > { %19162 = vmatprep.mubr.f32.mxu0 %v11292_v33  ;;  %v8251_v33 = vld [vmem:[%s25591_s4 + $0x438] sm:$0xff] }
 0x97e   : > { %19163 = vmatmul.mubr.f32.gmra.mrb[70].mxu0 %v19028_v2  ;;  %v26755_v2 = vld [vmem:[#allocation125_spill] sm:$0xff] }
 0x97f   : > { %19165 = vmatprep.mubr.f32.mxu0 %v11367_v51  ;;  %v20501_v51 = vpack.c.bf16 %v8251_v33, %v8250_v21  ;;  %v26759_v33 = vld [vmem:[#allocation139_spill] sm:$0xff] }
 0x981   : > { %20502 = vmatprep.subr.bf16.mxu1 %v20501_v51 }
 0x982   : > { %19166 = vmatmul.mubr.f32.gmra.mrb[72].mxu0 %v19035_v56  ;;  %20504 = vmatpush3.bf16.msra.mxu1 %v20501_v51  ;;  %v26754_v56 = vld [vmem:[#allocation122_spill] sm:$0xff] }
 0x983   : > { %19168 = vmatprep.mubr.f32.mxu0 %v11377_v42  ;;  %v8253_v42 = vld [vmem:[%s25591_s4 + $0x448] sm:$0xff] }
 0x986   : > { %19169 = vmatmul.mubr.f32.gmra.mrb[74].mxu0 %v19038_v52  ;;  %v24661_v52 = vld [vmem:[%s25592_s5 + $0x9] ss:$0 sm:$0xff] }
 0x987   : > { %19171 = vmatprep.mubr.f32.mxu0 %v11452_v36  ;;  %v12245_v19 = vmul.f32 %v24661_v52, %v26757_v11  ;;  %v12248_v39 = vmul.f32 %v24661_v52, %v26758_v41  ;;  %v12247_v51 = vmul.f32 %v24661_v52, %v26759_v33 }
 0x98a   : > { %19172 = vmatmul.mubr.f32.gmra.mrb[76].mxu0 %v19045_v12  ;;  %v26756_v12 = vld [vmem:[#allocation133_spill] sm:$0xff] }
 0x98b   : > { %19174 = vmatprep.mubr.f32.mxu0 %v11462_v61  ;;  %v12246_v36 = vmul.f32 %v24661_v52, %v26756_v12 }
 0x98e   : > { %19175 = vmatmul.mubr.f32.gmra.mrb[78].mxu0 %v19048_v0  ;;  %v8252_v0 = vld [vmem:[%s25591_s4 + $0x440] sm:$0xff] }
 0x98f   : > { %19209 = vmatprep.mubr.f32.mxu0 %v24372_v5  ;;  %v20505_v61 = vpack.c.bf16 %v8253_v42, %v8252_v0  ;;  %v8255_v5 = vld [vmem:[%s25591_s4 + $0x458] sm:$0xff] }
 0x991   : > { %20506 = vmatprep.subr.bf16.mxu1 %v20505_v61 }
 0x992   : > { %19210 = vmatmul.mubr.f32.vlgmr.msra.gmra.mrb[16].mxu0 %v24370_v32  ;;  %v8254_v32 = vld [vmem:[%s25591_s4 + $0x450] sm:$0xff]  ;;  %20508 = vmatpush3.bf16.msra.mxu1 %v20505_v61 }
 0x993   : > { %19212 = vmatprep.mubr.f32.mxu0 %v24376_v8  ;;  %v26719_v8 = vld [vmem:[#allocation83_spill] sm:$0xff] }
 0x996   : > { %19213 = vmatmul.mubr.f32.gmra.mrb[18].mxu0 %v24374_v48  ;;  %v20509_v48 = vpack.c.bf16 %v8255_v5, %v8254_v32 }
 0x997   : > { %19215 = vmatprep.mubr.f32.mxu0 %v24380_v25  ;;  %v26721_v25 = vld [vmem:[#allocation64_spill] sm:$0xff] }
 0x998   : > { %20510 = vmatprep.subr.bf16.mxu1 %v20509_v48 }
 0x999   : > { %20512 = vmatpush3.bf16.msra.mxu1 %v20509_v48 }
 0x99a   : > { %19216 = vmatmul.mubr.f32.gmra.mrb[20].mxu0 %v24378_v54  ;;  %v26720_v54 = vld [vmem:[#allocation66_spill] sm:$0xff] }
 0x99b   : > { %19218 = vmatprep.mubr.f32.mxu0 %v24384_v6  ;;  %v26723_v6 = vld [vmem:[#allocation86_spill] sm:$0xff] }
 0x99e   : > { %19219 = vmatmul.mubr.f32.gmra.mrb[22].mxu0 %v24382_v55  ;;  %v26722_v55 = vld [vmem:[#allocation89_spill] sm:$0xff] }
 0x99f   : > { %19221 = vmatprep.mubr.f32.mxu0 %v24388_v38  ;;  %v26725_v38 = vld [vmem:[#allocation92_spill] sm:$0xff] }
 0x9a2   : > { %19222 = vmatmul.mubr.f32.gmra.mrb[24].mxu0 %v24386_v58  ;;  %v26724_v58 = vld [vmem:[#allocation94_spill] sm:$0xff] }
 0x9a3   : > { %19224 = vmatprep.mubr.f32.mxu0 %v24392_v44  ;;  %v26730_v44 = vld [vmem:[#allocation91_spill] sm:$0xff] }
 0x9a6   : > { %19225 = vmatmul.mubr.f32.gmra.mrb[26].mxu0 %v24390_v26  ;;  %v26726_v26 = vld [vmem:[#allocation95_spill] sm:$0xff] }
 0x9a7   : > { %19227 = vmatprep.mubr.f32.mxu0 %v24396_v27  ;;  %v26732_v27 = vld [vmem:[#allocation96_spill] sm:$0xff] }
 0x9aa   : > { %19228 = vmatmul.mubr.f32.gmra.mrb[28].mxu0 %v24394_v37  ;;  %v26731_v37 = vld [vmem:[#allocation93_spill] sm:$0xff] }
 0x9ab   : > { %19230 = vmatprep.mubr.f32.mxu0 %v24400_v34  ;;  %v26734_v34 = vld [vmem:[#allocation98_spill] sm:$0xff] }
 0x9ae   : > { %19231 = vmatmul.mubr.f32.gmra.mrb[30].mxu0 %v24398_v20  ;;  %v26733_v20 = vld [vmem:[#allocation104_spill] sm:$0xff] }
 0x9af   : > { %19233 = vmatprep.mubr.f32.mxu0 %v24404_v60  ;;  %v8257_v60 = vld [vmem:[%s25591_s4 + $0x468] sm:$0xff] }
 0x9b2   : > { %19234 = vmatmul.mubr.f32.gmra.mrb[32].mxu0 %v24402_v4  ;;  %v8256_v4 = vld [vmem:[%s25591_s4 + $0x460] sm:$0xff] }
 0x9b3   : > { %19236 = vmatprep.mubr.f32.mxu0 %v24408_v57  ;;  %v20513_v57 = vpack.c.bf16 %v8257_v60, %v8256_v4  ;;  %v26763_v4 = vld [vmem:[#allocation144_spill] sm:$0xff] }
 0x9b4   : > { %v12251_v60 = vmul.f32 %v24661_v52, %v26763_v4 }
 0x9b5   : > { %20514 = vmatprep.subr.bf16.mxu1 %v20513_v57 }
 0x9b6   : > { %19237 = vmatmul.mubr.f32.gmra.mrb[34].mxu0 %v24406_v18  ;;  %v26735_v18 = vld [vmem:[#allocation103_spill] sm:$0xff]  ;;  %20516 = vmatpush3.bf16.msra.mxu1 %v20513_v57 }
 0x9b7   : > { %19239 = vmatprep.mubr.f32.mxu0 %v24412_v10  ;;  %v8258_v10 = vld [vmem:[%s25591_s4 + $0x470] sm:$0xff] }
 0x9ba   : > { %19240 = vmatmul.mubr.f32.gmra.mrb[36].mxu0 %v24410_v35  ;;  %v26736_v35 = vld [vmem:[#allocation102_spill] sm:$0xff] }
 0x9bb   : > { %19242 = vmatprep.mubr.f32.mxu0 %v24416_v31  ;;  %v26737_v31 = vld [vmem:[#allocation107_spill] sm:$0xff] }
 0x9be   : > { %19243 = vmatmul.mubr.f32.gmra.mrb[38].mxu0 %v24414_v62  ;;  %v8259_v62 = vld [vmem:[%s25591_s4 + $0x478] sm:$0xff] }
 0x9bf   : > { %19245 = vmatprep.mubr.f32.mxu0 %v24420_v50  ;;  %v26727_v50 = vld [vmem:[#allocation84_spill] sm:$0xff]  ;;  %v20517_v23 = vpack.c.bf16 %v8259_v62, %v8258_v10 }
 0x9c1   : > { %20518 = vmatprep.subr.bf16.mxu1 %v20517_v23 }
 0x9c2   : > { %19246 = vmatmul.mubr.f32.gmra.mrb[40].mxu0 %v24418_v30  ;;  %v26728_v30 = vld [vmem:[#allocation88_spill] sm:$0xff]  ;;  %20520 = vmatpush3.bf16.msra.mxu1 %v20517_v23  ;;  %v26764_v23 = vld [vmem:[#allocation147_spill] sm:$0xff] }
 0x9c3   : > { %19248 = vmatprep.mubr.f32.mxu0 %v24424_v43  ;;  %v26729_v43 = vld [vmem:[#allocation97_spill] sm:$0xff] }
 0x9c6   : > { %19249 = vmatmul.mubr.f32.gmra.mrb[42].mxu0 %v26719_v8  ;;  %v26760_v8 = vld [vmem:[#allocation135_spill] sm:$0xff] }
 0x9c7   : > { %19251 = vmatprep.mubr.f32.mxu0 %v26720_v54  ;;  %v12250_v54 = vmul.f32 %v24661_v52, %v26760_v8 }
 0x9ca   : > { %19252 = vmatmul.mubr.f32.gmra.mrb[44].mxu0 %v26721_v25 }
 0x9cb   : > { %19254 = vmatprep.mubr.f32.mxu0 %v26722_v55 }
 0x9ce   : > { %19255 = vmatmul.mubr.f32.gmra.mrb[46].mxu0 %v26723_v6  ;;  %v26761_v6 = vld [vmem:[#allocation140_spill] sm:$0xff] }
 0x9cf   : > { %19257 = vmatprep.mubr.f32.mxu0 %v26724_v58  ;;  %v12249_v58 = vmul.f32 %v24661_v52, %v26761_v6 }
 0x9d2   : > { %19258 = vmatmul.mubr.f32.gmra.mrb[48].mxu0 %v26725_v38 }
 0x9d3   : > { %19260 = vmatprep.mubr.f32.mxu0 %v26726_v26 }
 0x9d6   : > { %19261 = vmatmul.mubr.f32.gmra.mrb[50].mxu0 %v26727_v50 }
 0x9d7   : > { %19263 = vmatprep.mubr.f32.mxu0 %v26728_v30 }
 0x9da   : > { %19264 = vmatmul.mubr.f32.gmra.mrb[52].mxu0 %v26729_v43 }
 0x9db   : > { %19266 = vmatprep.mubr.f32.mxu0 %v26730_v44 }
 0x9de   : > { %19267 = vmatmul.mubr.f32.gmra.mrb[54].mxu0 %v26731_v37  ;;  %v26762_v37 = vld [vmem:[#allocation137_spill] sm:$0xff] }
 0x9df   : > { %19269 = vmatprep.mubr.f32.mxu0 %v26732_v27  ;;  %v12252_v27 = vmul.f32 %v24661_v52, %v26762_v37 }
 0x9e2   : > { %19270 = vmatmul.mubr.f32.gmra.mrb[56].mxu0 %v26733_v20 }
 0x9e3   : > { %19272 = vmatprep.mubr.f32.mxu0 %v26734_v34 }
 0x9e6   : > { %19273 = vmatmul.mubr.f32.gmra.mrb[58].mxu0 %v26735_v18 }
 0x9e7   : > { %19275 = vmatprep.mubr.f32.mxu0 %v26736_v35 }
 0x9ea   : > { %19276 = vmatmul.mubr.f32.gmra.mrb[60].mxu0 %v26737_v31 }
 0x9eb   : > { %19278 = vmatprep.mubr.f32.mxu0 %v26738_v24  ;;  %v12254_v24 = vmul.f32 %v24661_v52, %v26764_v23 }
 0x9ee   : > { %19279 = vmatmul.mubr.f32.gmra.mrb[62].mxu0 %v26739_v40 }
 0x9ef   : > { %19281 = vmatprep.mubr.f32.mxu0 %v26740_v15 }
 0x9f2   : > { %19282 = vmatmul.mubr.f32.gmra.mrb[64].mxu0 %v26741_v47  ;;  %v26765_v47 = vld [vmem:[#allocation136_spill] sm:$0xff] }
 0x9f3   : > { %19284 = vmatprep.mubr.f32.mxu0 %v26742_v22  ;;  %v12253_v22 = vmul.f32 %v24661_v52, %v26765_v47 }
 0x9f6   : > { %19285 = vmatmul.mubr.f32.gmra.mrb[66].mxu0 %v26743_v1 }
 0x9f7   : > { %19287 = vmatprep.mubr.f32.mxu0 %v26744_v7 }
 0x9fa   : > { %19288 = vmatmul.mubr.f32.gmra.mrb[68].mxu0 %v26745_v13 }
 0x9fb   : > { %19290 = vmatprep.mubr.f32.mxu0 %v26746_v16 }
 0x9fe   : > { %19291 = vmatmul.mubr.f32.gmra.mrb[70].mxu0 %v26747_v53 }
 0x9ff   : > { %19293 = vmatprep.mubr.f32.mxu0 %v26748_v45 }
 0xa02   : > { %19294 = vmatmul.mubr.f32.gmra.mrb[72].mxu0 %v26749_v3  ;;  %v26766_v3 = vld [vmem:[#allocation151_spill] sm:$0xff] }
 0xa03   : > { %19296 = vmatprep.mubr.f32.mxu0 %v26750_v46  ;;  %v12256_v46 = vmul.f32 %v24661_v52, %v26766_v3 }
 0xa06   : > { %19297 = vmatmul.mubr.f32.gmra.mrb[74].mxu0 %v26751_v28 }
 0xa07   : > { %19299 = vmatprep.mubr.f32.mxu0 %v26752_v17 }
 0xa0a   : > { %19300 = vmatmul.mubr.f32.gmra.mrb[76].mxu0 %v26753_v49  ;;  %v26767_v49 = vld [vmem:[#allocation138_spill] sm:$0xff] }
 0xa0b   : > { %19302 = vmatprep.mubr.f32.mxu0 %v26754_v56  ;;  %v12255_v56 = vmul.f32 %v24661_v52, %v26767_v49 }
 0xa0e   : > { %19303 = vmatmul.mubr.f32.gmra.mrb[78].mxu0 %v26755_v2 }
 0xa65   : > { %v19211_v63 = vpop.f32.mrb[16].mxu0 }
 0xa66   : > { %v12310_v59 = vadd.f32 %v19211_v63, %v12246_v36  ;;  %v11922_v9 = vpop.f32.mrb[17].mxu0 }
 0xa67   : > { %v12309_v29 = vadd.f32 %v12245_v19, %v11922_v9 }
 0xa68   : > { %v12378_v21 = vadd.f32 %v24670_v14, %v12310_v59  ;;  %v26768_v59 = vld [vmem:[#allocation141_spill] sm:$0xff] }
 0xa69   : > { %v12377_v0 = vadd.f32 %v24670_v14, %v12309_v29  ;;  %v19214_v42 = vpop.f32.mrb[18].mxu0  ;;  %v12258_v9 = vmul.f32 %v24661_v52, %v26768_v59 }
 0xa6a   : > { %v12312_v61 = vadd.f32 %v19214_v42, %v12248_v39  ;;  %v11932_v32 = vpop.f32.mrb[19].mxu0  ;;  %v12442_v25 = vmax.f32 %v12378_v21, 0.0  ;;  %v26769_v39 = vld [vmem:[#allocation148_spill] sm:$0xff] }
 0xa6b   : > { %v12441_v5 = vmax.f32 %v12377_v0, 0.0  ;;  %v12311_v48 = vadd.f32 %v12247_v51, %v11932_v32  ;;  %v12257_v21 = vmul.f32 %v24661_v52, %v26769_v39 }
 0xa6c   : > { %v12380_v55 = vadd.f32 %v24670_v14, %v12312_v61 }
 0xa6d   : > { %v12379_v38 = vadd.f32 %v24670_v14, %v12311_v48  ;;  %v19217_v26 = vpop.f32.mrb[20].mxu0  ;;  %19337 = vmatprep.mubr.f32.mxu1 %v12441_v5  ;;  %v26770_v5 = vld [vmem:[#allocation145_spill] sm:$0xff] }
 0xa6e   : > { %v12314_v50 = vadd.f32 %v19217_v26, %v12250_v54  ;;  %v11942_v30 = vpop.f32.mrb[21].mxu0  ;;  %19338 = vmatmul.mubr.f32.vlgmr.msra.gmra.mrb[16].mxu1 %v12442_v25  ;;  %v12444_v20 = vmax.f32 %v12380_v55, 0.0  ;;  %v12260_v48 = vmul.f32 %v24661_v52, %v26770_v5  ;;  %v26771_v25 = vld [vmem:[#allocation152_spill] sm:$0xff] }
 0xa6f   : > { %v12443_v43 = vmax.f32 %v12379_v38, 0.0  ;;  %v12313_v44 = vadd.f32 %v12249_v58, %v11942_v30  ;;  %v12259_v55 = vmul.f32 %v24661_v52, %v26771_v25 }
 0xa70   : > { %v12382_v34 = vadd.f32 %v24670_v14, %v12314_v50 }
 0xa71   : > { %v12381_v18 = vadd.f32 %v24670_v14, %v12313_v44  ;;  %v19220_v57 = vpop.f32.mrb[22].mxu0  ;;  %19340 = vmatprep.mubr.f32.mxu1 %v12443_v43  ;;  %v26772_v43 = vld [vmem:[#allocation155_spill] sm:$0xff] }
 0xa72   : > { %v12316_v35 = vadd.f32 %v19220_v57, %v12252_v27  ;;  %v11952_v10 = vpop.f32.mrb[23].mxu0  ;;  %19341 = vmatmul.mubr.f32.gmra.mrb[18].mxu1 %v12444_v20  ;;  %v12446_v40 = vmax.f32 %v12382_v34, 0.0  ;;  %v12262_v44 = vmul.f32 %v24661_v52, %v26772_v43  ;;  %v26773_v20 = vld [vmem:[#allocation142_spill] sm:$0xff] }
 0xa73   : > { %v12445_v62 = vmax.f32 %v12381_v18, 0.0  ;;  %v12315_v31 = vadd.f32 %v12251_v60, %v11952_v10  ;;  %v12261_v34 = vmul.f32 %v24661_v52, %v26773_v20 }
 0xa74   : > { %v12384_v15 = vadd.f32 %v24670_v14, %v12316_v35 }
 0xa75   : > { %v12383_v1 = vadd.f32 %v24670_v14, %v12315_v31  ;;  %v19223_v7 = vpop.f32.mrb[24].mxu0  ;;  %19343 = vmatprep.mubr.f32.mxu1 %v12445_v62  ;;  %v26774_v62 = vld [vmem:[#allocation159_spill] sm:$0xff] }
 0xa76   : > { %v12318_v13 = vadd.f32 %v19223_v7, %v12254_v24  ;;  %v11962_v16 = vpop.f32.mrb[25].mxu0  ;;  %19344 = vmatmul.mubr.f32.gmra.mrb[20].mxu1 %v12446_v40  ;;  %v12448_v28 = vmax.f32 %v12384_v15, 0.0  ;;  %v12264_v31 = vmul.f32 %v24661_v52, %v26774_v62  ;;  %v26775_v40 = vld [vmem:[#allocation146_spill] sm:$0xff] }
 0xa77   : > { %v12447_v53 = vmax.f32 %v12383_v1, 0.0  ;;  %v12317_v45 = vadd.f32 %v12253_v22, %v11962_v16  ;;  %v12263_v15 = vmul.f32 %v24661_v52, %v26775_v40 }
 0xa78   : > { %v12386_v17 = vadd.f32 %v24670_v14, %v12318_v13 }
 0xa79   : > { %v12385_v2 = vadd.f32 %v24670_v14, %v12317_v45  ;;  %v19226_v12 = vpop.f32.mrb[26].mxu0  ;;  %19346 = vmatprep.mubr.f32.mxu1 %v12447_v53  ;;  %v26776_v53 = vld [vmem:[#allocation149_spill] sm:$0xff] }
 0xa7a   : > { %v12320_v36 = vadd.f32 %v19226_v12, %v12256_v46  ;;  %v11972_v11 = vpop.f32.mrb[27].mxu0  ;;  %19347 = vmatmul.mubr.f32.gmra.mrb[22].mxu1 %v12448_v28  ;;  %v12450_v29 = vmax.f32 %v12386_v17, 0.0  ;;  %v12266_v45 = vmul.f32 %v24661_v52, %v26776_v53  ;;  %v26777_v28 = vld [vmem:[#allocation156_spill] sm:$0xff] }
 0xa7b   : > { %v12449_v19 = vmax.f32 %v12385_v2, 0.0  ;;  %v12319_v63 = vadd.f32 %v12255_v56, %v11972_v11  ;;  %v12265_v17 = vmul.f32 %v24661_v52, %v26777_v28 }
 0xa7c   : > { %v12388_v41 = vadd.f32 %v24670_v14, %v12320_v36 }
 0xa7d   : > { %v12387_v33 = vadd.f32 %v24670_v14, %v12319_v63  ;;  %v19229_v51 = vpop.f32.mrb[28].mxu0  ;;  %19349 = vmatprep.mubr.f32.mxu1 %v12449_v19  ;;  %v26778_v19 = vld [vmem:[#allocation153_spill] sm:$0xff] }
 0xa7e   : > { %v12322_v0 = vadd.f32 %v19229_v51, %v12258_v9  ;;  %v11982_v42 = vpop.f32.mrb[29].mxu0  ;;  %19350 = vmatmul.mubr.f32.gmra.mrb[24].mxu1 %v12450_v29  ;;  %v12452_v8 = vmax.f32 %v12388_v41, 0.0  ;;  %v12268_v63 = vmul.f32 %v24661_v52, %v26778_v19  ;;  %v26779_v29 = vld [vmem:[#allocation160_spill] sm:$0xff] }
 0xa7f   : > { %v12451_v61 = vmax.f32 %v12387_v33, 0.0  ;;  %v12321_v32 = vadd.f32 %v12257_v21, %v11982_v42  ;;  %v12267_v41 = vmul.f32 %v24661_v52, %v26779_v29 }
 0xa80   : > { %v12390_v54 = vadd.f32 %v24670_v14, %v12322_v0 }
 0xa81   : > { %v12389_v6 = vadd.f32 %v24670_v14, %v12321_v32  ;;  %v19232_v58 = vpop.f32.mrb[30].mxu0  ;;  %19352 = vmatprep.mubr.f32.mxu1 %v12451_v61  ;;  %v26780_v61 = vld [vmem:[#allocation163_spill] sm:$0xff] }
 0xa82   : > { %v12324_v38 = vadd.f32 %v19232_v58, %v12260_v48  ;;  %v11992_v26 = vpop.f32.mrb[31].mxu0  ;;  %19353 = vmatmul.mubr.f32.gmra.mrb[26].mxu1 %v12452_v8  ;;  %v12454_v37 = vmax.f32 %v12390_v54, 0.0  ;;  %v12270_v32 = vmul.f32 %v24661_v52, %v26780_v61  ;;  %v26781_v8 = vld [vmem:[#allocation150_spill] sm:$0xff] }
 0xa83   : > { %v12453_v50 = vmax.f32 %v12389_v6, 0.0  ;;  %v12323_v30 = vadd.f32 %v12259_v55, %v11992_v26  ;;  %v12269_v54 = vmul.f32 %v24661_v52, %v26781_v8 }
 0xa84   : > { %v12392_v27 = vadd.f32 %v24670_v14, %v12324_v38 }
 0xa85   : > { %v12391_v4 = vadd.f32 %v24670_v14, %v12323_v30  ;;  %v19235_v60 = vpop.f32.mrb[32].mxu0  ;;  %19355 = vmatprep.mubr.f32.mxu1 %v12453_v50  ;;  %v26782_v50 = vld [vmem:[#allocation165_spill] sm:$0xff] }
 0xa86   : > { %v12326_v18 = vadd.f32 %v19235_v60, %v12262_v44  ;;  %v12002_v57 = vpop.f32.mrb[33].mxu0  ;;  %19356 = vmatmul.mubr.f32.gmra.mrb[28].mxu1 %v12454_v37  ;;  %v12456_v23 = vmax.f32 %v12392_v27, 0.0  ;;  %v12272_v30 = vmul.f32 %v24661_v52, %v26782_v50  ;;  %v26783_v37 = vld [vmem:[#allocation154_spill] sm:$0xff] }
 0xa87   : > { %v12455_v35 = vmax.f32 %v12391_v4, 0.0  ;;  %v12325_v10 = vadd.f32 %v12261_v34, %v12002_v57  ;;  %v12271_v27 = vmul.f32 %v24661_v52, %v26783_v37 }
 0xa88   : > { %v12394_v24 = vadd.f32 %v24670_v14, %v12326_v18 }
 0xa89   : > { %v12393_v47 = vadd.f32 %v24670_v14, %v12325_v10  ;;  %v19238_v22 = vpop.f32.mrb[34].mxu0  ;;  %19358 = vmatprep.mubr.f32.mxu1 %v12455_v35  ;;  %v26784_v35 = vld [vmem:[#allocation157_spill] sm:$0xff] }
 0xa8a   : > { %v12328_v1 = vadd.f32 %v19238_v22, %v12264_v31  ;;  %v12012_v7 = vpop.f32.mrb[35].mxu0  ;;  %19359 = vmatmul.mubr.f32.gmra.mrb[30].mxu1 %v12456_v23  ;;  %v12458_v3 = vmax.f32 %v12394_v24, 0.0  ;;  %v12274_v10 = vmul.f32 %v24661_v52, %v26784_v35  ;;  %v26785_v23 = vld [vmem:[#allocation164_spill] sm:$0xff] }
 0xa8b   : > { %v12457_v13 = vmax.f32 %v12393_v47, 0.0  ;;  %v12327_v16 = vadd.f32 %v12263_v15, %v12012_v7  ;;  %v12273_v24 = vmul.f32 %v24661_v52, %v26785_v23 }
 0xa8c   : > { %v12396_v46 = vadd.f32 %v24670_v14, %v12328_v1 }
 0xa8d   : > { %v12395_v49 = vadd.f32 %v24670_v14, %v12327_v16  ;;  %v19241_v56 = vpop.f32.mrb[36].mxu0  ;;  %19361 = vmatprep.mubr.f32.mxu1 %v12457_v13  ;;  %v26786_v13 = vld [vmem:[#allocation161_spill] sm:$0xff] }
 0xa8e   : > { %v12330_v2 = vadd.f32 %v19241_v56, %v12266_v45  ;;  %v12022_v12 = vpop.f32.mrb[37].mxu0  ;;  %19362 = vmatmul.mubr.f32.gmra.mrb[32].mxu1 %v12458_v3  ;;  %v12460_v59 = vmax.f32 %v12396_v46, 0.0  ;;  %v12276_v16 = vmul.f32 %v24661_v52, %v26786_v13  ;;  %v26787_v3 = vld [vmem:[#allocation166_spill] sm:$0xff] }
 0xa8f   : > { %v12459_v36 = vmax.f32 %v12395_v49, 0.0  ;;  %v12329_v11 = vadd.f32 %v12265_v17, %v12022_v12  ;;  %v12275_v46 = vmul.f32 %v24661_v52, %v26787_v3 }
 0xa90   : > { %v12398_v9 = vadd.f32 %v24670_v14, %v12330_v2 }
 0xa91   : > { %v12397_v39 = vadd.f32 %v24670_v14, %v12329_v11  ;;  %v19244_v21 = vpop.f32.mrb[38].mxu0  ;;  %19364 = vmatprep.mubr.f32.mxu1 %v12459_v36  ;;  %v26788_v36 = vld [vmem:[#allocation167_spill] sm:$0xff] }
 0xa92   : > { %v12332_v33 = vadd.f32 %v19244_v21, %v12268_v63  ;;  %v12032_v51 = vpop.f32.mrb[39].mxu0  ;;  %19365 = vmatmul.mubr.f32.gmra.mrb[34].mxu1 %v12460_v59  ;;  %v12462_v5 = vmax.f32 %v12398_v9, 0.0  ;;  %v12278_v11 = vmul.f32 %v24661_v52, %v26788_v36  ;;  %v26789_v59 = vld [vmem:[#allocation158_spill] sm:$0xff] }
 0xa93   : > { %v12461_v0 = vmax.f32 %v12397_v39, 0.0  ;;  %v12331_v42 = vadd.f32 %v12267_v41, %v12032_v51  ;;  %v12277_v9 = vmul.f32 %v24661_v52, %v26789_v59 }
 0xa94   : > { %v12400_v48 = vadd.f32 %v24670_v14, %v12332_v33 }
 0xa95   : > { %v12399_v25 = vadd.f32 %v24670_v14, %v12331_v42  ;;  %v19247_v55 = vpop.f32.mrb[40].mxu0  ;;  %19367 = vmatprep.mubr.f32.mxu1 %v12461_v0  ;;  %v26790_v0 = vld [vmem:[#allocation169_spill] sm:$0xff] }
 0xa96   : > { %v12334_v6 = vadd.f32 %v19247_v55, %v12270_v32  ;;  %v12042_v58 = vpop.f32.mrb[41].mxu0  ;;  %19368 = vmatmul.mubr.f32.gmra.mrb[36].mxu1 %v12462_v5  ;;  %v12464_v43 = vmax.f32 %v12400_v48, 0.0  ;;  %v12280_v42 = vmul.f32 %v24661_v52, %v26790_v0  ;;  %v26791_v5 = vld [vmem:[#allocation162_spill] sm:$0xff] }
 0xa97   : > { %v12463_v38 = vmax.f32 %v12399_v25, 0.0  ;;  %v12333_v26 = vadd.f32 %v12269_v54, %v12042_v58  ;;  %v12279_v48 = vmul.f32 %v24661_v52, %v26791_v5 }
 0xa98   : > { %v12402_v44 = vadd.f32 %v24670_v14, %v12334_v6 }
 0xa99   : > { %v12401_v20 = vadd.f32 %v24670_v14, %v12333_v26  ;;  %v19250_v34 = vpop.f32.mrb[42].mxu0  ;;  %19370 = vmatprep.mubr.f32.mxu1 %v12463_v38  ;;  %v26792_v38 = vld [vmem:[#allocation16_spill] sm:$0xff] }
 0xa9a   : > { %v12336_v4 = vadd.f32 %v19250_v34, %v12272_v30  ;;  %v12052_v60 = vpop.f32.mrb[43].mxu0  ;;  %19371 = vmatmul.mubr.f32.gmra.mrb[38].mxu1 %v12464_v43  ;;  %v12466_v62 = vmax.f32 %v12402_v44, 0.0  ;;  %v12282_v26 = vmul.f32 %v24661_v52, %v26792_v38  ;;  %v26793_v43 = vld [vmem:[#allocation168_spill] sm:$0xff] }
 0xa9b   : > { %v12465_v18 = vmax.f32 %v12401_v20, 0.0  ;;  %v12335_v57 = vadd.f32 %v12271_v27, %v12052_v60  ;;  %v12281_v44 = vmul.f32 %v24661_v52, %v26793_v43 }
 0xa9c   : > { %v12404_v31 = vadd.f32 %v24670_v14, %v12336_v4 }
 0xa9d   : > { %v12403_v40 = vadd.f32 %v24670_v14, %v12335_v57  ;;  %v19253_v15 = vpop.f32.mrb[44].mxu0  ;;  %19373 = vmatprep.mubr.f32.mxu1 %v12465_v18  ;;  %v26794_v18 = vld [vmem:[#allocation19_spill] sm:$0xff] }
 0xa9e   : > { %v12338_v47 = vadd.f32 %v19253_v15, %v12274_v10  ;;  %v12062_v22 = vpop.f32.mrb[45].mxu0  ;;  %19374 = vmatmul.mubr.f32.gmra.mrb[40].mxu1 %v12466_v62  ;;  %v12468_v53 = vmax.f32 %v12404_v31, 0.0  ;;  %v12284_v57 = vmul.f32 %v24661_v52, %v26794_v18  ;;  %v26795_v62 = vld [vmem:[#allocation170_spill] sm:$0xff] }
 0xa9f   : > { %v12467_v1 = vmax.f32 %v12403_v40, 0.0  ;;  %v12337_v7 = vadd.f32 %v12273_v24, %v12062_v22  ;;  %v12283_v31 = vmul.f32 %v24661_v52, %v26795_v62 }
 0xaa0   : > { %v12406_v45 = vadd.f32 %v24670_v14, %v12338_v47 }
 0xaa1   : > { %v12405_v28 = vadd.f32 %v24670_v14, %v12337_v7  ;;  %v19256_v17 = vpop.f32.mrb[46].mxu0  ;;  %19376 = vmatprep.mubr.f32.mxu1 %v12467_v1  ;;  %v26796_v1 = vld [vmem:[#allocation20_spill] sm:$0xff] }
 0xaa2   : > { %v12340_v49 = vadd.f32 %v19256_v17, %v12276_v16  ;;  %v12072_v56 = vpop.f32.mrb[47].mxu0  ;;  %19377 = vmatmul.mubr.f32.gmra.mrb[42].mxu1 %v12468_v53  ;;  %v12470_v19 = vmax.f32 %v12406_v45, 0.0  ;;  %v12286_v7 = vmul.f32 %v24661_v52, %v26796_v1  ;;  %v26797_v53 = vld [vmem:[#allocation5_spill] sm:$0xff] }
 0xaa3   : > { %v12469_v2 = vmax.f32 %v12405_v28, 0.0  ;;  %v12339_v12 = vadd.f32 %v12275_v46, %v12072_v56  ;;  %v12285_v45 = vmul.f32 %v24661_v52, %v26797_v53 }
 0xaa4   : > { %v12408_v63 = vadd.f32 %v24670_v14, %v12340_v49 }
 0xaa5   : > { %v12407_v29 = vadd.f32 %v24670_v14, %v12339_v12  ;;  %v19259_v41 = vpop.f32.mrb[48].mxu0  ;;  %19379 = vmatprep.mubr.f32.mxu1 %v12469_v2  ;;  %v26798_v2 = vld [vmem:[#allocation23_spill] sm:$0xff] }
 0xaa6   : > { %v12342_v39 = vadd.f32 %v19259_v41, %v12278_v11  ;;  %v12082_v21 = vpop.f32.mrb[49].mxu0  ;;  %19380 = vmatmul.mubr.f32.gmra.mrb[44].mxu1 %v12470_v19  ;;  %v12472_v61 = vmax.f32 %v12408_v63, 0.0  ;;  %v12288_v12 = vmul.f32 %v24661_v52, %v26798_v2  ;;  %v26799_v19 = vld [vmem:[#allocation11_spill] sm:$0xff] }
 0xaa7   : > { %v12471_v33 = vmax.f32 %v12407_v29, 0.0  ;;  %v12341_v51 = vadd.f32 %v12277_v9, %v12082_v21  ;;  %v12287_v63 = vmul.f32 %v24661_v52, %v26799_v19 }
 0xaa8   : > { %v12410_v32 = vadd.f32 %v24670_v14, %v12342_v39 }
 0xaa9   : > { %v12409_v8 = vadd.f32 %v24670_v14, %v12341_v51  ;;  %v19262_v54 = vpop.f32.mrb[50].mxu0  ;;  %19382 = vmatprep.mubr.f32.mxu1 %v12471_v33  ;;  %v26800_v33 = vld [vmem:[#allocation35_spill] sm:$0xff] }
 0xaaa   : > { %v12344_v25 = vadd.f32 %v19262_v54, %v12280_v42  ;;  %v12092_v55 = vpop.f32.mrb[51].mxu0  ;;  %19383 = vmatmul.mubr.f32.gmra.mrb[46].mxu1 %v12472_v61  ;;  %v12474_v50 = vmax.f32 %v12410_v32, 0.0  ;;  %v12290_v51 = vmul.f32 %v24661_v52, %v26800_v33  ;;  %v26801_v61 = vld [vmem:[#allocation12_spill] sm:$0xff] }
 0xaab   : > { %v12473_v6 = vmax.f32 %v12409_v8, 0.0  ;;  %v12343_v58 = vadd.f32 %v12279_v48, %v12092_v55  ;;  %v12289_v32 = vmul.f32 %v24661_v52, %v26801_v61 }
 0xaac   : > { %v12412_v30 = vadd.f32 %v24670_v14, %v12344_v25 }
 0xaad   : > { %v12411_v37 = vadd.f32 %v24670_v14, %v12343_v58  ;;  %v19265_v27 = vpop.f32.mrb[52].mxu0  ;;  %19385 = vmatprep.mubr.f32.mxu1 %v12473_v6  ;;  %v26802_v6 = vld [vmem:[#allocation39_spill] sm:$0xff] }
 0xaae   : > { %v12346_v20 = vadd.f32 %v19265_v27, %v12282_v26  ;;  %v12102_v34 = vpop.f32.mrb[53].mxu0  ;;  %19386 = vmatmul.mubr.f32.gmra.mrb[48].mxu1 %v12474_v50  ;;  %v12476_v35 = vmax.f32 %v12412_v30, 0.0  ;;  %v12292_v58 = vmul.f32 %v24661_v52, %v26802_v6  ;;  %v26803_v50 = vld [vmem:[#allocation15_spill] sm:$0xff] }
 0xaaf   : > { %v12475_v4 = vmax.f32 %v12411_v37, 0.0  ;;  %v12345_v60 = vadd.f32 %v12281_v44, %v12102_v34  ;;  %v12291_v30 = vmul.f32 %v24661_v52, %v26803_v50 }
 0xab0   : > { %v12414_v10 = vadd.f32 %v24670_v14, %v12346_v20 }
 0xab1   : > { %v12413_v23 = vadd.f32 %v24670_v14, %v12345_v60  ;;  %v19268_v24 = vpop.f32.mrb[54].mxu0  ;;  %19388 = vmatprep.mubr.f32.mxu1 %v12475_v4  ;;  %v26804_v4 = vld [vmem:[#allocation33_spill] sm:$0xff] }
 0xab2   : > { %v12348_v40 = vadd.f32 %v19268_v24, %v12284_v57  ;;  %v12112_v15 = vpop.f32.mrb[55].mxu0  ;;  %19389 = vmatmul.mubr.f32.gmra.mrb[50].mxu1 %v12476_v35  ;;  %v12478_v13 = vmax.f32 %v12414_v10, 0.0  ;;  %v12294_v60 = vmul.f32 %v24661_v52, %v26804_v4  ;;  %v26805_v35 = vld [vmem:[#allocation24_spill] sm:$0xff] }
 0xab3   : > { %v12477_v47 = vmax.f32 %v12413_v23, 0.0  ;;  %v12347_v22 = vadd.f32 %v12283_v31, %v12112_v15  ;;  %v12293_v10 = vmul.f32 %v24661_v52, %v26805_v35 }
 0xab4   : > { %v12416_v16 = vadd.f32 %v24670_v14, %v12348_v40 }
 0xab5   : > { %v12415_v3 = vadd.f32 %v24670_v14, %v12347_v22  ;;  %v19271_v46 = vpop.f32.mrb[56].mxu0  ;;  %19391 = vmatprep.mubr.f32.mxu1 %v12477_v47  ;;  %v26806_v47 = vld [vmem:[#allocation30_spill] sm:$0xff] }
 0xab6   : > { %v12350_v28 = vadd.f32 %v19271_v46, %v12286_v7  ;;  %v12122_v17 = vpop.f32.mrb[57].mxu0  ;;  %19392 = vmatmul.mubr.f32.gmra.mrb[52].mxu1 %v12478_v13  ;;  %v12480_v36 = vmax.f32 %v12416_v16, 0.0  ;;  %v12296_v22 = vmul.f32 %v24661_v52, %v26806_v47  ;;  %v26807_v13 = vld [vmem:[#allocation27_spill] sm:$0xff] }
 0xab7   : > { %v12479_v49 = vmax.f32 %v12415_v3, 0.0  ;;  %v12349_v56 = vadd.f32 %v12285_v45, %v12122_v17  ;;  %v12295_v16 = vmul.f32 %v24661_v52, %v26807_v13 }
 0xab8   : > { %v12418_v11 = vadd.f32 %v24670_v14, %v12350_v28 }
 0xab9   : > { %v12417_v59 = vadd.f32 %v24670_v14, %v12349_v56  ;;  %v19274_v9 = vpop.f32.mrb[58].mxu0  ;;  %19394 = vmatprep.mubr.f32.mxu1 %v12479_v49  ;;  %v26808_v49 = vld [vmem:[#allocation52_spill] sm:$0xff] }
 0xaba   : > { %v12352_v29 = vadd.f32 %v19274_v9, %v12288_v12  ;;  %v12132_v41 = vpop.f32.mrb[59].mxu0  ;;  %19395 = vmatmul.mubr.f32.gmra.mrb[54].mxu1 %v12480_v36  ;;  %v12482_v0 = vmax.f32 %v12418_v11, 0.0  ;;  %v12298_v56 = vmul.f32 %v24661_v52, %v26808_v49  ;;  %v26809_v36 = vld [vmem:[#allocation29_spill] sm:$0xff] }
 0xabb   : > { %v12481_v39 = vmax.f32 %v12417_v59, 0.0  ;;  %v12351_v21 = vadd.f32 %v12287_v63, %v12132_v41  ;;  %v12297_v11 = vmul.f32 %v24661_v52, %v26809_v36 }
 0xabc   : > { %v12420_v42 = vadd.f32 %v24670_v14, %v12352_v29 }
 0xabd   : > { %v12419_v5 = vadd.f32 %v24670_v14, %v12351_v21  ;;  %v19277_v48 = vpop.f32.mrb[60].mxu0  ;;  %19397 = vmatprep.mubr.f32.mxu1 %v12481_v39  ;;  %v26810_v39 = vld [vmem:[#allocation72_spill] sm:$0xff] }
 0xabe   : > { %v12354_v8 = vadd.f32 %v19277_v48, %v12290_v51  ;;  %v12142_v54 = vpop.f32.mrb[61].mxu0  ;;  %19398 = vmatmul.mubr.f32.gmra.mrb[56].mxu1 %v12482_v0  ;;  %v12484_v38 = vmax.f32 %v12420_v42, 0.0  ;;  %v12300_v21 = vmul.f32 %v24661_v52, %v26810_v39  ;;  %v26811_v0 = vld [vmem:[#allocation6_spill] sm:$0xff] }
 0xabf   : > { %v12483_v25 = vmax.f32 %v12419_v5, 0.0  ;;  %v12353_v55 = vadd.f32 %v12289_v32, %v12142_v54  ;;  %v12299_v42 = vmul.f32 %v24661_v52, %v26811_v0  ;;  %v24866_v0 = vld [vmem:[%s25592_s5 + $0xb] ss:$0 sm:$0xff] }
 0xac0   : > { %v12422_v26 = vadd.f32 %v24670_v14, %v12354_v8 }
 0xac1   : > { %v12421_v43 = vadd.f32 %v24670_v14, %v12353_v55  ;;  %v19280_v44 = vpop.f32.mrb[62].mxu0  ;;  %19400 = vmatprep.mubr.f32.mxu1 %v12483_v25  ;;  %v26812_v25 = vld [vmem:[#allocation76_spill] sm:$0xff] }
 0xac2   : > { %v12356_v37 = vadd.f32 %v19280_v44, %v12292_v58  ;;  %v12152_v27 = vpop.f32.mrb[63].mxu0  ;;  %19401 = vmatmul.mubr.f32.gmra.mrb[58].mxu1 %v12484_v38  ;;  %v12486_v18 = vmax.f32 %v12422_v26, 0.0  ;;  %v12302_v55 = vmul.f32 %v24661_v52, %v26812_v25  ;;  %v26813_v38 = vld [vmem:[#allocation46_spill] sm:$0xff] }
 0xac3   : > { %v12485_v20 = vmax.f32 %v12421_v43, 0.0  ;;  %v12355_v34 = vadd.f32 %v12291_v30, %v12152_v27  ;;  %v12301_v26 = vmul.f32 %v24661_v52, %v26813_v38 }
 0xac4   : > { %v12424_v57 = vadd.f32 %v24670_v14, %v12356_v37 }
 0xac5   : > { %v12423_v62 = vadd.f32 %v24670_v14, %v12355_v34  ;;  %v19283_v31 = vpop.f32.mrb[64].mxu0  ;;  %19403 = vmatprep.mubr.f32.mxu1 %v12485_v20  ;;  %v26814_v20 = vld [vmem:[#allocation82_spill] sm:$0xff] }
 0xac6   : > { %v12358_v23 = vadd.f32 %v19283_v31, %v12294_v60  ;;  %v12162_v24 = vpop.f32.mrb[65].mxu0  ;;  %19404 = vmatmul.mubr.f32.gmra.mrb[60].mxu1 %v12486_v18  ;;  %v12488_v1 = vmax.f32 %v12424_v57, 0.0  ;;  %v12304_v34 = vmul.f32 %v24661_v52, %v26814_v20  ;;  %v26815_v18 = vld [vmem:[#allocation58_spill] sm:$0xff]  ;;  %v14268_v20 = vld [vmem:[%s25591_s4 + $0x4a0] sm:$0xff] }
 0xac7   : > { %v12487_v40 = vmax.f32 %v12423_v62, 0.0  ;;  %v12357_v15 = vadd.f32 %v12293_v10, %v12162_v24  ;;  %v12303_v57 = vmul.f32 %v24661_v52, %v26815_v18 }
 0xac8   : > { %v12426_v7 = vadd.f32 %v24670_v14, %v12358_v23 }
 0xac9   : > { %v12425_v53 = vadd.f32 %v24670_v14, %v12357_v15  ;;  %v19286_v45 = vpop.f32.mrb[66].mxu0  ;;  %19406 = vmatprep.mubr.f32.mxu1 %v12487_v40  ;;  %v26816_v40 = vld [vmem:[#allocation100_spill] sm:$0xff] }
 0xaca   : > { %v12360_v3 = vadd.f32 %v19286_v45, %v12296_v22  ;;  %v12172_v46 = vpop.f32.mrb[67].mxu0  ;;  %19407 = vmatmul.mubr.f32.gmra.mrb[62].mxu1 %v12488_v1  ;;  %v12490_v2 = vmax.f32 %v12426_v7, 0.0  ;;  %v12306_v15 = vmul.f32 %v24661_v52, %v26816_v40  ;;  %v26817_v1 = vld [vmem:[#allocation70_spill] sm:$0xff] }
 0xacb   : > { %v12489_v28 = vmax.f32 %v12425_v53, 0.0  ;;  %v12359_v17 = vadd.f32 %v12295_v16, %v12172_v46  ;;  %v12305_v7 = vmul.f32 %v24661_v52, %v26817_v1 }
 0xacc   : > { %v12428_v12 = vadd.f32 %v24670_v14, %v12360_v3 }
 0xacd   : > { %v12427_v19 = vadd.f32 %v24670_v14, %v12359_v17  ;;  %v19289_v63 = vpop.f32.mrb[68].mxu0  ;;  %19409 = vmatprep.mubr.f32.mxu1 %v12489_v28  ;;  %v26818_v28 = vld [vmem:[#allocation101_spill] sm:$0xff] }
 0xace   : > { %v12362_v59 = vadd.f32 %v19289_v63, %v12298_v56  ;;  %v12182_v9 = vpop.f32.mrb[69].mxu0  ;;  %19410 = vmatmul.mubr.f32.gmra.mrb[64].mxu1 %v12490_v2  ;;  %v12492_v33 = vmax.f32 %v12428_v12, 0.0  ;;  %v12308_v17 = vmul.f32 %v24661_v52, %v26818_v28  ;;  %v26819_v2 = vld [vmem:[#allocation78_spill] sm:$0xff] }
 0xacf   : > { %v12491_v29 = vmax.f32 %v12427_v19, 0.0  ;;  %v12361_v41 = vadd.f32 %v12297_v11, %v12182_v9  ;;  %v12307_v12 = vmul.f32 %v24661_v52, %v26819_v2  ;;  %v26820_v52 = vld [vmem:[#allocation99_spill] sm:$0xff]  ;;  %v26826_v2 = vld [vmem:[#allocation106_spill] sm:$0xff] }
 0xad0   : > { %v12430_v51 = vadd.f32 %v24670_v14, %v12362_v59  ;;  %v26824_v40 = vunpack.i.h.bf16 %v26820_v52 }
 0xad1   : > { %v12429_v61 = vadd.f32 %v24670_v14, %v12361_v41  ;;  %v19292_v32 = vpop.f32.mrb[70].mxu0  ;;  %19412 = vmatprep.mubr.f32.mxu1 %v12491_v29 }
 0xad2   : > { %v12364_v5 = vadd.f32 %v19292_v32, %v12300_v21  ;;  %v12192_v48 = vpop.f32.mrb[71].mxu0  ;;  %19413 = vmatmul.mubr.f32.gmra.mrb[66].mxu1 %v12492_v33  ;;  %v12494_v6 = vmax.f32 %v12430_v51, 0.0  ;;  %v26821_v51 = vunpack.i.l.bf16 %v26820_v52 }
 0xad3   : > { %v12493_v8 = vmax.f32 %v12429_v61, 0.0  ;;  %v12363_v54 = vadd.f32 %v12299_v42, %v12192_v48 }
 0xad4   : > { %v12432_v58 = vadd.f32 %v24670_v14, %v12364_v5 }
 0xad5   : > { %v12431_v50 = vadd.f32 %v24670_v14, %v12363_v54  ;;  %v19295_v30 = vpop.f32.mrb[72].mxu0  ;;  %19415 = vmatprep.mubr.f32.mxu1 %v12493_v8 }
 0xad6   : > { %v12366_v43 = vadd.f32 %v19295_v30, %v12302_v55  ;;  %v12202_v44 = vpop.f32.mrb[73].mxu0  ;;  %19416 = vmatmul.mubr.f32.gmra.mrb[68].mxu1 %v12494_v6  ;;  %v12496_v4 = vmax.f32 %v12432_v58, 0.0  ;;  %v14264_v55 = vld [vmem:[%s25591_s4 + $0x480] sm:$0xff]  ;;  %v14265_v6 = vld [vmem:[%s25591_s4 + $0x488] sm:$0xff]  ;;  %v14266_v58 = vld [vmem:[%s25591_s4 + $0x490] sm:$0xff] }
 0xad7   : > { %v12495_v37 = vmax.f32 %v12431_v50, 0.0  ;;  %v12365_v27 = vadd.f32 %v12301_v26, %v12202_v44  ;;  %v20649_v38 = vpack.c.bf16 %v14265_v6, %v14264_v55  ;;  %v14267_v26 = vld [vmem:[%s25591_s4 + $0x498] sm:$0xff] }
 0xad8   : > { %v12434_v60 = vadd.f32 %v24670_v14, %v12366_v43  ;;  %v20653_v43 = vpack.c.bf16 %v14267_v26, %v14266_v58  ;;  %v26832_v58 = vld [vmem:[#allocation172_spill] sm:$0xff] }
 0xad9   : > { %v12433_v35 = vadd.f32 %v24670_v14, %v12365_v27  ;;  %v19298_v10 = vpop.f32.mrb[74].mxu0  ;;  %19418 = vmatprep.mubr.f32.mxu1 %v12495_v37  ;;  %20650 = vmatprep.subr.bf16.mxu0 %v20649_v38 }
 0xada   : > { %v12368_v62 = vadd.f32 %v19298_v10, %v12304_v34  ;;  %v12212_v31 = vpop.f32.mrb[75].mxu0  ;;  %19419 = vmatmul.mubr.f32.gmra.mrb[70].mxu1 %v12496_v4  ;;  %v12498_v47 = vmax.f32 %v12434_v60, 0.0  ;;  %20652 = vmatpush3.bf16.msra.mxu0 %v20649_v38  ;;  %v14269_v34 = vld [vmem:[%s25591_s4 + $0x4a8] sm:$0xff]  ;;  %v26833_v38 = vunpack.i.l.bf16 %v26832_v58 }
 0xadb   : > { %v12497_v23 = vmax.f32 %v12433_v35, 0.0  ;;  %v12367_v24 = vadd.f32 %v12303_v57, %v12212_v31  ;;  %20654 = vmatprep.subr.bf16.mxu0 %v20653_v43  ;;  %v20657_v35 = vpack.c.bf16 %v14269_v34, %v14268_v20 }
 0xadc   : > { %v12436_v22 = vadd.f32 %v24670_v14, %v12368_v62  ;;  %v26822_v62 = vld [vmem:[#allocation90_spill] sm:$0xff] }
 0xadd   : > { %v12435_v13 = vadd.f32 %v24670_v14, %v12367_v24  ;;  %v19301_v16 = vpop.f32.mrb[76].mxu0  ;;  %19421 = vmatprep.mubr.f32.mxu1 %v12497_v23  ;;  %v26823_v31 = vunpack.i.l.bf16 %v26822_v62  ;;  %v14270_v23 = vld [vmem:[%s25591_s4 + $0x4b0] sm:$0xff]  ;;  %v14271_v24 = vld [vmem:[%s25591_s4 + $0x4b8] sm:$0xff] }
 0xade   : > { %v12370_v53 = vadd.f32 %v19301_v16, %v12306_v15  ;;  %v12222_v45 = vpop.f32.mrb[77].mxu0  ;;  %19422 = vmatmul.mubr.f32.gmra.mrb[72].mxu1 %v12498_v47  ;;  %v12500_v49 = vmax.f32 %v12436_v22, 0.0  ;;  %20656 = vmatpush3.bf16.msra.mxu0 %v20653_v43  ;;  %v14272_v16 = vld [vmem:[%s25591_s4 + $0x4c0] sm:$0xff] }
 0xadf   : > { %v12499_v3 = vmax.f32 %v12435_v13, 0.0  ;;  %v12369_v46 = vadd.f32 %v12305_v7, %v12222_v45  ;;  %20658 = vmatprep.subr.bf16.mxu0 %v20657_v35  ;;  %v20661_v7 = vpack.c.bf16 %v14271_v24, %v14270_v23 }
 0xae0   : > { %v12438_v56 = vadd.f32 %v24670_v14, %v12370_v53  ;;  %v14273_v53 = vld [vmem:[%s25591_s4 + $0x4c8] sm:$0xff] }
 0xae1   : > { %v12437_v36 = vadd.f32 %v24670_v14, %v12369_v46  ;;  %v19304_v11 = vpop.f32.mrb[78].mxu0  ;;  %19424 = vmatprep.mubr.f32.mxu1 %v12499_v3 }
 0xae2   : > { %v12372_v19 = vadd.f32 %v19304_v11, %v12308_v17  ;;  %v12232_v63 = vpop.f32.mrb[79].mxu0  ;;  %19425 = vmatmul.mubr.f32.gmra.mrb[74].mxu1 %v12500_v49  ;;  %v12502_v29 = vmax.f32 %v12438_v56, 0.0  ;;  %20660 = vmatpush3.bf16.msra.mxu0 %v20657_v35  ;;  %v20665_v17 = vpack.c.bf16 %v14273_v53, %v14272_v16  ;;  %v26825_v56 = vunpack.i.h.bf16 %v26822_v62 }
 0xae3   : > { %v12501_v59 = vmax.f32 %v12437_v36, 0.0  ;;  %v12371_v9 = vadd.f32 %v12307_v12, %v12232_v63  ;;  %20662 = vmatprep.subr.bf16.mxu0 %v20661_v7  ;;  %v26827_v12 = vunpack.i.l.bf16 %v26826_v2 }
 0xae4   : > { %v12440_v41 = vadd.f32 %v24670_v14, %v12372_v19 }
 0xae5   : > { %v12439_v39 = vadd.f32 %v24670_v14, %v12371_v9  ;;  %19427 = vmatprep.mubr.f32.mxu1 %v12501_v59 }
 0xae6   : > { %19428 = vmatmul.mubr.f32.gmra.mrb[76].mxu1 %v12502_v29  ;;  %v12504_v33 = vmax.f32 %v12440_v41, 0.0  ;;  %20664 = vmatpush3.bf16.msra.mxu0 %v20661_v7  ;;  %v26838_v7 = vld [vmem:[#allocation174_spill] sm:$0xff] }
 0xae7   : > { %v12503_v21 = vmax.f32 %v12439_v39, 0.0  ;;  %20666 = vmatprep.subr.bf16.mxu0 %v20665_v17 }
 0xae9   : > { %19430 = vmatprep.mubr.f32.mxu1 %v12503_v21 }
 0xaea   : > { %19431 = vmatmul.mubr.f32.gmra.mrb[78].mxu1 %v12504_v33  ;;  %20668 = vmatpush3.bf16.msra.mxu0 %v20665_v17  ;;  %v26828_v33 = vld [vmem:[#allocation171_spill] sm:$0xff] }
 0xaeb   : > { %19441 = vmatprep.mubr.msk.f32.mxu1 %vm6261_vm2, %v26821_v51  ;;  %v26829_v52 = vunpack.i.l.bf16 %v26828_v33  ;;  %v26830_v51 = vunpack.i.h.bf16 %v26826_v2  ;;  %v26831_v6 = vunpack.i.h.bf16 %v26828_v33 }
 0xb41   : > { %v19339_v42 = vpop.f32.mrb[16].mxu1 }
 0xb42   : > { %v12581_v61 = vadd.f32 %v19339_v42, %v24866_v0  ;;  %v12575_v32 = vpop.f32.mrb[17].mxu1 }
 0xb43   : > { %v12576_v14 = vadd.f32 %v24866_v0, %v12575_v32 }
 0xb45   : > { %v20521_v5 = vpack.c.bf16 %v12581_v61, %v12576_v14  ;;  %v19342_v48 = vpop.f32.mrb[18].mxu1 }
 0xb46   : > { %v12591_v8 = vadd.f32 %v19342_v48, %v24866_v0  ;;  %v12585_v54 = vpop.f32.mrb[19].mxu1 }
 0xb47   : > { %v12586_v25 = vadd.f32 %v24866_v0, %v12585_v54  ;;  %20522 = vmatprep.subr.bf16.mxu1 %v20521_v5 }
 0xb48   : > { %20524 = vmatpush3.bf16.msra.mxu1 %v20521_v5 }
 0xb49   : > { %v20525_v50 = vpack.c.bf16 %v12591_v8, %v12586_v25  ;;  %v19345_v30 = vpop.f32.mrb[20].mxu1 }
 0xb4a   : > { %v12601_v44 = vadd.f32 %v19345_v30, %v24866_v0  ;;  %v12595_v37 = vpop.f32.mrb[21].mxu1 }
 0xb4b   : > { %v12596_v27 = vadd.f32 %v24866_v0, %v12595_v37  ;;  %20526 = vmatprep.subr.bf16.mxu1 %v20525_v50 }
 0xb4c   : > { %20528 = vmatpush3.bf16.msra.mxu1 %v20525_v50 }
 0xb4d   : > { %v20529_v4 = vpack.c.bf16 %v12601_v44, %v12596_v27  ;;  %v19348_v60 = vpop.f32.mrb[22].mxu1 }
 0xb4e   : > { %v12611_v18 = vadd.f32 %v19348_v60, %v24866_v0  ;;  %v12605_v57 = vpop.f32.mrb[23].mxu1  ;;  %v26834_v60 = vld [vmem:[#allocation173_spill] sm:$0xff] }
 0xb4f   : > { %v12606_v10 = vadd.f32 %v24866_v0, %v12605_v57  ;;  %19442 = vmatmul.mubr.msk.f32.vlgmr.msra.gmra.mrb[80].mxu1 %vm6261_vm2, %v26823_v31  ;;  %20530 = vmatprep.subr.bf16.mxu1 %v20529_v4  ;;  %v26836_v57 = vunpack.i.h.bf16 %v26832_v58 }
 0xb50   : > { %20532 = vmatpush3.bf16.msra.mxu1 %v20529_v4  ;;  %19452 = vmatprep.mubr.msk.f32.mxu1 %vm6261_vm2, %v26824_v40 }
 0xb51   : > { %v20533_v15 = vpack.c.bf16 %v12611_v18, %v12606_v10  ;;  %v19351_v47 = vpop.f32.mrb[24].mxu1  ;;  %v26835_v18 = vunpack.i.l.bf16 %v26834_v60 }
 0xb52   : > { %v12621_v22 = vadd.f32 %v19351_v47, %v24866_v0  ;;  %v12615_v1 = vpop.f32.mrb[25].mxu1 }
 0xb53   : > { %v12616_v13 = vadd.f32 %v24866_v0, %v12615_v1  ;;  %20534 = vmatprep.subr.bf16.mxu1 %v20533_v15  ;;  %v26837_v1 = vunpack.i.h.bf16 %v26834_v60 }
 0xb54   : > { %20536 = vmatpush3.bf16.msra.mxu1 %v20533_v15 }
 0xb55   : > { %v20537_v45 = vpack.c.bf16 %v12621_v22, %v12616_v13  ;;  %v19354_v3 = vpop.f32.mrb[26].mxu1  ;;  %v26839_v13 = vunpack.i.l.bf16 %v26838_v7 }
 0xb56   : > { %v12631_v46 = vadd.f32 %v19354_v3, %v24866_v0  ;;  %v12625_v28 = vpop.f32.mrb[27].mxu1 }
 0xb57   : > { %v12626_v49 = vadd.f32 %v24866_v0, %v12625_v28  ;;  %19453 = vmatmul.mubr.msk.f32.vlgmr.msra.gmra.mrb[82].mxu1 %vm6261_vm2, %v26825_v56  ;;  %20538 = vmatprep.subr.bf16.mxu1 %v20537_v45 }
 0xb58   : > { %20540 = vmatpush3.bf16.msra.mxu1 %v20537_v45  ;;  %19463 = vmatprep.mubr.msk.f32.mxu1 %vm6261_vm2, %v26827_v12  ;;  %v26840_v12 = vld [vmem:[#allocation175_spill] sm:$0xff] }
 0xb59   : > { %v20541_v36 = vpack.c.bf16 %v12631_v46, %v12626_v49  ;;  %v19357_v11 = vpop.f32.mrb[28].mxu1 }
 0xb5a   : > { %v12641_v19 = vadd.f32 %v19357_v11, %v24866_v0  ;;  %v12635_v63 = vpop.f32.mrb[29].mxu1  ;;  %v26842_v11 = vunpack.i.h.bf16 %v26838_v7 }
 0xb5b   : > { %v12636_v59 = vadd.f32 %v24866_v0, %v12635_v63  ;;  %20542 = vmatprep.subr.bf16.mxu1 %v20541_v36 }
 0xb5c   : > { %20544 = vmatpush3.bf16.msra.mxu1 %v20541_v36  ;;  %v26841_v36 = vunpack.i.l.bf16 %v26840_v12 }
 0xb5d   : > { %v20545_v9 = vpack.c.bf16 %v12641_v19, %v12636_v59  ;;  %v19360_v29 = vpop.f32.mrb[30].mxu1 }
 0xb5e   : > { %v12651_v41 = vadd.f32 %v19360_v29, %v24866_v0  ;;  %v12645_v39 = vpop.f32.mrb[31].mxu1 }
 0xb5f   : > { %v12646_v21 = vadd.f32 %v24866_v0, %v12645_v39  ;;  %19464 = vmatmul.mubr.msk.f32.vlgmr.msra.gmra.mrb[84].mxu1 %vm6261_vm2, %v26829_v52  ;;  %20546 = vmatprep.subr.bf16.mxu1 %v20545_v9 }
 0xb60   : > { %20548 = vmatpush3.bf16.msra.mxu1 %v20545_v9  ;;  %19474 = vmatprep.mubr.msk.f32.mxu1 %vm6261_vm2, %v26830_v51  ;;  %v26843_v51 = vunpack.i.h.bf16 %v26840_v12 }
 0xb61   : > { %v20549_v42 = vpack.c.bf16 %v12651_v41, %v12646_v21  ;;  %v19363_v61 = vpop.f32.mrb[32].mxu1 }
 0xb62   : > { %v12661_v32 = vadd.f32 %v19363_v61, %v24866_v0  ;;  %v12655_v14 = vpop.f32.mrb[33].mxu1 }
 0xb63   : > { %v12656_v5 = vadd.f32 %v24866_v0, %v12655_v14  ;;  %20550 = vmatprep.subr.bf16.mxu1 %v20549_v42 }
 0xb64   : > { %20552 = vmatpush3.bf16.msra.mxu1 %v20549_v42  ;;  %v26844_v42 = vld [vmem:[#allocation176_spill] sm:$0xff] }
 0xb65   : > { %v20553_v48 = vpack.c.bf16 %v12661_v32, %v12656_v5  ;;  %v19366_v8 = vpop.f32.mrb[34].mxu1  ;;  %v26845_v61 = vunpack.i.l.bf16 %v26844_v42 }
 0xb66   : > { %v12671_v54 = vadd.f32 %v19366_v8, %v24866_v0  ;;  %v12665_v25 = vpop.f32.mrb[35].mxu1 }
 0xb67   : > { %v12666_v55 = vadd.f32 %v24866_v0, %v12665_v25  ;;  %19475 = vmatmul.mubr.msk.f32.vlgmr.msra.gmra.mrb[86].mxu1 %vm6261_vm2, %v26831_v6  ;;  %20554 = vmatprep.subr.bf16.mxu1 %v20553_v48 }
 0xb68   : > { %20556 = vmatpush3.bf16.msra.mxu1 %v20553_v48  ;;  %19485 = vmatprep.mubr.msk.f32.mxu1 %vm6261_vm2, %v26833_v38  ;;  %v26846_v38 = vld [vmem:[#allocation177_spill] sm:$0xff] }
 0xb69   : > { %v20557_v26 = vpack.c.bf16 %v12671_v54, %v12666_v55  ;;  %v19369_v50 = vpop.f32.mrb[36].mxu1 }
 0xb6a   : > { %v12681_v30 = vadd.f32 %v19369_v50, %v24866_v0  ;;  %v12675_v43 = vpop.f32.mrb[37].mxu1  ;;  %v26848_v50 = vunpack.i.h.bf16 %v26844_v42 }
 0xb6b   : > { %v12676_v44 = vadd.f32 %v24866_v0, %v12675_v43  ;;  %20558 = vmatprep.subr.bf16.mxu1 %v20557_v26 }
 0xb6c   : > { %20560 = vmatpush3.bf16.msra.mxu1 %v20557_v26  ;;  %v26847_v26 = vunpack.i.l.bf16 %v26846_v38 }
 0xb6d   : > { %v20561_v37 = vpack.c.bf16 %v12681_v30, %v12676_v44  ;;  %v19372_v27 = vpop.f32.mrb[38].mxu1 }
 0xb6e   : > { %v12691_v20 = vadd.f32 %v19372_v27, %v24866_v0  ;;  %v12685_v34 = vpop.f32.mrb[39].mxu1 }
 0xb6f   : > { %v12686_v4 = vadd.f32 %v24866_v0, %v12685_v34  ;;  %19486 = vmatmul.mubr.msk.f32.vlgmr.msra.gmra.mrb[88].mxu1 %vm6261_vm2, %v26835_v18  ;;  %20562 = vmatprep.subr.bf16.mxu1 %v20561_v37 }
 0xb70   : > { %20564 = vmatpush3.bf16.msra.mxu1 %v20561_v37  ;;  %19496 = vmatprep.mubr.msk.f32.mxu1 %vm6261_vm2, %v26836_v57  ;;  %v26849_v57 = vunpack.i.h.bf16 %v26846_v38 }
 0xb71   : > { %v20565_v35 = vpack.c.bf16 %v12691_v20, %v12686_v4  ;;  %v19375_v10 = vpop.f32.mrb[40].mxu1 }
 0xb72   : > { %v12701_v62 = vadd.f32 %v19375_v10, %v24866_v0  ;;  %v12695_v31 = vpop.f32.mrb[41].mxu1 }
 0xb73   : > { %v12696_v23 = vadd.f32 %v24866_v0, %v12695_v31  ;;  %20566 = vmatprep.subr.bf16.mxu1 %v20565_v35 }
 0xb74   : > { %20568 = vmatpush3.bf16.msra.mxu1 %v20565_v35  ;;  %v26850_v35 = vld [vmem:[#allocation178_spill] sm:$0xff] }
 0xb75   : > { %v20569_v24 = vpack.c.bf16 %v12701_v62, %v12696_v23  ;;  %v19378_v40 = vpop.f32.mrb[42].mxu1  ;;  %v26851_v10 = vunpack.i.l.bf16 %v26850_v35 }
 0xb76   : > { %v12711_v15 = vadd.f32 %v19378_v40, %v24866_v0  ;;  %v12705_v47 = vpop.f32.mrb[43].mxu1 }
 0xb77   : > { %v12706_v22 = vadd.f32 %v24866_v0, %v12705_v47  ;;  %19497 = vmatmul.mubr.msk.f32.vlgmr.msra.gmra.mrb[90].mxu1 %vm6261_vm2, %v26837_v1  ;;  %20570 = vmatprep.subr.bf16.mxu1 %v20569_v24 }
 0xb78   : > { %20572 = vmatpush3.bf16.msra.mxu1 %v20569_v24  ;;  %19507 = vmatprep.mubr.msk.f32.mxu1 %vm6261_vm2, %v26839_v13  ;;  %v26852_v13 = vld [vmem:[#allocation179_spill] sm:$0xff] }
 0xb79   : > { %v20573_v16 = vpack.c.bf16 %v12711_v15, %v12706_v22  ;;  %v19381_v53 = vpop.f32.mrb[44].mxu1 }
 0xb7a   : > { %v12721_v45 = vadd.f32 %v19381_v53, %v24866_v0  ;;  %v12715_v3 = vpop.f32.mrb[45].mxu1  ;;  %v26854_v53 = vunpack.i.h.bf16 %v26850_v35 }
 0xb7b   : > { %v12716_v46 = vadd.f32 %v24866_v0, %v12715_v3  ;;  %20574 = vmatprep.subr.bf16.mxu1 %v20573_v16 }
 0xb7c   : > { %20576 = vmatpush3.bf16.msra.mxu1 %v20573_v16  ;;  %v26853_v16 = vunpack.i.l.bf16 %v26852_v13 }
 0xb7d   : > { %v20577_v28 = vpack.c.bf16 %v12721_v45, %v12716_v46  ;;  %v19384_v17 = vpop.f32.mrb[46].mxu1 }
 0xb7e   : > { %v12731_v49 = vadd.f32 %v19384_v17, %v24866_v0  ;;  %v12725_v56 = vpop.f32.mrb[47].mxu1  ;;  %v14274_v17 = vld [vmem:[%s25591_s4 + $0x4d0] sm:$0xff] }
 0xb7f   : > { %v12726_v2 = vadd.f32 %v24866_v0, %v12725_v56  ;;  %19508 = vmatmul.mubr.msk.f32.vlgmr.msra.gmra.mrb[92].mxu1 %vm6261_vm2, %v26841_v36  ;;  %20578 = vmatprep.subr.bf16.mxu1 %v20577_v28 }
 0xb80   : > { %20580 = vmatpush3.bf16.msra.mxu1 %v20577_v28  ;;  %19518 = vmatprep.mubr.msk.f32.mxu1 %vm6261_vm2, %v26842_v11 }
 0xb81   : > { %v20581_v19 = vpack.c.bf16 %v12731_v49, %v12726_v2  ;;  %v19387_v63 = vpop.f32.mrb[48].mxu1  ;;  %v14275_v49 = vld [vmem:[%s25591_s4 + $0x4d8] sm:$0xff] }
 0xb82   : > { %v12741_v59 = vadd.f32 %v19387_v63, %v24866_v0  ;;  %v12735_v9 = vpop.f32.mrb[49].mxu1  ;;  %v20669_v2 = vpack.c.bf16 %v14275_v49, %v14274_v17  ;;  %v14276_v63 = vld [vmem:[%s25591_s4 + $0x4e0] sm:$0xff] }
 0xb83   : > { %v12736_v29 = vadd.f32 %v24866_v0, %v12735_v9  ;;  %20582 = vmatprep.subr.bf16.mxu1 %v20581_v19 }
 0xb84   : > { %20584 = vmatpush3.bf16.msra.mxu1 %v20581_v19  ;;  %20670 = vmatprep.subr.bf16.mxu0 %v20669_v2 }
 0xb85   : > { %v20585_v41 = vpack.c.bf16 %v12741_v59, %v12736_v29  ;;  %v19390_v39 = vpop.f32.mrb[50].mxu1  ;;  %20672 = vmatpush3.bf16.msra.mxu0 %v20669_v2  ;;  %v14277_v59 = vld [vmem:[%s25591_s4 + $0x4e8] sm:$0xff]  ;;  %v26855_v29 = vunpack.i.h.bf16 %v26852_v13  ;;  %v26865_v13 = vld [vmem:[#allocation185_spill] sm:$0xff] }
 0xb86   : > { %v12751_v21 = vadd.f32 %v19390_v39, %v24866_v0  ;;  %v12745_v33 = vpop.f32.mrb[51].mxu1  ;;  %v26856_v39 = vld [vmem:[#allocation180_spill] sm:$0xff] }
 0xb87   : > { %v12746_v52 = vadd.f32 %v24866_v0, %v12745_v33  ;;  %19519 = vmatmul.mubr.msk.f32.vlgmr.msra.gmra.mrb[94].mxu1 %vm6261_vm2, %v26843_v51  ;;  %20586 = vmatprep.subr.bf16.mxu1 %v20585_v41  ;;  %v26860_v38 = vunpack.i.h.bf16 %v26856_v39 }
 0xb88   : > { %20588 = vmatpush3.bf16.msra.mxu1 %v20585_v41  ;;  %19529 = vmatprep.mubr.msk.f32.mxu1 %vm6261_vm2, %v26845_v61  ;;  %v20673_v41 = vpack.c.bf16 %v14277_v59, %v14276_v63  ;;  %v14278_v61 = vld [vmem:[%s25591_s4 + $0x4f0] sm:$0xff]  ;;  %v14762_v59 = vld [vmem:[%s25591_s4 + $0x518] sm:$0xff] }
 0xb89   : > { %v20589_v32 = vpack.c.bf16 %v12751_v21, %v12746_v52  ;;  %v19393_v14 = vpop.f32.mrb[52].mxu1  ;;  %v26857_v21 = vunpack.i.l.bf16 %v26856_v39  ;;  %v14764_v39 = vld [vmem:[%s25591_s4 + $0x528] sm:$0xff] }
 0xb8a   : > { %v12761_v5 = vadd.f32 %v19393_v14, %v24866_v0  ;;  %v12755_v48 = vpop.f32.mrb[53].mxu1  ;;  %20674 = vmatprep.subr.bf16.mxu0 %v20673_v41 }
 0xb8b   : > { %v12756_v8 = vadd.f32 %v24866_v0, %v12755_v48  ;;  %20590 = vmatprep.subr.bf16.mxu1 %v20589_v32  ;;  %20676 = vmatpush3.bf16.msra.mxu0 %v20673_v41  ;;  %v14763_v41 = vld [vmem:[%s25591_s4 + $0x520] sm:$0xff] }
 0xb8c   : > { %20592 = vmatpush3.bf16.msra.mxu1 %v20589_v32  ;;  %v14279_v32 = vld [vmem:[%s25591_s4 + $0x4f8] sm:$0xff] }
 0xb8d   : > { %v20593_v54 = vpack.c.bf16 %v12761_v5, %v12756_v8  ;;  %v19396_v25 = vpop.f32.mrb[54].mxu1  ;;  %v20677_v5 = vpack.c.bf16 %v14279_v32, %v14278_v61  ;;  %v26869_v61 = vld [vmem:[#allocation189_spill] sm:$0xff] }
 0xb8e   : > { %v12771_v55 = vadd.f32 %v19396_v25, %v24866_v0  ;;  %v12765_v6 = vpop.f32.mrb[55].mxu1 }
 0xb8f   : > { %v12766_v58 = vadd.f32 %v24866_v0, %v12765_v6  ;;  %19530 = vmatmul.mubr.msk.f32.vlgmr.msra.gmra.mrb[96].mxu1 %vm6261_vm2, %v26847_v26  ;;  %20594 = vmatprep.subr.bf16.mxu1 %v20593_v54  ;;  %v26858_v6 = vld [vmem:[#allocation181_spill] sm:$0xff] }
 0xb90   : > { %20596 = vmatpush3.bf16.msra.mxu1 %v20593_v54  ;;  %19540 = vmatprep.mubr.msk.f32.mxu1 %vm6261_vm2, %v26848_v50 }
 0xb91   : > { %v20597_v30 = vpack.c.bf16 %v12771_v55, %v12766_v58  ;;  %v19399_v43 = vpop.f32.mrb[56].mxu1  ;;  %20678 = vmatprep.subr.bf16.mxu0 %v20677_v5  ;;  %v26859_v58 = vunpack.i.l.bf16 %v26858_v6 }
 0xb92   : > { %v12781_v44 = vadd.f32 %v19399_v43, %v24866_v0  ;;  %v12775_v37 = vpop.f32.mrb[57].mxu1  ;;  %20680 = vmatpush3.bf16.msra.mxu0 %v20677_v5 }
 0xb93   : > { %v12776_v27 = vadd.f32 %v24866_v0, %v12775_v37  ;;  %20598 = vmatprep.subr.bf16.mxu1 %v20597_v30 }
 0xb94   : > { %20600 = vmatpush3.bf16.msra.mxu1 %v20597_v30 }
 0xb95   : > { %v20601_v20 = vpack.c.bf16 %v12781_v44, %v12776_v27  ;;  %v19402_v34 = vpop.f32.mrb[58].mxu1 }
 0xb96   : > { %v12791_v4 = vadd.f32 %v19402_v34, %v24866_v0  ;;  %v12785_v60 = vpop.f32.mrb[59].mxu1 }
 0xb97   : > { %v12786_v18 = vadd.f32 %v24866_v0, %v12785_v60  ;;  %19541 = vmatmul.mubr.msk.f32.vlgmr.msra.gmra.mrb[98].mxu1 %vm6261_vm2, %v26849_v57  ;;  %20602 = vmatprep.subr.bf16.mxu1 %v20601_v20  ;;  %v26861_v60 = vunpack.i.h.bf16 %v26858_v6 }
 0xb98   : > { %20604 = vmatpush3.bf16.msra.mxu1 %v20601_v20  ;;  %19551 = vmatprep.mubr.msk.f32.mxu1 %vm6261_vm2, %v26851_v10 }
 0xb99   : > { %v20605_v62 = vpack.c.bf16 %v12791_v4, %v12786_v18  ;;  %v19405_v31 = vpop.f32.mrb[60].mxu1  ;;  %v26862_v18 = vld [vmem:[#allocation182_spill] sm:$0xff] }
 0xb9a   : > { %v12801_v23 = vadd.f32 %v19405_v31, %v24866_v0  ;;  %v12795_v24 = vpop.f32.mrb[61].mxu1 }
 0xb9b   : > { %v12796_v40 = vadd.f32 %v24866_v0, %v12795_v24  ;;  %20606 = vmatprep.subr.bf16.mxu1 %v20605_v62 }
 0xb9c   : > { %20608 = vmatpush3.bf16.msra.mxu1 %v20605_v62 }
 0xb9d   : > { %v20609_v15 = vpack.c.bf16 %v12801_v23, %v12796_v40  ;;  %v19408_v47 = vpop.f32.mrb[62].mxu1 }
 0xb9e   : > { %v12811_v22 = vadd.f32 %v19408_v47, %v24866_v0  ;;  %v12805_v1 = vpop.f32.mrb[63].mxu1 }
 0xb9f   : > { %v12806_v7 = vadd.f32 %v24866_v0, %v12805_v1  ;;  %19552 = vmatmul.mubr.msk.f32.vlgmr.msra.gmra.mrb[100].mxu1 %vm6261_vm2, %v26853_v16  ;;  %20610 = vmatprep.subr.bf16.mxu1 %v20609_v15  ;;  %v26864_v1 = vld [vmem:[#allocation184_spill] sm:$0xff] }
 0xba0   : > { %20612 = vmatpush3.bf16.msra.mxu1 %v20609_v15  ;;  %19562 = vmatprep.mubr.msk.f32.mxu1 %vm6261_vm2, %v26854_v53  ;;  %v25072_v53 = vld [vmem:[%s25592_s5 + $0xc] ss:$0 sm:$0xff] }
 0xba1   : > { %v20613_v45 = vpack.c.bf16 %v12811_v22, %v12806_v7  ;;  %v19411_v3 = vpop.f32.mrb[64].mxu1  ;;  %v26863_v22 = vld [vmem:[#allocation183_spill] sm:$0xff] }
 0xba2   : > { %v12821_v46 = vadd.f32 %v19411_v3, %v24866_v0  ;;  %v12815_v28 = vpop.f32.mrb[65].mxu1 }
 0xba3   : > { %v12816_v56 = vadd.f32 %v24866_v0, %v12815_v28  ;;  %20614 = vmatprep.subr.bf16.mxu1 %v20613_v45  ;;  %v26867_v28 = vld [vmem:[#allocation187_spill] sm:$0xff] }
 0xba4   : > { %20616 = vmatpush3.bf16.msra.mxu1 %v20613_v45 }
 0xba5   : > { %v20617_v12 = vpack.c.bf16 %v12821_v46, %v12816_v56  ;;  %v19414_v36 = vpop.f32.mrb[66].mxu1  ;;  %v25078_v46 = vld [vmem:[%s25592_s5 + $0xd] ss:$0 sm:$0xff] }
 0xba6   : > { %v12831_v11 = vadd.f32 %v19414_v36, %v24866_v0  ;;  %v12825_v19 = vpop.f32.mrb[67].mxu1  ;;  %v14760_v36 = vld [vmem:[%s25591_s4 + $0x508] sm:$0xff] }
 0xba7   : > { %v12826_v9 = vadd.f32 %v24866_v0, %v12825_v19  ;;  %19563 = vmatmul.mubr.msk.f32.vlgmr.msra.gmra.mrb[102].mxu1 %vm6261_vm2, %v26855_v29  ;;  %20618 = vmatprep.subr.bf16.mxu1 %v20617_v12 }
 0xba8   : > { %20620 = vmatpush3.bf16.msra.mxu1 %v20617_v12  ;;  %19573 = vmatprep.mubr.msk.f32.mxu1 %vm6261_vm2, %v26857_v21  ;;  %v14759_v12 = vld [vmem:[%s25591_s4 + $0x500] sm:$0xff] }
 0xba9   : > { %v20621_v33 = vpack.c.bf16 %v12831_v11, %v12826_v9  ;;  %v19417_v52 = vpop.f32.mrb[68].mxu1  ;;  %v14761_v11 = vld [vmem:[%s25591_s4 + $0x510] sm:$0xff]  ;;  %v20681_v63 = vpack.c.bf16 %v14760_v36, %v14759_v12  ;;  %v26881_v36 = vld [vmem:[#allocation193_spill] sm:$0xff] }
 0xbaa   : > { %v12841_v51 = vadd.f32 %v19417_v52, %v24866_v0  ;;  %v12835_v42 = vpop.f32.mrb[69].mxu1  ;;  %v20685_v29 = vpack.c.bf16 %v14762_v59, %v14761_v11  ;;  %v26868_v52 = vld [vmem:[#allocation188_spill] sm:$0xff] }
 0xbab   : > { %v12836_v14 = vadd.f32 %v24866_v0, %v12835_v42  ;;  %20622 = vmatprep.subr.bf16.mxu1 %v20621_v33 }
 0xbac   : > { %20624 = vmatpush3.bf16.msra.mxu1 %v20621_v33 }
 0xbad   : > { %v20625_v48 = vpack.c.bf16 %v12841_v51, %v12836_v14  ;;  %v19420_v8 = vpop.f32.mrb[70].mxu1  ;;  %v26870_v14 = vld [vmem:[#allocation8_spill] sm:$0xff] }
 0xbae   : > { %v12851_v54 = vadd.f32 %v19420_v8, %v24866_v0  ;;  %v12845_v25 = vpop.f32.mrb[71].mxu1  ;;  %v26871_v5 = vmax.f32 %v26870_v14, 0.0  ;;  %v20689_v8 = vpack.c.bf16 %v14764_v39, %v14763_v41  ;;  %v26886_v14 = vld [vmem:[#allocation194_spill] sm:$0xff] }
 0xbaf   : > { %v12846_v55 = vadd.f32 %v24866_v0, %v12845_v25  ;;  %19574 = vmatmul.mubr.msk.f32.vlgmr.msra.gmra.mrb[104].mxu1 %vm6261_vm2, %v26859_v58  ;;  %20626 = vmatprep.subr.bf16.mxu1 %v20625_v48  ;;  %v14765_v58 = vld [vmem:[%s25591_s4 + $0x530] sm:$0xff] }
 0xbb0   : > { %20628 = vmatpush3.bf16.msra.mxu1 %v20625_v48  ;;  %19584 = vmatprep.mubr.msk.f32.mxu1 %vm6261_vm2, %v26860_v38  ;;  %v14766_v38 = vld [vmem:[%s25591_s4 + $0x538] sm:$0xff] }
 0xbb1   : > { %v20629_v26 = vpack.c.bf16 %v12851_v54, %v12846_v55  ;;  %v19423_v50 = vpop.f32.mrb[72].mxu1  ;;  %v26872_v54 = vld [vmem:[#allocation7_spill] sm:$0xff] }
 0xbb2   : > { %v12861_v30 = vadd.f32 %v19423_v50, %v24866_v0  ;;  %v12855_v43 = vpop.f32.mrb[73].mxu1  ;;  %v26873_v25 = vmax.f32 %v26872_v54, 0.0 }
 0xbb3   : > { %v12856_v44 = vadd.f32 %v24866_v0, %v12855_v43  ;;  %20630 = vmatprep.subr.bf16.mxu1 %v20629_v26  ;;  %v20693_v43 = vpack.c.bf16 %v14766_v38, %v14765_v58  ;;  %v26890_v58 = vld [vmem:[#allocation17_spill] sm:$0xff] }
 0xbb4   : > { %20632 = vmatpush3.bf16.msra.mxu1 %v20629_v26  ;;  %v26891_v38 = vmax.f32 %v26890_v58, 0.0 }
 0xbb5   : > { %v20633_v37 = vpack.c.bf16 %v12861_v30, %v12856_v44  ;;  %v19426_v27 = vpop.f32.mrb[74].mxu1 }
 0xbb6   : > { %v12871_v20 = vadd.f32 %v19426_v27, %v24866_v0  ;;  %v12865_v34 = vpop.f32.mrb[75].mxu1  ;;  %v14768_v27 = vld [vmem:[%s25591_s4 + $0x548] sm:$0xff] }
 0xbb7   : > { %v12866_v4 = vadd.f32 %v24866_v0, %v12865_v34  ;;  %19585 = vmatmul.mubr.msk.f32.vlgmr.msra.gmra.mrb[106].mxu1 %vm6261_vm2, %v26861_v60  ;;  %20634 = vmatprep.subr.bf16.mxu1 %v20633_v37 }
 0xbb8   : > { %20636 = vmatpush3.bf16.msra.mxu1 %v20633_v37  ;;  %19595 = vmatprep.mubr.msk.f32.mxu1 %vm6261_vm2, %v26862_v18  ;;  %v14767_v37 = vld [vmem:[%s25591_s4 + $0x540] sm:$0xff] }
 0xbb9   : > { %v20637_v57 = vpack.c.bf16 %v12871_v20, %v12866_v4  ;;  %v19429_v35 = vpop.f32.mrb[76].mxu1  ;;  %v26874_v4 = vld [vmem:[#allocation190_spill] sm:$0xff] }
 0xbba   : > { %v12881_v10 = vadd.f32 %v19429_v35, %v24866_v0  ;;  %v12875_v62 = vpop.f32.mrb[77].mxu1 }
 0xbbb   : > { %v12876_v31 = vadd.f32 %v24866_v0, %v12875_v62  ;;  %20638 = vmatprep.subr.bf16.mxu1 %v20637_v57 }
 0xbbc   : > { %20640 = vmatpush3.bf16.msra.mxu1 %v20637_v57  ;;  %v26875_v57 = vld [vmem:[#allocation191_spill] sm:$0xff] }
 0xbbd   : > { %v20641_v23 = vpack.c.bf16 %v12881_v10, %v12876_v31  ;;  %v19432_v24 = vpop.f32.mrb[78].mxu1  ;;  %v26876_v10 = vld [vmem:[#allocation10_spill] sm:$0xff] }
 0xbbe   : > { %v12891_v40 = vadd.f32 %v19432_v24, %v24866_v0  ;;  %v12885_v15 = vpop.f32.mrb[79].mxu1  ;;  %v26877_v62 = vmax.f32 %v26876_v10, 0.0  ;;  %v26878_v24 = vld [vmem:[#allocation9_spill] sm:$0xff] }
 0xbbf   : > { %v12886_v47 = vadd.f32 %v24866_v0, %v12885_v15  ;;  %19596 = vmatmul.mubr.msk.f32.vlgmr.msra.gmra.mrb[108].mxu1 %vm6261_vm2, %v26863_v22  ;;  %20642 = vmatprep.subr.bf16.mxu1 %v20641_v23  ;;  %v26866_v0 = vld [vmem:[#allocation186_spill] sm:$0xff]  ;;  %v14769_v22 = vld [vmem:[%s25591_s4 + $0x550] sm:$0xff] }
 0xbc0   : > { %20644 = vmatpush3.bf16.msra.mxu1 %v20641_v23  ;;  %19606 = vmatprep.mubr.msk.f32.mxu1 %vm6261_vm2, %v26864_v1  ;;  %v20697_v23 = vpack.c.bf16 %v14768_v27, %v14767_v37  ;;  %v14770_v1 = vld [vmem:[%s25591_s4 + $0x558] sm:$0xff] }
 0xbc1   : > { %v20645_v7 = vpack.c.bf16 %v12891_v40, %v12886_v47  ;;  %v26879_v40 = vmax.f32 %v26878_v24, 0.0 }
 0xbc3   : > { %20646 = vmatprep.subr.bf16.mxu1 %v20645_v7 }
 0xbc4   : > { %20648 = vmatpush3.bf16.msra.mxu1 %v20645_v7 }
 0xbc5   : > { %20682 = vmatprep.subr.bf16.mxu1 %v20681_v63 }
 0xbc7   : > { %19607 = vmatmul.mubr.msk.f32.vlgmr.msra.gmra.mrb[110].mxu1 %vm6261_vm2, %v26865_v13 }
 0xbc8   : > { %20684 = vmatpush3.bf16.msra.mxu1 %v20681_v63 }
 0xbc9   : > { %20686 = vmatprep.subr.bf16.mxu1 %v20685_v29 }
 0xbcc   : > { %20688 = vmatpush3.bf16.msra.mxu1 %v20685_v29  ;;  %v26884_v29 = vld [vmem:[#allocation13_spill] sm:$0xff] }
 0xbcd   : > { %20690 = vmatprep.subr.bf16.mxu1 %v20689_v8  ;;  %v26885_v41 = vmax.f32 %v26884_v29, 0.0 }
 0xbd0   : > { %20692 = vmatpush3.bf16.msra.mxu1 %v20689_v8  ;;  %v26887_v8 = vld [vmem:[#allocation195_spill] sm:$0xff] }
 0xbd1   : > { %20694 = vmatprep.subr.bf16.mxu1 %v20693_v43 }
 0xbd4   : > { %20696 = vmatpush3.bf16.msra.mxu1 %v20693_v43 }
 0xbd5   : > { %20698 = vmatprep.subr.bf16.mxu1 %v20697_v23 }
 0xbd8   : > { %20700 = vmatpush3.bf16.msra.mxu1 %v20697_v23 }
 0xc22   : > { %v19443_v16 = vpop.f32.mrb[80].mxu1 }
 0xc23   : > { %v14095_v45 = vadd.f32 %v19443_v16, %v26866_v0  ;;  %v12960_v3 = vpop.f32.mrb[81].mxu1  ;;  %v20701_v0 = vpack.c.bf16 %v14770_v1, %v14769_v22 }
 0xc24   : > { %v14094_v17 = vadd.f32 %v12960_v3, %v26867_v28  ;;  %v14771_v3 = vld [vmem:[%s25591_s4 + $0x560] sm:$0xff]  ;;  %v14772_v28 = vld [vmem:[%s25591_s4 + $0x568] sm:$0xff] }
 0xc25   : > { %v14132_v49 = vmul.f32 %v25072_v53, %v14095_v45  ;;  %20702 = vmatprep.subr.bf16.mxu1 %v20701_v0 }
 0xc26   : > { %v14131_v56 = vmul.f32 %v25072_v53, %v14094_v17  ;;  %20704 = vmatpush3.bf16.msra.mxu1 %v20701_v0 }
 0xc27   : > { %v14169_v2 = vadd.f32 %v25078_v46, %v14132_v49 }
 0xc28   : > { %v14168_v19 = vadd.f32 %v25078_v46, %v14131_v56  ;;  %v26880_v56 = vld [vmem:[#allocation192_spill] sm:$0xff] }
 0xc29   : > { %v14201_v9 = vmax.f32 %v14169_v2, 0.0 }
 0xc2a   : > { %v14200_v21 = vmax.f32 %v14168_v19, 0.0  ;;  %v19454_v33 = vpop.f32.mrb[82].mxu1  ;;  %v26882_v19 = vld [vmem:[#allocation14_spill] sm:$0xff] }
 0xc2b   : > { %v14097_v51 = vadd.f32 %v19454_v33, %v26868_v52  ;;  %v13035_v42 = vpop.f32.mrb[83].mxu1  ;;  %v14233_v55 = vadd.f32 %v14201_v9, %v26873_v25  ;;  %v26883_v63 = vmax.f32 %v26882_v19, 0.0  ;;  %v20705_v9 = vpack.c.bf16 %v14772_v28, %v14771_v3  ;;  %v26888_v25 = vld [vmem:[#allocation18_spill] sm:$0xff]  ;;  %v26899_v3 = vld [vmem:[#allocation28_spill] sm:$0xff] }
 0xc2c   : > { %v14096_v32 = vadd.f32 %v13035_v42, %v26869_v61  ;;  %v14232_v48 = vadd.f32 %v14200_v21, %v26871_v5 }
 0xc2d   : > { %v14134_v6 = vmul.f32 %v25072_v53, %v14097_v51  ;;  %20706 = vmatprep.subr.bf16.mxu1 %v20705_v9 }
 0xc2e   : > { %v14133_v26 = vmul.f32 %v25072_v53, %v14096_v32  ;;  %19641 = vmatprep.mubr.f32.mxu0 %v14232_v48  ;;  %20708 = vmatpush3.bf16.msra.mxu1 %v20705_v9 }
 0xc2f   : > { %v14171_v50 = vadd.f32 %v25078_v46, %v14134_v6  ;;  %19642 = vmatmul.mubr.f32.vlgmr.msra.gmra.mrb[80].mxu0 %v14233_v55  ;;  %v26889_v55 = vmax.f32 %v26888_v25, 0.0 }
 0xc30   : > { %v14170_v30 = vadd.f32 %v25078_v46, %v14133_v26 }
 0xc31   : > { %v14203_v44 = vmax.f32 %v14171_v50, 0.0 }
 0xc32   : > { %v14202_v20 = vmax.f32 %v14170_v30, 0.0  ;;  %v19465_v34 = vpop.f32.mrb[84].mxu1 }
 0xc33   : > { %v14099_v60 = vadd.f32 %v19465_v34, %v26874_v4  ;;  %v13110_v18 = vpop.f32.mrb[85].mxu1  ;;  %v14235_v15 = vadd.f32 %v14203_v44, %v26879_v40  ;;  %v26892_v34 = vld [vmem:[#allocation41_spill] sm:$0xff] }
 0xc34   : > { %v14098_v35 = vadd.f32 %v13110_v18, %v26875_v57  ;;  %v14234_v31 = vadd.f32 %v14202_v20, %v26877_v62  ;;  %v26893_v18 = vld [vmem:[#allocation45_spill] sm:$0xff] }
 0xc35   : > { %v14136_v47 = vmul.f32 %v25072_v53, %v14099_v60 }
 0xc36   : > { %v14135_v7 = vmul.f32 %v25072_v53, %v14098_v35  ;;  %19644 = vmatprep.mubr.f32.mxu0 %v14234_v31  ;;  %v26894_v35 = vld [vmem:[#allocation22_spill] sm:$0xff]  ;;  %v26896_v31 = vld [vmem:[#allocation21_spill] sm:$0xff] }
 0xc37   : > { %v14173_v13 = vadd.f32 %v25078_v46, %v14136_v47  ;;  %19645 = vmatmul.mubr.f32.gmra.mrb[82].mxu0 %v14235_v15  ;;  %v26895_v10 = vmax.f32 %v26894_v35, 0.0  ;;  %v26897_v23 = vmax.f32 %v26896_v31, 0.0 }
 0xc38   : > { %v14172_v16 = vadd.f32 %v25078_v46, %v14135_v7 }
 0xc39   : > { %v14205_v45 = vmax.f32 %v14173_v13, 0.0 }
 0xc3a   : > { %v14204_v17 = vmax.f32 %v14172_v16, 0.0  ;;  %v19476_v49 = vpop.f32.mrb[86].mxu1  ;;  %v26898_v16 = vld [vmem:[#allocation47_spill] sm:$0xff] }
 0xc3b   : > { %v14101_v2 = vadd.f32 %v19476_v49, %v26880_v56  ;;  %v13185_v12 = vpop.f32.mrb[87].mxu1  ;;  %v14237_v39 = vadd.f32 %v14205_v45, %v26885_v41 }
 0xc3c   : > { %v14100_v11 = vadd.f32 %v13185_v12, %v26881_v36  ;;  %v14236_v59 = vadd.f32 %v14204_v17, %v26883_v63  ;;  %v26900_v17 = vld [vmem:[#allocation26_spill] sm:$0xff] }
 0xc3d   : > { %v14138_v21 = vmul.f32 %v25072_v53, %v14101_v2  ;;  %v26901_v49 = vmax.f32 %v26900_v17, 0.0  ;;  %v26902_v2 = vld [vmem:[#allocation25_spill] sm:$0xff] }
 0xc3e   : > { %v14137_v33 = vmul.f32 %v25072_v53, %v14100_v11  ;;  %19647 = vmatprep.mubr.f32.mxu0 %v14236_v59  ;;  %v26903_v12 = vmax.f32 %v26902_v2, 0.0 }
 0xc3f   : > { %v14175_v52 = vadd.f32 %v25078_v46, %v14138_v21  ;;  %19648 = vmatmul.mubr.f32.gmra.mrb[84].mxu0 %v14237_v39  ;;  %v26904_v39 = vld [vmem:[#allocation34_spill] sm:$0xff] }
 0xc40   : > { %v14174_v51 = vadd.f32 %v25078_v46, %v14137_v33 }
 0xc41   : > { %v14207_v42 = vmax.f32 %v14175_v52, 0.0  ;;  %v26905_v52 = vld [vmem:[#allocation36_spill] sm:$0xff] }
 0xc42   : > { %v14206_v61 = vmax.f32 %v14174_v51, 0.0  ;;  %v19487_v32 = vpop.f32.mrb[88].mxu1 }
 0xc43   : > { %v14103_v5 = vadd.f32 %v19487_v32, %v26886_v14  ;;  %v13260_v48 = vpop.f32.mrb[89].mxu1  ;;  %v14239_v26 = vadd.f32 %v14207_v42, %v26891_v38  ;;  %v26906_v42 = vld [vmem:[#allocation32_spill] sm:$0xff]  ;;  %v26908_v14 = vld [vmem:[#allocation31_spill] sm:$0xff] }
 0xc44   : > { %v14102_v54 = vadd.f32 %v13260_v48, %v26887_v8  ;;  %v14238_v6 = vadd.f32 %v14206_v61, %v26889_v55  ;;  %v26907_v61 = vmax.f32 %v26906_v42, 0.0 }
 0xc45   : > { %v14140_v50 = vmul.f32 %v25072_v53, %v14103_v5  ;;  %v26909_v5 = vmax.f32 %v26908_v14, 0.0 }
 0xc46   : > { %v14139_v30 = vmul.f32 %v25072_v53, %v14102_v54  ;;  %19650 = vmatprep.mubr.f32.mxu0 %v14238_v6 }
 0xc47   : > { %v14177_v43 = vadd.f32 %v25078_v46, %v14140_v50  ;;  %19651 = vmatmul.mubr.f32.gmra.mrb[86].mxu0 %v14239_v26  ;;  %v26910_v26 = vld [vmem:[#allocation51_spill] sm:$0xff] }
 0xc48   : > { %v14176_v44 = vadd.f32 %v25078_v46, %v14139_v30 }
 0xc49   : > { %v14209_v37 = vmax.f32 %v14177_v43, 0.0  ;;  %v26911_v43 = vld [vmem:[#allocation53_spill] sm:$0xff] }
 0xc4a   : > { %v14208_v27 = vmax.f32 %v14176_v44, 0.0  ;;  %v19498_v20 = vpop.f32.mrb[90].mxu1 }
 0xc4b   : > { %v14105_v4 = vadd.f32 %v19498_v20, %v26892_v34  ;;  %v13335_v60 = vpop.f32.mrb[91].mxu1  ;;  %v14241_v24 = vadd.f32 %v14209_v37, %v26897_v23  ;;  %v26912_v37 = vld [vmem:[#allocation38_spill] sm:$0xff]  ;;  %v26914_v34 = vld [vmem:[#allocation37_spill] sm:$0xff] }
 0xc4c   : > { %v14104_v57 = vadd.f32 %v13335_v60, %v26893_v18  ;;  %v14240_v62 = vadd.f32 %v14208_v27, %v26895_v10  ;;  %v26913_v27 = vmax.f32 %v26912_v37, 0.0 }
 0xc4d   : > { %v14142_v40 = vmul.f32 %v25072_v53, %v14105_v4  ;;  %v26915_v4 = vmax.f32 %v26914_v34, 0.0 }
 0xc4e   : > { %v14141_v15 = vmul.f32 %v25072_v53, %v14104_v57  ;;  %19653 = vmatprep.mubr.f32.mxu0 %v14240_v62 }
 0xc4f   : > { %v14179_v47 = vadd.f32 %v25078_v46, %v14142_v40  ;;  %19654 = vmatmul.mubr.f32.gmra.mrb[88].mxu0 %v14241_v24  ;;  %v26916_v24 = vld [vmem:[#allocation57_spill] sm:$0xff] }
 0xc50   : > { %v14178_v22 = vadd.f32 %v25078_v46, %v14141_v15 }
 0xc51   : > { %v14211_v1 = vmax.f32 %v14179_v47, 0.0  ;;  %v26917_v47 = vld [vmem:[#allocation59_spill] sm:$0xff] }
 0xc52   : > { %v14210_v7 = vmax.f32 %v14178_v22, 0.0  ;;  %v19509_v13 = vpop.f32.mrb[92].mxu1 }
 0xc53   : > { %v14107_v0 = vadd.f32 %v19509_v13, %v26898_v16  ;;  %v13410_v45 = vpop.f32.mrb[93].mxu1  ;;  %v14243_v36 = vadd.f32 %v14211_v1, %v26903_v12  ;;  %v26918_v1 = vld [vmem:[#allocation44_spill] sm:$0xff]  ;;  %v26920_v16 = vld [vmem:[#allocation43_spill] sm:$0xff] }
 0xc54   : > { %v14106_v28 = vadd.f32 %v13410_v45, %v26899_v3  ;;  %v14242_v56 = vadd.f32 %v14210_v7, %v26901_v49  ;;  %v26919_v7 = vmax.f32 %v26918_v1, 0.0 }
 0xc55   : > { %v14144_v11 = vmul.f32 %v25072_v53, %v14107_v0  ;;  %v26921_v0 = vmax.f32 %v26920_v16, 0.0 }
 0xc56   : > { %v14143_v19 = vmul.f32 %v25072_v53, %v14106_v28  ;;  %19656 = vmatprep.mubr.f32.mxu0 %v14242_v56 }
 0xc57   : > { %v14181_v63 = vadd.f32 %v25078_v46, %v14144_v11  ;;  %19657 = vmatmul.mubr.f32.gmra.mrb[90].mxu0 %v14243_v36  ;;  %v26922_v36 = vld [vmem:[#allocation40_spill] sm:$0xff] }
 0xc58   : > { %v14180_v59 = vadd.f32 %v25078_v46, %v14143_v19 }
 0xc59   : > { %v14213_v9 = vmax.f32 %v14181_v63, 0.0  ;;  %v26923_v63 = vld [vmem:[#allocation42_spill] sm:$0xff] }
 0xc5a   : > { %v14212_v29 = vmax.f32 %v14180_v59, 0.0  ;;  %v19520_v41 = vpop.f32.mrb[94].mxu1 }
 0xc5b   : > { %v14109_v21 = vadd.f32 %v19520_v41, %v26904_v39  ;;  %v13485_v33 = vpop.f32.mrb[95].mxu1  ;;  %v14245_v48 = vadd.f32 %v14213_v9, %v26909_v5  ;;  %v26924_v9 = vld [vmem:[#allocation50_spill] sm:$0xff]  ;;  %v26926_v39 = vld [vmem:[#allocation49_spill] sm:$0xff] }
 0xc5c   : > { %v14108_v51 = vadd.f32 %v13485_v33, %v26905_v52  ;;  %v14244_v32 = vadd.f32 %v14212_v29, %v26907_v61  ;;  %v26925_v29 = vmax.f32 %v26924_v9, 0.0 }
 0xc5d   : > { %v14146_v8 = vmul.f32 %v25072_v53, %v14109_v21  ;;  %v26927_v21 = vmax.f32 %v26926_v39, 0.0 }
 0xc5e   : > { %v14145_v54 = vmul.f32 %v25072_v53, %v14108_v51  ;;  %19659 = vmatprep.mubr.f32.mxu0 %v14244_v32 }
 0xc5f   : > { %v14183_v25 = vadd.f32 %v25078_v46, %v14146_v8  ;;  %19660 = vmatmul.mubr.f32.gmra.mrb[92].mxu0 %v14245_v48  ;;  %v26928_v48 = vld [vmem:[#allocation48_spill] sm:$0xff] }
 0xc60   : > { %v14182_v55 = vadd.f32 %v25078_v46, %v14145_v54 }
 0xc61   : > { %v14215_v6 = vmax.f32 %v14183_v25, 0.0  ;;  %v26929_v25 = vld [vmem:[#allocation63_spill] sm:$0xff] }
 0xc62   : > { %v14214_v58 = vmax.f32 %v14182_v55, 0.0  ;;  %v19531_v38 = vpop.f32.mrb[96].mxu1 }
 0xc63   : > { %v14111_v50 = vadd.f32 %v19531_v38, %v26910_v26  ;;  %v13560_v30 = vpop.f32.mrb[97].mxu1  ;;  %v14247_v60 = vadd.f32 %v14215_v6, %v26915_v4  ;;  %v26930_v6 = vld [vmem:[#allocation56_spill] sm:$0xff]  ;;  %v26932_v26 = vld [vmem:[#allocation55_spill] sm:$0xff] }
 0xc64   : > { %v14110_v44 = vadd.f32 %v13560_v30, %v26911_v43  ;;  %v14246_v20 = vadd.f32 %v14214_v58, %v26913_v27  ;;  %v26931_v58 = vmax.f32 %v26930_v6, 0.0 }
 0xc65   : > { %v14148_v18 = vmul.f32 %v25072_v53, %v14111_v50  ;;  %v26933_v50 = vmax.f32 %v26932_v26, 0.0 }
 0xc66   : > { %v14147_v57 = vmul.f32 %v25072_v53, %v14110_v44  ;;  %19662 = vmatprep.mubr.f32.mxu0 %v14246_v20 }
 0xc67   : > { %v14185_v35 = vadd.f32 %v25078_v46, %v14148_v18  ;;  %19663 = vmatmul.mubr.f32.gmra.mrb[94].mxu0 %v14247_v60  ;;  %v26934_v60 = vld [vmem:[#allocation65_spill] sm:$0xff] }
 0xc68   : > { %v14184_v10 = vadd.f32 %v25078_v46, %v14147_v57 }
 0xc69   : > { %v14217_v62 = vmax.f32 %v14185_v35, 0.0  ;;  %v26935_v35 = vld [vmem:[#allocation69_spill] sm:$0xff] }
 0xc6a   : > { %v14216_v31 = vmax.f32 %v14184_v10, 0.0  ;;  %v19542_v23 = vpop.f32.mrb[98].mxu1 }
 0xc6b   : > { %v14113_v40 = vadd.f32 %v19542_v23, %v26916_v24  ;;  %v13635_v15 = vpop.f32.mrb[99].mxu1  ;;  %v14249_v45 = vadd.f32 %v14217_v62, %v26921_v0  ;;  %v26936_v62 = vld [vmem:[#allocation62_spill] sm:$0xff]  ;;  %v14773_v24 = vld [vmem:[%s25591_s4 + $0x570] sm:$0xff] }
 0xc6c   : > { %v14112_v22 = vadd.f32 %v13635_v15, %v26917_v47  ;;  %v14248_v13 = vadd.f32 %v14216_v31, %v26919_v7  ;;  %v26937_v31 = vmax.f32 %v26936_v62, 0.0  ;;  %v26938_v15 = vld [vmem:[#allocation61_spill] sm:$0xff] }
 0xc6d   : > { %v14150_v3 = vmul.f32 %v25072_v53, %v14113_v40  ;;  %v14774_v40 = vld [vmem:[%s25591_s4 + $0x578] sm:$0xff]  ;;  %v26939_v47 = vmax.f32 %v26938_v15, 0.0 }
 0xc6e   : > { %v14149_v28 = vmul.f32 %v25072_v53, %v14112_v22  ;;  %19665 = vmatprep.mubr.f32.mxu0 %v14248_v13  ;;  %v20709_v7 = vpack.c.bf16 %v14774_v40, %v14773_v24 }
 0xc6f   : > { %v14187_v17 = vadd.f32 %v25078_v46, %v14150_v3  ;;  %19666 = vmatmul.mubr.f32.gmra.mrb[96].mxu0 %v14249_v45 }
 0xc70   : > { %v14186_v49 = vadd.f32 %v25078_v46, %v14149_v28  ;;  %20710 = vmatprep.subr.bf16.mxu1 %v20709_v7 }
 0xc71   : > { %v14219_v56 = vmax.f32 %v14187_v17, 0.0  ;;  %20712 = vmatpush3.bf16.msra.mxu1 %v20709_v7  ;;  %v26940_v17 = vld [vmem:[#allocation71_spill] sm:$0xff] }
 0xc72   : > { %v14218_v2 = vmax.f32 %v14186_v49, 0.0  ;;  %v19553_v12 = vpop.f32.mrb[100].mxu1 }
 0xc73   : > { %v14115_v11 = vadd.f32 %v19553_v12, %v26922_v36  ;;  %v13710_v19 = vpop.f32.mrb[101].mxu1  ;;  %v14251_v33 = vadd.f32 %v14219_v56, %v26927_v21  ;;  %v26942_v36 = vld [vmem:[#allocation68_spill] sm:$0xff] }
 0xc74   : > { %v14114_v59 = vadd.f32 %v13710_v19, %v26923_v63  ;;  %v14250_v41 = vadd.f32 %v14218_v2, %v26925_v29  ;;  %v26941_v2 = vld [vmem:[#allocation54_spill] sm:$0xff]  ;;  %v26944_v63 = vld [vmem:[#allocation67_spill] sm:$0xff] }
 0xc75   : > { %v14152_v52 = vmul.f32 %v25072_v53, %v14115_v11  ;;  %v26943_v11 = vmax.f32 %v26942_v36, 0.0 }
 0xc76   : > { %v14151_v51 = vmul.f32 %v25072_v53, %v14114_v59  ;;  %19668 = vmatprep.mubr.f32.mxu0 %v14250_v41  ;;  %v26945_v59 = vmax.f32 %v26944_v63, 0.0 }
 0xc77   : > { %v14189_v42 = vadd.f32 %v25078_v46, %v14152_v52  ;;  %19669 = vmatmul.mubr.f32.gmra.mrb[98].mxu0 %v14251_v33 }
 0xc78   : > { %v14188_v61 = vadd.f32 %v25078_v46, %v14151_v51 }
 0xc79   : > { %v14221_v32 = vmax.f32 %v14189_v42, 0.0  ;;  %v26946_v42 = vld [vmem:[#allocation60_spill] sm:$0xff] }
 0xc7a   : > { %v14220_v14 = vmax.f32 %v14188_v61, 0.0  ;;  %v19564_v5 = vpop.f32.mrb[102].mxu1 }
 0xc7b   : > { %v14117_v8 = vadd.f32 %v19564_v5, %v26928_v48  ;;  %v13785_v54 = vpop.f32.mrb[103].mxu1  ;;  %v14253_v30 = vadd.f32 %v14221_v32, %v26933_v50  ;;  %v26948_v48 = vld [vmem:[#allocation74_spill] sm:$0xff] }
 0xc7c   : > { %v14116_v55 = vadd.f32 %v13785_v54, %v26929_v25  ;;  %v14252_v38 = vadd.f32 %v14220_v14, %v26931_v58  ;;  %v26947_v14 = vld [vmem:[#allocation75_spill] sm:$0xff]  ;;  %v26950_v25 = vld [vmem:[#allocation73_spill] sm:$0xff] }
 0xc7d   : > { %v14154_v43 = vmul.f32 %v25072_v53, %v14117_v8  ;;  %v26949_v8 = vmax.f32 %v26948_v48, 0.0  ;;  %v15038_v48 = vld [vmem:[%s25591_s4 + $0x588] sm:$0xff] }
 0xc7e   : > { %v14153_v44 = vmul.f32 %v25072_v53, %v14116_v55  ;;  %19671 = vmatprep.mubr.f32.mxu0 %v14252_v38  ;;  %v26951_v55 = vmax.f32 %v26950_v25, 0.0 }
 0xc7f   : > { %v14191_v37 = vadd.f32 %v25078_v46, %v14154_v43  ;;  %19672 = vmatmul.mubr.f32.gmra.mrb[100].mxu0 %v14253_v30 }
 0xc80   : > { %v14190_v27 = vadd.f32 %v25078_v46, %v14153_v44 }
 0xc81   : > { %v14223_v20 = vmax.f32 %v14191_v37, 0.0  ;;  %v26952_v37 = vld [vmem:[#allocation77_spill] sm:$0xff] }
 0xc82   : > { %v14222_v34 = vmax.f32 %v14190_v27, 0.0  ;;  %v19575_v4 = vpop.f32.mrb[104].mxu1 }
 0xc83   : > { %v14119_v18 = vadd.f32 %v19575_v4, %v26934_v60  ;;  %v13860_v57 = vpop.f32.mrb[105].mxu1  ;;  %v14255_v22 = vadd.f32 %v14223_v20, %v26939_v47  ;;  %v26954_v60 = vld [vmem:[#allocation80_spill] sm:$0xff] }
 0xc84   : > { %v14118_v10 = vadd.f32 %v13860_v57, %v26935_v35  ;;  %v14254_v23 = vadd.f32 %v14222_v34, %v26937_v31  ;;  %v26953_v34 = vld [vmem:[#allocation81_spill] sm:$0xff]  ;;  %v26956_v35 = vld [vmem:[#allocation79_spill] sm:$0xff] }
 0xc85   : > { %v14156_v1 = vmul.f32 %v25072_v53, %v14119_v18  ;;  %v26955_v18 = vmax.f32 %v26954_v60, 0.0  ;;  %v15043_v60 = vld [vmem:[%s25591_s4 + $0x5b0] sm:$0xff] }
 0xc86   : > { %v14155_v13 = vmul.f32 %v25072_v53, %v14118_v10  ;;  %19674 = vmatprep.mubr.f32.mxu0 %v14254_v23  ;;  %v26957_v10 = vmax.f32 %v26956_v35, 0.0 }
 0xc87   : > { %v14193_v16 = vadd.f32 %v25078_v46, %v14156_v1  ;;  %19675 = vmatmul.mubr.f32.gmra.mrb[102].mxu0 %v14255_v22  ;;  %v26958_v22 = vld [vmem:[#allocation87_spill] sm:$0xff] }
 0xc88   : > { %v14192_v0 = vadd.f32 %v25078_v46, %v14155_v13  ;;  %v26959_v1 = vmax.f32 %v26958_v22, 0.0  ;;  %v26960_v13 = vld [vmem:[#allocation85_spill] sm:$0xff] }
 0xc89   : > { %v14225_v45 = vmax.f32 %v14193_v16, 0.0  ;;  %v26961_v16 = vmax.f32 %v26960_v13, 0.0  ;;  %v15045_v22 = vld [vmem:[%s25591_s4 + $0x5c0] sm:$0xff] }
 0xc8a   : > { %v14224_v3 = vmax.f32 %v14192_v0, 0.0  ;;  %v19586_v28 = vpop.f32.mrb[106].mxu1 }
 0xc8b   : > { %v14121_v49 = vadd.f32 %v19586_v28, %v26940_v17  ;;  %v13935_v56 = vpop.f32.mrb[107].mxu1  ;;  %v14257_v9 = vadd.f32 %v14225_v45, %v26945_v59 }
 0xc8c   : > { %v14120_v12 = vadd.f32 %v13935_v56, %v26941_v2  ;;  %v14256_v19 = vadd.f32 %v14224_v3, %v26943_v11 }
 0xc8d   : > { %v14158_v29 = vmul.f32 %v25072_v53, %v14121_v49 }
 0xc8e   : > { %v14157_v41 = vmul.f32 %v25072_v53, %v14120_v12  ;;  %19677 = vmatprep.mubr.f32.mxu0 %v14256_v19 }
 0xc8f   : > { %v14195_v39 = vadd.f32 %v25078_v46, %v14158_v29  ;;  %19678 = vmatmul.mubr.f32.gmra.mrb[104].mxu0 %v14257_v9 }
 0xc90   : > { %v14194_v21 = vadd.f32 %v25078_v46, %v14157_v41 }
 0xc91   : > { %v14227_v33 = vmax.f32 %v14195_v39, 0.0 }
 0xc92   : > { %v14226_v52 = vmax.f32 %v14194_v21, 0.0  ;;  %v19597_v51 = vpop.f32.mrb[108].mxu1 }
 0xc93   : > { %v14123_v61 = vadd.f32 %v19597_v51, %v26946_v42  ;;  %v14010_v32 = vpop.f32.mrb[109].mxu1  ;;  %v14259_v6 = vadd.f32 %v14227_v33, %v26951_v55 }
 0xc94   : > { %v14122_v5 = vadd.f32 %v14010_v32, %v26947_v14  ;;  %v14258_v54 = vadd.f32 %v14226_v52, %v26949_v8  ;;  %v15039_v8 = vld [vmem:[%s25591_s4 + $0x590] sm:$0xff] }
 0xc95   : > { %v14160_v58 = vmul.f32 %v25072_v53, %v14123_v61 }
 0xc96   : > { %v14159_v38 = vmul.f32 %v25072_v53, %v14122_v5  ;;  %19680 = vmatprep.mubr.f32.mxu0 %v14258_v54  ;;  %v15037_v5 = vld [vmem:[%s25591_s4 + $0x580] sm:$0xff] }
 0xc97   : > { %v14197_v26 = vadd.f32 %v25078_v46, %v14160_v58  ;;  %19681 = vmatmul.mubr.f32.gmra.mrb[106].mxu0 %v14259_v6  ;;  %v20713_v55 = vpack.c.bf16 %v15038_v48, %v15037_v5  ;;  %v15040_v6 = vld [vmem:[%s25591_s4 + $0x598] sm:$0xff] }
 0xc98   : > { %v14196_v50 = vadd.f32 %v25078_v46, %v14159_v38  ;;  %v20717_v58 = vpack.c.bf16 %v15040_v6, %v15039_v8  ;;  %v15041_v38 = vld [vmem:[%s25591_s4 + $0x5a0] sm:$0xff] }
 0xc99   : > { %v14229_v30 = vmax.f32 %v14197_v26, 0.0  ;;  %v15042_v26 = vld [vmem:[%s25591_s4 + $0x5a8] sm:$0xff]  ;;  %20714 = vmatprep.subr.bf16.mxu0 %v20713_v55 }
 0xc9a   : > { %v14228_v43 = vmax.f32 %v14196_v50, 0.0  ;;  %v19608_v44 = vpop.f32.mrb[110].mxu1  ;;  %20716 = vmatpush3.bf16.msra.mxu0 %v20713_v55 }
 0xc9b   : > { %v14125_v27 = vadd.f32 %v19608_v44, %v26952_v37  ;;  %v14085_v20 = vpop.f32.mrb[111].mxu1  ;;  %v14261_v62 = vadd.f32 %v14229_v30, %v26957_v10  ;;  %20718 = vmatprep.subr.bf16.mxu0 %v20717_v58 }
 0xc9c   : > { %v14124_v4 = vadd.f32 %v14085_v20, %v26953_v34  ;;  %v14260_v57 = vadd.f32 %v14228_v43, %v26955_v18  ;;  %v20721_v20 = vpack.c.bf16 %v15042_v26, %v15041_v38  ;;  %v15044_v18 = vld [vmem:[%s25591_s4 + $0x5b8] sm:$0xff] }
 0xc9d   : > { %v14162_v31 = vmul.f32 %v25072_v53, %v14125_v27 }
 0xc9e   : > { %v14161_v23 = vmul.f32 %v25072_v53, %v14124_v4  ;;  %19683 = vmatprep.mubr.f32.mxu0 %v14260_v57  ;;  %v25290_v53 = vld [vmem:[%s25592_s5 + $0xe] ss:$0 sm:$0xff]  ;;  %20720 = vmatpush3.bf16.msra.mxu0 %v20717_v58 }
 0xc9f   : > { %v14199_v24 = vadd.f32 %v25078_v46, %v14162_v31  ;;  %19684 = vmatmul.mubr.f32.gmra.mrb[108].mxu0 %v14261_v62  ;;  %20722 = vmatprep.subr.bf16.mxu0 %v20721_v20 }
 0xca0   : > { %v14198_v40 = vadd.f32 %v25078_v46, %v14161_v23  ;;  %v25327_v23 = vld [vmem:[%s25592_s5 + $0x11] ss:$0 sm:$0xff] }
 0xca1   : > { %v14231_v15 = vmax.f32 %v14199_v24, 0.0 }
 0xca2   : > { %v14230_v47 = vmax.f32 %v14198_v40, 0.0  ;;  %20724 = vmatpush3.bf16.msra.mxu0 %v20721_v20 }
 0xca3   : > { %v14263_v0 = vadd.f32 %v14231_v15, %v26961_v16 }
 0xca4   : > { %v14262_v7 = vadd.f32 %v14230_v47, %v26959_v1  ;;  %v20725_v47 = vpack.c.bf16 %v15044_v18, %v15043_v60  ;;  %v15046_v1 = vld [vmem:[%s25591_s4 + $0x5c8] sm:$0xff] }
 0xca6   : > { %19686 = vmatprep.mubr.f32.mxu0 %v14262_v7  ;;  %20726 = vmatprep.subr.bf16.mxu0 %v20725_v47 }
 0xca7   : > { %19687 = vmatmul.mubr.f32.gmra.mrb[110].mxu0 %v14263_v0 }
 0xca8   : > { %20728 = vmatpush3.bf16.msra.mxu0 %v20725_v47 }
 0xd02   : > { %v19643_v45 = vpop.f32.mrb[80].mxu0 }
 0xd03   : > { %v14357_v3 = vadd.f32 %v19643_v45, %v25290_v53  ;;  %v14351_v28 = vpop.f32.mrb[81].mxu0 }
 0xd04   : > { %v14352_v46 = vadd.f32 %v25290_v53, %v14351_v28 }
 0xd05   : > { %v14511_v17 = vmax.f32 %v14357_v3, 0.0 }
 0xd06   : > { %v14510_v49 = vmax.f32 %v14352_v46, 0.0 }
 0xd08   : > { %v14542_v56 = vadd.f32 %v14511_v17, %v14510_v49  ;;  %19721 = vmatprep.mubr.f32.mxu1 %v14510_v49 }
 0xd09   : > { %19722 = vmatmul.mubr.f32.vlgmr.msra.gmra.mrb[112].mxu1 %v14511_v17  ;;  %v20729_v17 = vpack.c.bf16 %v15046_v1, %v15045_v22 }
 0xd0a   : > { %v14543_v2 = vrot.slane %v14542_v56, 4  ;;  %v19646_v12 = vpop.f32.mrb[82].mxu0 }
 0xd0b   : > { %v14367_v36 = vadd.f32 %v19646_v12, %v25290_v53  ;;  %v14361_v11 = vpop.f32.mrb[83].mxu0  ;;  %v15048_v12 = vld [vmem:[%s25591_s4 + $0x5d8] sm:$0xff]  ;;  %20730 = vmatprep.subr.bf16.mxu0 %v20729_v17 }
 0xd0c   : > { %v14544_v19 = vadd.f32 %v14543_v2, %v14542_v56  ;;  %v14362_v63 = vadd.f32 %v25290_v53, %v14361_v11  ;;  %v15047_v2 = vld [vmem:[%s25591_s4 + $0x5d0] sm:$0xff]  ;;  %20732 = vmatpush3.bf16.msra.mxu0 %v20729_v17 }
 0xd0d   : > { %v14513_v59 = vmax.f32 %v14367_v36, 0.0 }
 0xd0e   : > { %v14545_v9 = vrot.slane %v14544_v19, 2  ;;  %v14512_v29 = vmax.f32 %v14362_v63, 0.0 }
 0xd10   : > { %v14549_v41 = vadd.f32 %v14513_v59, %v14512_v29  ;;  %19724 = vmatprep.mubr.f32.mxu1 %v14512_v29  ;;  %v14546_v39 = vadd.f32 %v14545_v9, %v14544_v19 }
 0xd11   : > { %19725 = vmatmul.mubr.f32.gmra.mrb[114].mxu1 %v14513_v59 }
 0xd12   : > { %v14550_v21 = vrot.slane %v14549_v41, 4  ;;  %v19649_v33 = vpop.f32.mrb[84].mxu0  ;;  %v14547_v32 = vrot.slane %v14546_v39, 1 }
 0xd13   : > { %v14377_v52 = vadd.f32 %v19649_v33, %v25290_v53  ;;  %v14371_v51 = vpop.f32.mrb[85].mxu0  ;;  %v15050_v33 = vld [vmem:[%s25591_s4 + $0x5e8] sm:$0xff] }
 0xd14   : > { %v14551_v42 = vadd.f32 %v14550_v21, %v14549_v41  ;;  %v14372_v61 = vadd.f32 %v25290_v53, %v14371_v51  ;;  %v14548_v43 = vadd.f32 %v14547_v32, %v14546_v39  ;;  %v20733_v39 = vpack.c.bf16 %v15048_v12, %v15047_v2  ;;  %v15049_v21 = vld [vmem:[%s25591_s4 + $0x5e0] sm:$0xff] }
 0xd15   : > { %v14515_v14 = vmax.f32 %v14377_v52, 0.0  ;;  %v20737_v48 = vpack.c.bf16 %v15050_v33, %v15049_v21 }
 0xd16   : > { %v14552_v54 = vrot.slane %v14551_v42, 2  ;;  %v14514_v25 = vmax.f32 %v14372_v61, 0.0  ;;  %v14655_v62 = vmul.f32 0.0625, %v14548_v43  ;;  %20734 = vmatprep.subr.bf16.mxu0 %v20733_v39 }
 0xd17   : > { %20736 = vmatpush3.bf16.msra.mxu0 %v20733_v39 }
 0xd18   : > { %v14553_v50 = vadd.f32 %v14552_v54, %v14551_v42  ;;  %v14556_v30 = vadd.f32 %v14515_v14, %v14514_v25  ;;  %19727 = vmatprep.mubr.f32.mxu1 %v14514_v25  ;;  %v14676_v0 = vmul.f32 %v25327_v23, %v14655_v62  ;;  %20738 = vmatprep.subr.bf16.mxu0 %v20737_v48 }
 0xd19   : > { %19728 = vmatmul.mubr.f32.gmra.mrb[116].mxu1 %v14515_v14 }
 0xd1a   : > { %v14554_v44 = vrot.slane %v14553_v50, 1  ;;  %v14557_v37 = vrot.slane %v14556_v30, 4  ;;  %v19652_v27 = vpop.f32.mrb[86].mxu0 }
 0xd1b   : > { %v14387_v34 = vadd.f32 %v19652_v27, %v25290_v53  ;;  %v14381_v4 = vpop.f32.mrb[87].mxu0  ;;  %20740 = vmatpush3.bf16.msra.mxu0 %v20737_v48 }
 0xd1c   : > { %v14555_v57 = vadd.f32 %v14554_v44, %v14553_v50  ;;  %v14558_v35 = vadd.f32 %v14557_v37, %v14556_v30  ;;  %v14382_v10 = vadd.f32 %v25290_v53, %v14381_v4 }
 0xd1d   : > { %v14517_v31 = vmax.f32 %v14387_v34, 0.0 }
 0xd1e   : > { %v14656_v24 = vmul.f32 0.0625, %v14555_v57  ;;  %v14559_v40 = vrot.slane %v14558_v35, 2  ;;  %v14516_v15 = vmax.f32 %v14382_v10, 0.0 }
 0xd20   : > { %v14677_v7 = vmul.f32 %v25327_v23, %v14656_v24  ;;  %v14560_v13 = vadd.f32 %v14559_v40, %v14558_v35  ;;  %v14563_v16 = vadd.f32 %v14517_v31, %v14516_v15  ;;  %19730 = vmatprep.mubr.f32.mxu1 %v14516_v15 }
 0xd21   : > { %19731 = vmatmul.mubr.f32.gmra.mrb[118].mxu1 %v14517_v31 }
 0xd22   : > { %v14708_v45 = vrot.slane %v14677_v7, 7  ;;  %v14561_v3 = vrot.slane %v14560_v13, 1  ;;  %v14564_v28 = vrot.slane %v14563_v16, 4  ;;  %v19655_v46 = vpop.f32.mrb[88].mxu0 }
 0xd23   : > { %v14397_v49 = vadd.f32 %v19655_v46, %v25290_v53  ;;  %v14391_v56 = vpop.f32.mrb[89].mxu0 }
 0xd24   : > { %v14562_v36 = vadd.f32 %v14561_v3, %v14560_v13  ;;  %v14565_v11 = vadd.f32 %v14564_v28, %v14563_v16  ;;  %v14392_v19 = vadd.f32 %v25290_v53, %v14391_v56  ;;  %v14710_v63 = vsel %vm14709_vm3, %v14708_v45, %v14676_v0 }
 0xd25   : > { %v14519_v59 = vmax.f32 %v14397_v49, 0.0 }
 0xd26   : > { %v14657_v9 = vmul.f32 0.0625, %v14562_v36  ;;  %v14566_v29 = vrot.slane %v14565_v11, 2  ;;  %v14518_v41 = vmax.f32 %v14392_v19, 0.0 }
 0xd28   : > { %v14678_v52 = vmul.f32 %v25327_v23, %v14657_v9  ;;  %v14567_v51 = vadd.f32 %v14566_v29, %v14565_v11  ;;  %v14570_v42 = vadd.f32 %v14519_v59, %v14518_v41  ;;  %19733 = vmatprep.mubr.f32.mxu1 %v14518_v41 }
 0xd29   : > { %19734 = vmatmul.mubr.f32.gmra.mrb[120].mxu1 %v14519_v59 }
 0xd2a   : > { %v14711_v61 = vrot.slane %v14678_v52, 6  ;;  %v14568_v32 = vrot.slane %v14567_v51, 1  ;;  %v14571_v14 = vrot.slane %v14570_v42, 4  ;;  %v19658_v5 = vpop.f32.mrb[90].mxu0 }
 0xd2b   : > { %v14407_v8 = vadd.f32 %v19658_v5, %v25290_v53  ;;  %v14401_v54 = vpop.f32.mrb[91].mxu0 }
 0xd2c   : > { %v14569_v25 = vadd.f32 %v14568_v32, %v14567_v51  ;;  %v14572_v55 = vadd.f32 %v14571_v14, %v14570_v42  ;;  %v14402_v6 = vadd.f32 %v25290_v53, %v14401_v54  ;;  %v14713_v58 = vsel %vm14712_vm4, %v14711_v61, %v14710_v63 }
 0xd2d   : > { %v14521_v38 = vmax.f32 %v14407_v8, 0.0 }
 0xd2e   : > { %v14658_v26 = vmul.f32 0.0625, %v14569_v25  ;;  %v14573_v50 = vrot.slane %v14572_v55, 2  ;;  %v14520_v30 = vmax.f32 %v14402_v6, 0.0 }
 0xd30   : > { %v14679_v43 = vmul.f32 %v25327_v23, %v14658_v26  ;;  %v14574_v44 = vadd.f32 %v14573_v50, %v14572_v55  ;;  %v14577_v37 = vadd.f32 %v14521_v38, %v14520_v30  ;;  %19736 = vmatprep.mubr.f32.mxu1 %v14520_v30 }
 0xd31   : > { %19737 = vmatmul.mubr.f32.gmra.mrb[122].mxu1 %v14521_v38 }
 0xd32   : > { %v14714_v27 = vrot.slane %v14679_v43, 5  ;;  %v14575_v20 = vrot.slane %v14574_v44, 1  ;;  %v14578_v34 = vrot.slane %v14577_v37, 4  ;;  %v19661_v4 = vpop.f32.mrb[92].mxu0 }
 0xd33   : > { %v14417_v60 = vadd.f32 %v19661_v4, %v25290_v53  ;;  %v14411_v18 = vpop.f32.mrb[93].mxu0 }
 0xd34   : > { %v14576_v57 = vadd.f32 %v14575_v20, %v14574_v44  ;;  %v14579_v35 = vadd.f32 %v14578_v34, %v14577_v37  ;;  %v14412_v10 = vadd.f32 %v25290_v53, %v14411_v18  ;;  %v14716_v62 = vsel %vm14715_vm5, %v14714_v27, %v14713_v58 }
 0xd35   : > { %v14523_v31 = vmax.f32 %v14417_v60, 0.0 }
 0xd36   : > { %v14659_v24 = vmul.f32 0.0625, %v14576_v57  ;;  %v14580_v40 = vrot.slane %v14579_v35, 2  ;;  %v14522_v15 = vmax.f32 %v14412_v10, 0.0 }
 0xd38   : > { %v14680_v47 = vmul.f32 %v25327_v23, %v14659_v24  ;;  %v14581_v22 = vadd.f32 %v14580_v40, %v14579_v35  ;;  %v14584_v1 = vadd.f32 %v14523_v31, %v14522_v15  ;;  %19739 = vmatprep.mubr.f32.mxu1 %v14522_v15 }
 0xd39   : > { %19740 = vmatmul.mubr.f32.gmra.mrb[124].mxu1 %v14523_v31 }
 0xd3a   : > { %v14582_v7 = vrot.slane %v14581_v22, 1  ;;  %v14585_v13 = vrot.slane %v14584_v1, 4  ;;  %v19664_v16 = vpop.f32.mrb[94].mxu0  ;;  %v14717_v0 = vrot.slane %v14680_v47, 4 }
 0xd3b   : > { %v14427_v45 = vadd.f32 %v19664_v16, %v25290_v53  ;;  %v14421_v3 = vpop.f32.mrb[95].mxu0 }
 0xd3c   : > { %v14583_v28 = vadd.f32 %v14582_v7, %v14581_v22  ;;  %v14586_v46 = vadd.f32 %v14585_v13, %v14584_v1  ;;  %v14422_v17 = vadd.f32 %v25290_v53, %v14421_v3  ;;  %v14719_v49 = vsel %vm14718_vm6, %v14717_v0, %v14716_v62 }
 0xd3d   : > { %v14525_v56 = vmax.f32 %v14427_v45, 0.0 }
 0xd3e   : > { %v14660_v2 = vmul.f32 0.0625, %v14583_v28  ;;  %v14587_v12 = vrot.slane %v14586_v46, 2  ;;  %v14524_v36 = vmax.f32 %v14422_v17, 0.0 }
 0xd40   : > { %v14588_v11 = vadd.f32 %v14587_v12, %v14586_v46  ;;  %v14591_v19 = vadd.f32 %v14525_v56, %v14524_v36  ;;  %19742 = vmatprep.mubr.f32.mxu1 %v14524_v36  ;;  %v14681_v63 = vmul.f32 %v25327_v23, %v14660_v2 }
 0xd41   : > { %19743 = vmatmul.mubr.f32.gmra.mrb[126].mxu1 %v14525_v56 }
 0xd42   : > { %v14589_v59 = vrot.slane %v14588_v11, 1  ;;  %v14592_v9 = vrot.slane %v14591_v19, 4  ;;  %v19667_v29 = vpop.f32.mrb[96].mxu0  ;;  %v14720_v41 = vrot.slane %v14681_v63, 3 }
 0xd43   : > { %v14437_v39 = vadd.f32 %v19667_v29, %v25290_v53  ;;  %v14431_v21 = vpop.f32.mrb[97].mxu0 }
 0xd44   : > { %v14590_v33 = vadd.f32 %v14589_v59, %v14588_v11  ;;  %v14593_v52 = vadd.f32 %v14592_v9, %v14591_v19  ;;  %v14432_v51 = vadd.f32 %v25290_v53, %v14431_v21  ;;  %v14722_v42 = vsel %vm14721_vm7, %v14720_v41, %v14719_v49  ;;  %v15051_v59 = vld [vmem:[%s25591_s4 + $0x5f0] sm:$0xff]  ;;  %v15052_v9 = vld [vmem:[%s25591_s4 + $0x5f8] sm:$0xff] }
 0xd45   : > { %v14527_v61 = vmax.f32 %v14437_v39, 0.0  ;;  %v20741_v29 = vpack.c.bf16 %v15052_v9, %v15051_v59 }
 0xd46   : > { %v14661_v32 = vmul.f32 0.0625, %v14590_v33  ;;  %v14594_v14 = vrot.slane %v14593_v52, 2  ;;  %v14526_v5 = vmax.f32 %v14432_v51, 0.0 }
 0xd47   : > { %20742 = vmatprep.subr.bf16.mxu0 %v20741_v29 }
 0xd48   : > { %v14595_v48 = vadd.f32 %v14594_v14, %v14593_v52  ;;  %v14598_v8 = vadd.f32 %v14527_v61, %v14526_v5  ;;  %19745 = vmatprep.mubr.f32.mxu1 %v14526_v5  ;;  %v14682_v54 = vmul.f32 %v25327_v23, %v14661_v32  ;;  %20744 = vmatpush3.bf16.msra.mxu0 %v20741_v29 }
 0xd49   : > { %19746 = vmatmul.mubr.f32.gmra.mrb[128].mxu1 %v14527_v61 }
 0xd4a   : > { %v14596_v25 = vrot.slane %v14595_v48, 1  ;;  %v14599_v55 = vrot.slane %v14598_v8, 4  ;;  %v19670_v6 = vpop.f32.mrb[98].mxu0  ;;  %v14723_v58 = vrot.slane %v14682_v54, 2 }
 0xd4b   : > { %v14447_v38 = vadd.f32 %v19670_v6, %v25290_v53  ;;  %v14441_v26 = vpop.f32.mrb[99].mxu0 }
 0xd4c   : > { %v14600_v50 = vadd.f32 %v14599_v55, %v14598_v8  ;;  %v14442_v30 = vadd.f32 %v25290_v53, %v14441_v26  ;;  %v14597_v43 = vadd.f32 %v14596_v25, %v14595_v48  ;;  %v14725_v44 = vsel %vm14724_vm8, %v14723_v58, %v14722_v42 }
 0xd4d   : > { %v14529_v37 = vmax.f32 %v14447_v38, 0.0 }
 0xd4e   : > { %v14601_v27 = vrot.slane %v14600_v50, 2  ;;  %v14528_v20 = vmax.f32 %v14442_v30, 0.0  ;;  %v14662_v34 = vmul.f32 0.0625, %v14597_v43 }
 0xd50   : > { %v14605_v4 = vadd.f32 %v14529_v37, %v14528_v20  ;;  %19748 = vmatprep.mubr.f32.mxu1 %v14528_v20  ;;  %v14683_v60 = vmul.f32 %v25327_v23, %v14662_v34  ;;  %v14602_v18 = vadd.f32 %v14601_v27, %v14600_v50 }
 0xd51   : > { %19749 = vmatmul.mubr.f32.gmra.mrb[130].mxu1 %v14529_v37 }
 0xd52   : > { %v14606_v57 = vrot.slane %v14605_v4, 4  ;;  %v19673_v35 = vpop.f32.mrb[100].mxu0  ;;  %v14726_v10 = vrot.slane %v14683_v60, 1  ;;  %v14603_v22 = vrot.slane %v14602_v18, 1 }
 0xd53   : > { %v14457_v62 = vadd.f32 %v19673_v35, %v25290_v53  ;;  %v14451_v31 = vpop.f32.mrb[101].mxu0 }
 0xd54   : > { %v14607_v24 = vadd.f32 %v14606_v57, %v14605_v4  ;;  %v14452_v40 = vadd.f32 %v25290_v53, %v14451_v31  ;;  %v14728_v15 = vsel %vm14727_vm9, %v14726_v10, %v14725_v44  ;;  %v14604_v0 = vadd.f32 %v14603_v22, %v14602_v18 }
 0xd55   : > { %v14531_v47 = vmax.f32 %v14457_v62, 0.0  ;;  %14745 = vadd.xlane.f32.xlu1 %v14728_v15 }
 0xd56   : > { %v14608_v1 = vrot.slane %v14607_v24, 2  ;;  %v14530_v7 = vmax.f32 %v14452_v40, 0.0  ;;  %v14663_v36 = vmul.f32 0.0625, %v14604_v0 }
 0xd58   : > { %v14609_v13 = vadd.f32 %v14608_v1, %v14607_v24  ;;  %v14612_v16 = vadd.f32 %v14531_v47, %v14530_v7  ;;  %19751 = vmatprep.mubr.f32.mxu1 %v14530_v7  ;;  %v14684_v33 = vmul.f32 %v25327_v23, %v14663_v36 }
 0xd59   : > { %19752 = vmatmul.mubr.f32.gmra.mrb[132].mxu1 %v14531_v47 }
 0xd5a   : > { %v14610_v45 = vrot.slane %v14609_v13, 1  ;;  %v14613_v3 = vrot.slane %v14612_v16, 4  ;;  %v19676_v28 = vpop.f32.mrb[102].mxu0 }
 0xd5b   : > { %v14467_v46 = vadd.f32 %v19676_v28, %v25290_v53  ;;  %v14461_v17 = vpop.f32.mrb[103].mxu0 }
 0xd5c   : > { %v14611_v49 = vadd.f32 %v14610_v45, %v14609_v13  ;;  %v14614_v56 = vadd.f32 %v14613_v3, %v14612_v16  ;;  %v14462_v2 = vadd.f32 %v25290_v53, %v14461_v17 }
 0xd5d   : > { %v14533_v12 = vmax.f32 %v14467_v46, 0.0 }
 0xd5e   : > { %v14664_v11 = vmul.f32 0.0625, %v14611_v49  ;;  %v14615_v19 = vrot.slane %v14614_v56, 2  ;;  %v14532_v63 = vmax.f32 %v14462_v2, 0.0 }
 0xd60   : > { %v14685_v41 = vmul.f32 %v25327_v23, %v14664_v11  ;;  %v14616_v39 = vadd.f32 %v14615_v19, %v14614_v56  ;;  %v14619_v21 = vadd.f32 %v14533_v12, %v14532_v63  ;;  %19754 = vmatprep.mubr.f32.mxu1 %v14532_v63 }
 0xd61   : > { %19755 = vmatmul.mubr.f32.gmra.mrb[134].mxu1 %v14533_v12 }
 0xd62   : > { %v14729_v52 = vrot.slane %v14685_v41, 7  ;;  %v14617_v51 = vrot.slane %v14616_v39, 1  ;;  %v14620_v42 = vrot.slane %v14619_v21, 4  ;;  %v19679_v61 = vpop.f32.mrb[104].mxu0 }
 0xd63   : > { %v14477_v32 = vadd.f32 %v19679_v61, %v25290_v53  ;;  %v14471_v14 = vpop.f32.mrb[105].mxu0 }
 0xd64   : > { %v14618_v5 = vadd.f32 %v14617_v51, %v14616_v39  ;;  %v14621_v48 = vadd.f32 %v14620_v42, %v14619_v21  ;;  %v14472_v8 = vadd.f32 %v25290_v53, %v14471_v14  ;;  %v14730_v54 = vsel %vm14709_vm3, %v14729_v52, %v14684_v33 }
 0xd65   : > { %v14535_v25 = vmax.f32 %v14477_v32, 0.0 }
 0xd66   : > { %v14665_v55 = vmul.f32 0.0625, %v14618_v5  ;;  %v14622_v6 = vrot.slane %v14621_v48, 2  ;;  %v14534_v58 = vmax.f32 %v14472_v8, 0.0 }
 0xd68   : > { %v14686_v38 = vmul.f32 %v25327_v23, %v14665_v55  ;;  %v14623_v26 = vadd.f32 %v14622_v6, %v14621_v48  ;;  %v14626_v50 = vadd.f32 %v14535_v25, %v14534_v58  ;;  %19757 = vmatprep.mubr.f32.mxu1 %v14534_v58 }
 0xd69   : > { %19758 = vmatmul.mubr.f32.gmra.mrb[136].mxu1 %v14535_v25 }
 0xd6a   : > { %v14731_v30 = vrot.slane %v14686_v38, 6  ;;  %v14624_v43 = vrot.slane %v14623_v26, 1  ;;  %v14627_v44 = vrot.slane %v14626_v50, 4  ;;  %v19682_v37 = vpop.f32.mrb[106].mxu0 }
 0xd6b   : > { %v14487_v27 = vadd.f32 %v19682_v37, %v25290_v53  ;;  %v14481_v20 = vpop.f32.mrb[107].mxu0 }
 0xd6c   : > { %v14625_v34 = vadd.f32 %v14624_v43, %v14623_v26  ;;  %v14628_v4 = vadd.f32 %v14627_v44, %v14626_v50  ;;  %v14482_v60 = vadd.f32 %v25290_v53, %v14481_v20  ;;  %v14732_v18 = vsel %vm14712_vm4, %v14731_v30, %v14730_v54 }
 0xd6d   : > { %v14537_v57 = vmax.f32 %v14487_v27, 0.0 }
 0xd6e   : > { %v14666_v35 = vmul.f32 0.0625, %v14625_v34  ;;  %v14629_v10 = vrot.slane %v14628_v4, 2  ;;  %v14536_v62 = vmax.f32 %v14482_v60, 0.0  ;;  %v25411_v34 = vld [vmem:[%s25592_s5 + $0xf] ss:$0 sm:$0xff] }
 0xd70   : > { %v14687_v31 = vmul.f32 %v25327_v23, %v14666_v35  ;;  %v14630_v24 = vadd.f32 %v14629_v10, %v14628_v4  ;;  %v14633_v40 = vadd.f32 %v14537_v57, %v14536_v62  ;;  %19760 = vmatprep.mubr.f32.mxu1 %v14536_v62  ;;  %v25418_v35 = vld [vmem:[%s25592_s5 + $0x12] ss:$0 sm:$0xff] }
 0xd71   : > { %19761 = vmatmul.mubr.f32.gmra.mrb[138].mxu1 %v14537_v57 }
 0xd72   : > { %v14733_v15 = vrot.slane %v14687_v31, 5  ;;  %v14631_v47 = vrot.slane %v14630_v24, 1  ;;  %v14634_v22 = vrot.slane %v14633_v40, 4  ;;  %v19685_v1 = vpop.f32.mrb[108].mxu0 }
 0xd73   : > { %v14497_v7 = vadd.f32 %v19685_v1, %v25290_v53  ;;  %v14491_v13 = vpop.f32.mrb[109].mxu0 }
 0xd74   : > { %v14632_v16 = vadd.f32 %v14631_v47, %v14630_v24  ;;  %v14635_v0 = vadd.f32 %v14634_v22, %v14633_v40  ;;  %v14492_v45 = vadd.f32 %v25290_v53, %v14491_v13  ;;  %v14734_v3 = vsel %vm14715_vm5, %v14733_v15, %v14732_v18 }
 0xd75   : > { %v14539_v28 = vmax.f32 %v14497_v7, 0.0 }
 0xd76   : > { %v14667_v46 = vmul.f32 0.0625, %v14632_v16  ;;  %v14636_v17 = vrot.slane %v14635_v0, 2  ;;  %v14538_v49 = vmax.f32 %v14492_v45, 0.0 }
 0xd78   : > { %v14688_v56 = vmul.f32 %v25327_v23, %v14667_v46  ;;  %v14637_v2 = vadd.f32 %v14636_v17, %v14635_v0  ;;  %v14640_v12 = vadd.f32 %v14539_v28, %v14538_v49  ;;  %19763 = vmatprep.mubr.f32.mxu1 %v14538_v49 }
 0xd79   : > { %19764 = vmatmul.mubr.f32.gmra.mrb[140].mxu1 %v14539_v28 }
 0xd7a   : > { %v14638_v36 = vrot.slane %v14637_v2, 1  ;;  %v14641_v11 = vrot.slane %v14640_v12, 4  ;;  %v19688_v19 = vpop.f32.mrb[110].mxu0  ;;  %v14735_v63 = vrot.slane %v14688_v56, 4 }
 0xd7b   : > { %v14507_v59 = vadd.f32 %v19688_v19, %v25290_v53  ;;  %v14501_v9 = vpop.f32.mrb[111].mxu0 }
 0xd7c   : > { %v14639_v29 = vadd.f32 %v14638_v36, %v14637_v2  ;;  %v14642_v41 = vadd.f32 %v14641_v11, %v14640_v12  ;;  %v14502_v39 = vadd.f32 %v25290_v53, %v14501_v9  ;;  %v14736_v21 = vsel %vm14718_vm6, %v14735_v63, %v14734_v3 }
 0xd7d   : > { %v14541_v33 = vmax.f32 %v14507_v59, 0.0 }
 0xd7e   : > { %v14668_v52 = vmul.f32 0.0625, %v14639_v29  ;;  %v14643_v51 = vrot.slane %v14642_v41, 2  ;;  %v14540_v42 = vmax.f32 %v14502_v39, 0.0 }
 0xd80   : > { %v14644_v61 = vadd.f32 %v14643_v51, %v14642_v41  ;;  %v14647_v32 = vadd.f32 %v14541_v33, %v14540_v42  ;;  %19766 = vmatprep.mubr.f32.mxu1 %v14540_v42  ;;  %v14689_v14 = vmul.f32 %v25327_v23, %v14668_v52 }
 0xd81   : > { %19767 = vmatmul.mubr.f32.gmra.mrb[142].mxu1 %v14541_v33 }
 0xd82   : > { %v14645_v5 = vrot.slane %v14644_v61, 1  ;;  %v14648_v48 = vrot.slane %v14647_v32, 4  ;;  %v14737_v8 = vrot.slane %v14689_v14, 3 }
 0xd84   : > { %v14646_v54 = vadd.f32 %v14645_v5, %v14644_v61  ;;  %v14649_v25 = vadd.f32 %v14648_v48, %v14647_v32  ;;  %v14738_v53 = vsel %vm14721_vm7, %v14737_v8, %v14736_v21 }
 0xd86   : > { %v14669_v55 = vmul.f32 0.0625, %v14646_v54  ;;  %v14650_v6 = vrot.slane %v14649_v25, 2 }
 0xd88   : > { %v14651_v58 = vadd.f32 %v14650_v6, %v14649_v25  ;;  %v14690_v38 = vmul.f32 %v25327_v23, %v14669_v55 }
 0xd8a   : > { %v14652_v26 = vrot.slane %v14651_v58, 1  ;;  %v14739_v50 = vrot.slane %v14690_v38, 2 }
 0xd8c   : > { %v14653_v30 = vadd.f32 %v14652_v26, %v14651_v58  ;;  %v14740_v43 = vsel %vm14724_vm8, %v14739_v50, %v14738_v53 }
 0xd8e   : > { %v14670_v44 = vmul.f32 0.0625, %v14653_v30 }
 0xd90   : > { %v14691_v37 = vmul.f32 %v25327_v23, %v14670_v44 }
 0xd92   : > { %v14741_v27 = vrot.slane %v14691_v37, 1 }
 0xd94   : > { %v14742_v20 = vsel %vm14727_vm9, %v14741_v27, %v14740_v43 }
 0xd95   : > { %14747 = vadd.xlane.f32.xlu0 %v14742_v20 }
 0xddc   : > { %v19723_v4 = vpop.f32.mrb[112].mxu1 }
 0xddd   : > { %v14852_v60 = vadd.f32 %v19723_v4, %v25411_v34  ;;  %v14846_v18 = vpop.f32.mrb[113].mxu1 }
 0xdde   : > { %v14847_v57 = vadd.f32 %v25411_v34, %v14846_v18 }
 0xddf   : > { %v15006_v10 = vmax.f32 %v14852_v60, 0.0 }
 0xde0   : > { %v15005_v23 = vmax.f32 %v14847_v57, 0.0 }
 0xde2   : > { %v14746_v62 = vpop.xlane.xlu1 %14745  ;;  %19801 = vmatprep.mubr.f32.mxu0 %v15005_v23 }
 0xde3   : > { %v14754_v31 = vadd.f32 %v25418_v35, %v14746_v62  ;;  %19802 = vmatmul.mubr.f32.vlgmr.msra.gmra.mrb[112].mxu0 %v15006_v10 }
 0xde4   : > { %v19726_v24 = vpop.f32.mrb[114].mxu1 }
 0xde5   : > { %14757 = vst.msk [vmem:[%s25423_s17] sm:$0xff] %vm14756_vm10, %v14754_v31  ;;  %v14862_v40 = vadd.f32 %v19726_v24, %v25411_v34  ;;  %v14856_v15 = vpop.f32.mrb[115].mxu1 }
 0xde6   : > { %v14857_v47 = vadd.f32 %v25411_v34, %v14856_v15 }
 0xde7   : > { %v15008_v1 = vmax.f32 %v14862_v40, 0.0 }
 0xde8   : > { %v15007_v22 = vmax.f32 %v14857_v47, 0.0 }
 0xdea   : > { %19804 = vmatprep.mubr.f32.mxu0 %v15007_v22 }
 0xdeb   : > { %19805 = vmatmul.mubr.f32.gmra.mrb[114].mxu0 %v15008_v1 }
 0xdec   : > { %v19729_v7 = vpop.f32.mrb[116].mxu1 }
 0xded   : > { %v14872_v13 = vadd.f32 %v19729_v7, %v25411_v34  ;;  %v14866_v16 = vpop.f32.mrb[117].mxu1 }
 0xdee   : > { %v14867_v0 = vadd.f32 %v25411_v34, %v14866_v16 }
 0xdef   : > { %v15010_v3 = vmax.f32 %v14872_v13, 0.0 }
 0xdf0   : > { %v15009_v45 = vmax.f32 %v14867_v0, 0.0 }
 0xdf2   : > { %19807 = vmatprep.mubr.f32.mxu0 %v15009_v45 }
 0xdf3   : > { %19808 = vmatmul.mubr.f32.gmra.mrb[116].mxu0 %v15010_v3 }
 0xdf4   : > { %v19732_v28 = vpop.f32.mrb[118].mxu1 }
 0xdf5   : > { %v14882_v46 = vadd.f32 %v19732_v28, %v25411_v34  ;;  %v14876_v17 = vpop.f32.mrb[119].mxu1 }
 0xdf6   : > { %v14877_v49 = vadd.f32 %v25411_v34, %v14876_v17 }
 0xdf7   : > { %v15012_v2 = vmax.f32 %v14882_v46, 0.0 }
 0xdf8   : > { %v15011_v56 = vmax.f32 %v14877_v49, 0.0 }
 0xdfa   : > { %19810 = vmatprep.mubr.f32.mxu0 %v15011_v56 }
 0xdfb   : > { %19811 = vmatmul.mubr.f32.gmra.mrb[118].mxu0 %v15012_v2 }
 0xdfc   : > { %v19735_v12 = vpop.f32.mrb[120].mxu1 }
 0xdfd   : > { %v14892_v36 = vadd.f32 %v19735_v12, %v25411_v34  ;;  %v14886_v11 = vpop.f32.mrb[121].mxu1 }
 0xdfe   : > { %v14887_v19 = vadd.f32 %v25411_v34, %v14886_v11 }
 0xdff   : > { %v15014_v59 = vmax.f32 %v14892_v36, 0.0 }
 0xe00   : > { %v15013_v63 = vmax.f32 %v14887_v19, 0.0 }
 0xe02   : > { %19813 = vmatprep.mubr.f32.mxu0 %v15013_v63 }
 0xe03   : > { %19814 = vmatmul.mubr.f32.gmra.mrb[120].mxu0 %v15014_v59 }
 0xe04   : > { %v19738_v9 = vpop.f32.mrb[122].mxu1 }
 0xe05   : > { %v14902_v29 = vadd.f32 %v19738_v9, %v25411_v34  ;;  %v14896_v41 = vpop.f32.mrb[123].mxu1 }
 0xe06   : > { %v14897_v39 = vadd.f32 %v25411_v34, %v14896_v41 }
 0xe07   : > { %v15016_v33 = vmax.f32 %v14902_v29, 0.0 }
 0xe08   : > { %v15015_v21 = vmax.f32 %v14897_v39, 0.0 }
 0xe0a   : > { %19816 = vmatprep.mubr.f32.mxu0 %v15015_v21 }
 0xe0b   : > { %19817 = vmatmul.mubr.f32.gmra.mrb[122].mxu0 %v15016_v33  ;;  %v25467_v33 = vld [vmem:[%s25592_s5 + $0x10] ss:$0 sm:$0xff] }
 0xe0c   : > { %v19741_v52 = vpop.f32.mrb[124].mxu1 }
 0xe0d   : > { %v14912_v51 = vadd.f32 %v19741_v52, %v25411_v34  ;;  %v14906_v42 = vpop.f32.mrb[125].mxu1 }
 0xe0e   : > { %v14907_v61 = vadd.f32 %v25411_v34, %v14906_v42 }
 0xe0f   : > { %v15018_v14 = vmax.f32 %v14912_v51, 0.0 }
 0xe10   : > { %v15017_v32 = vmax.f32 %v14907_v61, 0.0 }
 0xe12   : > { %19819 = vmatprep.mubr.f32.mxu0 %v15017_v32 }
 0xe13   : > { %19820 = vmatmul.mubr.f32.gmra.mrb[124].mxu0 %v15018_v14 }
 0xe14   : > { %v19744_v5 = vpop.f32.mrb[126].mxu1 }
 0xe15   : > { %v14922_v48 = vadd.f32 %v19744_v5, %v25411_v34  ;;  %v14916_v8 = vpop.f32.mrb[127].mxu1 }
 0xe16   : > { %v14917_v54 = vadd.f32 %v25411_v34, %v14916_v8 }
 0xe17   : > { %v15020_v53 = vmax.f32 %v14922_v48, 0.0 }
 0xe18   : > { %v15019_v25 = vmax.f32 %v14917_v54, 0.0 }
 0xe1a   : > { %19822 = vmatprep.mubr.f32.mxu0 %v15019_v25 }
 0xe1b   : > { %19823 = vmatmul.mubr.f32.gmra.mrb[126].mxu0 %v15020_v53 }
 0xe1c   : > { %v19747_v55 = vpop.f32.mrb[128].mxu1 }
 0xe1d   : > { %v14932_v6 = vadd.f32 %v19747_v55, %v25411_v34  ;;  %v14926_v58 = vpop.f32.mrb[129].mxu1 }
 0xe1e   : > { %v14927_v38 = vadd.f32 %v25411_v34, %v14926_v58 }
 0xe1f   : > { %v15022_v50 = vmax.f32 %v14932_v6, 0.0 }
 0xe20   : > { %v15021_v26 = vmax.f32 %v14927_v38, 0.0 }
 0xe22   : > { %19825 = vmatprep.mubr.f32.mxu0 %v15021_v26  ;;  %v14748_v30 = vpop.xlane.xlu0 %14747 }
 0xe23   : > { %v14755_v43 = vadd.f32 %v25418_v35, %v14748_v30  ;;  %19826 = vmatmul.mubr.f32.gmra.mrb[128].mxu0 %v15022_v50 }
 0xe24   : > { %v19750_v44 = vpop.f32.mrb[130].mxu1 }
 0xe25   : > { %14758 = vst.msk [vmem:[%s25423_s17 + $0x8] sm:$0xff] %vm14756_vm10, %v14755_v43  ;;  %v14942_v37 = vadd.f32 %v19750_v44, %v25411_v34  ;;  %v14936_v27 = vpop.f32.mrb[131].mxu1  ;;  %s21052_s17 = scalar_lea.vmem %s21051_s16, 8192 }
 0xe26   : > { %v14937_v20 = vadd.f32 %v25411_v34, %v14936_v27  ;;  %p21054_p2 = scmp.lt.s32.totalorder %s21052_s17, %s21046_s14 }
 0xe27   : > { %v15024_v60 = vmax.f32 %v14942_v37, 0.0 }
 0xe28   : > { %v15023_v4 = vmax.f32 %v14937_v20, 0.0  ;;  %p21055_p3 = por %p21054_p2, %p21053_p1 }
 0xe2a   : > { %19828 = vmatprep.mubr.f32.mxu0 %v15023_v4  ;;  %p21056_p4 = pnand %p21055_p3, %p21049_p0 }
 0xe2b   : > { %19829 = vmatmul.mubr.f32.gmra.mrb[130].mxu0 %v15024_v60 }
 0xe2c   : > { %v19753_v18 = vpop.f32.mrb[132].mxu1 }
 0xe2d   : > { %v14952_v57 = vadd.f32 %v19753_v18, %v25411_v34  ;;  %v14946_v23 = vpop.f32.mrb[133].mxu1 }
 0xe2e   : > { %v14947_v10 = vadd.f32 %v25411_v34, %v14946_v23 }
 0xe2f   : > { %v15026_v62 = vmax.f32 %v14952_v57, 0.0 }
 0xe30   : > { %v15025_v35 = vmax.f32 %v14947_v10, 0.0 }
 0xe32   : > { %19831 = vmatprep.mubr.f32.mxu0 %v15025_v35 }
 0xe33   : > { %19832 = vmatmul.mubr.f32.gmra.mrb[132].mxu0 %v15026_v62 }
 0xe34   : > { %v19756_v31 = vpop.f32.mrb[134].mxu1 }
 0xe35   : > { %v14962_v24 = vadd.f32 %v19756_v31, %v25411_v34  ;;  %v14956_v40 = vpop.f32.mrb[135].mxu1 }
 0xe36   : > { %v14957_v15 = vadd.f32 %v25411_v34, %v14956_v40 }
 0xe37   : > { %v15028_v22 = vmax.f32 %v14962_v24, 0.0 }
 0xe38   : > { %v15027_v47 = vmax.f32 %v14957_v15, 0.0 }
 0xe3a   : > { %19834 = vmatprep.mubr.f32.mxu0 %v15027_v47 }
 0xe3b   : > { %19835 = vmatmul.mubr.f32.gmra.mrb[134].mxu0 %v15028_v22 }
 0xe3c   : > { %v19759_v1 = vpop.f32.mrb[136].mxu1 }
 0xe3d   : > { %v14972_v7 = vadd.f32 %v19759_v1, %v25411_v34  ;;  %v14966_v13 = vpop.f32.mrb[137].mxu1 }
 0xe3e   : > { %v14967_v16 = vadd.f32 %v25411_v34, %v14966_v13 }
 0xe3f   : > { %v15030_v45 = vmax.f32 %v14972_v7, 0.0 }
 0xe40   : > { %v15029_v0 = vmax.f32 %v14967_v16, 0.0 }
 0xe42   : > { %19837 = vmatprep.mubr.f32.mxu0 %v15029_v0 }
 0xe43   : > { %19838 = vmatmul.mubr.f32.gmra.mrb[136].mxu0 %v15030_v45 }
 0xe44   : > { %v19762_v3 = vpop.f32.mrb[138].mxu1 }
 0xe45   : > { %v14982_v28 = vadd.f32 %v19762_v3, %v25411_v34  ;;  %v14976_v46 = vpop.f32.mrb[139].mxu1 }
 0xe46   : > { %v14977_v17 = vadd.f32 %v25411_v34, %v14976_v46 }
 0xe47   : > { %v15032_v56 = vmax.f32 %v14982_v28, 0.0 }
 0xe48   : > { %v15031_v49 = vmax.f32 %v14977_v17, 0.0 }
 0xe4a   : > { %19840 = vmatprep.mubr.f32.mxu0 %v15031_v49 }
 0xe4b   : > { %19841 = vmatmul.mubr.f32.gmra.mrb[138].mxu0 %v15032_v56 }
 0xe4c   : > { %v19765_v2 = vpop.f32.mrb[140].mxu1 }
 0xe4d   : > { %v14992_v12 = vadd.f32 %v19765_v2, %v25411_v34  ;;  %v14986_v36 = vpop.f32.mrb[141].mxu1 }
 0xe4e   : > { %v14987_v11 = vadd.f32 %v25411_v34, %v14986_v36 }
 0xe4f   : > { %v15034_v63 = vmax.f32 %v14992_v12, 0.0 }
 0xe50   : > { %v15033_v19 = vmax.f32 %v14987_v11, 0.0 }
 0xe52   : > { %19843 = vmatprep.mubr.f32.mxu0 %v15033_v19 }
 0xe53   : > { %19844 = vmatmul.mubr.f32.gmra.mrb[140].mxu0 %v15034_v63 }
 0xe54   : > { %v19768_v59 = vpop.f32.mrb[142].mxu1 }
 0xe55   : > { %v15002_v9 = vadd.f32 %v19768_v59, %v25411_v34  ;;  %v14996_v29 = vpop.f32.mrb[143].mxu1 }
 0xe56   : > { %v14997_v41 = vadd.f32 %v25411_v34, %v14996_v29 }
 0xe57   : > { %v15036_v21 = vmax.f32 %v15002_v9, 0.0 }
 0xe58   : > { %v15035_v39 = vmax.f32 %v14997_v41, 0.0 }
 0xe5a   : > { %19846 = vmatprep.mubr.f32.mxu0 %v15035_v39 }
 0xe5b   : > { %19847 = vmatmul.mubr.f32.gmra.mrb[142].mxu0 %v15036_v21 }
 0xeb6   : > { %v19803_v52 = vpop.f32.mrb[112].mxu0 }
 0xeb7   : > { %v15130_v51 = vadd.f32 %v19803_v52, %v25467_v33  ;;  %v15124_v42 = vpop.f32.mrb[113].mxu0 }
 0xeb8   : > { %v15125_v61 = vadd.f32 %v25467_v33, %v15124_v42 }
 0xeb9   : > { %15284 = vst [vmem:[%s25471_s22 + $0x8] sm:$0xff] %v15130_v51 }
 0xeba   : > { %15283 = vst [vmem:[%s25471_s22] sm:$0xff] %v15125_v61 }
 0xebe   : > { %v19806_v34 = vpop.f32.mrb[114].mxu0 }
 0xebf   : > { %v15140_v32 = vadd.f32 %v19806_v34, %v25467_v33  ;;  %v15134_v14 = vpop.f32.mrb[115].mxu0 }
 0xec0   : > { %v15135_v5 = vadd.f32 %v25467_v33, %v15134_v14 }
 0xec1   : > { %15286 = vst [vmem:[%s25471_s22 + $0x18] sm:$0xff] %v15140_v32 }
 0xec2   : > { %15285 = vst [vmem:[%s25471_s22 + $0x10] sm:$0xff] %v15135_v5 }
 0xec6   : > { %v19809_v48 = vpop.f32.mrb[116].mxu0 }
 0xec7   : > { %v15150_v8 = vadd.f32 %v19809_v48, %v25467_v33  ;;  %v15144_v54 = vpop.f32.mrb[117].mxu0 }
 0xec8   : > { %v15145_v25 = vadd.f32 %v25467_v33, %v15144_v54 }
 0xec9   : > { %15288 = vst [vmem:[%s25471_s22 + $0x28] sm:$0xff] %v15150_v8 }
 0xeca   : > { %15287 = vst [vmem:[%s25471_s22 + $0x20] sm:$0xff] %v15145_v25 }
 0xece   : > { %v19812_v53 = vpop.f32.mrb[118].mxu0 }
 0xecf   : > { %v15160_v55 = vadd.f32 %v19812_v53, %v25467_v33  ;;  %v15154_v6 = vpop.f32.mrb[119].mxu0 }
 0xed0   : > { %v15155_v58 = vadd.f32 %v25467_v33, %v15154_v6 }
 0xed1   : > { %15290 = vst [vmem:[%s25471_s22 + $0x38] sm:$0xff] %v15160_v55 }
 0xed2   : > { %15289 = vst [vmem:[%s25471_s22 + $0x30] sm:$0xff] %v15155_v58 }
 0xed6   : > { %v19815_v38 = vpop.f32.mrb[120].mxu0 }
 0xed7   : > { %v15170_v26 = vadd.f32 %v19815_v38, %v25467_v33  ;;  %v15164_v50 = vpop.f32.mrb[121].mxu0 }
 0xed8   : > { %v15165_v30 = vadd.f32 %v25467_v33, %v15164_v50 }
 0xed9   : > { %15292 = vst [vmem:[%s25471_s22 + $0x48] sm:$0xff] %v15170_v26 }
 0xeda   : > { %15291 = vst [vmem:[%s25471_s22 + $0x40] sm:$0xff] %v15165_v30 }
 0xede   : > { %v19818_v43 = vpop.f32.mrb[122].mxu0 }
 0xedf   : > { %v15180_v44 = vadd.f32 %v19818_v43, %v25467_v33  ;;  %v15174_v37 = vpop.f32.mrb[123].mxu0 }
 0xee0   : > { %v15175_v27 = vadd.f32 %v25467_v33, %v15174_v37 }
 0xee1   : > { %15294 = vst [vmem:[%s25471_s22 + $0x58] sm:$0xff] %v15180_v44 }
 0xee2   : > { %15293 = vst [vmem:[%s25471_s22 + $0x50] sm:$0xff] %v15175_v27 }
 0xee6   : > { %v19821_v20 = vpop.f32.mrb[124].mxu0 }
 0xee7   : > { %v15190_v4 = vadd.f32 %v19821_v20, %v25467_v33  ;;  %v15184_v60 = vpop.f32.mrb[125].mxu0 }
 0xee8   : > { %v15185_v18 = vadd.f32 %v25467_v33, %v15184_v60 }
 0xee9   : > { %15296 = vst [vmem:[%s25471_s22 + $0x68] sm:$0xff] %v15190_v4 }
 0xeea   : > { %15295 = vst [vmem:[%s25471_s22 + $0x60] sm:$0xff] %v15185_v18 }
 0xeee   : > { %v19824_v57 = vpop.f32.mrb[126].mxu0 }
 0xeef   : > { %v15200_v23 = vadd.f32 %v19824_v57, %v25467_v33  ;;  %v15194_v10 = vpop.f32.mrb[127].mxu0 }
 0xef0   : > { %v15195_v35 = vadd.f32 %v25467_v33, %v15194_v10 }
 0xef1   : > { %15298 = vst [vmem:[%s25471_s22 + $0x78] sm:$0xff] %v15200_v23 }
 0xef2   : > { %15297 = vst [vmem:[%s25471_s22 + $0x70] sm:$0xff] %v15195_v35 }
 0xef6   : > { %v19827_v62 = vpop.f32.mrb[128].mxu0 }
 0xef7   : > { %v15210_v31 = vadd.f32 %v19827_v62, %v25467_v33  ;;  %v15204_v24 = vpop.f32.mrb[129].mxu0 }
 0xef8   : > { %v15205_v40 = vadd.f32 %v25467_v33, %v15204_v24 }
 0xef9   : > { %15300 = vst [vmem:[%s25471_s22 + $0x88] sm:$0xff] %v15210_v31 }
 0xefa   : > { %15299 = vst [vmem:[%s25471_s22 + $0x80] sm:$0xff] %v15205_v40 }
 0xefe   : > { %v19830_v15 = vpop.f32.mrb[130].mxu0 }
 0xeff   : > { %v15220_v47 = vadd.f32 %v19830_v15, %v25467_v33  ;;  %v15214_v22 = vpop.f32.mrb[131].mxu0 }
 0xf00   : > { %v15215_v1 = vadd.f32 %v25467_v33, %v15214_v22 }
 0xf01   : > { %15302 = vst [vmem:[%s25471_s22 + $0x98] sm:$0xff] %v15220_v47 }
 0xf02   : > { %15301 = vst [vmem:[%s25471_s22 + $0x90] sm:$0xff] %v15215_v1 }
 0xf06   : > { %v19833_v7 = vpop.f32.mrb[132].mxu0 }
 0xf07   : > { %v15230_v13 = vadd.f32 %v19833_v7, %v25467_v33  ;;  %v15224_v16 = vpop.f32.mrb[133].mxu0 }
 0xf08   : > { %v15225_v0 = vadd.f32 %v25467_v33, %v15224_v16 }
 0xf09   : > { %15304 = vst [vmem:[%s25471_s22 + $0xa8] sm:$0xff] %v15230_v13 }
 0xf0a   : > { %15303 = vst [vmem:[%s25471_s22 + $0xa0] sm:$0xff] %v15225_v0 }
 0xf0e   : > { %v19836_v45 = vpop.f32.mrb[134].mxu0 }
 0xf0f   : > { %v15240_v3 = vadd.f32 %v19836_v45, %v25467_v33  ;;  %v15234_v28 = vpop.f32.mrb[135].mxu0 }
 0xf10   : > { %v15235_v46 = vadd.f32 %v25467_v33, %v15234_v28 }
 0xf11   : > { %15306 = vst [vmem:[%s25471_s22 + $0xb8] sm:$0xff] %v15240_v3 }
 0xf12   : > { %15305 = vst [vmem:[%s25471_s22 + $0xb0] sm:$0xff] %v15235_v46 }
 0xf16   : > { %v19839_v17 = vpop.f32.mrb[136].mxu0 }
 0xf17   : > { %v15250_v49 = vadd.f32 %v19839_v17, %v25467_v33  ;;  %v15244_v56 = vpop.f32.mrb[137].mxu0 }
 0xf18   : > { %v15245_v2 = vadd.f32 %v25467_v33, %v15244_v56 }
 0xf19   : > { %15308 = vst [vmem:[%s25471_s22 + $0xc8] sm:$0xff] %v15250_v49 }
 0xf1a   : > { %15307 = vst [vmem:[%s25471_s22 + $0xc0] sm:$0xff] %v15245_v2 }
 0xf1e   : > { %v19842_v12 = vpop.f32.mrb[138].mxu0 }
 0xf1f   : > { %v15260_v36 = vadd.f32 %v19842_v12, %v25467_v33  ;;  %v15254_v11 = vpop.f32.mrb[139].mxu0 }
 0xf20   : > { %v15255_v19 = vadd.f32 %v25467_v33, %v15254_v11 }
 0xf21   : > { %15310 = vst [vmem:[%s25471_s22 + $0xd8] sm:$0xff] %v15260_v36 }
 0xf22   : > { %15309 = vst [vmem:[%s25471_s22 + $0xd0] sm:$0xff] %v15255_v19 }
 0xf26   : > { %v19845_v63 = vpop.f32.mrb[140].mxu0 }
 0xf27   : > { %v15270_v59 = vadd.f32 %v19845_v63, %v25467_v33  ;;  %v15264_v9 = vpop.f32.mrb[141].mxu0 }
 0xf28   : > { %v15265_v29 = vadd.f32 %v25467_v33, %v15264_v9 }
 0xf29   : > { %15312 = vst [vmem:[%s25471_s22 + $0xe8] sm:$0xff] %v15270_v59 }
 0xf2a   : > { %15311 = vst [vmem:[%s25471_s22 + $0xe0] sm:$0xff] %v15265_v29 }
 0xf2e   : > { %v19848_v41 = vpop.f32.mrb[142].mxu0 }
 0xf2f   : > { %v15280_v39 = vadd.f32 %v19848_v41, %v25467_v33  ;;  %v15274_v21 = vpop.f32.mrb[143].mxu0 }
 0xf30   : > { %v15275_v52 = vadd.f32 %v25467_v33, %v15274_v21 }
 0xf31   : > { %15314 = vst [vmem:[%s25471_s22 + $0xf8] sm:$0xff] %v15280_v39 }
 0xf32   : > { %15313 = vst [vmem:[%s25471_s22 + $0xf0] sm:$0xff] %v15275_v52 }
 0xf33   : > { %21059 = shalt.err (!%p21056_p4)
}
 0xf34   : > { %s21060_s18 = scalar_lea.hbm %s25537_s20, 4096  ;;  %s21064_s21 = scalar_lea.hbm %s25594_s7, 8192 }
 0xf35   : > { %p21061_p7 = scmp.ne.s32.totalorder %s25537_s20, %s21060_s18  ;;  %p21065_p10 = scmp.lt.u32.totalorder %s25537_s20, %s25594_s7 }
 0xf36   : > { %p21066_p11 = scmp.lt.u32.totalorder %s21064_s21, %s21060_s18  ;;  %p21068_p13 = scmp.lt.u32.totalorder %s21060_s18, %s25537_s20 }
 0xf37   : > { %p21062_p8 = pnand %p21061_p7, %p21192_p5 }
 0xf38   : > { %p21067_p12 = por %p21066_p11, %p21065_p10 }
 0xf39   : > { %p21063_p9 = pneg %p21062_p8 }
 0xf3a   : > { %p21069_p0 = por %p21068_p13, %p21067_p12 }
 0xf3c   : > { %p21070_p1 = pnand %p21069_p0, %p21063_p9 }
 0xf3e   : > { %21073 = shalt.err (!%p21070_p1)
}
 0xf3f   : > { %s21112_s9 = smov 128   ;;  %s21113_s13 = smov 8  }
 0xf40   : > { %20875 = dma.vmem_to_hbm [thread:$0]  (%p21192_p5), %s25539_s8, 4096, %s25537_s20, %s25546_s28, %s21112_s9, %s21112_s9, %s21113_s13  }
 0xf41 PF: > { %p20881_p2 = scmp.ge.s32.totalorder %s21108_s27, 2  ;;  %s15362_s14 = sand.u32 1, %s21096_s24  }
 0xf42   : > { %s15363_s29 = scalar_lea.sflag [#allocation3], %s15362_s14 }
 0xf43   : > { %p20878_p3 = pnand %p20881_p2, %p21196_p6 }
 0xf45   : > { %21091 = dma.done.wait (!%p20878_p3), %s15363_s29, 4096  }
 0xf46   : > { %21093 = vsyncadd (!%p20878_p3), %s15363_s29, 4294963200  ;;  %p18_p4 = scmp.ge.s32.totalorder %s21179_s30, 4   ;;  %s26962_s24 = smov %s21100_s25 }
 0xf47   : > { %s26963_s25 = smov %s21104_s26  ;;  %s26964_s26 = smov %s21190_s10 }
 0xf48   : > { %s26965_s27 = smov %s21179_s30  ;;  %20 = sbr.rel (!%p18_p4) target bundleno = 3 (0x3), region = 100 }
 0xf4f   :  { %15368 = vsyncpa [#allocation3], 1 }
 0xf50   :  { %15370 = vsyncpa [#allocation3 + $0x1], 1 }

</bundles_post_ra>
